<compile_context>
chip_gen: v7x
topology: tpu7x:2x2x1
jax: 0.10.0
libtpu: 0.0.40
codegen_flags: <defaults>
</compile_context>

<pallas_src>
import functools

import jax
import jax.numpy as jnp
from jax.experimental import pallas as pl
from jax.experimental.pallas import tpu as pltpu

BN_EPS = 1e-5


def _pick_tile(total, candidates):
    for c in candidates:
        if total % c == 0:
            return c
    return total


# ---------------------------------------------------------------------------
# Generic conv-as-matmul kernel: out = relu?((x @ w) * scale + bias)
# Grid = (M "parallel", N "parallel", K "arbitrary"); f32 VMEM accumulator.
# ---------------------------------------------------------------------------
def _matmul_scale_bias_kernel(x_ref, w_ref, scale_ref, bias_ref, o_ref, acc_ref, *, relu):
    @pl.when(pl.program_id(2) == 0)
    def _():
        acc_ref[...] = jnp.zeros_like(acc_ref)

    acc_ref[...] += jnp.dot(x_ref[...], w_ref[...], preferred_element_type=jnp.float32)

    @pl.when(pl.program_id(2) == pl.num_programs(2) - 1)
    def _():
        r = acc_ref[...] * scale_ref[...] + bias_ref[...]
        if relu:
            r = jnp.maximum(r, 0.0)
        o_ref[...] = r.astype(o_ref.dtype)


def matmul_scale_bias(x, w, scale, bias, relu=True):
    """(M,K)@(K,N) * scale(1,N) + bias(1,N), optional ReLU.  bf16 in/out, f32 acc."""
    M, K = x.shape
    K2, N = w.shape
    assert K == K2
    TM = _pick_tile(M, (256, 128, 64, 32, 16, 8))
    TN = _pick_tile(N, (512, 256, 128))
    TK = _pick_tile(K, (2304, 1152, 512, 384, 256, 128))
    grid = (M // TM, N // TN, K // TK)

    scale = jnp.asarray(scale, jnp.float32).reshape(1, N)
    bias = jnp.asarray(bias, jnp.float32).reshape(1, N)

    cost = pl.CostEstimate(
        flops=2 * M * K * N,
        transcendentals=0,
        bytes_accessed=2 * (M * K + K * N + M * N) + 8 * N,
    )
    return pl.pallas_call(
        functools.partial(_matmul_scale_bias_kernel, relu=relu),
        out_shape=jax.ShapeDtypeStruct((M, N), jnp.bfloat16),
        grid=grid,
        in_specs=[
            pl.BlockSpec((TM, TK), lambda i, j, k: (i, k)),
            pl.BlockSpec((TK, TN), lambda i, j, k: (k, j)),
            pl.BlockSpec((1, TN), lambda i, j, k: (0, j)),
            pl.BlockSpec((1, TN), lambda i, j, k: (0, j)),
        ],
        out_specs=pl.BlockSpec((TM, TN), lambda i, j, k: (i, j)),
        scratch_shapes=[pltpu.VMEM((TM, TN), jnp.float32)],
        compiler_params=pltpu.CompilerParams(
            dimension_semantics=("parallel", "parallel", "arbitrary")),
        cost_estimate=cost,
    )(x.astype(jnp.bfloat16), w, scale, bias)


# ---------------------------------------------------------------------------
# layer0 conv1: both sensor branches in one kernel (two accumulated dots).
# ---------------------------------------------------------------------------
def _dual_matmul_scale_bias_kernel(x1_ref, x2_ref, w1_ref, w2_ref, s_ref, b_ref, o_ref):
    acc = jnp.dot(x1_ref[...], w1_ref[...], preferred_element_type=jnp.float32)
    acc = acc + jnp.dot(x2_ref[...], w2_ref[...], preferred_element_type=jnp.float32)
    o_ref[...] = jnp.maximum(acc * s_ref[...] + b_ref[...], 0.0).astype(o_ref.dtype)


def dual_matmul_scale_bias(x1, x2, w1, w2, scale, bias):
    M, K1 = x1.shape
    M2, K2 = x2.shape
    assert M == M2
    N = w1.shape[1]
    TM = _pick_tile(M, (256, 128, 64, 32, 16, 8))
    scale = jnp.asarray(scale, jnp.float32).reshape(1, N)
    bias = jnp.asarray(bias, jnp.float32).reshape(1, N)
    return pl.pallas_call(
        _dual_matmul_scale_bias_kernel,
        out_shape=jax.ShapeDtypeStruct((M, N), jnp.bfloat16),
        grid=(M // TM,),
        in_specs=[
            pl.BlockSpec((TM, K1), lambda i: (i, 0)),
            pl.BlockSpec((TM, K2), lambda i: (i, 0)),
            pl.BlockSpec((K1, N), lambda i: (0, 0)),
            pl.BlockSpec((K2, N), lambda i: (0, 0)),
            pl.BlockSpec((1, N), lambda i: (0, 0)),
            pl.BlockSpec((1, N), lambda i: (0, 0)),
        ],
        out_specs=pl.BlockSpec((TM, N), lambda i: (i, 0)),
        compiler_params=pltpu.CompilerParams(dimension_semantics=("parallel",)),
    )(x1.astype(jnp.bfloat16), x2.astype(jnp.bfloat16), w1, w2, scale, bias)


# ---------------------------------------------------------------------------
# MaxPool2d(3, stride=2, ceil_mode=True) on NHWC (bf16 in/out).
# ---------------------------------------------------------------------------
def _max9_kernel(*refs):
    *in_refs, o_ref = refs
    m = in_refs[0][...]
    for r in in_refs[1:]:
        m = jnp.maximum(m, r[...])
    o_ref[...] = m


def maxpool_3x3_s2_ceil(x):
    N, H, W, C = x.shape
    OH = -(-(H - 3) // 2) + 1  # ceil mode, no padding
    OW = -(-(W - 3) // 2) + 1
    pad_h = 2 * (OH - 1) + 3 - H
    pad_w = 2 * (OW - 1) + 3 - W
    # Inputs are post-ReLU (>= 0) and every ceil-mode window has >= 1 valid
    # element, so padding with 0 never changes the max (and avoids -inf in bf16).
    xp = jnp.pad(x, ((0, 0), (0, pad_h), (0, pad_w), (0, 0)), constant_values=0.0)
    wins = []
    for dy in range(3):
        for dx in range(3):
            wins.append(
                xp[:, dy:dy + 2 * (OH - 1) + 1:2, dx:dx + 2 * (OW - 1) + 1:2, :])
    spec = pl.BlockSpec((N, OH, OW, C), lambda i: (0, 0, 0, 0))
    return pl.pallas_call(
        _max9_kernel,
        out_shape=jax.ShapeDtypeStruct((N, OH, OW, C), x.dtype),
        grid=(1,),
        in_specs=[spec] * 9,
        out_specs=spec,
    )(*wins)


# ---------------------------------------------------------------------------
# Fused tail: layer3 conv (+BN+ReLU) -> linear1 -> linear2 (padded to 1024).
# layer3's weight is streamed over the K grid axis; the (M,1024)/(M,256)
# intermediates never leave VMEM.
# ---------------------------------------------------------------------------
def _tail_head_kernel(x_ref, w3_ref, s3_ref, b3_ref, w1_ref, b1_ref, w2_ref, b2_ref,
                      o_ref, acc_ref):
    @pl.when(pl.program_id(0) == 0)
    def _():
        acc_ref[...] = jnp.zeros_like(acc_ref)

    acc_ref[...] += jnp.dot(x_ref[...], w3_ref[...], preferred_element_type=jnp.float32)

    @pl.when(pl.program_id(0) == pl.num_programs(0) - 1)
    def _():
        h3 = jnp.maximum(acc_ref[...] * s3_ref[...] + b3_ref[...], 0.0).astype(w1_ref.dtype)
        h1 = jnp.dot(h3, w1_ref[...], preferred_element_type=jnp.float32) + b1_ref[...]
        h1 = h1.astype(w2_ref.dtype)
        out = jnp.dot(h1, w2_ref[...], preferred_element_type=jnp.float32) + b2_ref[...]
        o_ref[...] = out.astype(o_ref.dtype)


def tail_head(patches, layer3, linear1, linear2):
    w3, s3, b3 = layer3
    w1, b1 = linear1
    w2, b2 = linear2
    M, K = patches.shape
    N3 = w3.shape[1]
    N1 = w1.shape[1]
    NP = w2.shape[1]  # padded (multiple of 128) classifier width
    TK = _pick_tile(K, (1152, 512, 384, 256, 128))
    nk = K // TK

    s3 = jnp.asarray(s3, jnp.float32).reshape(1, N3)
    b3 = jnp.asarray(b3, jnp.float32).reshape(1, N3)
    b1 = jnp.asarray(b1, jnp.float32).reshape(1, N1)
    b2 = jnp.asarray(b2, jnp.float32).reshape(1, NP)

    cost = pl.CostEstimate(
        flops=2 * M * (K * N3 + N3 * N1 + N1 * NP),
        transcendentals=0,
        bytes_accessed=2 * (M * K + K * N3 + N3 * N1 + N1 * NP) + 4 * M * NP,
    )
    return pl.pallas_call(
        _tail_head_kernel,
        out_shape=jax.ShapeDtypeStruct((M, NP), jnp.float32),
        grid=(nk,),
        in_specs=[
            pl.BlockSpec((M, TK), lambda k: (0, k)),
            pl.BlockSpec((TK, N3), lambda k: (k, 0)),
            pl.BlockSpec((1, N3), lambda k: (0, 0)),
            pl.BlockSpec((1, N3), lambda k: (0, 0)),
            pl.BlockSpec((N3, N1), lambda k: (0, 0)),
            pl.BlockSpec((1, N1), lambda k: (0, 0)),
            pl.BlockSpec((N1, NP), lambda k: (0, 0)),
            pl.BlockSpec((1, NP), lambda k: (0, 0)),
        ],
        out_specs=pl.BlockSpec((M, NP), lambda k: (0, 0)),
        scratch_shapes=[pltpu.VMEM((M, N3), jnp.float32)],
        compiler_params=pltpu.CompilerParams(dimension_semantics=("arbitrary",)),
        cost_estimate=cost,
    )(patches.astype(jnp.bfloat16), w3, s3, b3, w1, b1, w2, b2)


# ---------------------------------------------------------------------------
# Conv = im2col (plain-JAX glue, bf16) + fused Pallas matmul/BN/ReLU.
# TODO(synk): im2col is still materialized by XLA outside the kernel; a true
# in-kernel shifted-window conv would need Mosaic-friendly strided reshapes.
# ---------------------------------------------------------------------------
def _im2col(x, ksize, stride, pad):
    N, H, W, C = x.shape
    xp = jnp.pad(x, ((0, 0), (pad, pad), (pad, pad), (0, 0)))
    Hp, Wp = H + 2 * pad, W + 2 * pad
    OH = (Hp - ksize) // stride + 1
    OW = (Wp - ksize) // stride + 1
    cols = []
    for dy in range(ksize):
        for dx in range(ksize):
            cols.append(
                xp[:, dy:dy + stride * (OH - 1) + 1:stride,
                   dx:dx + stride * (OW - 1) + 1:stride, :])
    patches = jnp.stack(cols, axis=3)  # (N, OH, OW, k*k, C), offset-major/channel-minor
    return patches.reshape(N * OH * OW, ksize * ksize * C), OH, OW


def conv_bn_relu(x, w_mat, bn_scale, bn_shift, stride):
    """3x3 conv (pad=1, no bias) + BN(eval) + ReLU.  x: NHWC bf16, w_mat: (9*Cin, Cout) bf16."""
    n = x.shape[0]
    patches, OH, OW = _im2col(x.astype(jnp.bfloat16), 3, stride, 1)
    out = matmul_scale_bias(patches, w_mat, bn_scale, bn_shift, relu=True)
    return out.reshape(n, OH, OW, w_mat.shape[1])


# ---------------------------------------------------------------------------
# Parameters (deterministic, synthetic).  Conv weights pre-transposed to
# (kh*kw*Cin, Cout) bf16, BN fused into scale/shift, layer0's two branches
# merged into 128-lane slabs (block-diagonal weights / per-branch operands).
# ---------------------------------------------------------------------------
def _conv_bn(key, cin, cout):
    kw_, kg_, kb_, km_, kv_ = jax.random.split(key, 5)
    w = jax.random.normal(kw_, (cout, cin, 3, 3), jnp.float32) * (2.0 / (cin * 9)) ** 0.5
    gamma = 1.0 + 0.1 * jax.random.normal(kg_, (cout,), jnp.float32)
    beta = 0.05 * jax.random.normal(kb_, (cout,), jnp.float32)
    mean = 0.05 * jax.random.normal(km_, (cout,), jnp.float32)
    var = 1.0 + 0.1 * jax.random.uniform(kv_, (cout,), jnp.float32)
    scale = gamma / jnp.sqrt(var + BN_EPS)
    shift = beta - mean * scale
    return w, scale, shift


def _to_mat(w):
    cout, cin, kh, kw = w.shape
    return jnp.transpose(w, (2, 3, 1, 0)).reshape(kh * kw * cin, cout)


def _merge_channels_blockdiag(w1, w2):
    """64->64 convs of both branches as one 128->128 conv, block-diag per spatial offset."""
    m1, m2 = _to_mat(w1), _to_mat(w2)
    kk = 9
    c1, o1 = m1.shape[0] // kk, m1.shape[1]
    c2, o2 = m2.shape[0] // kk, m2.shape[1]
    r1 = m1.reshape(kk, c1, o1)
    r2 = m2.reshape(kk, c2, o2)
    out = jnp.zeros((kk, c1 + c2, o1 + o2), jnp.float32)
    out = out.at[:, :c1, :o1].set(r1).at[:, c1:, o1:].set(r2)
    return out.reshape(kk * (c1 + c2), o1 + o2)


def make_params(key, num_classes):
    keys = jax.random.split(key, 12)
    c1a = _conv_bn(keys[0], 8, 64)
    c2a = _conv_bn(keys[1], 64, 64)
    c3a = _conv_bn(keys[2], 64, 64)
    c1b = _conv_bn(keys[3], 10, 64)
    c2b = _conv_bn(keys[4], 64, 64)
    c3b = _conv_bn(keys[5], 64, 64)

    # layer0 conv1: two branches kept as two operands; weights zero-extended to
    # the full 128 output lanes so both dots write one lane-dense slab.
    w1a = _to_mat(c1a[0])  # (72, 64)
    w1b = _to_mat(c1b[0])  # (90, 64)
    w1_full = jnp.concatenate([w1a, jnp.zeros_like(w1a)], axis=1)          # (72, 128)
    w2_full = jnp.concatenate([jnp.zeros_like(w1b), w1b], axis=1)          # (90, 128)
    l0_conv1 = (w1_full.astype(jnp.bfloat16), w2_full.astype(jnp.bfloat16),
                jnp.concatenate([c1a[1], c1b[1]]), jnp.concatenate([c1a[2], c1b[2]]))

    def pack_merged(pa, pb):
        wm = _merge_channels_blockdiag(pa[0], pb[0]).astype(jnp.bfloat16)
        return wm, jnp.concatenate([pa[1], pb[1]]), jnp.concatenate([pa[2], pb[2]])

    def pack(p):
        return _to_mat(p[0]).astype(jnp.bfloat16), p[1], p[2]

    # Classifier width padded to a multiple of 128 for lane-dense stores.
    n_pad = max(128, ((num_classes + 127) // 128) * 128)
    w2_lin = (jax.random.normal(keys[11], (256, num_classes), jnp.float32)
              * (1.0 / 256.0) ** 0.5)
    w2_padded = jnp.zeros((256, n_pad), jnp.float32).at[:, :num_classes].set(w2_lin)

    params = {
        "l0_conv1": l0_conv1,
        "l0_conv2": pack_merged(c2a, c2b),
        "l0_conv3": pack_merged(c3a, c3b),
        "layer1": pack(_conv_bn(keys[6], 128, 256)),
        "layer2": pack(_conv_bn(keys[7], 256, 512)),
        "layer3": pack(_conv_bn(keys[8], 512, 1024)),
        # Linear weights stored already transposed: (in_features, out_features), bf16.
        "linear1": (
            (jax.random.normal(keys[9], (1024, 256), jnp.float32)
             * (1.0 / 1024.0) ** 0.5).astype(jnp.bfloat16),
            0.01 * jax.random.normal(keys[10], (256,), jnp.float32),
        ),
        "linear2": (
            w2_padded.astype(jnp.bfloat16),
            jnp.zeros((n_pad,), jnp.float32),
        ),
    }
    return params


# ---------------------------------------------------------------------------
# Forward pass (matches SimpleNet.forward, eval mode).
# ---------------------------------------------------------------------------
def simplenet_forward(params, x_sen1_nchw, x_sen2_nchw, *, num_classes):
    # NCHW -> NHWC; bf16 at kernel boundaries (f32 accumulation inside kernels).
    x1 = jnp.transpose(x_sen1_nchw, (0, 2, 3, 1)).astype(jnp.bfloat16)
    x2 = jnp.transpose(x_sen2_nchw, (0, 2, 3, 1)).astype(jnp.bfloat16)

    # layer0 conv1 (stride 2): both sensor branches fused as one 128-lane slab
    # (channels 0..63 == sen1 branch, 64..127 == sen2 branch) so the later
    # torch.cat((x_sen1, x_sen2), dim=1) is already materialized in the layout.
    w1, w2, s, b = params["l0_conv1"]
    p1, OH, OW = _im2col(x1, 3, 2, 1)
    p2, _, _ = _im2col(x2, 3, 2, 1)
    x = dual_matmul_scale_bias(p1, p2, w1, w2, s, b)
    x = x.reshape(x1.shape[0], OH, OW, w1.shape[1])

    for name in ("l0_conv2", "l0_conv3"):             # conv2/conv3 (stride 1)
        wm, sc, sh = params[name]
        x = conv_bn_relu(x, wm, sc, sh, stride=1)
    x = maxpool_3x3_s2_ceil(x)                        # MaxPool2d(3, 2, ceil_mode=True)

    for name in ("layer1", "layer2"):                 # stride-2 convs
        wm, sc, sh = params[name]
        x = conv_bn_relu(x, wm, sc, sh, stride=2)

    # Fused tail: layer3 conv (stride 2 -> 1x1 spatial) + logits().
    # dropout1's output is discarded in the reference; dropout2 is identity (eval).
    p3, _, _ = _im2col(x, 3, 2, 1)                    # (N, 9*512)
    logits_padded = tail_head(p3, params["layer3"], params["linear1"], params["linear2"])
    return logits_padded[:, :num_classes]


if __name__ == "__main__":
    num_classes = 1000
    root = jax.random.PRNGKey(0)
    kp, kx1, kx2 = jax.random.split(root, 3)

    params = make_params(kp, num_classes)
    # 32x32 -> conv s2 (16) -> pool (8) -> s2 (4) -> s2 (2) -> s2 (1): 1x1x1024
    x_sen1 = jax.random.normal(kx1, (2, 8, 32, 32), jnp.float32)
    x_sen2 = jax.random.normal(kx2, (2, 10, 32, 32), jnp.float32)

    fwd = jax.jit(functools.partial(simplenet_forward, num_classes=num_classes))
    out = fwd(params, x_sen1, x_sen2)
    jax.block_until_ready(out)

    assert out.shape == (2, num_classes), out.shape
    assert bool(jnp.all(jnp.isfinite(out)))
    print("KERNEL_OK")
</pallas_src>

<mosaic_0001>
module attributes {stable_mosaic.version = 11 : i64} {
  func.func @_dual_matmul_scale_bias_kernel(%arg0: i32, %arg1: memref<256x72xbf16, #tpu.memory_space<vmem>>, %arg2: memref<256x90xbf16, #tpu.memory_space<vmem>>, %arg3: memref<72x128xbf16, #tpu.memory_space<vmem>>, %arg4: memref<90x128xbf16, #tpu.memory_space<vmem>>, %arg5: memref<1x128xf32, #tpu.memory_space<vmem>>, %arg6: memref<1x128xf32, #tpu.memory_space<vmem>>, %arg7: memref<256x128xbf16, #tpu.memory_space<vmem>>) attributes {dimension_semantics = [#tpu.dimension_semantics<parallel>], iteration_bounds = array<i64: 2>, scalar_prefetch = 0 : i64, scratch_operands = 0 : i64, tpu.core_type = #tpu.core_type<tc>, window_params = [{transform_indices = @transform_0, window_bounds = array<i64: 256, 72>}, {transform_indices = @transform_1, window_bounds = array<i64: 256, 90>}, {pipeline_mode = #tpu.pipeline_mode<synchronous>, transform_indices = @transform_2, window_bounds = array<i64: 72, 128>}, {pipeline_mode = #tpu.pipeline_mode<synchronous>, transform_indices = @transform_3, window_bounds = array<i64: 90, 128>}, {pipeline_mode = #tpu.pipeline_mode<synchronous>, transform_indices = @transform_4, window_bounds = array<i64: 1, 128>}, {pipeline_mode = #tpu.pipeline_mode<synchronous>, transform_indices = @transform_5, window_bounds = array<i64: 1, 128>}, {transform_indices = @transform_6, window_bounds = array<i64: 256, 128>}]} {
    %c0 = arith.constant 0 : index
    %c0_0 = arith.constant 0 : index
    %0 = vector.load %arg1[%c0, %c0_0] : memref<256x72xbf16, #tpu.memory_space<vmem>>, vector<256x72xbf16>
    %c0_1 = arith.constant 0 : index
    %c0_2 = arith.constant 0 : index
    %1 = vector.load %arg3[%c0_1, %c0_2] : memref<72x128xbf16, #tpu.memory_space<vmem>>, vector<72x128xbf16>
    %cst = arith.constant dense<0.000000e+00> : vector<256x128xf32>
    %2 = tpu.matmul %0, %1, %cst {dimension_numbers = #tpu.dot_dimension_numbers<[1], [0], [0], [1], [0, 0, 1, 1], [], []>} : vector<256x72xbf16>, vector<72x128xbf16>, vector<256x128xf32> -> vector<256x128xf32>
    %c0_3 = arith.constant 0 : index
    %c0_4 = arith.constant 0 : index
    %3 = vector.load %arg2[%c0_3, %c0_4] : memref<256x90xbf16, #tpu.memory_space<vmem>>, vector<256x90xbf16>
    %c0_5 = arith.constant 0 : index
    %c0_6 = arith.constant 0 : index
    %4 = vector.load %arg4[%c0_5, %c0_6] : memref<90x128xbf16, #tpu.memory_space<vmem>>, vector<90x128xbf16>
    %cst_7 = arith.constant dense<0.000000e+00> : vector<256x128xf32>
    %5 = tpu.matmul %3, %4, %cst_7 {dimension_numbers = #tpu.dot_dimension_numbers<[1], [0], [0], [1], [0, 0, 1, 1], [], []>} : vector<256x90xbf16>, vector<90x128xbf16>, vector<256x128xf32> -> vector<256x128xf32>
    %6 = arith.addf %2, %5 : vector<256x128xf32>
    %c0_8 = arith.constant 0 : index
    %c0_9 = arith.constant 0 : index
    %7 = vector.load %arg5[%c0_8, %c0_9] : memref<1x128xf32, #tpu.memory_space<vmem>>, vector<1x128xf32>
    %8 = vector.broadcast %7 : vector<1x128xf32> to vector<256x128xf32>
    %9 = arith.mulf %6, %8 : vector<256x128xf32>
    %c0_10 = arith.constant 0 : index
    %c0_11 = arith.constant 0 : index
    %10 = vector.load %arg6[%c0_10, %c0_11] : memref<1x128xf32, #tpu.memory_space<vmem>>, vector<1x128xf32>
    %11 = vector.broadcast %10 : vector<1x128xf32> to vector<256x128xf32>
    %12 = arith.addf %9, %11 : vector<256x128xf32>
    %cst_12 = arith.constant 0.000000e+00 : f32
    %13 = vector.broadcast %cst_12 : f32 to vector<256x128xf32>
    %14 = arith.maximumf %12, %13 : vector<256x128xf32>
    %15 = arith.truncf %14 : vector<256x128xf32> to vector<256x128xbf16>
    %c0_13 = arith.constant 0 : index
    %c0_14 = arith.constant 0 : index
    %16 = vector.load %arg7[%c0_13, %c0_14] : memref<256x128xbf16, #tpu.memory_space<vmem>>, vector<256x128xbf16>
    tpu.vector_store %arg7[%c0_13, %c0_14], %15 {strides = array<i32>} : memref<256x128xbf16, #tpu.memory_space<vmem>>, vector<256x128xbf16>,
    return
  }
  func.func @transform_0(%arg0: i32) -> (i32, i32) {
    %c0_i32 = arith.constant 0 : i32
    %c0_i32_0 = arith.constant 0 : i32
    return %arg0, %c0_i32 : i32, i32
  }
  func.func @transform_1(%arg0: i32) -> (i32, i32) {
    %c0_i32 = arith.constant 0 : i32
    %c0_i32_0 = arith.constant 0 : i32
    return %arg0, %c0_i32 : i32, i32
  }
  func.func @transform_2(%arg0: i32) -> (i32, i32) {
    %c0_i32 = arith.constant 0 : i32
    %c0_i32_0 = arith.constant 0 : i32
    %c0_i32_1 = arith.constant 0 : i32
    return %c0_i32, %c0_i32_0 : i32, i32
  }
  func.func @transform_3(%arg0: i32) -> (i32, i32) {
    %c0_i32 = arith.constant 0 : i32
    %c0_i32_0 = arith.constant 0 : i32
    %c0_i32_1 = arith.constant 0 : i32
    return %c0_i32, %c0_i32_0 : i32, i32
  }
  func.func @transform_4(%arg0: i32) -> (i32, i32) {
    %c0_i32 = arith.constant 0 : i32
    %c0_i32_0 = arith.constant 0 : i32
    %c0_i32_1 = arith.constant 0 : i32
    return %c0_i32, %c0_i32_0 : i32, i32
  }
  func.func @transform_5(%arg0: i32) -> (i32, i32) {
    %c0_i32 = arith.constant 0 : i32
    %c0_i32_0 = arith.constant 0 : i32
    %c0_i32_1 = arith.constant 0 : i32
    return %c0_i32, %c0_i32_0 : i32, i32
  }
  func.func @transform_6(%arg0: i32) -> (i32, i32) {
    %c0_i32 = arith.constant 0 : i32
    %c0_i32_0 = arith.constant 0 : i32
    return %arg0, %c0_i32 : i32, i32
  }
}

module attributes {stable_mosaic.version = 11 : i64} {
  func.func @_matmul_scale_bias_kernel(%arg0: i32, %arg1: i32, %arg2: i32, %arg3: memref<256x1152xbf16, #tpu.memory_space<vmem>>, %arg4: memref<1152x128xbf16, #tpu.memory_space<vmem>>, %arg5: memref<1x128xf32, #tpu.memory_space<vmem>>, %arg6: memref<1x128xf32, #tpu.memory_space<vmem>>, %arg7: memref<256x128xbf16, #tpu.memory_space<vmem>>, %arg8: memref<256x128xf32, #tpu.memory_space<vmem>>) attributes {dimension_semantics = [#tpu.dimension_semantics<parallel>, #tpu.dimension_semantics<parallel>, #tpu.dimension_semantics<arbitrary>], iteration_bounds = array<i64: 2, 1, 1>, scalar_prefetch = 0 : i64, scratch_operands = 1 : i64, tpu.core_type = #tpu.core_type<tc>, window_params = [{transform_indices = @transform_0, window_bounds = array<i64: 256, 1152>}, {transform_indices = @transform_1, window_bounds = array<i64: 1152, 128>}, {transform_indices = @transform_2, window_bounds = array<i64: 1, 128>}, {transform_indices = @transform_3, window_bounds = array<i64: 1, 128>}, {transform_indices = @transform_4, window_bounds = array<i64: 256, 128>}]} {
    %c0_i32 = arith.constant 0 : i32
    %0 = arith.cmpi eq, %arg2, %c0_i32 : i32
    %1 = arith.extui %0 : i1 to i32
    %c0_i32_0 = arith.constant 0 : i32
    %2 = arith.cmpi ne, %1, %c0_i32_0 : i32
    scf.if %2 {
      %cst_10 = arith.constant 0.000000e+00 : f32
      %12 = vector.broadcast %cst_10 : f32 to vector<256x128xf32>
      %c0_11 = arith.constant 0 : index
      %c0_12 = arith.constant 0 : index
      %13 = vector.load %arg8[%c0_11, %c0_12] : memref<256x128xf32, #tpu.memory_space<vmem>>, vector<256x128xf32>
      tpu.vector_store %arg8[%c0_11, %c0_12], %12 {strides = array<i32>} : memref<256x128xf32, #tpu.memory_space<vmem>>, vector<256x128xf32>,
    } else {
    }
    %c0 = arith.constant 0 : index
    %c0_1 = arith.constant 0 : index
    %3 = vector.load %arg8[%c0, %c0_1] : memref<256x128xf32, #tpu.memory_space<vmem>>, vector<256x128xf32>
    %c0_2 = arith.constant 0 : index
    %c0_3 = arith.constant 0 : index
    %4 = vector.load %arg3[%c0_2, %c0_3] : memref<256x1152xbf16, #tpu.memory_space<vmem>>, vector<256x1152xbf16>
    %c0_4 = arith.constant 0 : index
    %c0_5 = arith.constant 0 : index
    %5 = vector.load %arg4[%c0_4, %c0_5] : memref<1152x128xbf16, #tpu.memory_space<vmem>>, vector<1152x128xbf16>
    %cst = arith.constant dense<0.000000e+00> : vector<256x128xf32>
    %6 = tpu.matmul %4, %5, %cst {dimension_numbers = #tpu.dot_dimension_numbers<[1], [0], [0], [1], [0, 0, 1, 1], [], []>} : vector<256x1152xbf16>, vector<1152x128xbf16>, vector<256x128xf32> -> vector<256x128xf32>
    %7 = arith.addf %3, %6 : vector<256x128xf32>
    %c0_6 = arith.constant 0 : index
    %c0_7 = arith.constant 0 : index
    %8 = vector.load %arg8[%c0_6, %c0_7] : memref<256x128xf32, #tpu.memory_space<vmem>>, vector<256x128xf32>
    tpu.vector_store %arg8[%c0_6, %c0_7], %7 {strides = array<i32>} : memref<256x128xf32, #tpu.memory_space<vmem>>, vector<256x128xf32>,
    %c0_i32_8 = arith.constant 0 : i32
    %9 = arith.cmpi eq, %arg2, %c0_i32_8 : i32
    %10 = arith.extui %9 : i1 to i32
    %c0_i32_9 = arith.constant 0 : i32
    %11 = arith.cmpi ne, %10, %c0_i32_9 : i32
    scf.if %11 {
      %c0_10 = arith.constant 0 : index
      %c0_11 = arith.constant 0 : index
      %12 = vector.load %arg8[%c0_10, %c0_11] : memref<256x128xf32, #tpu.memory_space<vmem>>, vector<256x128xf32>
      %c0_12 = arith.constant 0 : index
      %c0_13 = arith.constant 0 : index
      %13 = vector.load %arg5[%c0_12, %c0_13] : memref<1x128xf32, #tpu.memory_space<vmem>>, vector<1x128xf32>
      %14 = vector.broadcast %13 : vector<1x128xf32> to vector<256x128xf32>
      %15 = arith.mulf %12, %14 : vector<256x128xf32>
      %c0_14 = arith.constant 0 : index
      %c0_15 = arith.constant 0 : index
      %16 = vector.load %arg6[%c0_14, %c0_15] : memref<1x128xf32, #tpu.memory_space<vmem>>, vector<1x128xf32>
      %17 = vector.broadcast %16 : vector<1x128xf32> to vector<256x128xf32>
      %18 = arith.addf %15, %17 : vector<256x128xf32>
      %cst_16 = arith.constant 0.000000e+00 : f32
      %19 = vector.broadcast %cst_16 : f32 to vector<256x128xf32>
      %20 = arith.maximumf %18, %19 : vector<256x128xf32>
      %21 = arith.truncf %20 : vector<256x128xf32> to vector<256x128xbf16>
      %c0_17 = arith.constant 0 : index
      %c0_18 = arith.constant 0 : index
      %22 = vector.load %arg7[%c0_17, %c0_18] : memref<256x128xbf16, #tpu.memory_space<vmem>>, vector<256x128xbf16>
      tpu.vector_store %arg7[%c0_17, %c0_18], %21 {strides = array<i32>} : memref<256x128xbf16, #tpu.memory_space<vmem>>, vector<256x128xbf16>,
    } else {
    }
    return
  }
  func.func @transform_0(%arg0: i32, %arg1: i32, %arg2: i32) -> (i32, i32) {
    %c0_i32 = arith.constant 0 : i32
    return %arg0, %arg2 : i32, i32
  }
  func.func @transform_1(%arg0: i32, %arg1: i32, %arg2: i32) -> (i32, i32) {
    %c0_i32 = arith.constant 0 : i32
    return %arg2, %arg1 : i32, i32
  }
  func.func @transform_2(%arg0: i32, %arg1: i32, %arg2: i32) -> (i32, i32) {
    %c0_i32 = arith.constant 0 : i32
    %c0_i32_0 = arith.constant 0 : i32
    return %c0_i32, %arg1 : i32, i32
  }
  func.func @transform_3(%arg0: i32, %arg1: i32, %arg2: i32) -> (i32, i32) {
    %c0_i32 = arith.constant 0 : i32
    %c0_i32_0 = arith.constant 0 : i32
    return %c0_i32, %arg1 : i32, i32
  }
  func.func @transform_4(%arg0: i32, %arg1: i32, %arg2: i32) -> (i32, i32) {
    %c0_i32 = arith.constant 0 : i32
    return %arg0, %arg1 : i32, i32
  }
}

module attributes {stable_mosaic.version = 11 : i64} {
  func.func @_max9_kernel(%arg0: i32, %arg1: memref<2x8x8x128xbf16, #tpu.memory_space<vmem>>, %arg2: memref<2x8x8x128xbf16, #tpu.memory_space<vmem>>, %arg3: memref<2x8x8x128xbf16, #tpu.memory_space<vmem>>, %arg4: memref<2x8x8x128xbf16, #tpu.memory_space<vmem>>, %arg5: memref<2x8x8x128xbf16, #tpu.memory_space<vmem>>, %arg6: memref<2x8x8x128xbf16, #tpu.memory_space<vmem>>, %arg7: memref<2x8x8x128xbf16, #tpu.memory_space<vmem>>, %arg8: memref<2x8x8x128xbf16, #tpu.memory_space<vmem>>, %arg9: memref<2x8x8x128xbf16, #tpu.memory_space<vmem>>, %arg10: memref<2x8x8x128xbf16, #tpu.memory_space<vmem>>) attributes {dimension_semantics = [#tpu.dimension_semantics<arbitrary>], iteration_bounds = array<i64: 1>, scalar_prefetch = 0 : i64, scratch_operands = 0 : i64, tpu.core_type = #tpu.core_type<tc>, window_params = [{pipeline_mode = #tpu.pipeline_mode<synchronous>, transform_indices = @transform_0, window_bounds = array<i64: 2, 8, 8, 128>}, {pipeline_mode = #tpu.pipeline_mode<synchronous>, transform_indices = @transform_1, window_bounds = array<i64: 2, 8, 8, 128>}, {pipeline_mode = #tpu.pipeline_mode<synchronous>, transform_indices = @transform_2, window_bounds = array<i64: 2, 8, 8, 128>}, {pipeline_mode = #tpu.pipeline_mode<synchronous>, transform_indices = @transform_3, window_bounds = array<i64: 2, 8, 8, 128>}, {pipeline_mode = #tpu.pipeline_mode<synchronous>, transform_indices = @transform_4, window_bounds = array<i64: 2, 8, 8, 128>}, {pipeline_mode = #tpu.pipeline_mode<synchronous>, transform_indices = @transform_5, window_bounds = array<i64: 2, 8, 8, 128>}, {pipeline_mode = #tpu.pipeline_mode<synchronous>, transform_indices = @transform_6, window_bounds = array<i64: 2, 8, 8, 128>}, {pipeline_mode = #tpu.pipeline_mode<synchronous>, transform_indices = @transform_7, window_bounds = array<i64: 2, 8, 8, 128>}, {pipeline_mode = #tpu.pipeline_mode<synchronous>, transform_indices = @transform_8, window_bounds = array<i64: 2, 8, 8, 128>}, {pipeline_mode = #tpu.pipeline_mode<synchronous>, transform_indices = @transform_9, window_bounds = array<i64: 2, 8, 8, 128>}]} {
    %c0 = arith.constant 0 : index
    %c0_0 = arith.constant 0 : index
    %c0_1 = arith.constant 0 : index
    %c0_2 = arith.constant 0 : index
    %0 = vector.load %arg1[%c0, %c0_0, %c0_1, %c0_2] : memref<2x8x8x128xbf16, #tpu.memory_space<vmem>>, vector<2x8x8x128xbf16>
    %c0_3 = arith.constant 0 : index
    %c0_4 = arith.constant 0 : index
    %c0_5 = arith.constant 0 : index
    %c0_6 = arith.constant 0 : index
    %1 = vector.load %arg2[%c0_3, %c0_4, %c0_5, %c0_6] : memref<2x8x8x128xbf16, #tpu.memory_space<vmem>>, vector<2x8x8x128xbf16>
    %2 = arith.maximumf %0, %1 : vector<2x8x8x128xbf16>
    %c0_7 = arith.constant 0 : index
    %c0_8 = arith.constant 0 : index
    %c0_9 = arith.constant 0 : index
    %c0_10 = arith.constant 0 : index
    %3 = vector.load %arg3[%c0_7, %c0_8, %c0_9, %c0_10] : memref<2x8x8x128xbf16, #tpu.memory_space<vmem>>, vector<2x8x8x128xbf16>
    %4 = arith.maximumf %2, %3 : vector<2x8x8x128xbf16>
    %c0_11 = arith.constant 0 : index
    %c0_12 = arith.constant 0 : index
    %c0_13 = arith.constant 0 : index
    %c0_14 = arith.constant 0 : index
    %5 = vector.load %arg4[%c0_11, %c0_12, %c0_13, %c0_14] : memref<2x8x8x128xbf16, #tpu.memory_space<vmem>>, vector<2x8x8x128xbf16>
    %6 = arith.maximumf %4, %5 : vector<2x8x8x128xbf16>
    %c0_15 = arith.constant 0 : index
    %c0_16 = arith.constant 0 : index
    %c0_17 = arith.constant 0 : index
    %c0_18 = arith.constant 0 : index
    %7 = vector.load %arg5[%c0_15, %c0_16, %c0_17, %c0_18] : memref<2x8x8x128xbf16, #tpu.memory_space<vmem>>, vector<2x8x8x128xbf16>
    %8 = arith.maximumf %6, %7 : vector<2x8x8x128xbf16>
    %c0_19 = arith.constant 0 : index
    %c0_20 = arith.constant 0 : index
    %c0_21 = arith.constant 0 : index
    %c0_22 = arith.constant 0 : index
    %9 = vector.load %arg6[%c0_19, %c0_20, %c0_21, %c0_22] : memref<2x8x8x128xbf16, #tpu.memory_space<vmem>>, vector<2x8x8x128xbf16>
    %10 = arith.maximumf %8, %9 : vector<2x8x8x128xbf16>
    %c0_23 = arith.constant 0 : index
    %c0_24 = arith.constant 0 : index
    %c0_25 = arith.constant 0 : index
    %c0_26 = arith.constant 0 : index
    %11 = vector.load %arg7[%c0_23, %c0_24, %c0_25, %c0_26] : memref<2x8x8x128xbf16, #tpu.memory_space<vmem>>, vector<2x8x8x128xbf16>
    %12 = arith.maximumf %10, %11 : vector<2x8x8x128xbf16>
    %c0_27 = arith.constant 0 : index
    %c0_28 = arith.constant 0 : index
    %c0_29 = arith.constant 0 : index
    %c0_30 = arith.constant 0 : index
    %13 = vector.load %arg8[%c0_27, %c0_28, %c0_29, %c0_30] : memref<2x8x8x128xbf16, #tpu.memory_space<vmem>>, vector<2x8x8x128xbf16>
    %14 = arith.maximumf %12, %13 : vector<2x8x8x128xbf16>
    %c0_31 = arith.constant 0 : index
    %c0_32 = arith.constant 0 : index
    %c0_33 = arith.constant 0 : index
    %c0_34 = arith.constant 0 : index
    %15 = vector.load %arg9[%c0_31, %c0_32, %c0_33, %c0_34] : memref<2x8x8x128xbf16, #tpu.memory_space<vmem>>, vector<2x8x8x128xbf16>
    %16 = arith.maximumf %14, %15 : vector<2x8x8x128xbf16>
    %c0_35 = arith.constant 0 : index
    %c0_36 = arith.constant 0 : index
    %c0_37 = arith.constant 0 : index
    %c0_38 = arith.constant 0 : index
    %17 = vector.load %arg10[%c0_35, %c0_36, %c0_37, %c0_38] : memref<2x8x8x128xbf16, #tpu.memory_space<vmem>>, vector<2x8x8x128xbf16>
    tpu.vector_store %arg10[%c0_35, %c0_36, %c0_37, %c0_38], %16 {strides = array<i32>} : memref<2x8x8x128xbf16, #tpu.memory_space<vmem>>, vector<2x8x8x128xbf16>,
    return
  }
  func.func @transform_0(%arg0: i32) -> (i32, i32, i32, i32) {
    %c0_i32 = arith.constant 0 : i32
    %c0_i32_0 = arith.constant 0 : i32
    %c0_i32_1 = arith.constant 0 : i32
    %c0_i32_2 = arith.constant 0 : i32
    %c0_i32_3 = arith.constant 0 : i32
    return %c0_i32, %c0_i32_0, %c0_i32_1, %c0_i32_2 : i32, i32, i32, i32
  }
  func.func @transform_1(%arg0: i32) -> (i32, i32, i32, i32) {
    %c0_i32 = arith.constant 0 : i32
    %c0_i32_0 = arith.constant 0 : i32
    %c0_i32_1 = arith.constant 0 : i32
    %c0_i32_2 = arith.constant 0 : i32
    %c0_i32_3 = arith.constant 0 : i32
    return %c0_i32, %c0_i32_0, %c0_i32_1, %c0_i32_2 : i32, i32, i32, i32
  }
  func.func @transform_2(%arg0: i32) -> (i32, i32, i32, i32) {
    %c0_i32 = arith.constant 0 : i32
    %c0_i32_0 = arith.constant 0 : i32
    %c0_i32_1 = arith.constant 0 : i32
    %c0_i32_2 = arith.constant 0 : i32
    %c0_i32_3 = arith.constant 0 : i32
    return %c0_i32, %c0_i32_0, %c0_i32_1, %c0_i32_2 : i32, i32, i32, i32
  }
  func.func @transform_3(%arg0: i32) -> (i32, i32, i32, i32) {
    %c0_i32 = arith.constant 0 : i32
    %c0_i32_0 = arith.constant 0 : i32
    %c0_i32_1 = arith.constant 0 : i32
    %c0_i32_2 = arith.constant 0 : i32
    %c0_i32_3 = arith.constant 0 : i32
    return %c0_i32, %c0_i32_0, %c0_i32_1, %c0_i32_2 : i32, i32, i32, i32
  }
  func.func @transform_4(%arg0: i32) -> (i32, i32, i32, i32) {
    %c0_i32 = arith.constant 0 : i32
    %c0_i32_0 = arith.constant 0 : i32
    %c0_i32_1 = arith.constant 0 : i32
    %c0_i32_2 = arith.constant 0 : i32
    %c0_i32_3 = arith.constant 0 : i32
    return %c0_i32, %c0_i32_0, %c0_i32_1, %c0_i32_2 : i32, i32, i32, i32
  }
  func.func @transform_5(%arg0: i32) -> (i32, i32, i32, i32) {
    %c0_i32 = arith.constant 0 : i32
    %c0_i32_0 = arith.constant 0 : i32
    %c0_i32_1 = arith.constant 0 : i32
    %c0_i32_2 = arith.constant 0 : i32
    %c0_i32_3 = arith.constant 0 : i32
    return %c0_i32, %c0_i32_0, %c0_i32_1, %c0_i32_2 : i32, i32, i32, i32
  }
  func.func @transform_6(%arg0: i32) -> (i32, i32, i32, i32) {
    %c0_i32 = arith.constant 0 : i32
    %c0_i32_0 = arith.constant 0 : i32
    %c0_i32_1 = arith.constant 0 : i32
    %c0_i32_2 = arith.constant 0 : i32
    %c0_i32_3 = arith.constant 0 : i32
    return %c0_i32, %c0_i32_0, %c0_i32_1, %c0_i32_2 : i32, i32, i32, i32
  }
  func.func @transform_7(%arg0: i32) -> (i32, i32, i32, i32) {
    %c0_i32 = arith.constant 0 : i32
    %c0_i32_0 = arith.constant 0 : i32
    %c0_i32_1 = arith.constant 0 : i32
    %c0_i32_2 = arith.constant 0 : i32
    %c0_i32_3 = arith.constant 0 : i32
    return %c0_i32, %c0_i32_0, %c0_i32_1, %c0_i32_2 : i32, i32, i32, i32
  }
  func.func @transform_8(%arg0: i32) -> (i32, i32, i32, i32) {
    %c0_i32 = arith.constant 0 : i32
    %c0_i32_0 = arith.constant 0 : i32
    %c0_i32_1 = arith.constant 0 : i32
    %c0_i32_2 = arith.constant 0 : i32
    %c0_i32_3 = arith.constant 0 : i32
    return %c0_i32, %c0_i32_0, %c0_i32_1, %c0_i32_2 : i32, i32, i32, i32
  }
  func.func @transform_9(%arg0: i32) -> (i32, i32, i32, i32) {
    %c0_i32 = arith.constant 0 : i32
    %c0_i32_0 = arith.constant 0 : i32
    %c0_i32_1 = arith.constant 0 : i32
    %c0_i32_2 = arith.constant 0 : i32
    %c0_i32_3 = arith.constant 0 : i32
    return %c0_i32, %c0_i32_0, %c0_i32_1, %c0_i32_2 : i32, i32, i32, i32
  }
}

module attributes {stable_mosaic.version = 11 : i64} {
  func.func @_matmul_scale_bias_kernel(%arg0: i32, %arg1: i32, %arg2: i32, %arg3: memref<32x1152xbf16, #tpu.memory_space<vmem>>, %arg4: memref<1152x256xbf16, #tpu.memory_space<vmem>>, %arg5: memref<1x256xf32, #tpu.memory_space<vmem>>, %arg6: memref<1x256xf32, #tpu.memory_space<vmem>>, %arg7: memref<32x256xbf16, #tpu.memory_space<vmem>>, %arg8: memref<32x256xf32, #tpu.memory_space<vmem>>) attributes {dimension_semantics = [#tpu.dimension_semantics<parallel>, #tpu.dimension_semantics<parallel>, #tpu.dimension_semantics<arbitrary>], iteration_bounds = array<i64: 1, 1, 1>, scalar_prefetch = 0 : i64, scratch_operands = 1 : i64, tpu.core_type = #tpu.core_type<tc>, window_params = [{transform_indices = @transform_0, window_bounds = array<i64: 32, 1152>}, {transform_indices = @transform_1, window_bounds = array<i64: 1152, 256>}, {transform_indices = @transform_2, window_bounds = array<i64: 1, 256>}, {transform_indices = @transform_3, window_bounds = array<i64: 1, 256>}, {transform_indices = @transform_4, window_bounds = array<i64: 32, 256>}]} {
    %c0_i32 = arith.constant 0 : i32
    %0 = arith.cmpi eq, %arg2, %c0_i32 : i32
    %1 = arith.extui %0 : i1 to i32
    %c0_i32_0 = arith.constant 0 : i32
    %2 = arith.cmpi ne, %1, %c0_i32_0 : i32
    scf.if %2 {
      %cst_10 = arith.constant 0.000000e+00 : f32
      %12 = vector.broadcast %cst_10 : f32 to vector<32x256xf32>
      %c0_11 = arith.constant 0 : index
      %c0_12 = arith.constant 0 : index
      %13 = vector.load %arg8[%c0_11, %c0_12] : memref<32x256xf32, #tpu.memory_space<vmem>>, vector<32x256xf32>
      tpu.vector_store %arg8[%c0_11, %c0_12], %12 {strides = array<i32>} : memref<32x256xf32, #tpu.memory_space<vmem>>, vector<32x256xf32>,
    } else {
    }
    %c0 = arith.constant 0 : index
    %c0_1 = arith.constant 0 : index
    %3 = vector.load %arg8[%c0, %c0_1] : memref<32x256xf32, #tpu.memory_space<vmem>>, vector<32x256xf32>
    %c0_2 = arith.constant 0 : index
    %c0_3 = arith.constant 0 : index
    %4 = vector.load %arg3[%c0_2, %c0_3] : memref<32x1152xbf16, #tpu.memory_space<vmem>>, vector<32x1152xbf16>
    %c0_4 = arith.constant 0 : index
    %c0_5 = arith.constant 0 : index
    %5 = vector.load %arg4[%c0_4, %c0_5] : memref<1152x256xbf16, #tpu.memory_space<vmem>>, vector<1152x256xbf16>
    %cst = arith.constant dense<0.000000e+00> : vector<32x256xf32>
    %6 = tpu.matmul %4, %5, %cst {dimension_numbers = #tpu.dot_dimension_numbers<[1], [0], [0], [1], [0, 0, 1, 1], [], []>} : vector<32x1152xbf16>, vector<1152x256xbf16>, vector<32x256xf32> -> vector<32x256xf32>
    %7 = arith.addf %3, %6 : vector<32x256xf32>
    %c0_6 = arith.constant 0 : index
    %c0_7 = arith.constant 0 : index
    %8 = vector.load %arg8[%c0_6, %c0_7] : memref<32x256xf32, #tpu.memory_space<vmem>>, vector<32x256xf32>
    tpu.vector_store %arg8[%c0_6, %c0_7], %7 {strides = array<i32>} : memref<32x256xf32, #tpu.memory_space<vmem>>, vector<32x256xf32>,
    %c0_i32_8 = arith.constant 0 : i32
    %9 = arith.cmpi eq, %arg2, %c0_i32_8 : i32
    %10 = arith.extui %9 : i1 to i32
    %c0_i32_9 = arith.constant 0 : i32
    %11 = arith.cmpi ne, %10, %c0_i32_9 : i32
    scf.if %11 {
      %c0_10 = arith.constant 0 : index
      %c0_11 = arith.constant 0 : index
      %12 = vector.load %arg8[%c0_10, %c0_11] : memref<32x256xf32, #tpu.memory_space<vmem>>, vector<32x256xf32>
      %c0_12 = arith.constant 0 : index
      %c0_13 = arith.constant 0 : index
      %13 = vector.load %arg5[%c0_12, %c0_13] : memref<1x256xf32, #tpu.memory_space<vmem>>, vector<1x256xf32>
      %14 = vector.broadcast %13 : vector<1x256xf32> to vector<32x256xf32>
      %15 = arith.mulf %12, %14 : vector<32x256xf32>
      %c0_14 = arith.constant 0 : index
      %c0_15 = arith.constant 0 : index
      %16 = vector.load %arg6[%c0_14, %c0_15] : memref<1x256xf32, #tpu.memory_space<vmem>>, vector<1x256xf32>
      %17 = vector.broadcast %16 : vector<1x256xf32> to vector<32x256xf32>
      %18 = arith.addf %15, %17 : vector<32x256xf32>
      %cst_16 = arith.constant 0.000000e+00 : f32
      %19 = vector.broadcast %cst_16 : f32 to vector<32x256xf32>
      %20 = arith.maximumf %18, %19 : vector<32x256xf32>
      %21 = arith.truncf %20 : vector<32x256xf32> to vector<32x256xbf16>
      %c0_17 = arith.constant 0 : index
      %c0_18 = arith.constant 0 : index
      %22 = vector.load %arg7[%c0_17, %c0_18] : memref<32x256xbf16, #tpu.memory_space<vmem>>, vector<32x256xbf16>
      tpu.vector_store %arg7[%c0_17, %c0_18], %21 {strides = array<i32>} : memref<32x256xbf16, #tpu.memory_space<vmem>>, vector<32x256xbf16>,
    } else {
    }
    return
  }
  func.func @transform_0(%arg0: i32, %arg1: i32, %arg2: i32) -> (i32, i32) {
    %c0_i32 = arith.constant 0 : i32
    return %arg0, %arg2 : i32, i32
  }
  func.func @transform_1(%arg0: i32, %arg1: i32, %arg2: i32) -> (i32, i32) {
    %c0_i32 = arith.constant 0 : i32
    return %arg2, %arg1 : i32, i32
  }
  func.func @transform_2(%arg0: i32, %arg1: i32, %arg2: i32) -> (i32, i32) {
    %c0_i32 = arith.constant 0 : i32
    %c0_i32_0 = arith.constant 0 : i32
    return %c0_i32, %arg1 : i32, i32
  }
  func.func @transform_3(%arg0: i32, %arg1: i32, %arg2: i32) -> (i32, i32) {
    %c0_i32 = arith.constant 0 : i32
    %c0_i32_0 = arith.constant 0 : i32
    return %c0_i32, %arg1 : i32, i32
  }
  func.func @transform_4(%arg0: i32, %arg1: i32, %arg2: i32) -> (i32, i32) {
    %c0_i32 = arith.constant 0 : i32
    return %arg0, %arg1 : i32, i32
  }
}

module attributes {stable_mosaic.version = 11 : i64} {
  func.func @_matmul_scale_bias_kernel(%arg0: i32, %arg1: i32, %arg2: i32, %arg3: memref<8x2304xbf16, #tpu.memory_space<vmem>>, %arg4: memref<2304x512xbf16, #tpu.memory_space<vmem>>, %arg5: memref<1x512xf32, #tpu.memory_space<vmem>>, %arg6: memref<1x512xf32, #tpu.memory_space<vmem>>, %arg7: memref<8x512xbf16, #tpu.memory_space<vmem>>, %arg8: memref<8x512xf32, #tpu.memory_space<vmem>>) attributes {dimension_semantics = [#tpu.dimension_semantics<parallel>, #tpu.dimension_semantics<parallel>, #tpu.dimension_semantics<arbitrary>], iteration_bounds = array<i64: 1, 1, 1>, scalar_prefetch = 0 : i64, scratch_operands = 1 : i64, tpu.core_type = #tpu.core_type<tc>, window_params = [{transform_indices = @transform_0, window_bounds = array<i64: 8, 2304>}, {transform_indices = @transform_1, window_bounds = array<i64: 2304, 512>}, {transform_indices = @transform_2, window_bounds = array<i64: 1, 512>}, {transform_indices = @transform_3, window_bounds = array<i64: 1, 512>}, {transform_indices = @transform_4, window_bounds = array<i64: 8, 512>}]} {
    %c0_i32 = arith.constant 0 : i32
    %0 = arith.cmpi eq, %arg2, %c0_i32 : i32
    %1 = arith.extui %0 : i1 to i32
    %c0_i32_0 = arith.constant 0 : i32
    %2 = arith.cmpi ne, %1, %c0_i32_0 : i32
    scf.if %2 {
      %cst_10 = arith.constant 0.000000e+00 : f32
      %12 = vector.broadcast %cst_10 : f32 to vector<8x512xf32>
      %c0_11 = arith.constant 0 : index
      %c0_12 = arith.constant 0 : index
      %13 = vector.load %arg8[%c0_11, %c0_12] : memref<8x512xf32, #tpu.memory_space<vmem>>, vector<8x512xf32>
      tpu.vector_store %arg8[%c0_11, %c0_12], %12 {strides = array<i32>} : memref<8x512xf32, #tpu.memory_space<vmem>>, vector<8x512xf32>,
    } else {
    }
    %c0 = arith.constant 0 : index
    %c0_1 = arith.constant 0 : index
    %3 = vector.load %arg8[%c0, %c0_1] : memref<8x512xf32, #tpu.memory_space<vmem>>, vector<8x512xf32>
    %c0_2 = arith.constant 0 : index
    %c0_3 = arith.constant 0 : index
    %4 = vector.load %arg3[%c0_2, %c0_3] : memref<8x2304xbf16, #tpu.memory_space<vmem>>, vector<8x2304xbf16>
    %c0_4 = arith.constant 0 : index
    %c0_5 = arith.constant 0 : index
    %5 = vector.load %arg4[%c0_4, %c0_5] : memref<2304x512xbf16, #tpu.memory_space<vmem>>, vector<2304x512xbf16>
    %cst = arith.constant dense<0.000000e+00> : vector<8x512xf32>
    %6 = tpu.matmul %4, %5, %cst {dimension_numbers = #tpu.dot_dimension_numbers<[1], [0], [0], [1], [0, 0, 1, 1], [], []>} : vector<8x2304xbf16>, vector<2304x512xbf16>, vector<8x512xf32> -> vector<8x512xf32>
    %7 = arith.addf %3, %6 : vector<8x512xf32>
    %c0_6 = arith.constant 0 : index
    %c0_7 = arith.constant 0 : index
    %8 = vector.load %arg8[%c0_6, %c0_7] : memref<8x512xf32, #tpu.memory_space<vmem>>, vector<8x512xf32>
    tpu.vector_store %arg8[%c0_6, %c0_7], %7 {strides = array<i32>} : memref<8x512xf32, #tpu.memory_space<vmem>>, vector<8x512xf32>,
    %c0_i32_8 = arith.constant 0 : i32
    %9 = arith.cmpi eq, %arg2, %c0_i32_8 : i32
    %10 = arith.extui %9 : i1 to i32
    %c0_i32_9 = arith.constant 0 : i32
    %11 = arith.cmpi ne, %10, %c0_i32_9 : i32
    scf.if %11 {
      %c0_10 = arith.constant 0 : index
      %c0_11 = arith.constant 0 : index
      %12 = vector.load %arg8[%c0_10, %c0_11] : memref<8x512xf32, #tpu.memory_space<vmem>>, vector<8x512xf32>
      %c0_12 = arith.constant 0 : index
      %c0_13 = arith.constant 0 : index
      %13 = vector.load %arg5[%c0_12, %c0_13] : memref<1x512xf32, #tpu.memory_space<vmem>>, vector<1x512xf32>
      %14 = vector.broadcast %13 : vector<1x512xf32> to vector<8x512xf32>
      %15 = arith.mulf %12, %14 : vector<8x512xf32>
      %c0_14 = arith.constant 0 : index
      %c0_15 = arith.constant 0 : index
      %16 = vector.load %arg6[%c0_14, %c0_15] : memref<1x512xf32, #tpu.memory_space<vmem>>, vector<1x512xf32>
      %17 = vector.broadcast %16 : vector<1x512xf32> to vector<8x512xf32>
      %18 = arith.addf %15, %17 : vector<8x512xf32>
      %cst_16 = arith.constant 0.000000e+00 : f32
      %19 = vector.broadcast %cst_16 : f32 to vector<8x512xf32>
      %20 = arith.maximumf %18, %19 : vector<8x512xf32>
      %21 = arith.truncf %20 : vector<8x512xf32> to vector<8x512xbf16>
      %c0_17 = arith.constant 0 : index
      %c0_18 = arith.constant 0 : index
      %22 = vector.load %arg7[%c0_17, %c0_18] : memref<8x512xbf16, #tpu.memory_space<vmem>>, vector<8x512xbf16>
      tpu.vector_store %arg7[%c0_17, %c0_18], %21 {strides = array<i32>} : memref<8x512xbf16, #tpu.memory_space<vmem>>, vector<8x512xbf16>,
    } else {
    }
    return
  }
  func.func @transform_0(%arg0: i32, %arg1: i32, %arg2: i32) -> (i32, i32) {
    %c0_i32 = arith.constant 0 : i32
    return %arg0, %arg2 : i32, i32
  }
  func.func @transform_1(%arg0: i32, %arg1: i32, %arg2: i32) -> (i32, i32) {
    %c0_i32 = arith.constant 0 : i32
    return %arg2, %arg1 : i32, i32
  }
  func.func @transform_2(%arg0: i32, %arg1: i32, %arg2: i32) -> (i32, i32) {
    %c0_i32 = arith.constant 0 : i32
    %c0_i32_0 = arith.constant 0 : i32
    return %c0_i32, %arg1 : i32, i32
  }
  func.func @transform_3(%arg0: i32, %arg1: i32, %arg2: i32) -> (i32, i32) {
    %c0_i32 = arith.constant 0 : i32
    %c0_i32_0 = arith.constant 0 : i32
    return %c0_i32, %arg1 : i32, i32
  }
  func.func @transform_4(%arg0: i32, %arg1: i32, %arg2: i32) -> (i32, i32) {
    %c0_i32 = arith.constant 0 : i32
    return %arg0, %arg1 : i32, i32
  }
}

module attributes {stable_mosaic.version = 11 : i64} {
  func.func @_tail_head_kernel(%arg0: i32, %arg1: memref<2x1152xbf16, #tpu.memory_space<vmem>>, %arg2: memref<1152x1024xbf16, #tpu.memory_space<vmem>>, %arg3: memref<1x1024xf32, #tpu.memory_space<vmem>>, %arg4: memref<1x1024xf32, #tpu.memory_space<vmem>>, %arg5: memref<1024x256xbf16, #tpu.memory_space<vmem>>, %arg6: memref<1x256xf32, #tpu.memory_space<vmem>>, %arg7: memref<256x1024xbf16, #tpu.memory_space<vmem>>, %arg8: memref<1x1024xf32, #tpu.memory_space<vmem>>, %arg9: memref<2x1024xf32, #tpu.memory_space<vmem>>, %arg10: memref<2x1024xf32, #tpu.memory_space<vmem>>) attributes {dimension_semantics = [#tpu.dimension_semantics<arbitrary>], iteration_bounds = array<i64: 4>, scalar_prefetch = 0 : i64, scratch_operands = 1 : i64, tpu.core_type = #tpu.core_type<tc>, window_params = [{transform_indices = @transform_0, window_bounds = array<i64: 2, 1152>}, {transform_indices = @transform_1, window_bounds = array<i64: 1152, 1024>}, {pipeline_mode = #tpu.pipeline_mode<synchronous>, transform_indices = @transform_2, window_bounds = array<i64: 1, 1024>}, {pipeline_mode = #tpu.pipeline_mode<synchronous>, transform_indices = @transform_3, window_bounds = array<i64: 1, 1024>}, {pipeline_mode = #tpu.pipeline_mode<synchronous>, transform_indices = @transform_4, window_bounds = array<i64: 1024, 256>}, {pipeline_mode = #tpu.pipeline_mode<synchronous>, transform_indices = @transform_5, window_bounds = array<i64: 1, 256>}, {pipeline_mode = #tpu.pipeline_mode<synchronous>, transform_indices = @transform_6, window_bounds = array<i64: 256, 1024>}, {pipeline_mode = #tpu.pipeline_mode<synchronous>, transform_indices = @transform_7, window_bounds = array<i64: 1, 1024>}, {pipeline_mode = #tpu.pipeline_mode<synchronous>, transform_indices = @transform_8, window_bounds = array<i64: 2, 1024>}]} {
    %c0_i32 = arith.constant 0 : i32
    %0 = arith.cmpi eq, %arg0, %c0_i32 : i32
    %1 = arith.extui %0 : i1 to i32
    %c0_i32_0 = arith.constant 0 : i32
    %2 = arith.cmpi ne, %1, %c0_i32_0 : i32
    scf.if %2 {
      %cst_9 = arith.constant 0.000000e+00 : f32
      %12 = vector.broadcast %cst_9 : f32 to vector<2x1024xf32>
      %c0_10 = arith.constant 0 : index
      %c0_11 = arith.constant 0 : index
      %13 = vector.load %arg10[%c0_10, %c0_11] : memref<2x1024xf32, #tpu.memory_space<vmem>>, vector<2x1024xf32>
      tpu.vector_store %arg10[%c0_10, %c0_11], %12 {strides = array<i32>} : memref<2x1024xf32, #tpu.memory_space<vmem>>, vector<2x1024xf32>,
    } else {
    }
    %c0 = arith.constant 0 : index
    %c0_1 = arith.constant 0 : index
    %3 = vector.load %arg10[%c0, %c0_1] : memref<2x1024xf32, #tpu.memory_space<vmem>>, vector<2x1024xf32>
    %c0_2 = arith.constant 0 : index
    %c0_3 = arith.constant 0 : index
    %4 = vector.load %arg1[%c0_2, %c0_3] : memref<2x1152xbf16, #tpu.memory_space<vmem>>, vector<2x1152xbf16>
    %c0_4 = arith.constant 0 : index
    %c0_5 = arith.constant 0 : index
    %5 = vector.load %arg2[%c0_4, %c0_5] : memref<1152x1024xbf16, #tpu.memory_space<vmem>>, vector<1152x1024xbf16>
    %cst = arith.constant dense<0.000000e+00> : vector<2x1024xf32>
    %6 = tpu.matmul %4, %5, %cst {dimension_numbers = #tpu.dot_dimension_numbers<[1], [0], [0], [1], [0, 0, 1, 1], [], []>} : vector<2x1152xbf16>, vector<1152x1024xbf16>, vector<2x1024xf32> -> vector<2x1024xf32>
    %7 = arith.addf %3, %6 : vector<2x1024xf32>
    %c0_6 = arith.constant 0 : index
    %c0_7 = arith.constant 0 : index
    %8 = vector.load %arg10[%c0_6, %c0_7] : memref<2x1024xf32, #tpu.memory_space<vmem>>, vector<2x1024xf32>
    tpu.vector_store %arg10[%c0_6, %c0_7], %7 {strides = array<i32>} : memref<2x1024xf32, #tpu.memory_space<vmem>>, vector<2x1024xf32>,
    %c3_i32 = arith.constant 3 : i32
    %9 = arith.cmpi eq, %arg0, %c3_i32 : i32
    %10 = arith.extui %9 : i1 to i32
    %c0_i32_8 = arith.constant 0 : i32
    %11 = arith.cmpi ne, %10, %c0_i32_8 : i32
    scf.if %11 {
      %c0_9 = arith.constant 0 : index
      %c0_10 = arith.constant 0 : index
      %12 = vector.load %arg10[%c0_9, %c0_10] : memref<2x1024xf32, #tpu.memory_space<vmem>>, vector<2x1024xf32>
      %c0_11 = arith.constant 0 : index
      %c0_12 = arith.constant 0 : index
      %13 = vector.load %arg3[%c0_11, %c0_12] : memref<1x1024xf32, #tpu.memory_space<vmem>>, vector<1x1024xf32>
      %14 = vector.broadcast %13 : vector<1x1024xf32> to vector<2x1024xf32>
      %15 = arith.mulf %12, %14 : vector<2x1024xf32>
      %c0_13 = arith.constant 0 : index
      %c0_14 = arith.constant 0 : index
      %16 = vector.load %arg4[%c0_13, %c0_14] : memref<1x1024xf32, #tpu.memory_space<vmem>>, vector<1x1024xf32>
      %17 = vector.broadcast %16 : vector<1x1024xf32> to vector<2x1024xf32>
      %18 = arith.addf %15, %17 : vector<2x1024xf32>
      %cst_15 = arith.constant 0.000000e+00 : f32
      %19 = vector.broadcast %cst_15 : f32 to vector<2x1024xf32>
      %20 = arith.maximumf %18, %19 : vector<2x1024xf32>
      %21 = arith.truncf %20 : vector<2x1024xf32> to vector<2x1024xbf16>
      %c0_16 = arith.constant 0 : index
      %c0_17 = arith.constant 0 : index
      %22 = vector.load %arg5[%c0_16, %c0_17] : memref<1024x256xbf16, #tpu.memory_space<vmem>>, vector<1024x256xbf16>
      %cst_18 = arith.constant dense<0.000000e+00> : vector<2x256xf32>
      %23 = tpu.matmul %21, %22, %cst_18 {dimension_numbers = #tpu.dot_dimension_numbers<[1], [0], [0], [1], [0, 0, 1, 1], [], []>} : vector<2x1024xbf16>, vector<1024x256xbf16>, vector<2x256xf32> -> vector<2x256xf32>
      %c0_19 = arith.constant 0 : index
      %c0_20 = arith.constant 0 : index
      %24 = vector.load %arg6[%c0_19, %c0_20] : memref<1x256xf32, #tpu.memory_space<vmem>>, vector<1x256xf32>
      %25 = vector.broadcast %24 : vector<1x256xf32> to vector<2x256xf32>
      %26 = arith.addf %23, %25 : vector<2x256xf32>
      %27 = arith.truncf %26 : vector<2x256xf32> to vector<2x256xbf16>
      %c0_21 = arith.constant 0 : index
      %c0_22 = arith.constant 0 : index
      %28 = vector.load %arg7[%c0_21, %c0_22] : memref<256x1024xbf16, #tpu.memory_space<vmem>>, vector<256x1024xbf16>
      %cst_23 = arith.constant dense<0.000000e+00> : vector<2x1024xf32>
      %29 = tpu.matmul %27, %28, %cst_23 {dimension_numbers = #tpu.dot_dimension_numbers<[1], [0], [0], [1], [0, 0, 1, 1], [], []>} : vector<2x256xbf16>, vector<256x1024xbf16>, vector<2x1024xf32> -> vector<2x1024xf32>
      %c0_24 = arith.constant 0 : index
      %c0_25 = arith.constant 0 : index
      %30 = vector.load %arg8[%c0_24, %c0_25] : memref<1x1024xf32, #tpu.memory_space<vmem>>, vector<1x1024xf32>
      %31 = vector.broadcast %30 : vector<1x1024xf32> to vector<2x1024xf32>
      %32 = arith.addf %29, %31 : vector<2x1024xf32>
      %c0_26 = arith.constant 0 : index
      %c0_27 = arith.constant 0 : index
      %33 = vector.load %arg9[%c0_26, %c0_27] : memref<2x1024xf32, #tpu.memory_space<vmem>>, vector<2x1024xf32>
      tpu.vector_store %arg9[%c0_26, %c0_27], %32 {strides = array<i32>} : memref<2x1024xf32, #tpu.memory_space<vmem>>, vector<2x1024xf32>,
    } else {
    }
    return
  }
  func.func @transform_0(%arg0: i32) -> (i32, i32) {
    %c0_i32 = arith.constant 0 : i32
    %c0_i32_0 = arith.constant 0 : i32
    return %c0_i32, %arg0 : i32, i32
  }
  func.func @transform_1(%arg0: i32) -> (i32, i32) {
    %c0_i32 = arith.constant 0 : i32
    %c0_i32_0 = arith.constant 0 : i32
    return %arg0, %c0_i32 : i32, i32
  }
  func.func @transform_2(%arg0: i32) -> (i32, i32) {
    %c0_i32 = arith.constant 0 : i32
    %c0_i32_0 = arith.constant 0 : i32
    %c0_i32_1 = arith.constant 0 : i32
    return %c0_i32, %c0_i32_0 : i32, i32
  }
  func.func @transform_3(%arg0: i32) -> (i32, i32) {
    %c0_i32 = arith.constant 0 : i32
    %c0_i32_0 = arith.constant 0 : i32
    %c0_i32_1 = arith.constant 0 : i32
    return %c0_i32, %c0_i32_0 : i32, i32
  }
  func.func @transform_4(%arg0: i32) -> (i32, i32) {
    %c0_i32 = arith.constant 0 : i32
    %c0_i32_0 = arith.constant 0 : i32
    %c0_i32_1 = arith.constant 0 : i32
    return %c0_i32, %c0_i32_0 : i32, i32
  }
  func.func @transform_5(%arg0: i32) -> (i32, i32) {
    %c0_i32 = arith.constant 0 : i32
    %c0_i32_0 = arith.constant 0 : i32
    %c0_i32_1 = arith.constant 0 : i32
    return %c0_i32, %c0_i32_0 : i32, i32
  }
  func.func @transform_6(%arg0: i32) -> (i32, i32) {
    %c0_i32 = arith.constant 0 : i32
    %c0_i32_0 = arith.constant 0 : i32
    %c0_i32_1 = arith.constant 0 : i32
    return %c0_i32, %c0_i32_0 : i32, i32
  }
  func.func @transform_7(%arg0: i32) -> (i32, i32) {
    %c0_i32 = arith.constant 0 : i32
    %c0_i32_0 = arith.constant 0 : i32
    %c0_i32_1 = arith.constant 0 : i32
    return %c0_i32, %c0_i32_0 : i32, i32
  }
  func.func @transform_8(%arg0: i32) -> (i32, i32) {
    %c0_i32 = arith.constant 0 : i32
    %c0_i32_0 = arith.constant 0 : i32
    %c0_i32_1 = arith.constant 0 : i32
    return %c0_i32, %c0_i32_0 : i32, i32
  }
}

</mosaic_0001>

<bundles_post_ra>
// kernel: simplenet_forward.7
= control target key start
LH: loop header
LB: loop body
LE: loop exit
PB: predicated region body
PF: predicated region fallthrough
CT: control target
= control target key end

     0   :  { %s1857_s21 = smov 0   ;;  %s2075_s0 = inlined_call_operand.vmem [shape: bf16[512,72], index: 0, kind: input, shape index: {}]   ;;  %s2076_s1 = inlined_call_operand.vmem [shape: bf16[512,90], index: 1, kind: input, shape index: {}]   ;;  %s2077_s2 = inlined_call_operand.vmem [shape: bf16[72,128], index: 2, kind: input, shape index: {}]   ;;  %s2078_s3 = inlined_call_operand.vmem [shape: bf16[90,128], index: 3, kind: input, shape index: {}]   ;;  %s2079_s4 = inlined_call_operand.vmem [shape: f32[1,128], index: 4, kind: input, shape index: {}]   ;;  %s2080_s5 = inlined_call_operand.vmem [shape: f32[1,128], index: 5, kind: input, shape index: {}]   ;;  %s2081_s6 = inlined_call_operand.vmem [shape: bf16[512,128], index: 6, kind: output, shape index: {}]  }
   0x1 LB: > { %s1351_s22 = sadd.s32 4294967295, %s1820_s21   ;;  %p1355_p0 = scmp.ge.s32.totalorder %s1820_s21, 1  ;;  %s1820_s21 = sphi %s1857_s21, %s16_s21  }
   0x2   : > { %p224_p1 = scmp.lt.s32.totalorder %s1820_s21, 3 }
   0x4   : > { %p225_p2 = pnand %p1355_p0, %p224_p1 }
   0x5   : > { %v1771_v0 = vld [vmem:[%s2078_s3] sm:$0xff] (!%p225_p2)   ;;  %v1773_v2 = vld [vmem:[%s2078_s3 + $0x8] sm:$0xff] (!%p225_p2)   ;;  %s1356_s29 = sshll.u32 (!%p225_p2), %s1351_s22, 5  ;;  %v1775_v4 = vld [vmem:[%s2078_s3 + $0x10] sm:$0xff] (!%p225_p2)   ;;  %vm799_vm0 = vcmask (!%p225_p2), 588800   ;;  %vm478_vm1 = vcmask (!%p225_p2), 736256  }
   0x6   : > { %228 = sbr.rel (%p225_p2) target bundleno = 312 (0x138), region = 44  ;;  %v1772_v1 = vld [vmem:[%s2077_s2] sm:$0xff] (!%p225_p2)   ;;  %1643 = vmatprep.subr.bf16.mxu1 (!%p225_p2), %v1771_v0  ;;  %v1774_v3 = vld [vmem:[%s2077_s2 + $0x8] sm:$0xff] (!%p225_p2)   ;;  %p260_p3 = scmp.lt.s32.totalorder (!%p225_p2), %s1356_s29, 63  ;;  %v1776_v5 = vld [vmem:[%s2077_s2 + $0x10] sm:$0xff] (!%p225_p2)   ;;  %vm848_vm2 = vcmask (!%p225_p2), 1043456  }
   0x7   : > { %1644 = vmatpush3.bf16.msra.mxu1 (!%p225_p2), %v1771_v0  ;;  %1687 = vmatprep.subr.bf16.mxu0 (!%p225_p2), %v1772_v1  ;;  %v1777_v6 = vld [vmem:[%s2078_s3 + $0x18] sm:$0xff] (!%p225_p2)   ;;  %v1779_v8 = vld [vmem:[%s2078_s3 + $0x20] sm:$0xff] (!%p225_p2)   ;;  %v1781_v12 = vld [vmem:[%s2078_s3 + $0x28] sm:$0x1f] (!%p225_p2)   ;;  %vm527_vm3 = vcmask (!%p225_p2), 1044480  }
   0x8   : > { %1688 = vmatpush3.bf16.msra.mxu0 (!%p225_p2), %v1772_v1  ;;  %1645 = vmatprep.subr.bf16.mxu1 (!%p225_p2), %v1773_v2  ;;  %v1778_v7 = vld [vmem:[%s2077_s2 + $0x18] sm:$0xff] (!%p225_p2)   ;;  %v1780_v10 = vld [vmem:[%s2077_s2 + $0x20] ss:$0 sps:$4 sm:$0xff] (!%p225_p2)   ;;  %v529_v15 = vsel (!%p225_p2), %vm527_vm3, %v1781_v12, 0 }
   0x9   : > { %1689 = vmatprep.subr.bf16.mxu0 (!%p225_p2), %v1774_v3  ;;  %v850_v13 = vsel (!%p225_p2), %vm848_vm2, %v1780_v10, 0  ;;  %v1979_v49 = vld [vmem:[%s2079_s4] ss:$0 sm:$0xff] (!%p225_p2) }
   0xa   : > { %v1984_v53 = vld [vmem:[%s2080_s5] ss:$0 sm:$0xff] (!%p225_p2) }
   0xb   : > { %1646 = vmatpush3.bf16.msra.mxu1 (!%p225_p2), %v1773_v2 }
   0xc   : > { %1690 = vmatpush3.bf16.msra.mxu0 (!%p225_p2), %v1774_v3  ;;  %1647 = vmatprep.subr.bf16.mxu1 (!%p225_p2), %v1775_v4 }
   0xd   : > { %s2083_s29 = smov (!%p260_p3, %s1356_s29), 63  ;;  %1691 = vmatprep.subr.bf16.mxu0 %v1776_v5 }
   0xe   : > { %s1883_s12 = sshll.u32 %s2083_s29, 2 }
   0xf   : > { %s1892_s17 = scalar_lea.vmem %s2075_s0, %s1883_s12  ;;  %s1904_s25 = scalar_lea.vmem %s2076_s1, %s1883_s12  ;;  %1648 = vmatpush3.bf16.msra.mxu1 %v1775_v4 }
  0x10   : > { %v1782_v9 = vld [vmem:[%s1892_s17] sm:$0xff]   ;;  %1692 = vmatpush3.bf16.msra.mxu0 %v1776_v5  ;;  %1649 = vmatprep.subr.bf16.mxu1 %v1777_v6  ;;  %v1783_v14 = vld [vmem:[%s1892_s17 + $0x8] sm:$0xff]   ;;  %v1786_v16 = vld [vmem:[%s1892_s17 + $0x10] sm:$0xff]   ;;  %s1998_s13 = scalar_lea.vmem %s2081_s6, %s1883_s12 }
  0x11   : > { %1693 = vmatprep.subr.bf16.mxu0 %v1778_v7  ;;  %1697 = vmatprep.mubr.msk.bf16.mxu0 %vm799_vm0, %v1782_v9  ;;  %v1784_v11 = vld [vmem:[%s1904_s25] sm:$0xff]   ;;  %v1785_v17 = vld [vmem:[%s1904_s25 + $0x8] sm:$0xff]   ;;  %v1788_v18 = vld [vmem:[%s1904_s25 + $0x10] sm:$0xff]  }
  0x12   : > { %1655 = vmatprep.mubr.msk.bf16.mxu1 %vm478_vm1, %v1784_v11  ;;  %v1787_v19 = vld [vmem:[%s1892_s17 + $0x18] sm:$0xff]   ;;  %v1790_v20 = vld [vmem:[%s1892_s17 + $0x20] sm:$0xff]   ;;  %v1791_v23 = vld [vmem:[%s1892_s17 + $0x28] sm:$0xff]  }
  0x13   : > { %1650 = vmatpush3.bf16.msra.mxu1 %v1777_v6  ;;  %v1789_v21 = vld [vmem:[%s1904_s25 + $0x18] sm:$0xff]   ;;  %v1792_v22 = vld [vmem:[%s1904_s25 + $0x20] sm:$0xff]   ;;  %v1794_v24 = vld [vmem:[%s1892_s17 + $0x30] sm:$0xff]  }
  0x14   : > { %1694 = vmatpush3.bf16.msra.mxu0 %v1778_v7  ;;  %1651 = vmatprep.subr.bf16.mxu1 %v1779_v8  ;;  %v1793_v25 = vld [vmem:[%s1904_s25 + $0x28] sm:$0xff]   ;;  %v1796_v26 = vld [vmem:[%s1904_s25 + $0x30] sm:$0xff]   ;;  %v1795_v27 = vld [vmem:[%s1892_s17 + $0x38] sm:$0xff]  }
  0x15   : > { %1762 = vmatprep.subr.msk.bf16.mxu0 %vm848_vm2, %v1780_v10  ;;  %v1798_v28 = vld [vmem:[%s1892_s17 + $0x40] sm:$0xff]   ;;  %v1797_v29 = vld [vmem:[%s1904_s25 + $0x38] sm:$0xff]   ;;  %v1799_v31 = vld [vmem:[%s1892_s17 + $0x48] sm:$0xff]  }
  0x16   : > { %v1800_v30 = vld [vmem:[%s1904_s25 + $0x40] sm:$0xff]   ;;  %v1802_v32 = vld [vmem:[%s1892_s17 + $0x50] sm:$0xff]   ;;  %v1801_v33 = vld [vmem:[%s1904_s25 + $0x48] sm:$0xff]  }
  0x17   : > { %1652 = vmatpush3.bf16.msra.mxu1 %v1779_v8  ;;  %v1804_v34 = vld [vmem:[%s1904_s25 + $0x50] sm:$0xff]   ;;  %v1803_v35 = vld [vmem:[%s1892_s17 + $0x58] sm:$0xff]   ;;  %v1806_v36 = vld [vmem:[%s1892_s17 + $0x60] sm:$0xff]  }
  0x18   : > { %1696 = vmatpush3.bf16.msra.mxu0 %v850_v13  ;;  %1761 = vmatprep.subr.msk.bf16.mxu1 %vm527_vm3, %v1781_v12  ;;  %v1805_v37 = vld [vmem:[%s1904_s25 + $0x58] sm:$0xff]   ;;  %v1808_v38 = vld [vmem:[%s1904_s25 + $0x60] sm:$0xff]   ;;  %v1807_v39 = vld [vmem:[%s1892_s17 + $0x68] sm:$0xff]  }
  0x19   : > { %v1810_v40 = vld [vmem:[%s1892_s17 + $0x70] sm:$0xff]   ;;  %v1809_v41 = vld [vmem:[%s1904_s25 + $0x68] sm:$0xff]   ;;  %v1811_v43 = vld [vmem:[%s1892_s17 + $0x78] sm:$0xff]  }
  0x1a   : > { %v1812_v42 = vld [vmem:[%s1904_s25 + $0x70] sm:$0xff]   ;;  %v1813_v44 = vld [vmem:[%s1904_s25 + $0x78] sm:$0xff]  }
  0x1b   : > { %1654 = vmatpush3.bf16.msra.mxu1 %v529_v15  ;;  %1698 = vmatmul.mubr.msk.bf16.vlgmr.msra.gmra.mrb[0].mxu0 %vm799_vm0, %v1783_v14 }
  0x1c   : > { %1701 = vmatprep.mubr.msk.bf16.mxu0 %vm799_vm0, %v1786_v16 }
  0x1e   : > { %1656 = vmatmul.mubr.msk.bf16.vlgmr.msra.gmra.mrb[0].mxu1 %vm478_vm1, %v1785_v17 }
  0x1f   : > { %1659 = vmatprep.mubr.msk.bf16.mxu1 %vm478_vm1, %v1788_v18 }
  0x23   : > { %1702 = vmatmul.mubr.msk.bf16.gmra.mrb[4].mxu0 %vm799_vm0, %v1787_v19 }
  0x24   : > { %1705 = vmatprep.mubr.msk.bf16.mxu0 %vm799_vm0, %v1790_v20 }
  0x26   : > { %1660 = vmatmul.mubr.msk.bf16.gmra.mrb[4].mxu1 %vm478_vm1, %v1789_v21 }
  0x27   : > { %1663 = vmatprep.mubr.msk.bf16.mxu1 %vm478_vm1, %v1792_v22 }
  0x2b   : > { %1706 = vmatmul.mubr.msk.bf16.gmra.mrb[8].mxu0 %vm799_vm0, %v1791_v23 }
  0x2c   : > { %1709 = vmatprep.mubr.msk.bf16.mxu0 %vm799_vm0, %v1794_v24 }
  0x2e   : > { %1664 = vmatmul.mubr.msk.bf16.gmra.mrb[8].mxu1 %vm478_vm1, %v1793_v25 }
  0x2f   : > { %1667 = vmatprep.mubr.msk.bf16.mxu1 %vm478_vm1, %v1796_v26 }
  0x33   : > { %1710 = vmatmul.mubr.msk.bf16.gmra.mrb[12].mxu0 %vm799_vm0, %v1795_v27 }
  0x34   : > { %1713 = vmatprep.mubr.msk.bf16.mxu0 %vm799_vm0, %v1798_v28 }
  0x36   : > { %1668 = vmatmul.mubr.msk.bf16.gmra.mrb[12].mxu1 %vm478_vm1, %v1797_v29 }
  0x37   : > { %1671 = vmatprep.mubr.msk.bf16.mxu1 %vm478_vm1, %v1800_v30 }
  0x3b   : > { %1714 = vmatmul.mubr.msk.bf16.gmra.mrb[16].mxu0 %vm799_vm0, %v1799_v31 }
  0x3c   : > { %1717 = vmatprep.mubr.msk.bf16.mxu0 %vm799_vm0, %v1802_v32 }
  0x3e   : > { %1672 = vmatmul.mubr.msk.bf16.gmra.mrb[16].mxu1 %vm478_vm1, %v1801_v33 }
  0x3f   : > { %1675 = vmatprep.mubr.msk.bf16.mxu1 %vm478_vm1, %v1804_v34 }
  0x43   : > { %1718 = vmatmul.mubr.msk.bf16.gmra.mrb[20].mxu0 %vm799_vm0, %v1803_v35 }
  0x44   : > { %1721 = vmatprep.mubr.msk.bf16.mxu0 %vm799_vm0, %v1806_v36 }
  0x46   : > { %1676 = vmatmul.mubr.msk.bf16.gmra.mrb[20].mxu1 %vm478_vm1, %v1805_v37 }
  0x47   : > { %1679 = vmatprep.mubr.msk.bf16.mxu1 %vm478_vm1, %v1808_v38 }
  0x4b   : > { %1722 = vmatmul.mubr.msk.bf16.gmra.mrb[24].mxu0 %vm799_vm0, %v1807_v39 }
  0x4c   : > { %1725 = vmatprep.mubr.msk.bf16.mxu0 %vm799_vm0, %v1810_v40 }
  0x4e   : > { %1680 = vmatmul.mubr.msk.bf16.gmra.mrb[24].mxu1 %vm478_vm1, %v1809_v41 }
  0x4f   : > { %1683 = vmatprep.mubr.msk.bf16.mxu1 %vm478_vm1, %v1812_v42 }
  0x53   : > { %1726 = vmatmul.mubr.msk.bf16.gmra.mrb[28].mxu0 %vm799_vm0, %v1811_v43 }
  0x56   : > { %1684 = vmatmul.mubr.msk.bf16.gmra.mrb[28].mxu1 %vm478_vm1, %v1813_v44 }
  0xee   : > { %v1699_v45 = vpop.f32.mrb[0].mxu0 }
  0xef   : > { %v886_v46 = vpop.f32.mrb[1].mxu0 }
  0xf0   : > { %v1700_v47 = vpop.f32.mrb[2].mxu0 }
  0xf1   : > { %v1657_v48 = vpop.f32.mrb[0].mxu1  ;;  %v889_v50 = vpop.f32.mrb[3].mxu0 }
  0xf2   : > { %v895_v51 = vadd.f32 %v1699_v45, %v1657_v48  ;;  %v565_v52 = vpop.f32.mrb[1].mxu1 }
  0xf3   : > { %v887_v54 = vadd.f32 %v886_v46, %v565_v52  ;;  %v1658_v55 = vpop.f32.mrb[2].mxu1 }
  0xf4   : > { %v1022_v56 = vmul.f32 %v1979_v49, %v895_v51  ;;  %v898_v57 = vadd.f32 %v1700_v47, %v1658_v55  ;;  %v568_v58 = vpop.f32.mrb[3].mxu1 }
  0xf5   : > { %v1020_v59 = vmul.f32 %v1979_v49, %v887_v54  ;;  %v890_v60 = vadd.f32 %v889_v50, %v568_v58 }
  0xf6   : > { %v1061_v61 = vadd.f32 %v1984_v53, %v1022_v56  ;;  %v1023_v62 = vmul.f32 %v1979_v49, %v898_v57  ;;  %v1703_v63 = vpop.f32.mrb[4].mxu0 }
  0xf7   : > { %v1059_v0 = vadd.f32 %v1984_v53, %v1020_v59  ;;  %v1021_v1 = vmul.f32 %v1979_v49, %v890_v60  ;;  %v902_v2 = vpop.f32.mrb[5].mxu0 }
  0xf8   : > { %v1062_v3 = vadd.f32 %v1984_v53, %v1023_v62  ;;  %v1704_v4 = vpop.f32.mrb[6].mxu0  ;;  %v1093_v8 = vmax.f32 %v1061_v61, 0.0 }
  0xf9   : > { %v1060_v5 = vadd.f32 %v1984_v53, %v1021_v1  ;;  %v1661_v6 = vpop.f32.mrb[4].mxu1  ;;  %v905_v7 = vpop.f32.mrb[7].mxu0  ;;  %v1091_v12 = vmax.f32 %v1059_v0, 0.0 }
  0xfa   : > { %v1094_v9 = vmax.f32 %v1062_v3, 0.0  ;;  %v911_v10 = vadd.f32 %v1703_v63, %v1661_v6  ;;  %v581_v11 = vpop.f32.mrb[5].mxu1 }
  0xfb   : > { %v1092_v13 = vmax.f32 %v1060_v5, 0.0  ;;  %v903_v14 = vadd.f32 %v902_v2, %v581_v11  ;;  %v1662_v15 = vpop.f32.mrb[6].mxu1 }
  0xfc   : > { %v1513_v16 = vpack.c.bf16 %v1094_v9, %v1093_v8  ;;  %v1026_v17 = vmul.f32 %v1979_v49, %v911_v10  ;;  %v914_v18 = vadd.f32 %v1704_v4, %v1662_v15  ;;  %v584_v19 = vpop.f32.mrb[7].mxu1 }
  0xfd   : > { %v1508_v20 = vpack.c.bf16 %v1092_v13, %v1091_v12  ;;  %v1024_v21 = vmul.f32 %v1979_v49, %v903_v14  ;;  %v906_v22 = vadd.f32 %v905_v7, %v584_v19 }
  0xfe   : > { %1585 = vst [vmem:[%s1998_s13 + $0x8] sm:$0xff] %v1513_v16   ;;  %v1065_v23 = vadd.f32 %v1984_v53, %v1026_v17  ;;  %v1027_v24 = vmul.f32 %v1979_v49, %v914_v18  ;;  %v1707_v25 = vpop.f32.mrb[8].mxu0 }
  0xff   : > { %1509 = vst [vmem:[%s1998_s13] sm:$0xff] %v1508_v20   ;;  %v1063_v26 = vadd.f32 %v1984_v53, %v1024_v21  ;;  %v1025_v27 = vmul.f32 %v1979_v49, %v906_v22  ;;  %v918_v28 = vpop.f32.mrb[9].mxu0 }
 0x100   : > { %v1066_v29 = vadd.f32 %v1984_v53, %v1027_v24  ;;  %v1708_v30 = vpop.f32.mrb[10].mxu0  ;;  %v1097_v34 = vmax.f32 %v1065_v23, 0.0 }
 0x101   : > { %v1064_v31 = vadd.f32 %v1984_v53, %v1025_v27  ;;  %v1665_v32 = vpop.f32.mrb[8].mxu1  ;;  %v921_v33 = vpop.f32.mrb[11].mxu0  ;;  %v1095_v38 = vmax.f32 %v1063_v26, 0.0 }
 0x102   : > { %v1098_v35 = vmax.f32 %v1066_v29, 0.0  ;;  %v927_v36 = vadd.f32 %v1707_v25, %v1665_v32  ;;  %v597_v37 = vpop.f32.mrb[9].mxu1 }
 0x103   : > { %v1096_v39 = vmax.f32 %v1064_v31, 0.0  ;;  %v919_v40 = vadd.f32 %v918_v28, %v597_v37  ;;  %v1666_v41 = vpop.f32.mrb[10].mxu1 }
 0x104   : > { %v1523_v42 = vpack.c.bf16 %v1098_v35, %v1097_v34  ;;  %v1030_v43 = vmul.f32 %v1979_v49, %v927_v36  ;;  %v930_v44 = vadd.f32 %v1708_v30, %v1666_v41  ;;  %v600_v45 = vpop.f32.mrb[11].mxu1 }
 0x105   : > { %v1518_v46 = vpack.c.bf16 %v1096_v39, %v1095_v38  ;;  %v1028_v47 = vmul.f32 %v1979_v49, %v919_v40  ;;  %v922_v48 = vadd.f32 %v921_v33, %v600_v45 }
 0x106   : > { %1587 = vst [vmem:[%s1998_s13 + $0x18] sm:$0xff] %v1523_v42   ;;  %v1069_v50 = vadd.f32 %v1984_v53, %v1030_v43  ;;  %v1031_v51 = vmul.f32 %v1979_v49, %v930_v44  ;;  %v1711_v52 = vpop.f32.mrb[12].mxu0 }
 0x107   : > { %1586 = vst [vmem:[%s1998_s13 + $0x10] sm:$0xff] %v1518_v46   ;;  %v1067_v54 = vadd.f32 %v1984_v53, %v1028_v47  ;;  %v1029_v55 = vmul.f32 %v1979_v49, %v922_v48  ;;  %v934_v56 = vpop.f32.mrb[13].mxu0 }
 0x108   : > { %v1070_v57 = vadd.f32 %v1984_v53, %v1031_v51  ;;  %v1712_v58 = vpop.f32.mrb[14].mxu0  ;;  %v1101_v62 = vmax.f32 %v1069_v50, 0.0 }
 0x109   : > { %v1068_v59 = vadd.f32 %v1984_v53, %v1029_v55  ;;  %v1669_v60 = vpop.f32.mrb[12].mxu1  ;;  %v937_v61 = vpop.f32.mrb[15].mxu0  ;;  %v1099_v2 = vmax.f32 %v1067_v54, 0.0 }
 0x10a   : > { %v1102_v63 = vmax.f32 %v1070_v57, 0.0  ;;  %v943_v0 = vadd.f32 %v1711_v52, %v1669_v60  ;;  %v613_v1 = vpop.f32.mrb[13].mxu1 }
 0x10b   : > { %v1100_v3 = vmax.f32 %v1068_v59, 0.0  ;;  %v935_v4 = vadd.f32 %v934_v56, %v613_v1  ;;  %v1670_v5 = vpop.f32.mrb[14].mxu1 }
 0x10c   : > { %v1533_v6 = vpack.c.bf16 %v1102_v63, %v1101_v62  ;;  %v1034_v7 = vmul.f32 %v1979_v49, %v943_v0  ;;  %v946_v8 = vadd.f32 %v1712_v58, %v1670_v5  ;;  %v616_v9 = vpop.f32.mrb[15].mxu1 }
 0x10d   : > { %v1528_v10 = vpack.c.bf16 %v1100_v3, %v1099_v2  ;;  %v1032_v11 = vmul.f32 %v1979_v49, %v935_v4  ;;  %v938_v12 = vadd.f32 %v937_v61, %v616_v9 }
 0x10e   : > { %1589 = vst [vmem:[%s1998_s13 + $0x28] sm:$0xff] %v1533_v6   ;;  %v1073_v13 = vadd.f32 %v1984_v53, %v1034_v7  ;;  %v1035_v14 = vmul.f32 %v1979_v49, %v946_v8  ;;  %v1715_v15 = vpop.f32.mrb[16].mxu0 }
 0x10f   : > { %1588 = vst [vmem:[%s1998_s13 + $0x20] sm:$0xff] %v1528_v10   ;;  %v1071_v16 = vadd.f32 %v1984_v53, %v1032_v11  ;;  %v1033_v17 = vmul.f32 %v1979_v49, %v938_v12  ;;  %v950_v18 = vpop.f32.mrb[17].mxu0 }
 0x110   : > { %v1074_v19 = vadd.f32 %v1984_v53, %v1035_v14  ;;  %v1716_v20 = vpop.f32.mrb[18].mxu0  ;;  %v1105_v24 = vmax.f32 %v1073_v13, 0.0 }
 0x111   : > { %v1072_v21 = vadd.f32 %v1984_v53, %v1033_v17  ;;  %v1673_v22 = vpop.f32.mrb[16].mxu1  ;;  %v953_v23 = vpop.f32.mrb[19].mxu0  ;;  %v1103_v28 = vmax.f32 %v1071_v16, 0.0 }
 0x112   : > { %v1106_v25 = vmax.f32 %v1074_v19, 0.0  ;;  %v959_v26 = vadd.f32 %v1715_v15, %v1673_v22  ;;  %v629_v27 = vpop.f32.mrb[17].mxu1 }
 0x113   : > { %v1104_v29 = vmax.f32 %v1072_v21, 0.0  ;;  %v951_v30 = vadd.f32 %v950_v18, %v629_v27  ;;  %v1674_v31 = vpop.f32.mrb[18].mxu1 }
 0x114   : > { %v1543_v32 = vpack.c.bf16 %v1106_v25, %v1105_v24  ;;  %v1038_v33 = vmul.f32 %v1979_v49, %v959_v26  ;;  %v962_v34 = vadd.f32 %v1716_v20, %v1674_v31  ;;  %v632_v35 = vpop.f32.mrb[19].mxu1 }
 0x115   : > { %v1538_v36 = vpack.c.bf16 %v1104_v29, %v1103_v28  ;;  %v1036_v37 = vmul.f32 %v1979_v49, %v951_v30  ;;  %v954_v38 = vadd.f32 %v953_v23, %v632_v35 }
 0x116   : > { %1591 = vst [vmem:[%s1998_s13 + $0x38] sm:$0xff] %v1543_v32   ;;  %v1077_v39 = vadd.f32 %v1984_v53, %v1038_v33  ;;  %v1039_v40 = vmul.f32 %v1979_v49, %v962_v34  ;;  %v1719_v41 = vpop.f32.mrb[20].mxu0 }
 0x117   : > { %1590 = vst [vmem:[%s1998_s13 + $0x30] sm:$0xff] %v1538_v36   ;;  %v1075_v42 = vadd.f32 %v1984_v53, %v1036_v37  ;;  %v1037_v43 = vmul.f32 %v1979_v49, %v954_v38  ;;  %v966_v44 = vpop.f32.mrb[21].mxu0 }
 0x118   : > { %v1078_v45 = vadd.f32 %v1984_v53, %v1039_v40  ;;  %v1720_v46 = vpop.f32.mrb[22].mxu0  ;;  %v1109_v51 = vmax.f32 %v1077_v39, 0.0 }
 0x119   : > { %v1076_v47 = vadd.f32 %v1984_v53, %v1037_v43  ;;  %v1677_v48 = vpop.f32.mrb[20].mxu1  ;;  %v969_v50 = vpop.f32.mrb[23].mxu0  ;;  %v1107_v56 = vmax.f32 %v1075_v42, 0.0 }
 0x11a   : > { %v1110_v52 = vmax.f32 %v1078_v45, 0.0  ;;  %v975_v54 = vadd.f32 %v1719_v41, %v1677_v48  ;;  %v645_v55 = vpop.f32.mrb[21].mxu1 }
 0x11b   : > { %v1108_v57 = vmax.f32 %v1076_v47, 0.0  ;;  %v967_v58 = vadd.f32 %v966_v44, %v645_v55  ;;  %v1678_v59 = vpop.f32.mrb[22].mxu1 }
 0x11c   : > { %v1553_v60 = vpack.c.bf16 %v1110_v52, %v1109_v51  ;;  %v1042_v61 = vmul.f32 %v1979_v49, %v975_v54  ;;  %v978_v62 = vadd.f32 %v1720_v46, %v1678_v59  ;;  %v648_v63 = vpop.f32.mrb[23].mxu1 }
 0x11d   : > { %v1548_v0 = vpack.c.bf16 %v1108_v57, %v1107_v56  ;;  %v1040_v1 = vmul.f32 %v1979_v49, %v967_v58  ;;  %v970_v2 = vadd.f32 %v969_v50, %v648_v63 }
 0x11e   : > { %1593 = vst [vmem:[%s1998_s13 + $0x48] sm:$0xff] %v1553_v60   ;;  %v1081_v3 = vadd.f32 %v1984_v53, %v1042_v61  ;;  %v1043_v4 = vmul.f32 %v1979_v49, %v978_v62  ;;  %v1723_v5 = vpop.f32.mrb[24].mxu0 }
 0x11f   : > { %1592 = vst [vmem:[%s1998_s13 + $0x40] sm:$0xff] %v1548_v0   ;;  %v1079_v6 = vadd.f32 %v1984_v53, %v1040_v1  ;;  %v1041_v7 = vmul.f32 %v1979_v49, %v970_v2  ;;  %v982_v8 = vpop.f32.mrb[25].mxu0 }
 0x120   : > { %v1082_v9 = vadd.f32 %v1984_v53, %v1043_v4  ;;  %v1724_v10 = vpop.f32.mrb[26].mxu0  ;;  %v1113_v14 = vmax.f32 %v1081_v3, 0.0 }
 0x121   : > { %v1080_v11 = vadd.f32 %v1984_v53, %v1041_v7  ;;  %v1681_v12 = vpop.f32.mrb[24].mxu1  ;;  %v985_v13 = vpop.f32.mrb[27].mxu0  ;;  %v1111_v18 = vmax.f32 %v1079_v6, 0.0 }
 0x122   : > { %v1114_v15 = vmax.f32 %v1082_v9, 0.0  ;;  %v991_v16 = vadd.f32 %v1723_v5, %v1681_v12  ;;  %v661_v17 = vpop.f32.mrb[25].mxu1 }
 0x123   : > { %v1112_v19 = vmax.f32 %v1080_v11, 0.0  ;;  %v983_v20 = vadd.f32 %v982_v8, %v661_v17  ;;  %v1682_v21 = vpop.f32.mrb[26].mxu1 }
 0x124   : > { %v1563_v22 = vpack.c.bf16 %v1114_v15, %v1113_v14  ;;  %v1046_v23 = vmul.f32 %v1979_v49, %v991_v16  ;;  %v994_v24 = vadd.f32 %v1724_v10, %v1682_v21  ;;  %v664_v25 = vpop.f32.mrb[27].mxu1 }
 0x125   : > { %v1558_v26 = vpack.c.bf16 %v1112_v19, %v1111_v18  ;;  %v1044_v27 = vmul.f32 %v1979_v49, %v983_v20  ;;  %v986_v28 = vadd.f32 %v985_v13, %v664_v25 }
 0x126   : > { %1595 = vst [vmem:[%s1998_s13 + $0x58] sm:$0xff] %v1563_v22   ;;  %v1085_v29 = vadd.f32 %v1984_v53, %v1046_v23  ;;  %v1047_v30 = vmul.f32 %v1979_v49, %v994_v24  ;;  %v1727_v31 = vpop.f32.mrb[28].mxu0 }
 0x127   : > { %1594 = vst [vmem:[%s1998_s13 + $0x50] sm:$0xff] %v1558_v26   ;;  %v1083_v32 = vadd.f32 %v1984_v53, %v1044_v27  ;;  %v1045_v33 = vmul.f32 %v1979_v49, %v986_v28  ;;  %v998_v34 = vpop.f32.mrb[29].mxu0 }
 0x128   : > { %v1086_v35 = vadd.f32 %v1984_v53, %v1047_v30  ;;  %v1728_v36 = vpop.f32.mrb[30].mxu0  ;;  %v1117_v40 = vmax.f32 %v1085_v29, 0.0 }
 0x129   : > { %v1084_v37 = vadd.f32 %v1984_v53, %v1045_v33  ;;  %v1685_v38 = vpop.f32.mrb[28].mxu1  ;;  %v1001_v39 = vpop.f32.mrb[31].mxu0  ;;  %v1115_v44 = vmax.f32 %v1083_v32, 0.0 }
 0x12a   : > { %v1118_v41 = vmax.f32 %v1086_v35, 0.0  ;;  %v1007_v42 = vadd.f32 %v1727_v31, %v1685_v38  ;;  %v677_v43 = vpop.f32.mrb[29].mxu1 }
 0x12b   : > { %v1116_v45 = vmax.f32 %v1084_v37, 0.0  ;;  %v999_v46 = vadd.f32 %v998_v34, %v677_v43  ;;  %v1686_v47 = vpop.f32.mrb[30].mxu1 }
 0x12c   : > { %v1573_v48 = vpack.c.bf16 %v1118_v41, %v1117_v40  ;;  %v1050_v50 = vmul.f32 %v1979_v49, %v1007_v42  ;;  %v1010_v51 = vadd.f32 %v1728_v36, %v1686_v47  ;;  %v680_v52 = vpop.f32.mrb[31].mxu1 }
 0x12d   : > { %v1568_v54 = vpack.c.bf16 %v1116_v45, %v1115_v44  ;;  %v1048_v55 = vmul.f32 %v1979_v49, %v999_v46  ;;  %v1002_v56 = vadd.f32 %v1001_v39, %v680_v52 }
 0x12e   : > { %1597 = vst [vmem:[%s1998_s13 + $0x68] sm:$0xff] %v1573_v48   ;;  %v1089_v57 = vadd.f32 %v1984_v53, %v1050_v50  ;;  %v1051_v58 = vmul.f32 %v1979_v49, %v1010_v51 }
 0x12f   : > { %1596 = vst [vmem:[%s1998_s13 + $0x60] sm:$0xff] %v1568_v54   ;;  %v1087_v59 = vadd.f32 %v1984_v53, %v1048_v55  ;;  %v1049_v60 = vmul.f32 %v1979_v49, %v1002_v56 }
 0x130   : > { %v1090_v61 = vadd.f32 %v1984_v53, %v1051_v58  ;;  %v1121_v63 = vmax.f32 %v1089_v57, 0.0 }
 0x131   : > { %v1088_v62 = vadd.f32 %v1984_v53, %v1049_v60  ;;  %v1119_v1 = vmax.f32 %v1087_v59, 0.0 }
 0x132   : > { %v1122_v0 = vmax.f32 %v1090_v61, 0.0 }
 0x133   : > { %v1120_v2 = vmax.f32 %v1088_v62, 0.0 }
 0x134   : > { %v1583_v3 = vpack.c.bf16 %v1122_v0, %v1121_v63 }
 0x135   : > { %v1578_v4 = vpack.c.bf16 %v1120_v2, %v1119_v1 }
 0x136   : > { %1599 = vst [vmem:[%s1998_s13 + $0x78] sm:$0xff] %v1583_v3  }
 0x137   : > { %1598 = vst [vmem:[%s1998_s13 + $0x70] sm:$0xff] %v1578_v4  }
 0x138 PF: > { %s16_s21 = sadd.s32 1, %s1820_s21  }
 0x139   : > { %p13_p4 = scmp.ge.s32.totalorder %s16_s21, 4  }
 0x13b   :  { %15 = sbr.rel (!%p13_p4) target bundleno = 1 (0x1), region = 77 }

// kernel: simplenet_forward.8
= control target key start
LH: loop header
LB: loop body
LE: loop exit
PB: predicated region body
PF: predicated region fallthrough
CT: control target
= control target key end

     0   :  { %s4430_s15 = smov 0   ;;  %s4432_s16 = smov 0   ;;  %s5260_s0 = inlined_call_operand.vmem [shape: bf16[512,1152], index: 0, kind: input, shape index: {}]   ;;  %s5261_s1 = inlined_call_operand.vmem [shape: bf16[1152,128], index: 1, kind: input, shape index: {}]   ;;  %s5262_s2 = inlined_call_operand.vmem [shape: f32[1,128], index: 2, kind: input, shape index: {}]   ;;  %s5263_s3 = inlined_call_operand.vmem [shape: f32[1,128], index: 3, kind: input, shape index: {}]   ;;  %s5264_s4 = inlined_call_operand.vmem [shape: bf16[512,128], index: 4, kind: output, shape index: {}]  }
   0x1   :  { %s4434_s17 = smov 0  }
   0x2 LB: > { %s33_s18 = sadd.s32 1, %s4399_s16  ;;  %p3156_p0 = scmp.ge.s32.totalorder %s4403_s17, 1  ;;  %s4403_s17 = sphi %s4434_s17, %s14_s17   ;;  %s4399_s16 = sphi %s4432_s16, %s5266_s16   ;;  %s4395_s15 = sphi %s4430_s15, %s5265_s15  }
   0x3   : > { %p35_p1 = scmp.ge.s32.totalorder %s33_s18, 2  ;;  %p224_p2 = scmp.lt.s32.totalorder %s4403_s17, 3 }
   0x5   : > { %s5268_s18 = smov (%p35_p1, %s33_s18), 0  ;;  %p225_p3 = pnand %p3156_p0, %p224_p2 }
   0x6   : > { %v4101_v0 = vld [vmem:[%s5261_s1 + $0x40] sm:$0xff] (!%p225_p3)   ;;  %s3157_s21 = sshll.u32 (!%p225_p3), %s4395_s15, 5  ;;  %v4103_v2 = vld [vmem:[%s5261_s1 + $0x48] sm:$0xff] (!%p225_p3)   ;;  %v4105_v4 = vld [vmem:[%s5261_s1 + $0x50] sm:$0xff] (!%p225_p3)  }
   0x7   : > { %228 = sbr.rel (%p225_p3) target bundleno = 549 (0x225), region = 36  ;;  %v4102_v1 = vld [vmem:[%s5261_s1] sm:$0xff] (!%p225_p3)   ;;  %3540 = vmatprep.subr.bf16.mxu0 (!%p225_p3), %v4101_v0  ;;  %4060 = vmatprep.subr.bf16.mxu1 (!%p225_p3), %v4101_v0  ;;  %p274_p4 = scmp.lt.s32.totalorder (!%p225_p3), %s3157_s21, 63  ;;  %v4104_v3 = vld [vmem:[%s5261_s1 + $0x8] sm:$0xff] (!%p225_p3)   ;;  %v4106_v5 = vld [vmem:[%s5261_s1 + $0x10] sm:$0xff] (!%p225_p3)  }
   0x8   : > { %3541 = vmatpush3.bf16.msra.mxu0 (!%p225_p3), %v4102_v1  ;;  %4068 = vmatpush3.bf16.msra.mxu1 (!%p225_p3), %v4102_v1  ;;  %v4107_v6 = vld [vmem:[%s5261_s1 + $0x58] sm:$0xff] (!%p225_p3)   ;;  %v4109_v8 = vld [vmem:[%s5261_s1 + $0x60] sm:$0xff] (!%p225_p3)   ;;  %v4111_v10 = vld [vmem:[%s5261_s1 + $0x68] sm:$0xff] (!%p225_p3)  }
   0x9   : > { %3542 = vmatprep.subr.bf16.mxu0 (!%p225_p3), %v4103_v2  ;;  %4061 = vmatprep.subr.bf16.mxu1 (!%p225_p3), %v4103_v2  ;;  %v4108_v7 = vld [vmem:[%s5261_s1 + $0x18] sm:$0xff] (!%p225_p3)   ;;  %v4110_v9 = vld [vmem:[%s5261_s1 + $0x20] sm:$0xff] (!%p225_p3)   ;;  %v4112_v13 = vld [vmem:[%s5261_s1 + $0x28] sm:$0xff] (!%p225_p3)  }
   0xa   : > { %v4113_v14 = vld [vmem:[%s5261_s1 + $0x70] sm:$0xff] (!%p225_p3)   ;;  %v4115_v16 = vld [vmem:[%s5261_s1 + $0x78] sm:$0xff] (!%p225_p3)   ;;  %v4123_v18 = vld [vmem:[%s5261_s1 + $0xc0] sm:$0xff] (!%p225_p3)  }
   0xb   : > { %v4114_v15 = vld [vmem:[%s5261_s1 + $0x30] sm:$0xff] (!%p225_p3)   ;;  %v4116_v17 = vld [vmem:[%s5261_s1 + $0x38] sm:$0xff] (!%p225_p3)   ;;  %v4126_v21 = vld [vmem:[%s5261_s1 + $0x140] sm:$0xff] (!%p225_p3)  }
   0xc   : > { %3543 = vmatpush3.bf16.msra.mxu0 (!%p225_p3), %v4104_v3  ;;  %4069 = vmatpush3.bf16.msra.mxu1 (!%p225_p3), %v4104_v3  ;;  %v4124_v22 = vld [vmem:[%s5261_s1 + $0x80] sm:$0xff] (!%p225_p3)   ;;  %v4125_v23 = vld [vmem:[%s5261_s1 + $0xc8] sm:$0xff] (!%p225_p3)   ;;  %v4135_v31 = vld [vmem:[%s5261_s1 + $0xd0] sm:$0xff] (!%p225_p3)  }
   0xd   : > { %3544 = vmatprep.subr.bf16.mxu0 (!%p225_p3), %v4105_v4  ;;  %4062 = vmatprep.subr.bf16.mxu1 (!%p225_p3), %v4105_v4  ;;  %v4128_v24 = vld [vmem:[%s5261_s1 + $0x100] sm:$0xff] (!%p225_p3)   ;;  %v4127_v27 = vld [vmem:[%s5261_s1 + $0x88] sm:$0xff] (!%p225_p3)   ;;  %v4136_v32 = vld [vmem:[%s5261_s1 + $0x90] sm:$0xff] (!%p225_p3)  }
   0xe   : > { %s5270_s21 = smov (!%p274_p4, %s3157_s21), 63  ;;  %v4146_v28 = vld [vmem:[%s5261_s1 + $0x148] sm:$0xff]   ;;  %v4137_v34 = vld [vmem:[%s5261_s1 + $0xd8] sm:$0xff]   ;;  %v4145_v40 = vld [vmem:[%s5261_s1 + $0xe0] sm:$0xff]  }
   0xf   : > { %s4076_s8 = smul.u32 36, %s5270_s21  ;;  %v4148_v33 = vld [vmem:[%s5261_s1 + $0x108] sm:$0xff]   ;;  %v4138_v37 = vld [vmem:[%s5261_s1 + $0x98] sm:$0xff]   ;;  %v4147_v41 = vld [vmem:[%s5261_s1 + $0xa0] sm:$0xff]   ;;  %s3160_s23 = sshll.u32 %s5270_s21, 2 }
  0x10   : > { %3545 = vmatpush3.bf16.msra.mxu0 %v4106_v5  ;;  %4070 = vmatpush3.bf16.msra.mxu1 %v4106_v5  ;;  %v4149_v42 = vld [vmem:[%s5261_s1 + $0xe8] sm:$0xff]   ;;  %v4160_v43 = vld [vmem:[%s5261_s1 + $0x150] sm:$0xff]   ;;  %v4159_v52 = vld [vmem:[%s5261_s1 + $0xf8] sm:$0xff]   ;;  %s5138_s26 = scalar_lea.vmem %s5264_s4, %s3160_s23 }
  0x11   : > { %3546 = vmatprep.subr.bf16.mxu0 %v4107_v6  ;;  %4063 = vmatprep.subr.bf16.mxu1 %v4107_v6  ;;  %s4481_s15 = scalar_lea.vmem %s5260_s0, %s4076_s8  ;;  %v4162_v46 = vld [vmem:[%s5261_s1 + $0x110] sm:$0xff]   ;;  %v4150_v47 = vld [vmem:[%s5261_s1 + $0xa8] sm:$0xff]   ;;  %v4177_v55 = vld [vmem:[%s5261_s1 + $0x158] sm:$0xff]  }
  0x12   : > { %v4119_v11 = vld [vmem:[%s4481_s15 + $0x4] ss:$36 sps:$4 sm:$0xff]   ;;  %v4129_v25 = vld [vmem:[%s4481_s15 + $0x4c] ss:$36 sps:$4 sm:$0xff]   ;;  %v4139_v35 = vld [vmem:[%s4481_s15 + $0x94] ss:$36 sps:$4 sm:$0xff]  }
  0x13   : > { %v4122_v12 = vld [vmem:[%s4481_s15 + $0x364] ss:$36 sps:$4 sm:$0xff]   ;;  %1881 = vmatprep.mubr.bf16.mxu0 %v4119_v11  ;;  %v4131_v26 = vld [vmem:[%s4481_s15 + $0x3ac] ss:$36 sps:$4 sm:$0xff]   ;;  %v4141_v36 = vld [vmem:[%s4481_s15 + $0x3f4] ss:$36 sps:$4 sm:$0xff]  }
  0x14   : > { %3547 = vmatpush3.bf16.msra.mxu0 %v4108_v7  ;;  %4071 = vmatpush3.bf16.msra.mxu1 %v4108_v7  ;;  %v4117_v19 = vld [vmem:[%s4481_s15] ss:$36 sps:$4 sm:$0xff]   ;;  %v4133_v29 = vld [vmem:[%s4481_s15 + $0x48] ss:$36 sps:$4 sm:$0xff]   ;;  %v4143_v38 = vld [vmem:[%s4481_s15 + $0x90] ss:$36 sps:$4 sm:$0xff]  }
  0x15   : > { %3548 = vmatprep.subr.bf16.mxu0 %v4109_v8  ;;  %4064 = vmatprep.subr.bf16.mxu1 %v4109_v8  ;;  %v4120_v20 = vld [vmem:[%s4481_s15 + $0x360] ss:$36 sps:$4 sm:$0xff]   ;;  %v4134_v30 = vld [vmem:[%s4481_s15 + $0x3a8] ss:$36 sps:$4 sm:$0xff]   ;;  %v4144_v39 = vld [vmem:[%s4481_s15 + $0x3f0] ss:$36 sps:$4 sm:$0xff]  }
  0x16   : > { %1977 = vmatprep.mubr.bf16.mxu1 %v4122_v12  ;;  %v4151_v44 = vld [vmem:[%s4481_s15 + $0xdc] ss:$36 sps:$4 sm:$0xff]   ;;  %v4157_v48 = vld [vmem:[%s5261_s1 + $0xf0] sm:$0xff]   ;;  %v4163_v53 = vld [vmem:[%s4481_s15 + $0x124] ss:$36 sps:$4 sm:$0xff]  }
  0x17   : > { %v4153_v45 = vld [vmem:[%s4481_s15 + $0x43c] ss:$36 sps:$4 sm:$0xff]   ;;  %v4158_v51 = vld [vmem:[%s5261_s1 + $0xb0] sm:$0xff]   ;;  %v4165_v58 = vld [vmem:[%s4481_s15 + $0x8] ss:$36 sps:$4 sm:$0xff]  }
  0x18   : > { %3549 = vmatpush3.bf16.msra.mxu0 %v4110_v9  ;;  %4072 = vmatpush3.bf16.msra.mxu1 %v4110_v9  ;;  %v4155_v49 = vld [vmem:[%s4481_s15 + $0xd8] ss:$36 sps:$4 sm:$0xff]   ;;  %v4167_v54 = vld [vmem:[%s4481_s15 + $0xc] ss:$36 sps:$4 sm:$0xff]   ;;  %v4168_v59 = vld [vmem:[%s4481_s15 + $0x120] ss:$36 sps:$4 sm:$0xff]  }
  0x19   : > { %3550 = vmatprep.subr.bf16.mxu0 %v4111_v10  ;;  %4065 = vmatprep.subr.bf16.mxu1 %v4111_v10  ;;  %v4156_v50 = vld [vmem:[%s4481_s15 + $0x438] ss:$36 sps:$4 sm:$0xff]   ;;  %v4169_v60 = vld [vmem:[%s5261_s1 + $0x1c0] sm:$0xff]   ;;  %v4171_v62 = vld [vmem:[%s4481_s15 + $0x16c] ss:$36 sps:$4 sm:$0xff]  }
  0x1a   : > { %v4178_v56 = vld [vmem:[%s5261_s1 + $0x118] sm:$0xff]   ;;  %v4170_v61 = vld [vmem:[%s5261_s1 + $0x180] sm:$0xff]   ;;  %v4185_v1 = vld [vmem:[%s5261_s1 + $0x1c8] sm:$0xff]  }
  0x1b   : > { %v4161_v57 = vld [vmem:[%s5261_s1 + $0xb8] sm:$0xff]   ;;  %v4187_v0 = vld [vmem:[%s5261_s1 + $0x160] sm:$0xff]   ;;  %v4186_v3 = vld [vmem:[%s5261_s1 + $0x188] sm:$0xff]  }
  0x1c   : > { %3551 = vmatpush3.bf16.msra.mxu0 %v4112_v13  ;;  %4073 = vmatpush3.bf16.msra.mxu1 %v4112_v13  ;;  %v4173_v63 = vld [vmem:[%s4481_s15 + $0x54] ss:$36 sps:$4 sm:$0xff]   ;;  %v4188_v2 = vld [vmem:[%s5261_s1 + $0x120] sm:$0xff]   ;;  %v4175_v4 = vld [vmem:[%s4481_s15 + $0x168] ss:$36 sps:$4 sm:$0xff]  }
  0x1d   : > { %3552 = vmatprep.subr.bf16.mxu0 %v4113_v14  ;;  %4066 = vmatprep.subr.bf16.mxu1 %v4113_v14  ;;  %v4176_v5 = vld [vmem:[%s4481_s15 + $0x50] ss:$36 sps:$4 sm:$0xff]   ;;  %v4181_v7 = vld [vmem:[%s4481_s15 + $0x9c] ss:$36 sps:$4 sm:$0xff]   ;;  %v4201_v8 = vld [vmem:[%s5261_s1 + $0x168] sm:$0xff]  }
  0x1e   : > { %v4179_v6 = vld [vmem:[%s4481_s15 + $0x1b4] ss:$36 sps:$4 sm:$0xff]   ;;  %v4203_v10 = vld [vmem:[%s5261_s1 + $0x128] sm:$0xff]   ;;  %v4189_v14 = vld [vmem:[%s4481_s15 + $0x1fc] ss:$36 sps:$4 sm:$0xff]  }
  0x1f   : > { %v4202_v9 = vld [vmem:[%s5261_s1 + $0x1d0] sm:$0xff]   ;;  %v4184_v13 = vld [vmem:[%s4481_s15 + $0x98] ss:$36 sps:$4 sm:$0xff]  }
  0x20   : > { %3553 = vmatpush3.bf16.msra.mxu0 %v4114_v15  ;;  %4074 = vmatpush3.bf16.msra.mxu1 %v4114_v15  ;;  %v4204_v11 = vld [vmem:[%s5261_s1 + $0x190] sm:$0xff]  }
  0x21   : > { %3554 = vmatprep.subr.bf16.mxu0 %v4115_v16  ;;  %4067 = vmatprep.subr.bf16.mxu1 %v4115_v16  ;;  %v4183_v12 = vld [vmem:[%s4481_s15 + $0x1b0] ss:$36 sps:$4 sm:$0xff]  }
  0x22   : > { %v4211_v15 = vld [vmem:[%s5261_s1 + $0x170] sm:$0xff]  }
  0x23   : > { %v4212_v16 = vld [vmem:[%s5261_s1 + $0x130] sm:$0xff]  }
  0x24   : > { %3555 = vmatpush3.bf16.msra.mxu0 %v4116_v17  ;;  %4075 = vmatpush3.bf16.msra.mxu1 %v4116_v17  ;;  %v4191_v17 = vld [vmem:[%s4481_s15 + $0xe4] ss:$36 sps:$4 sm:$0xff]  }
  0x25   : > { %3652 = vmatprep.subr.bf16.mxu1 %v4123_v18  ;;  %3764 = vmatprep.subr.bf16.mxu0 %v4126_v21  ;;  %v4219_v18 = vld [vmem:[%s5261_s1 + $0x1d8] sm:$0xff]   ;;  %v4194_v21 = vld [vmem:[%s4481_s15 + $0xe0] ss:$36 sps:$4 sm:$0xff]  }
  0x27   : > { %1882 = vmatmul.mubr.bf16.vlgmr.msra.gmra.mrb[0].mxu0 %v4117_v19  ;;  %1978 = vmatmul.mubr.bf16.vlgmr.msra.gmra.mrb[0].mxu1 %v4120_v20  ;;  %v4220_v19 = vld [vmem:[%s5261_s1 + $0x198] sm:$0xff]  }
  0x28   : > { %3653 = vmatpush3.bf16.msra.mxu1 %v4124_v22  ;;  %3765 = vmatpush3.bf16.msra.mxu0 %v4128_v24  ;;  %v4193_v20 = vld [vmem:[%s4481_s15 + $0x1f8] ss:$36 sps:$4 sm:$0xff]   ;;  %v4195_v22 = vld [vmem:[%s4481_s15 + $0x244] ss:$36 sps:$4 sm:$0xff]  }
  0x29   : > { %3654 = vmatprep.subr.bf16.mxu1 %v4125_v23  ;;  %1889 = vmatprep.mubr.bf16.mxu0 %v4129_v25  ;;  %v4197_v23 = vld [vmem:[%s4481_s15 + $0x12c] ss:$36 sps:$4 sm:$0xff]   ;;  %v4227_v24 = vld [vmem:[%s5261_s1 + $0x178] sm:$0xff]  }
  0x2a   : > { %1985 = vmatprep.mubr.bf16.mxu1 %v4131_v26  ;;  %3766 = vmatprep.subr.bf16.mxu0 %v4146_v28  ;;  %v4228_v25 = vld [vmem:[%s5261_s1 + $0x138] sm:$0xff]   ;;  %v4235_v26 = vld [vmem:[%s5261_s1 + $0x1e0] sm:$0xff]  }
  0x2b   : > { %v4236_v28 = vld [vmem:[%s5261_s1 + $0x1a0] sm:$0xff]  }
  0x2c   : > { %3655 = vmatpush3.bf16.msra.mxu1 %v4127_v27  ;;  %3767 = vmatpush3.bf16.msra.mxu0 %v4148_v33  ;;  %v4199_v27 = vld [vmem:[%s4481_s15 + $0x240] ss:$36 sps:$4 sm:$0xff]   ;;  %v4250_v33 = vld [vmem:[%s5261_s1 + $0x1e8] sm:$0xff]  }
  0x2d   : > { %3656 = vmatprep.subr.bf16.mxu1 %v4135_v31  ;;  %3768 = vmatprep.subr.bf16.mxu0 %v4160_v43  ;;  %v4205_v31 = vld [vmem:[%s4481_s15 + $0x28c] ss:$36 sps:$4 sm:$0xff]   ;;  %v4221_v43 = vld [vmem:[%s4481_s15 + $0x31c] ss:$36 sps:$4 sm:$0xff]  }
  0x2f   : > { %1890 = vmatmul.mubr.bf16.gmra.mrb[4].mxu0 %v4133_v29  ;;  %1986 = vmatmul.mubr.bf16.gmra.mrb[4].mxu1 %v4134_v30  ;;  %v4237_v29 = vld [vmem:[%s5261_s1 + $0x200] sm:$0xff]   ;;  %v4200_v30 = vld [vmem:[%s4481_s15 + $0x128] ss:$36 sps:$4 sm:$0xff]  }
  0x30   : > { %3657 = vmatpush3.bf16.msra.mxu1 %v4136_v32  ;;  %1897 = vmatprep.mubr.bf16.mxu0 %v4139_v35  ;;  %v4207_v32 = vld [vmem:[%s4481_s15 + $0x174] ss:$36 sps:$4 sm:$0xff]   ;;  %v4251_v35 = vld [vmem:[%s5261_s1 + $0x1a8] sm:$0xff]  }
  0x31   : > { %3658 = vmatprep.subr.bf16.mxu1 %v4137_v34  ;;  %1993 = vmatprep.mubr.bf16.mxu1 %v4141_v36  ;;  %v4209_v34 = vld [vmem:[%s4481_s15 + $0x288] ss:$36 sps:$4 sm:$0xff]   ;;  %v4210_v36 = vld [vmem:[%s4481_s15 + $0x170] ss:$36 sps:$4 sm:$0xff]  }
  0x32   : > { %3769 = vmatpush3.bf16.msra.mxu0 %v4162_v46  ;;  %v4226_v46 = vld [vmem:[%s4481_s15 + $0x200] ss:$36 sps:$4 sm:$0xff]  }
  0x33   : > { %3770 = vmatprep.subr.bf16.mxu0 %v4177_v55  ;;  %v4252_v55 = vld [vmem:[%s5261_s1 + $0x208] sm:$0xff]  }
  0x34   : > { %3659 = vmatpush3.bf16.msra.mxu1 %v4138_v37  ;;  %v4213_v37 = vld [vmem:[%s4481_s15 + $0x2d4] ss:$36 sps:$4 sm:$0xff]  }
  0x35   : > { %3660 = vmatprep.subr.bf16.mxu1 %v4145_v40  ;;  %v4218_v40 = vld [vmem:[%s4481_s15 + $0x1b8] ss:$36 sps:$4 sm:$0xff]  }
  0x36   : > { %3771 = vmatpush3.bf16.msra.mxu0 %v4178_v56  ;;  %v4267_v56 = vld [vmem:[%s5261_s1 + $0x210] sm:$0xff]  }
  0x37   : > { %1898 = vmatmul.mubr.bf16.gmra.mrb[8].mxu0 %v4143_v38  ;;  %1994 = vmatmul.mubr.bf16.gmra.mrb[8].mxu1 %v4144_v39  ;;  %v4215_v38 = vld [vmem:[%s4481_s15 + $0x1bc] ss:$36 sps:$4 sm:$0xff]   ;;  %v4217_v39 = vld [vmem:[%s4481_s15 + $0x2d0] ss:$36 sps:$4 sm:$0xff]  }
  0x38   : > { %3661 = vmatpush3.bf16.msra.mxu1 %v4147_v41  ;;  %1905 = vmatprep.mubr.bf16.mxu0 %v4151_v44  ;;  %v4265_v41 = vld [vmem:[%s5261_s1 + $0x1f0] sm:$0xff]   ;;  %v4223_v44 = vld [vmem:[%s4481_s15 + $0x204] ss:$36 sps:$4 sm:$0xff]  }
  0x39   : > { %3662 = vmatprep.subr.bf16.mxu1 %v4149_v42  ;;  %2001 = vmatprep.mubr.bf16.mxu1 %v4153_v45  ;;  %v4266_v42 = vld [vmem:[%s5261_s1 + $0x1b0] sm:$0xff]   ;;  %v4225_v45 = vld [vmem:[%s4481_s15 + $0x318] ss:$36 sps:$4 sm:$0xff]  }
  0x3a   : > { %3772 = vmatprep.subr.bf16.mxu0 %v4187_v0  ;;  %v4249_v0 = vld [vmem:[%s4481_s15 + $0xa0] ss:$36 sps:$4 sm:$0xff]  }
  0x3b   : > { %3773 = vmatpush3.bf16.msra.mxu0 %v4188_v2  ;;  %v4255_v2 = vld [vmem:[%s4481_s15 + $0xec] ss:$36 sps:$4 sm:$0xff]  }
  0x3c   : > { %3663 = vmatpush3.bf16.msra.mxu1 %v4150_v47  ;;  %3774 = vmatprep.subr.bf16.mxu0 %v4201_v8  ;;  %v4280_v47 = vld [vmem:[%s5261_s1 + $0x1f8] sm:$0xff]  }
  0x3d   : > { %3664 = vmatprep.subr.bf16.mxu1 %v4157_v48  ;;  %v4281_v48 = vld [vmem:[%s5261_s1 + $0x1b8] sm:$0xff]  }
  0x3e   : > { %v4261_v8 = vld [vmem:[%s4481_s15 + $0x134] ss:$36 sps:$4 sm:$0xff]  }
  0x3f   : > { %1906 = vmatmul.mubr.bf16.gmra.mrb[12].mxu0 %v4155_v49  ;;  %2002 = vmatmul.mubr.bf16.gmra.mrb[12].mxu1 %v4156_v50  ;;  %v4229_v49 = vld [vmem:[%s4481_s15 + $0x24c] ss:$36 sps:$4 sm:$0xff]   ;;  %v4233_v50 = vld [vmem:[%s4481_s15 + $0x14] ss:$36 sps:$4 sm:$0xff]  }
  0x40   : > { %3665 = vmatpush3.bf16.msra.mxu1 %v4158_v51  ;;  %1913 = vmatprep.mubr.bf16.mxu0 %v4163_v53  ;;  %v4231_v51 = vld [vmem:[%s4481_s15 + $0x10] ss:$36 sps:$4 sm:$0xff]  }
  0x41   : > { %3666 = vmatprep.subr.bf16.mxu1 %v4159_v52  ;;  %2042 = vmatprep.mubr.bf16.mxu1 %v4167_v54  ;;  %v4234_v52 = vld [vmem:[%s4481_s15 + $0x248] ss:$36 sps:$4 sm:$0xff]   ;;  %v4238_v53 = vld [vmem:[%s4481_s15 + $0x294] ss:$36 sps:$4 sm:$0xff]   ;;  %v4240_v54 = vld [vmem:[%s4481_s15 + $0x5c] ss:$36 sps:$4 sm:$0xff]  }
  0x42   : > { %3775 = vmatpush3.bf16.msra.mxu0 %v4203_v10  ;;  %v4263_v10 = vld [vmem:[%s4481_s15 + $0x368] ss:$36 sps:$4 sm:$0xff]  }
  0x43   : > { %3776 = vmatprep.subr.bf16.mxu0 %v4211_v15  ;;  %v4273_v15 = vld [vmem:[%s4481_s15 + $0x178] ss:$36 sps:$4 sm:$0xff]  }
  0x44   : > { %3667 = vmatpush3.bf16.msra.mxu1 %v4161_v57  ;;  %v4242_v57 = vld [vmem:[%s4481_s15 + $0x290] ss:$36 sps:$4 sm:$0xff]  }
  0x45   : > { %3876 = vmatprep.subr.bf16.mxu1 %v4169_v60  ;;  %v4246_v60 = vld [vmem:[%s4481_s15 + $0xa4] ss:$36 sps:$4 sm:$0xff]  }
  0x46   : > { %3777 = vmatpush3.bf16.msra.mxu0 %v4212_v16  ;;  %v4274_v16 = vld [vmem:[%s4481_s15 + $0x3fc] ss:$36 sps:$4 sm:$0xff]  }
  0x47   : > { %1914 = vmatmul.mubr.bf16.gmra.mrb[16].mxu0 %v4168_v59  ;;  %2043 = vmatmul.mubr.bf16.vlgmr.msra.gmra.mrb[16].mxu1 %v4165_v58  ;;  %v4243_v58 = vld [vmem:[%s4481_s15 + $0x58] ss:$36 sps:$4 sm:$0xff]  }
  0x48   : > { %3877 = vmatpush3.bf16.msra.mxu1 %v4170_v61  ;;  %1921 = vmatprep.mubr.bf16.mxu0 %v4171_v62  ;;  %v4244_v59 = vld [vmem:[%s4481_s15 + $0x2dc] ss:$36 sps:$4 sm:$0xff]  }
  0x49   : > { %2050 = vmatprep.mubr.bf16.mxu1 %v4173_v63  ;;  %3878 = vmatprep.subr.bf16.mxu1 %v4185_v1  ;;  %v4282_v61 = vld [vmem:[%s5261_s1 + $0x218] sm:$0xff]   ;;  %v4295_v62 = vld [vmem:[%s5261_s1 + $0x220] sm:$0xff]  }
  0x4a   : > { %3778 = vmatprep.subr.bf16.mxu0 %v4227_v24  ;;  %v4248_v63 = vld [vmem:[%s4481_s15 + $0x2d8] ss:$36 sps:$4 sm:$0xff]   ;;  %v4253_v1 = vld [vmem:[%s4481_s15 + $0x324] ss:$36 sps:$4 sm:$0xff]  }
  0x4b   : > { %3779 = vmatpush3.bf16.msra.mxu0 %v4228_v25  ;;  %v4289_v24 = vld [vmem:[%s4481_s15 + $0x254] ss:$36 sps:$4 sm:$0xff]   ;;  %v4293_v25 = vld [vmem:[%s4481_s15 + $0x1c] ss:$36 sps:$4 sm:$0xff]  }
  0x4c   : > { %3879 = vmatpush3.bf16.msra.mxu1 %v4186_v3  ;;  %4012 = vmatprep.subr.bf16.mxu0 %v4237_v29  ;;  %v4308_v3 = vld [vmem:[%s5261_s1 + $0x228] sm:$0xff]  }
  0x4d   : > { %3880 = vmatprep.subr.bf16.mxu1 %v4202_v9  ;;  %v4334_v9 = vld [vmem:[%s5261_s1 + $0x238] sm:$0xff]  }
  0x4f   : > { %1922 = vmatmul.mubr.bf16.gmra.mrb[20].mxu0 %v4175_v4  ;;  %2051 = vmatmul.mubr.bf16.gmra.mrb[20].mxu1 %v4176_v5  ;;  %v4257_v4 = vld [vmem:[%s4481_s15 + $0x320] ss:$36 sps:$4 sm:$0xff]   ;;  %v4258_v5 = vld [vmem:[%s4481_s15 + $0xe8] ss:$36 sps:$4 sm:$0xff]  }
  0x50   : > { %1929 = vmatprep.mubr.bf16.mxu0 %v4179_v6  ;;  %2058 = vmatprep.mubr.bf16.mxu1 %v4181_v7  ;;  %v4321_v6 = vld [vmem:[%s5261_s1 + $0x230] sm:$0xff]  }
  0x51   : > { %3881 = vmatpush3.bf16.msra.mxu1 %v4204_v11  ;;  %v4259_v7 = vld [vmem:[%s4481_s15 + $0x36c] ss:$36 sps:$4 sm:$0xff]  }
  0x52   : > { %3882 = vmatprep.subr.bf16.mxu1 %v4219_v18  ;;  %v4264_v11 = vld [vmem:[%s4481_s15 + $0x130] ss:$36 sps:$4 sm:$0xff]   ;;  %v4278_v18 = vld [vmem:[%s4481_s15 + $0x3f8] ss:$36 sps:$4 sm:$0xff]  }
  0x55   : > { %3883 = vmatpush3.bf16.msra.mxu1 %v4220_v19  ;;  %v4279_v19 = vld [vmem:[%s4481_s15 + $0x1c0] ss:$36 sps:$4 sm:$0xff]  }
  0x56   : > { %3884 = vmatprep.subr.bf16.mxu1 %v4235_v26  ;;  %v4291_v26 = vld [vmem:[%s4481_s15 + $0x18] ss:$36 sps:$4 sm:$0xff]  }
  0x57   : > { %1930 = vmatmul.mubr.bf16.gmra.mrb[24].mxu0 %v4183_v12  ;;  %2059 = vmatmul.mubr.bf16.gmra.mrb[24].mxu1 %v4184_v13  ;;  %v4268_v12 = vld [vmem:[%s4481_s15 + $0x3b4] ss:$36 sps:$4 sm:$0xff]   ;;  %v4270_v13 = vld [vmem:[%s4481_s15 + $0x17c] ss:$36 sps:$4 sm:$0xff]  }
  0x58   : > { %1937 = vmatprep.mubr.bf16.mxu0 %v4189_v14  ;;  %2066 = vmatprep.mubr.bf16.mxu1 %v4191_v17  ;;  %v4272_v14 = vld [vmem:[%s4481_s15 + $0x3b0] ss:$36 sps:$4 sm:$0xff]   ;;  %v4276_v17 = vld [vmem:[%s4481_s15 + $0x1c4] ss:$36 sps:$4 sm:$0xff]  }
  0x59   : > { %3885 = vmatpush3.bf16.msra.mxu1 %v4236_v28  ;;  %v4296_v28 = vld [vmem:[%s4481_s15 + $0x29c] ss:$36 sps:$4 sm:$0xff]  }
  0x5a   : > { %3886 = vmatprep.subr.bf16.mxu1 %v4250_v33  ;;  %v4304_v33 = vld [vmem:[%s4481_s15 + $0xac] ss:$36 sps:$4 sm:$0xff]  }
  0x5d   : > { %3887 = vmatpush3.bf16.msra.mxu1 %v4251_v35  ;;  %v4307_v35 = vld [vmem:[%s4481_s15 + $0xa8] ss:$36 sps:$4 sm:$0xff]  }
  0x5e   : > { %3888 = vmatprep.subr.bf16.mxu1 %v4265_v41  ;;  %v4317_v41 = vld [vmem:[%s4481_s15 + $0x13c] ss:$36 sps:$4 sm:$0xff]  }
  0x5f   : > { %1938 = vmatmul.mubr.bf16.gmra.mrb[28].mxu0 %v4193_v20  ;;  %2067 = vmatmul.mubr.bf16.gmra.mrb[28].mxu1 %v4194_v21  ;;  %v4283_v20 = vld [vmem:[%s4481_s15 + $0x444] ss:$36 sps:$4 sm:$0xff]   ;;  %v4285_v21 = vld [vmem:[%s4481_s15 + $0x20c] ss:$36 sps:$4 sm:$0xff]  }
  0x60   : > { %1945 = vmatprep.mubr.bf16.mxu0 %v4195_v22  ;;  %2074 = vmatprep.mubr.bf16.mxu1 %v4197_v23  ;;  %v4287_v22 = vld [vmem:[%s4481_s15 + $0x440] ss:$36 sps:$4 sm:$0xff]   ;;  %v4288_v23 = vld [vmem:[%s4481_s15 + $0x208] ss:$36 sps:$4 sm:$0xff]  }
  0x61   : > { %3889 = vmatpush3.bf16.msra.mxu1 %v4266_v42  ;;  %v4319_v42 = vld [vmem:[%s4481_s15 + $0x370] ss:$36 sps:$4 sm:$0xff]  }
  0x62   : > { %3890 = vmatprep.subr.bf16.mxu1 %v4280_v47  ;;  %v4327_v47 = vld [vmem:[%s4481_s15 + $0x180] ss:$36 sps:$4 sm:$0xff]  }
  0x65   : > { %3891 = vmatpush3.bf16.msra.mxu1 %v4281_v48  ;;  %v4328_v48 = vld [vmem:[%s4481_s15 + $0x404] ss:$36 sps:$4 sm:$0xff]  }
  0x67   : > { %1946 = vmatmul.mubr.bf16.gmra.mrb[32].mxu0 %v4199_v27  ;;  %2075 = vmatmul.mubr.bf16.gmra.mrb[32].mxu1 %v4200_v30  ;;  %v4294_v27 = vld [vmem:[%s4481_s15 + $0x250] ss:$36 sps:$4 sm:$0xff]   ;;  %v4300_v30 = vld [vmem:[%s4481_s15 + $0x298] ss:$36 sps:$4 sm:$0xff]  }
  0x68   : > { %1953 = vmatprep.mubr.bf16.mxu0 %v4205_v31  ;;  %2082 = vmatprep.mubr.bf16.mxu1 %v4207_v32  ;;  %v4301_v31 = vld [vmem:[%s4481_s15 + $0x60] ss:$36 sps:$4 sm:$0xff]  }
  0x69   : > { %v4302_v32 = vld [vmem:[%s4481_s15 + $0x2e4] ss:$36 sps:$4 sm:$0xff]  }
  0x6f   : > { %1954 = vmatmul.mubr.bf16.gmra.mrb[36].mxu0 %v4209_v34  ;;  %2083 = vmatmul.mubr.bf16.gmra.mrb[36].mxu1 %v4210_v36  ;;  %v4306_v34 = vld [vmem:[%s4481_s15 + $0x2e0] ss:$36 sps:$4 sm:$0xff]   ;;  %v4309_v36 = vld [vmem:[%s4481_s15 + $0x32c] ss:$36 sps:$4 sm:$0xff]  }
  0x70   : > { %1961 = vmatprep.mubr.bf16.mxu0 %v4213_v37  ;;  %2090 = vmatprep.mubr.bf16.mxu1 %v4215_v38  ;;  %v4311_v37 = vld [vmem:[%s4481_s15 + $0xf4] ss:$36 sps:$4 sm:$0xff]   ;;  %v4313_v38 = vld [vmem:[%s4481_s15 + $0x328] ss:$36 sps:$4 sm:$0xff]  }
  0x77   : > { %1962 = vmatmul.mubr.bf16.gmra.mrb[40].mxu0 %v4217_v39  ;;  %2091 = vmatmul.mubr.bf16.gmra.mrb[40].mxu1 %v4218_v40  ;;  %v4314_v39 = vld [vmem:[%s4481_s15 + $0xf0] ss:$36 sps:$4 sm:$0xff]  }
  0x78   : > { %1969 = vmatprep.mubr.bf16.mxu0 %v4221_v43  ;;  %2098 = vmatprep.mubr.bf16.mxu1 %v4223_v44  ;;  %v4315_v40 = vld [vmem:[%s4481_s15 + $0x374] ss:$36 sps:$4 sm:$0xff]   ;;  %v4322_v44 = vld [vmem:[%s4481_s15 + $0x3bc] ss:$36 sps:$4 sm:$0xff]  }
  0x79   : > { %v4320_v43 = vld [vmem:[%s4481_s15 + $0x138] ss:$36 sps:$4 sm:$0xff]  }
  0x7f   : > { %1970 = vmatmul.mubr.bf16.gmra.mrb[44].mxu0 %v4225_v45  ;;  %2099 = vmatmul.mubr.bf16.gmra.mrb[44].mxu1 %v4226_v46  ;;  %v4324_v45 = vld [vmem:[%s4481_s15 + $0x184] ss:$36 sps:$4 sm:$0xff]   ;;  %v4326_v46 = vld [vmem:[%s4481_s15 + $0x3b8] ss:$36 sps:$4 sm:$0xff]  }
  0x80   : > { %2106 = vmatprep.mubr.bf16.mxu1 %v4229_v49  ;;  %2203 = vmatprep.mubr.bf16.mxu0 %v4233_v50  ;;  %v4330_v49 = vld [vmem:[%s4481_s15 + $0x1cc] ss:$36 sps:$4 sm:$0xff]   ;;  %v4332_v50 = vld [vmem:[%s4481_s15 + $0x400] ss:$36 sps:$4 sm:$0xff]  }
  0x87   : > { %2107 = vmatmul.mubr.bf16.gmra.mrb[48].mxu1 %v4234_v52  ;;  %2204 = vmatmul.mubr.bf16.vlgmr.msra.gmra.mrb[48].mxu0 %v4231_v51  ;;  %v4333_v51 = vld [vmem:[%s4481_s15 + $0x1c8] ss:$36 sps:$4 sm:$0xff]  }
  0x88   : > { %4013 = vmatpush3.bf16.msra.mxu0 %v4237_v29  ;;  %2114 = vmatprep.mubr.bf16.mxu1 %v4238_v53  ;;  %v4298_v29 = vld [vmem:[%s4481_s15 + $0x64] ss:$36 sps:$4 sm:$0xff]   ;;  %v4335_v52 = vld [vmem:[%s4481_s15 + $0x44c] ss:$36 sps:$4 sm:$0xff]   ;;  %v4337_v53 = vld [vmem:[%s4481_s15 + $0x214] ss:$36 sps:$4 sm:$0xff]  }
  0x89   : > { %2211 = vmatprep.mubr.bf16.mxu0 %v4240_v54  ;;  %4014 = vmatprep.subr.bf16.mxu0 %v4252_v55 }
  0x8c   : > { %4015 = vmatpush3.bf16.msra.mxu0 %v4252_v55 }
  0x8d   : > { %4016 = vmatprep.subr.bf16.mxu0 %v4267_v56 }
  0x8f   : > { %2115 = vmatmul.mubr.bf16.gmra.mrb[52].mxu1 %v4242_v57  ;;  %2212 = vmatmul.mubr.bf16.gmra.mrb[52].mxu0 %v4243_v58  ;;  %v4339_v58 = vld [vmem:[%s4481_s15 + $0x448] ss:$36 sps:$4 sm:$0xff]  }
  0x90   : > { %2122 = vmatprep.mubr.bf16.mxu1 %v4244_v59  ;;  %2219 = vmatprep.mubr.bf16.mxu0 %v4246_v60  ;;  %v4340_v59 = vld [vmem:[%s4481_s15 + $0x210] ss:$36 sps:$4 sm:$0xff]  }
  0x91   : > { %4017 = vmatpush3.bf16.msra.mxu0 %v4267_v56 }
  0x92   : > { %4018 = vmatprep.subr.bf16.mxu0 %v4282_v61 }
  0x95   : > { %4019 = vmatpush3.bf16.msra.mxu0 %v4282_v61 }
  0x96   : > { %4020 = vmatprep.subr.bf16.mxu0 %v4295_v62 }
  0x97   : > { %2123 = vmatmul.mubr.bf16.gmra.mrb[56].mxu1 %v4248_v63  ;;  %2220 = vmatmul.mubr.bf16.gmra.mrb[56].mxu0 %v4249_v0  ;;  %v4341_v0 = vld [vmem:[%s4481_s15 + $0x25c] ss:$36 sps:$4 sm:$0xff]  }
  0x98   : > { %2130 = vmatprep.mubr.bf16.mxu1 %v4253_v1  ;;  %2227 = vmatprep.mubr.bf16.mxu0 %v4255_v2  ;;  %v4343_v1 = vld [vmem:[%s4481_s15 + $0x20] ss:$36 sps:$4 sm:$0xff]  }
  0x99   : > { %4021 = vmatpush3.bf16.msra.mxu0 %v4295_v62 }
  0x9a   : > { %4022 = vmatprep.subr.bf16.mxu0 %v4308_v3 }
  0x9d   : > { %4023 = vmatpush3.bf16.msra.mxu0 %v4308_v3 }
  0x9e   : > { %4024 = vmatprep.subr.bf16.mxu0 %v4321_v6 }
  0x9f   : > { %2131 = vmatmul.mubr.bf16.gmra.mrb[60].mxu1 %v4257_v4  ;;  %2228 = vmatmul.mubr.bf16.gmra.mrb[60].mxu0 %v4258_v5 }
  0xa0   : > { %2138 = vmatprep.mubr.bf16.mxu1 %v4259_v7  ;;  %2235 = vmatprep.mubr.bf16.mxu0 %v4261_v8 }
  0xa1   : > { %4025 = vmatpush3.bf16.msra.mxu0 %v4321_v6 }
  0xa2   : > { %4026 = vmatprep.subr.bf16.mxu0 %v4334_v9 }
  0xa5   : > { %4027 = vmatpush3.bf16.msra.mxu0 %v4334_v9 }
  0xa7   : > { %2139 = vmatmul.mubr.bf16.gmra.mrb[64].mxu1 %v4263_v10  ;;  %2236 = vmatmul.mubr.bf16.gmra.mrb[64].mxu0 %v4264_v11  ;;  %v4344_v10 = vld [vmem:[%s4481_s15 + $0x258] ss:$36 sps:$4 sm:$0xff]   ;;  %v4345_v11 = vld [vmem:[%s4481_s15 + $0x68] ss:$36 sps:$4 sm:$0xff]  }
  0xa8   : > { %2146 = vmatprep.mubr.bf16.mxu1 %v4268_v12  ;;  %2243 = vmatprep.mubr.bf16.mxu0 %v4270_v13 }
  0xaf   : > { %2147 = vmatmul.mubr.bf16.gmra.mrb[68].mxu1 %v4272_v14  ;;  %2244 = vmatmul.mubr.bf16.gmra.mrb[68].mxu0 %v4273_v15 }
  0xb0   : > { %2154 = vmatprep.mubr.bf16.mxu1 %v4274_v16  ;;  %2251 = vmatprep.mubr.bf16.mxu0 %v4276_v17  ;;  %v4346_v16 = vld [vmem:[%s4481_s15 + $0x2a4] ss:$36 sps:$4 sm:$0xff]   ;;  %v4348_v17 = vld [vmem:[%s4481_s15 + $0xb0] ss:$36 sps:$4 sm:$0xff]  }
  0xb7   : > { %2155 = vmatmul.mubr.bf16.gmra.mrb[72].mxu1 %v4278_v18  ;;  %2252 = vmatmul.mubr.bf16.gmra.mrb[72].mxu0 %v4279_v19 }
  0xb8   : > { %2162 = vmatprep.mubr.bf16.mxu1 %v4283_v20  ;;  %2259 = vmatprep.mubr.bf16.mxu0 %v4285_v21 }
  0xbf   : > { %2163 = vmatmul.mubr.bf16.gmra.mrb[76].mxu1 %v4287_v22  ;;  %2260 = vmatmul.mubr.bf16.gmra.mrb[76].mxu0 %v4288_v23 }
  0xc0   : > { %2267 = vmatprep.mubr.bf16.mxu0 %v4289_v24  ;;  %2364 = vmatprep.mubr.bf16.mxu1 %v4293_v25 }
  0xc7   : > { %2268 = vmatmul.mubr.bf16.gmra.mrb[80].mxu0 %v4294_v27  ;;  %2365 = vmatmul.mubr.bf16.vlgmr.msra.gmra.mrb[80].mxu1 %v4291_v26  ;;  %v4349_v26 = vld [vmem:[%s4481_s15 + $0x2a0] ss:$36 sps:$4 sm:$0xff]   ;;  %v4350_v27 = vld [vmem:[%s4481_s15 + $0xf8] ss:$36 sps:$4 sm:$0xff]  }
  0xc8   : > { %2275 = vmatprep.mubr.bf16.mxu0 %v4296_v28  ;;  %2372 = vmatprep.mubr.bf16.mxu1 %v4298_v29 }
  0xcf   : > { %2276 = vmatmul.mubr.bf16.gmra.mrb[84].mxu0 %v4300_v30  ;;  %2373 = vmatmul.mubr.bf16.gmra.mrb[84].mxu1 %v4301_v31 }
  0xd0   : > { %2283 = vmatprep.mubr.bf16.mxu0 %v4302_v32  ;;  %2380 = vmatprep.mubr.bf16.mxu1 %v4304_v33  ;;  %v4351_v32 = vld [vmem:[%s4481_s15 + $0x2ec] ss:$36 sps:$4 sm:$0xff]   ;;  %v4353_v33 = vld [vmem:[%s4481_s15 + $0x140] ss:$36 sps:$4 sm:$0xff]  }
  0xd7   : > { %2284 = vmatmul.mubr.bf16.gmra.mrb[88].mxu0 %v4306_v34  ;;  %2381 = vmatmul.mubr.bf16.gmra.mrb[88].mxu1 %v4307_v35 }
  0xd8   : > { %2291 = vmatprep.mubr.bf16.mxu0 %v4309_v36  ;;  %2388 = vmatprep.mubr.bf16.mxu1 %v4311_v37 }
  0xdf   : > { %2292 = vmatmul.mubr.bf16.gmra.mrb[92].mxu0 %v4313_v38  ;;  %2389 = vmatmul.mubr.bf16.gmra.mrb[92].mxu1 %v4314_v39 }
  0xe0   : > { %2299 = vmatprep.mubr.bf16.mxu0 %v4315_v40  ;;  %2396 = vmatprep.mubr.bf16.mxu1 %v4317_v41 }
  0xe7   : > { %2300 = vmatmul.mubr.bf16.gmra.mrb[96].mxu0 %v4319_v42  ;;  %2397 = vmatmul.mubr.bf16.gmra.mrb[96].mxu1 %v4320_v43  ;;  %v4354_v42 = vld [vmem:[%s4481_s15 + $0x2e8] ss:$36 sps:$4 sm:$0xff]  }
  0xe8   : > { %2307 = vmatprep.mubr.bf16.mxu0 %v4322_v44  ;;  %2404 = vmatprep.mubr.bf16.mxu1 %v4324_v45  ;;  %v4355_v43 = vld [vmem:[%s4481_s15 + $0x188] ss:$36 sps:$4 sm:$0xff]  }
  0xef   : > { %2308 = vmatmul.mubr.bf16.gmra.mrb[100].mxu0 %v4326_v46  ;;  %2405 = vmatmul.mubr.bf16.gmra.mrb[100].mxu1 %v4327_v47 }
  0xf0   : > { %2315 = vmatprep.mubr.bf16.mxu0 %v4328_v48  ;;  %2412 = vmatprep.mubr.bf16.mxu1 %v4330_v49  ;;  %v4356_v48 = vld [vmem:[%s4481_s15 + $0x334] ss:$36 sps:$4 sm:$0xff]  }
  0xf1   : > { %v4358_v49 = vld [vmem:[%s4481_s15 + $0x1d0] ss:$36 sps:$4 sm:$0xff]  }
  0xf7   : > { %2316 = vmatmul.mubr.bf16.gmra.mrb[104].mxu0 %v4332_v50  ;;  %2413 = vmatmul.mubr.bf16.gmra.mrb[104].mxu1 %v4333_v51 }
  0xf8   : > { %2323 = vmatprep.mubr.bf16.mxu0 %v4335_v52  ;;  %2420 = vmatprep.mubr.bf16.mxu1 %v4337_v53 }
  0xfa   : > { %v3628_v54 = vpop.f32.mrb[0].mxu1  ;;  %v3556_v55 = vpop.f32.mrb[0].mxu0 }
  0xfb   : > { %v3629_v56 = vpop.f32.mrb[1].mxu1  ;;  %v3557_v57 = vpop.f32.mrb[1].mxu0 }
  0xfc   : > { %v4784_v60 = vadd.f32 %v3629_v56, %v3628_v54  ;;  %v3631_v61 = vpop.f32.mrb[2].mxu1  ;;  %v4786_v62 = vadd.f32 %v3557_v57, %v3556_v55  ;;  %v3559_v63 = vpop.f32.mrb[2].mxu0 }
  0xfd   : > { %v3632_v2 = vpop.f32.mrb[3].mxu1  ;;  %v3560_v3 = vpop.f32.mrb[3].mxu0 }
  0xfe   : > { %v4790_v4 = vadd.f32 %v3632_v2, %v3631_v61  ;;  %v4792_v5 = vadd.f32 %v3560_v3, %v3559_v63  ;;  %v4361_v2 = vld [vmem:[%s4481_s15 + $0x37c] ss:$36 sps:$4 sm:$0xff]  }
  0xff   : > { %2324 = vmatmul.mubr.bf16.gmra.mrb[108].mxu0 %v4339_v58  ;;  %2421 = vmatmul.mubr.bf16.gmra.mrb[108].mxu1 %v4340_v59  ;;  %v4359_v58 = vld [vmem:[%s4481_s15 + $0x330] ss:$36 sps:$4 sm:$0xff]   ;;  %v4360_v59 = vld [vmem:[%s4481_s15 + $0x218] ss:$36 sps:$4 sm:$0xff]   ;;  %v4363_v3 = vld [vmem:[%s4481_s15 + $0x260] ss:$36 sps:$4 sm:$0xff]  }
 0x100   : > { %2428 = vmatprep.mubr.bf16.mxu1 %v4341_v0  ;;  %4028 = vmatprep.mubr.bf16.mxu0 %v4343_v1 }
 0x102   : > { %v3634_v6 = vpop.f32.mrb[4].mxu1  ;;  %v3562_v7 = vpop.f32.mrb[4].mxu0 }
 0x103   : > { %v3635_v8 = vpop.f32.mrb[5].mxu1  ;;  %v3563_v9 = vpop.f32.mrb[5].mxu0 }
 0x104   : > { %v4796_v12 = vadd.f32 %v3635_v8, %v3634_v6  ;;  %v3637_v13 = vpop.f32.mrb[6].mxu1  ;;  %v4798_v14 = vadd.f32 %v3563_v9, %v3562_v7  ;;  %v3565_v15 = vpop.f32.mrb[6].mxu0 }
 0x105   : > { %v3638_v18 = vpop.f32.mrb[7].mxu1  ;;  %v3566_v19 = vpop.f32.mrb[7].mxu0 }
 0x106   : > { %v4802_v20 = vadd.f32 %v3638_v18, %v3637_v13  ;;  %v4804_v21 = vadd.f32 %v3566_v19, %v3565_v15  ;;  %v4364_v18 = vld [vmem:[%s4481_s15 + $0x378] ss:$36 sps:$4 sm:$0xff]   ;;  %v4365_v19 = vld [vmem:[%s4481_s15 + $0x2a8] ss:$36 sps:$4 sm:$0xff]  }
 0x107   : > { %2429 = vmatmul.mubr.bf16.gmra.mrb[112].mxu1 %v4344_v10  ;;  %4029 = vmatmul.mubr.bf16.vlgmr.msra.gmra.mrb[112].mxu0 %v4345_v11 }
 0x108   : > { %2436 = vmatprep.mubr.bf16.mxu1 %v4346_v16  ;;  %4032 = vmatprep.mubr.bf16.mxu0 %v4348_v17 }
 0x10a   : > { %v3640_v22 = vpop.f32.mrb[8].mxu1  ;;  %v3568_v23 = vpop.f32.mrb[8].mxu0 }
 0x10b   : > { %v3641_v24 = vpop.f32.mrb[9].mxu1  ;;  %v3569_v25 = vpop.f32.mrb[9].mxu0 }
 0x10c   : > { %v4808_v28 = vadd.f32 %v3641_v24, %v3640_v22  ;;  %v3643_v29 = vpop.f32.mrb[10].mxu1  ;;  %v4810_v30 = vadd.f32 %v3569_v25, %v3568_v23  ;;  %v3571_v31 = vpop.f32.mrb[10].mxu0  ;;  %v4366_v25 = vld [vmem:[%s4481_s15 + $0x3c4] ss:$36 sps:$4 sm:$0xff]  }
 0x10d   : > { %v3644_v34 = vpop.f32.mrb[11].mxu1  ;;  %v3572_v35 = vpop.f32.mrb[11].mxu0 }
 0x10e   : > { %v4814_v36 = vadd.f32 %v3644_v34, %v3643_v29  ;;  %v4816_v37 = vadd.f32 %v3572_v35, %v3571_v31 }
 0x10f   : > { %2437 = vmatmul.mubr.bf16.gmra.mrb[116].mxu1 %v4349_v26  ;;  %4033 = vmatmul.mubr.bf16.gmra.mrb[116].mxu0 %v4350_v27  ;;  %v4368_v26 = vld [vmem:[%s4481_s15 + $0x2f0] ss:$36 sps:$4 sm:$0xff]  }
 0x110   : > { %2444 = vmatprep.mubr.bf16.mxu1 %v4351_v32  ;;  %4036 = vmatprep.mubr.bf16.mxu0 %v4353_v33 }
 0x112   : > { %v3646_v38 = vpop.f32.mrb[12].mxu1  ;;  %v3574_v39 = vpop.f32.mrb[12].mxu0 }
 0x113   : > { %v3647_v40 = vpop.f32.mrb[13].mxu1  ;;  %v3575_v41 = vpop.f32.mrb[13].mxu0 }
 0x114   : > { %v4820_v44 = vadd.f32 %v3647_v40, %v3646_v38  ;;  %v3649_v45 = vpop.f32.mrb[14].mxu1  ;;  %v4822_v46 = vadd.f32 %v3575_v41, %v3574_v39  ;;  %v3577_v47 = vpop.f32.mrb[14].mxu0  ;;  %v4369_v40 = vld [vmem:[%s4481_s15 + $0x3c0] ss:$36 sps:$4 sm:$0xff]   ;;  %v4370_v41 = vld [vmem:[%s4481_s15 + $0x338] ss:$36 sps:$4 sm:$0xff]  }
 0x115   : > { %v3650_v50 = vpop.f32.mrb[15].mxu1  ;;  %v3578_v51 = vpop.f32.mrb[15].mxu0 }
 0x116   : > { %v4826_v52 = vadd.f32 %v3650_v50, %v3649_v45  ;;  %v4828_v53 = vadd.f32 %v3578_v51, %v3577_v47  ;;  %v4371_v47 = vld [vmem:[%s4481_s15 + $0x40c] ss:$36 sps:$4 sm:$0xff]  }
 0x117   : > { %2445 = vmatmul.mubr.bf16.gmra.mrb[120].mxu1 %v4354_v42  ;;  %4037 = vmatmul.mubr.bf16.gmra.mrb[120].mxu0 %v4355_v43 }
 0x118   : > { %2452 = vmatprep.mubr.bf16.mxu1 %v4356_v48  ;;  %4040 = vmatprep.mubr.bf16.mxu0 %v4358_v49  ;;  %v4373_v48 = vld [vmem:[%s4481_s15 + $0x380] ss:$36 sps:$4 sm:$0xff]  }
 0x11a   : > { %v3668_v54 = vpop.f32.mrb[16].mxu1  ;;  %v3580_v55 = vpop.f32.mrb[16].mxu0 }
 0x11b   : > { %v3669_v56 = vpop.f32.mrb[17].mxu1  ;;  %v3581_v57 = vpop.f32.mrb[17].mxu0 }
 0x11c   : > { %v3670_v61 = vadd.f32 %v3669_v56, %v3668_v54  ;;  %v3671_v63 = vpop.f32.mrb[18].mxu1  ;;  %v4832_v0 = vadd.f32 %v3581_v57, %v3580_v55  ;;  %v3583_v1 = vpop.f32.mrb[18].mxu0 }
 0x11d   : > { %v3672_v6 = vpop.f32.mrb[19].mxu1  ;;  %v3584_v7 = vpop.f32.mrb[19].mxu0 }
 0x11e   : > { %v4837_v8 = vadd.f32 %v3670_v61, %v4786_v62  ;;  %v3673_v9 = vadd.f32 %v3672_v6, %v3671_v63  ;;  %v4839_v10 = vadd.f32 %v3584_v7, %v3583_v1  ;;  %v4374_v61 = vld [vmem:[%s4481_s15 + $0x408] ss:$36 sps:$4 sm:$0xff]   ;;  %v4376_v6 = vld [vmem:[%s4481_s15 + $0x454] ss:$36 sps:$4 sm:$0xff]  }
 0x11f   : > { %2453 = vmatmul.mubr.bf16.gmra.mrb[124].mxu1 %v4359_v58  ;;  %4041 = vmatmul.mubr.bf16.gmra.mrb[124].mxu0 %v4360_v59  ;;  %v4375_v63 = vld [vmem:[%s4481_s15 + $0x3c8] ss:$36 sps:$4 sm:$0xff]   ;;  %v4378_v7 = vld [vmem:[%s4481_s15 + $0x410] ss:$36 sps:$4 sm:$0xff]  }
 0x120   : > { %v4842_v11 = vadd.f32 %v3673_v9, %v4792_v5  ;;  %2460 = vmatprep.mubr.bf16.mxu1 %v4361_v2  ;;  %4044 = vmatprep.mubr.bf16.mxu0 %v4363_v3 }
 0x122   : > { %v3674_v13 = vpop.f32.mrb[20].mxu1  ;;  %v3586_v15 = vpop.f32.mrb[20].mxu0 }
 0x123   : > { %v3675_v16 = vpop.f32.mrb[21].mxu1  ;;  %v3587_v17 = vpop.f32.mrb[21].mxu0 }
 0x124   : > { %v3676_v62 = vadd.f32 %v3675_v16, %v3674_v13  ;;  %v3677_v22 = vpop.f32.mrb[22].mxu1  ;;  %v4846_v23 = vadd.f32 %v3587_v17, %v3586_v15  ;;  %v3589_v24 = vpop.f32.mrb[22].mxu0 }
 0x125   : > { %v3678_v27 = vpop.f32.mrb[23].mxu1  ;;  %v3590_v5 = vpop.f32.mrb[23].mxu0 }
 0x126   : > { %v4851_v29 = vadd.f32 %v3676_v62, %v4798_v14  ;;  %v3679_v31 = vadd.f32 %v3678_v27, %v3677_v22  ;;  %v4853_v32 = vadd.f32 %v3590_v5, %v3589_v24  ;;  %v4379_v24 = vld [vmem:[%s4481_s15 + $0x450] ss:$36 sps:$4 sm:$0xff]  }
 0x127   : > { %2461 = vmatmul.mubr.bf16.gmra.mrb[128].mxu1 %v4364_v18  ;;  %4045 = vmatmul.mubr.bf16.gmra.mrb[128].mxu0 %v4365_v19 }
 0x128   : > { %v4856_v33 = vadd.f32 %v3679_v31, %v4804_v21  ;;  %2468 = vmatprep.mubr.bf16.mxu1 %v4366_v25  ;;  %4048 = vmatprep.mubr.bf16.mxu0 %v4368_v26  ;;  %v4380_v25 = vld [vmem:[%s4481_s15 + $0x458] ss:$36 sps:$4 sm:$0xff]  }
 0x12a   : > { %v3680_v34 = vpop.f32.mrb[24].mxu1  ;;  %v3592_v35 = vpop.f32.mrb[24].mxu0 }
 0x12b   : > { %v3681_v38 = vpop.f32.mrb[25].mxu1  ;;  %v3593_v39 = vpop.f32.mrb[25].mxu0 }
 0x12c   : > { %v3682_v14 = vadd.f32 %v3681_v38, %v3680_v34  ;;  %v3683_v42 = vpop.f32.mrb[26].mxu1  ;;  %v4860_v43 = vadd.f32 %v3593_v39, %v3592_v35  ;;  %v3595_v45 = vpop.f32.mrb[26].mxu0 }
 0x12d   : > { %v3684_v49 = vpop.f32.mrb[27].mxu1  ;;  %v3596_v21 = vpop.f32.mrb[27].mxu0 }
 0x12e   : > { %v4865_v50 = vadd.f32 %v3682_v14, %v4810_v30  ;;  %v3685_v51 = vadd.f32 %v3684_v49, %v3683_v42  ;;  %v4867_v54 = vadd.f32 %v3596_v21, %v3595_v45 }
 0x12f   : > { %2469 = vmatmul.mubr.bf16.gmra.mrb[132].mxu1 %v4369_v40  ;;  %4049 = vmatmul.mubr.bf16.gmra.mrb[132].mxu0 %v4370_v41 }
 0x130   : > { %v4870_v55 = vadd.f32 %v3685_v51, %v4816_v37  ;;  %2476 = vmatprep.mubr.bf16.mxu1 %v4371_v47  ;;  %4052 = vmatprep.mubr.bf16.mxu0 %v4373_v48 }
 0x132   : > { %v3686_v56 = vpop.f32.mrb[28].mxu1  ;;  %v3598_v57 = vpop.f32.mrb[28].mxu0 }
 0x133   : > { %v3687_v58 = vpop.f32.mrb[29].mxu1  ;;  %v3599_v59 = vpop.f32.mrb[29].mxu0 }
 0x134   : > { %v3688_v30 = vadd.f32 %v3687_v58, %v3686_v56  ;;  %v3689_v1 = vpop.f32.mrb[30].mxu1  ;;  %v4874_v2 = vadd.f32 %v3599_v59, %v3598_v57  ;;  %v3601_v3 = vpop.f32.mrb[30].mxu0 }
 0x135   : > { %v3690_v9 = vpop.f32.mrb[31].mxu1  ;;  %v3602_v37 = vpop.f32.mrb[31].mxu0 }
 0x136   : > { %v4879_v13 = vadd.f32 %v3688_v30, %v4822_v46  ;;  %v3691_v15 = vadd.f32 %v3690_v9, %v3689_v1  ;;  %v4881_v16 = vadd.f32 %v3602_v37, %v3601_v3 }
 0x137   : > { %2477 = vmatmul.mubr.bf16.gmra.mrb[136].mxu1 %v4374_v61  ;;  %4053 = vmatmul.mubr.bf16.gmra.mrb[136].mxu0 %v4375_v63 }
 0x138   : > { %v4884_v17 = vadd.f32 %v3691_v15, %v4828_v53  ;;  %2484 = vmatprep.mubr.bf16.mxu1 %v4376_v6  ;;  %4056 = vmatprep.mubr.bf16.mxu0 %v4378_v7 }
 0x13a   : > { %v3692_v18 = vpop.f32.mrb[32].mxu1  ;;  %v3604_v19 = vpop.f32.mrb[32].mxu0 }
 0x13b   : > { %v3693_v62 = vpop.f32.mrb[33].mxu1  ;;  %v3605_v22 = vpop.f32.mrb[33].mxu0 }
 0x13c   : > { %v3694_v26 = vadd.f32 %v3693_v62, %v3692_v18  ;;  %v3695_v27 = vpop.f32.mrb[34].mxu1  ;;  %v3606_v46 = vadd.f32 %v3605_v22, %v3604_v19  ;;  %v3607_v5 = vpop.f32.mrb[34].mxu0 }
 0x13d   : > { %v3696_v31 = vpop.f32.mrb[35].mxu1  ;;  %v3608_v34 = vpop.f32.mrb[35].mxu0 }
 0x13e   : > { %v4889_v35 = vadd.f32 %v3694_v26, %v4832_v0  ;;  %v3697_v38 = vadd.f32 %v3696_v31, %v3695_v27  ;;  %v3609_v53 = vadd.f32 %v3608_v34, %v3607_v5 }
 0x13f   : > { %2485 = vmatmul.mubr.bf16.gmra.mrb[140].mxu1 %v4379_v24  ;;  %4057 = vmatmul.mubr.bf16.gmra.mrb[140].mxu0 %v4380_v25 }
 0x140   : > { %v4892_v39 = vadd.f32 %v3697_v38, %v4839_v10 }
 0x142   : > { %v3698_v40 = vpop.f32.mrb[36].mxu1  ;;  %v3610_v41 = vpop.f32.mrb[36].mxu0 }
 0x143   : > { %v3699_v14 = vpop.f32.mrb[37].mxu1  ;;  %v3611_v42 = vpop.f32.mrb[37].mxu0 }
 0x144   : > { %v3700_v45 = vadd.f32 %v3699_v14, %v3698_v40  ;;  %v3701_v47 = vpop.f32.mrb[38].mxu1  ;;  %v3612_v48 = vadd.f32 %v3611_v42, %v3610_v41  ;;  %v3613_v49 = vpop.f32.mrb[38].mxu0 }
 0x145   : > { %v3702_v21 = vpop.f32.mrb[39].mxu1  ;;  %v3614_v51 = vpop.f32.mrb[39].mxu0 }
 0x146   : > { %v4895_v0 = vadd.f32 %v3700_v45, %v4846_v23  ;;  %v3703_v56 = vadd.f32 %v3702_v21, %v3701_v47  ;;  %v3615_v57 = vadd.f32 %v3614_v51, %v3613_v49 }
 0x148   : > { %v4898_v58 = vadd.f32 %v3703_v56, %v4853_v32 }
 0x14a   : > { %v3704_v10 = vpop.f32.mrb[40].mxu1  ;;  %v3616_v59 = vpop.f32.mrb[40].mxu0 }
 0x14b   : > { %v3705_v61 = vpop.f32.mrb[41].mxu1  ;;  %v3617_v63 = vpop.f32.mrb[41].mxu0 }
 0x14c   : > { %v3706_v30 = vadd.f32 %v3705_v61, %v3704_v10  ;;  %v3707_v1 = vpop.f32.mrb[42].mxu1  ;;  %v4900_v3 = vadd.f32 %v3617_v63, %v3616_v59  ;;  %v3619_v6 = vpop.f32.mrb[42].mxu0 }
 0x14d   : > { %v3708_v7 = vpop.f32.mrb[43].mxu1  ;;  %v3620_v9 = vpop.f32.mrb[43].mxu0 }
 0x14e   : > { %v4903_v37 = vadd.f32 %v3706_v30, %v4860_v43  ;;  %v3709_v23 = vadd.f32 %v3708_v7, %v3707_v1  ;;  %v3621_v15 = vadd.f32 %v3620_v9, %v3619_v6 }
 0x150   : > { %v4906_v18 = vadd.f32 %v3709_v23, %v4867_v54 }
 0x152   : > { %v3710_v32 = vpop.f32.mrb[44].mxu1  ;;  %v3622_v19 = vpop.f32.mrb[44].mxu0 }
 0x153   : > { %v3711_v62 = vpop.f32.mrb[45].mxu1  ;;  %v3623_v22 = vpop.f32.mrb[45].mxu0 }
 0x154   : > { %v3712_v24 = vadd.f32 %v3711_v62, %v3710_v32  ;;  %v3713_v25 = vpop.f32.mrb[46].mxu1  ;;  %v4908_v26 = vadd.f32 %v3623_v22, %v3622_v19  ;;  %v3625_v27 = vpop.f32.mrb[46].mxu0 }
 0x155   : > { %v3714_v5 = vpop.f32.mrb[47].mxu1  ;;  %v3626_v31 = vpop.f32.mrb[47].mxu0 }
 0x156   : > { %v4911_v34 = vadd.f32 %v3712_v24, %v4874_v2  ;;  %v3715_v43 = vadd.f32 %v3714_v5, %v3713_v25  ;;  %v4913_v38 = vadd.f32 %v3626_v31, %v3625_v27 }
 0x158   : > { %v4916_v54 = vadd.f32 %v3715_v43, %v4881_v16 }
 0x15a   : > { %v3716_v40 = vpop.f32.mrb[48].mxu1  ;;  %v3780_v41 = vpop.f32.mrb[48].mxu0 }
 0x15b   : > { %v3717_v14 = vpop.f32.mrb[49].mxu1  ;;  %v3781_v42 = vpop.f32.mrb[49].mxu0 }
 0x15c   : > { %v3718_v45 = vadd.f32 %v3717_v14, %v3716_v40  ;;  %v3782_v47 = vadd.f32 %v3781_v42, %v3780_v41  ;;  %v3719_v49 = vpop.f32.mrb[50].mxu1  ;;  %v3783_v21 = vpop.f32.mrb[50].mxu0 }
 0x15d   : > { %v3720_v51 = vpop.f32.mrb[51].mxu1  ;;  %v3784_v56 = vpop.f32.mrb[51].mxu0 }
 0x15e   : > { %v4918_v10 = vadd.f32 %v3718_v45, %v3606_v46  ;;  %v4921_v2 = vadd.f32 %v3782_v47, %v4837_v8  ;;  %v3721_v59 = vadd.f32 %v3720_v51, %v3719_v49  ;;  %v3785_v61 = vadd.f32 %v3784_v56, %v3783_v21 }
 0x160   : > { %v4923_v63 = vadd.f32 %v3721_v59, %v3609_v53  ;;  %v4926_v16 = vadd.f32 %v3785_v61, %v4842_v11 }
 0x162   : > { %v3722_v30 = vpop.f32.mrb[52].mxu1  ;;  %v3786_v1 = vpop.f32.mrb[52].mxu0 }
 0x163   : > { %v3723_v6 = vpop.f32.mrb[53].mxu1  ;;  %v3787_v7 = vpop.f32.mrb[53].mxu0 }
 0x164   : > { %v3724_v9 = vadd.f32 %v3723_v6, %v3722_v30  ;;  %v3788_v23 = vadd.f32 %v3787_v7, %v3786_v1  ;;  %v3725_v32 = vpop.f32.mrb[54].mxu1  ;;  %v3789_v19 = vpop.f32.mrb[54].mxu0 }
 0x165   : > { %v3726_v46 = vpop.f32.mrb[55].mxu1  ;;  %v3790_v62 = vpop.f32.mrb[55].mxu0 }
 0x166   : > { %v4928_v22 = vadd.f32 %v3724_v9, %v3612_v48  ;;  %v4931_v8 = vadd.f32 %v3788_v23, %v4851_v29  ;;  %v3727_v53 = vadd.f32 %v3726_v46, %v3725_v32  ;;  %v3791_v24 = vadd.f32 %v3790_v62, %v3789_v19 }
 0x168   : > { %v4933_v25 = vadd.f32 %v3727_v53, %v3615_v57  ;;  %v4936_v11 = vadd.f32 %v3791_v24, %v4856_v33 }
 0x16a   : > { %v3728_v27 = vpop.f32.mrb[56].mxu1  ;;  %v3792_v5 = vpop.f32.mrb[56].mxu0 }
 0x16b   : > { %v3729_v31 = vpop.f32.mrb[57].mxu1  ;;  %v3793_v43 = vpop.f32.mrb[57].mxu0 }
 0x16c   : > { %v3730_v40 = vadd.f32 %v3729_v31, %v3728_v27  ;;  %v3794_v41 = vadd.f32 %v3793_v43, %v3792_v5  ;;  %v3731_v14 = vpop.f32.mrb[58].mxu1  ;;  %v3795_v42 = vpop.f32.mrb[58].mxu0 }
 0x16d   : > { %v3732_v48 = vpop.f32.mrb[59].mxu1  ;;  %v3796_v45 = vpop.f32.mrb[59].mxu0 }
 0x16e   : > { %v4939_v29 = vadd.f32 %v3730_v40, %v4900_v3  ;;  %v4942_v47 = vadd.f32 %v3794_v41, %v4865_v50  ;;  %v3733_v57 = vadd.f32 %v3732_v48, %v3731_v14  ;;  %v3797_v49 = vadd.f32 %v3796_v45, %v3795_v42 }
 0x170   : > { %v4944_v33 = vadd.f32 %v3733_v57, %v3621_v15  ;;  %v4947_v21 = vadd.f32 %v3797_v49, %v4870_v55 }
 0x172   : > { %v3734_v51 = vpop.f32.mrb[60].mxu1  ;;  %v3798_v56 = vpop.f32.mrb[60].mxu0 }
 0x173   : > { %v3735_v59 = vpop.f32.mrb[61].mxu1  ;;  %v3799_v61 = vpop.f32.mrb[61].mxu0 }
 0x174   : > { %v3736_v30 = vadd.f32 %v3735_v59, %v3734_v51  ;;  %v3800_v1 = vadd.f32 %v3799_v61, %v3798_v56  ;;  %v3737_v6 = vpop.f32.mrb[62].mxu1  ;;  %v3801_v7 = vpop.f32.mrb[62].mxu0 }
 0x175   : > { %v3738_v3 = vpop.f32.mrb[63].mxu1  ;;  %v3802_v9 = vpop.f32.mrb[63].mxu0 }
 0x176   : > { %v4950_v50 = vadd.f32 %v3736_v30, %v4908_v26  ;;  %v4953_v23 = vadd.f32 %v3800_v1, %v4879_v13  ;;  %v3739_v15 = vadd.f32 %v3738_v3, %v3737_v6  ;;  %v3803_v32 = vadd.f32 %v3802_v9, %v3801_v7 }
 0x178   : > { %v4956_v55 = vadd.f32 %v3739_v15, %v4913_v38  ;;  %v4959_v19 = vadd.f32 %v3803_v32, %v4884_v17 }
 0x17a   : > { %v3740_v46 = vpop.f32.mrb[64].mxu1  ;;  %v3804_v62 = vpop.f32.mrb[64].mxu0 }
 0x17b   : > { %v3741_v53 = vpop.f32.mrb[65].mxu1  ;;  %v3805_v24 = vpop.f32.mrb[65].mxu0 }
 0x17c   : > { %v3742_v27 = vadd.f32 %v3741_v53, %v3740_v46  ;;  %v3806_v5 = vadd.f32 %v3805_v24, %v3804_v62  ;;  %v3743_v31 = vpop.f32.mrb[66].mxu1  ;;  %v3807_v26 = vpop.f32.mrb[66].mxu0 }
 0x17d   : > { %v3744_v43 = vpop.f32.mrb[67].mxu1  ;;  %v3808_v40 = vpop.f32.mrb[67].mxu0 }
 0x17e   : > { %v4962_v13 = vadd.f32 %v3742_v27, %v4784_v60  ;;  %v4965_v41 = vadd.f32 %v3806_v5, %v4889_v35  ;;  %v3745_v38 = vadd.f32 %v3744_v43, %v3743_v31  ;;  %v3809_v14 = vadd.f32 %v3808_v40, %v3807_v26 }
 0x180   : > { %v4968_v17 = vadd.f32 %v3745_v38, %v4790_v4  ;;  %v4971_v42 = vadd.f32 %v3809_v14, %v4892_v39 }
 0x182   : > { %v3746_v48 = vpop.f32.mrb[68].mxu1  ;;  %v3810_v45 = vpop.f32.mrb[68].mxu0 }
 0x183   : > { %v3747_v57 = vpop.f32.mrb[69].mxu1  ;;  %v3811_v49 = vpop.f32.mrb[69].mxu0 }
 0x184   : > { %v3748_v51 = vadd.f32 %v3747_v57, %v3746_v48  ;;  %v3812_v56 = vadd.f32 %v3811_v49, %v3810_v45  ;;  %v3749_v59 = vpop.f32.mrb[70].mxu1  ;;  %v3813_v60 = vpop.f32.mrb[70].mxu0 }
 0x185   : > { %v3750_v61 = vpop.f32.mrb[71].mxu1  ;;  %v3814_v30 = vpop.f32.mrb[71].mxu0 }
 0x186   : > { %v4974_v35 = vadd.f32 %v3748_v51, %v4796_v12  ;;  %v4977_v1 = vadd.f32 %v3812_v56, %v4895_v0  ;;  %v3751_v4 = vadd.f32 %v3750_v61, %v3749_v59  ;;  %v3815_v6 = vadd.f32 %v3814_v30, %v3813_v60 }
 0x188   : > { %v4980_v39 = vadd.f32 %v3751_v4, %v4802_v20  ;;  %v4983_v7 = vadd.f32 %v3815_v6, %v4898_v58 }
 0x18a   : > { %v3752_v3 = vpop.f32.mrb[72].mxu1  ;;  %v3816_v9 = vpop.f32.mrb[72].mxu0 }
 0x18b   : > { %v3753_v15 = vpop.f32.mrb[73].mxu1  ;;  %v3817_v32 = vpop.f32.mrb[73].mxu0 }
 0x18c   : > { %v3754_v46 = vadd.f32 %v3753_v15, %v3752_v3  ;;  %v3818_v62 = vadd.f32 %v3817_v32, %v3816_v9  ;;  %v3755_v53 = vpop.f32.mrb[74].mxu1  ;;  %v3819_v12 = vpop.f32.mrb[74].mxu0 }
 0x18d   : > { %v3756_v24 = vpop.f32.mrb[75].mxu1  ;;  %v3820_v27 = vpop.f32.mrb[75].mxu0 }
 0x18e   : > { %v4986_v0 = vadd.f32 %v3754_v46, %v4808_v28  ;;  %v4989_v5 = vadd.f32 %v3818_v62, %v4903_v37  ;;  %v3757_v20 = vadd.f32 %v3756_v24, %v3755_v53  ;;  %v3821_v31 = vadd.f32 %v3820_v27, %v3819_v12 }
 0x190   : > { %v4992_v58 = vadd.f32 %v3757_v20, %v4814_v36  ;;  %v4995_v26 = vadd.f32 %v3821_v31, %v4906_v18 }
 0x192   : > { %v3758_v43 = vpop.f32.mrb[76].mxu1  ;;  %v3822_v40 = vpop.f32.mrb[76].mxu0 }
 0x193   : > { %v3759_v38 = vpop.f32.mrb[77].mxu1  ;;  %v3823_v14 = vpop.f32.mrb[77].mxu0 }
 0x194   : > { %v3760_v48 = vadd.f32 %v3759_v38, %v3758_v43  ;;  %v3824_v45 = vadd.f32 %v3823_v14, %v3822_v40  ;;  %v3761_v57 = vpop.f32.mrb[78].mxu1  ;;  %v3825_v28 = vpop.f32.mrb[78].mxu0 }
 0x195   : > { %v3762_v49 = vpop.f32.mrb[79].mxu1  ;;  %v3826_v51 = vpop.f32.mrb[79].mxu0 }
 0x196   : > { %v4998_v37 = vadd.f32 %v3760_v48, %v4820_v44  ;;  %v5001_v56 = vadd.f32 %v3824_v45, %v4911_v34  ;;  %v3763_v36 = vadd.f32 %v3762_v49, %v3761_v57  ;;  %v3827_v59 = vadd.f32 %v3826_v51, %v3825_v28 }
 0x198   : > { %v5004_v18 = vadd.f32 %v3763_v36, %v4826_v52  ;;  %v5007_v60 = vadd.f32 %v3827_v59, %v4916_v54 }
 0x19a   : > { %v3828_v61 = vpop.f32.mrb[80].mxu0  ;;  %v3892_v30 = vpop.f32.mrb[80].mxu1 }
 0x19b   : > { %v3829_v4 = vpop.f32.mrb[81].mxu0  ;;  %v3893_v6 = vpop.f32.mrb[81].mxu1 }
 0x19c   : > { %v3830_v3 = vadd.f32 %v3829_v4, %v3828_v61  ;;  %v3894_v9 = vadd.f32 %v3893_v6, %v3892_v30  ;;  %v3831_v15 = vpop.f32.mrb[82].mxu0  ;;  %v3895_v44 = vpop.f32.mrb[82].mxu1 }
 0x19d   : > { %v3832_v32 = vpop.f32.mrb[83].mxu0  ;;  %v3896_v46 = vpop.f32.mrb[83].mxu1 }
 0x19e   : > { %v5010_v34 = vadd.f32 %v3830_v3, %v4918_v10  ;;  %v3833_v62 = vadd.f32 %v3832_v32, %v3831_v15  ;;  %v3897_v53 = vadd.f32 %v3896_v46, %v3895_v44  ;;  %v5013_v52 = vadd.f32 %v3894_v9, %v4921_v2 }
 0x1a0   : > { %v5016_v54 = vadd.f32 %v3833_v62, %v4923_v63  ;;  %v5019_v12 = vadd.f32 %v3897_v53, %v4926_v16 }
 0x1a2   : > { %v3834_v24 = vpop.f32.mrb[84].mxu0  ;;  %v3898_v27 = vpop.f32.mrb[84].mxu1 }
 0x1a3   : > { %v3835_v20 = vpop.f32.mrb[85].mxu0  ;;  %v3899_v31 = vpop.f32.mrb[85].mxu1 }
 0x1a4   : > { %v3836_v43 = vadd.f32 %v3835_v20, %v3834_v24  ;;  %v3900_v40 = vadd.f32 %v3899_v31, %v3898_v27  ;;  %v3837_v38 = vpop.f32.mrb[86].mxu0  ;;  %v3901_v10 = vpop.f32.mrb[86].mxu1 }
 0x1a5   : > { %v3838_v14 = vpop.f32.mrb[87].mxu0  ;;  %v3902_v48 = vpop.f32.mrb[87].mxu1 }
 0x1a6   : > { %v5022_v45 = vadd.f32 %v3836_v43, %v4928_v22  ;;  %v3839_v2 = vadd.f32 %v3838_v14, %v3837_v38  ;;  %v3903_v57 = vadd.f32 %v3902_v48, %v3901_v10  ;;  %v5025_v63 = vadd.f32 %v3900_v40, %v4931_v8 }
 0x1a8   : > { %v5028_v16 = vadd.f32 %v3839_v2, %v4933_v25  ;;  %v5031_v28 = vadd.f32 %v3903_v57, %v4936_v11 }
 0x1aa   : > { %v3840_v49 = vpop.f32.mrb[88].mxu0  ;;  %v3904_v51 = vpop.f32.mrb[88].mxu1 }
 0x1ab   : > { %v3841_v36 = vpop.f32.mrb[89].mxu0  ;;  %v3905_v59 = vpop.f32.mrb[89].mxu1 }
 0x1ac   : > { %v3842_v61 = vadd.f32 %v3841_v36, %v3840_v49  ;;  %v3906_v30 = vadd.f32 %v3905_v59, %v3904_v51  ;;  %v3843_v4 = vpop.f32.mrb[90].mxu0  ;;  %v3907_v22 = vpop.f32.mrb[90].mxu1 }
 0x1ad   : > { %v3844_v6 = vpop.f32.mrb[91].mxu0  ;;  %v3908_v3 = vpop.f32.mrb[91].mxu1 }
 0x1ae   : > { %v5034_v9 = vadd.f32 %v3842_v61, %v4939_v29  ;;  %v3845_v8 = vadd.f32 %v3844_v6, %v3843_v4  ;;  %v3909_v15 = vadd.f32 %v3908_v3, %v3907_v22  ;;  %v5037_v25 = vadd.f32 %v3906_v30, %v4942_v47 }
 0x1b0   : > { %v5040_v11 = vadd.f32 %v3845_v8, %v4944_v33  ;;  %v5043_v44 = vadd.f32 %v3909_v15, %v4947_v21 }
 0x1b2   : > { %v3846_v32 = vpop.f32.mrb[92].mxu0  ;;  %v3910_v46 = vpop.f32.mrb[92].mxu1 }
 0x1b3   : > { %v3847_v62 = vpop.f32.mrb[93].mxu0  ;;  %v3911_v53 = vpop.f32.mrb[93].mxu1 }
 0x1b4   : > { %v3848_v24 = vadd.f32 %v3847_v62, %v3846_v32  ;;  %v3912_v27 = vadd.f32 %v3911_v53, %v3910_v46  ;;  %v3849_v20 = vpop.f32.mrb[94].mxu0  ;;  %v3913_v29 = vpop.f32.mrb[94].mxu1 }
 0x1b5   : > { %v3850_v31 = vpop.f32.mrb[95].mxu0  ;;  %v3914_v43 = vpop.f32.mrb[95].mxu1 }
 0x1b6   : > { %v5046_v40 = vadd.f32 %v3848_v24, %v4950_v50  ;;  %v3851_v47 = vadd.f32 %v3850_v31, %v3849_v20  ;;  %v3915_v38 = vadd.f32 %v3914_v43, %v3913_v29  ;;  %v5049_v33 = vadd.f32 %v3912_v27, %v4953_v23 }
 0x1b8   : > { %v5052_v21 = vadd.f32 %v3851_v47, %v4956_v55  ;;  %v5055_v10 = vadd.f32 %v3915_v38, %v4959_v19 }
 0x1ba   : > { %v3852_v14 = vpop.f32.mrb[96].mxu0  ;;  %v3916_v48 = vpop.f32.mrb[96].mxu1 }
 0x1bb   : > { %v3853_v2 = vpop.f32.mrb[97].mxu0  ;;  %v3917_v57 = vpop.f32.mrb[97].mxu1 }
 0x1bc   : > { %v3854_v49 = vadd.f32 %v3853_v2, %v3852_v14  ;;  %v3918_v51 = vadd.f32 %v3917_v57, %v3916_v48  ;;  %v3855_v36 = vpop.f32.mrb[98].mxu0  ;;  %v3919_v50 = vpop.f32.mrb[98].mxu1 }
 0x1bd   : > { %v3856_v59 = vpop.f32.mrb[99].mxu0  ;;  %v3920_v61 = vpop.f32.mrb[99].mxu1 }
 0x1be   : > { %v5058_v30 = vadd.f32 %v3854_v49, %v4962_v13  ;;  %v3857_v23 = vadd.f32 %v3856_v59, %v3855_v36  ;;  %v3921_v4 = vadd.f32 %v3920_v61, %v3919_v50  ;;  %v5061_v55 = vadd.f32 %v3918_v51, %v4965_v41 }
 0x1c0   : > { %v5064_v19 = vadd.f32 %v3857_v23, %v4968_v17  ;;  %v5067_v22 = vadd.f32 %v3921_v4, %v4971_v42 }
 0x1c2   : > { %v3858_v6 = vpop.f32.mrb[100].mxu0  ;;  %v3922_v3 = vpop.f32.mrb[100].mxu1 }
 0x1c3   : > { %v3859_v8 = vpop.f32.mrb[101].mxu0  ;;  %v3923_v15 = vpop.f32.mrb[101].mxu1 }
 0x1c4   : > { %v3860_v32 = vadd.f32 %v3859_v8, %v3858_v6  ;;  %v3924_v46 = vadd.f32 %v3923_v15, %v3922_v3  ;;  %v3861_v62 = vpop.f32.mrb[102].mxu0  ;;  %v3925_v13 = vpop.f32.mrb[102].mxu1 }
 0x1c5   : > { %v3862_v53 = vpop.f32.mrb[103].mxu0  ;;  %v3926_v24 = vpop.f32.mrb[103].mxu1 }
 0x1c6   : > { %v5070_v27 = vadd.f32 %v3860_v32, %v4974_v35  ;;  %v3863_v41 = vadd.f32 %v3862_v53, %v3861_v62  ;;  %v3927_v20 = vadd.f32 %v3926_v24, %v3925_v13  ;;  %v5073_v17 = vadd.f32 %v3924_v46, %v4977_v1 }
 0x1c8   : > { %v5076_v42 = vadd.f32 %v3863_v41, %v4980_v39  ;;  %v5079_v29 = vadd.f32 %v3927_v20, %v4983_v7  ;;  %v5108_v41 = vld [vmem:[%s5262_s2] ss:$0 sm:$0xff] }
 0x1ca   : > { %v3864_v31 = vpop.f32.mrb[104].mxu0  ;;  %v3928_v43 = vpop.f32.mrb[104].mxu1 }
 0x1cb   : > { %v3865_v47 = vpop.f32.mrb[105].mxu0  ;;  %v3929_v38 = vpop.f32.mrb[105].mxu1 }
 0x1cc   : > { %v3866_v14 = vadd.f32 %v3865_v47, %v3864_v31  ;;  %v3930_v48 = vadd.f32 %v3929_v38, %v3928_v43  ;;  %v3867_v2 = vpop.f32.mrb[106].mxu0  ;;  %v3931_v35 = vpop.f32.mrb[106].mxu1 }
 0x1cd   : > { %v3868_v57 = vpop.f32.mrb[107].mxu0  ;;  %v3932_v49 = vpop.f32.mrb[107].mxu1 }
 0x1ce   : > { %v5082_v51 = vadd.f32 %v3866_v14, %v4986_v0  ;;  %v3869_v1 = vadd.f32 %v3868_v57, %v3867_v2  ;;  %v3933_v36 = vadd.f32 %v3932_v49, %v3931_v35  ;;  %v5085_v39 = vadd.f32 %v3930_v48, %v4989_v5 }
 0x1d0   : > { %v5088_v7 = vadd.f32 %v3869_v1, %v4992_v58  ;;  %v5091_v50 = vadd.f32 %v3933_v36, %v4995_v26 }
 0x1d2   : > { %v3870_v59 = vpop.f32.mrb[108].mxu0  ;;  %v3934_v61 = vpop.f32.mrb[108].mxu1 }
 0x1d3   : > { %v3871_v23 = vpop.f32.mrb[109].mxu0  ;;  %v3935_v4 = vpop.f32.mrb[109].mxu1 }
 0x1d4   : > { %v3872_v6 = vadd.f32 %v3871_v23, %v3870_v59  ;;  %v3936_v3 = vadd.f32 %v3935_v4, %v3934_v61  ;;  %v3873_v8 = vpop.f32.mrb[110].mxu0  ;;  %v3937_v0 = vpop.f32.mrb[110].mxu1 }
 0x1d5   : > { %v3874_v15 = vpop.f32.mrb[111].mxu0  ;;  %v3938_v32 = vpop.f32.mrb[111].mxu1 }
 0x1d6   : > { %v5094_v46 = vadd.f32 %v3872_v6, %v4998_v37  ;;  %v3875_v5 = vadd.f32 %v3874_v15, %v3873_v8  ;;  %v3939_v62 = vadd.f32 %v3938_v32, %v3937_v0  ;;  %v5097_v58 = vadd.f32 %v3936_v3, %v5001_v56  ;;  %v5114_v56 = vld [vmem:[%s5263_s3] ss:$0 sm:$0xff] }
 0x1d8   : > { %v5100_v26 = vadd.f32 %v3875_v5, %v5004_v18  ;;  %v5103_v13 = vadd.f32 %v3939_v62, %v5007_v60 }
 0x1da   : > { %v3940_v53 = vpop.f32.mrb[112].mxu1  ;;  %v4030_v24 = vpop.f32.mrb[112].mxu0 }
 0x1db   : > { %v2536_v37 = vadd.f32 %v4030_v24, %v5025_v63  ;;  %v3941_v20 = vpop.f32.mrb[113].mxu1  ;;  %v2527_v31 = vpop.f32.mrb[113].mxu0 }
 0x1dc   : > { %v3942_v18 = vadd.f32 %v3941_v20, %v3940_v53  ;;  %v2528_v60 = vadd.f32 %v2527_v31, %v5013_v52  ;;  %v3943_v43 = vpop.f32.mrb[114].mxu1  ;;  %v4031_v47 = vpop.f32.mrb[114].mxu0 }
 0x1dd   : > { %v2762_v38 = vmul.f32 %v5108_v41, %v2536_v37  ;;  %v2539_v14 = vadd.f32 %v4031_v47, %v5031_v28  ;;  %v3944_v48 = vpop.f32.mrb[115].mxu1  ;;  %v2530_v2 = vpop.f32.mrb[115].mxu0 }
 0x1de   : > { %v2760_v63 = vmul.f32 %v5108_v41, %v2528_v60  ;;  %v3945_v35 = vadd.f32 %v3944_v48, %v3943_v43  ;;  %v2531_v57 = vadd.f32 %v2530_v2, %v5019_v12  ;;  %v5122_v49 = vadd.f32 %v3942_v18, %v5010_v34 }
 0x1df   : > { %v2801_v1 = vadd.f32 %v5114_v56, %v2762_v38  ;;  %v2763_v52 = vmul.f32 %v5108_v41, %v2539_v14 }
 0x1e0   : > { %v2799_v36 = vadd.f32 %v5114_v56, %v2760_v63  ;;  %v2761_v59 = vmul.f32 %v5108_v41, %v2531_v57  ;;  %v5129_v28 = vadd.f32 %v3945_v35, %v5016_v54 }
 0x1e1   : > { %v2802_v61 = vadd.f32 %v5114_v56, %v2763_v52  ;;  %v2833_v34 = vmax.f32 %v2801_v1, 0.0 }
 0x1e2   : > { %v2800_v23 = vadd.f32 %v5114_v56, %v2761_v59  ;;  %v3946_v12 = vpop.f32.mrb[116].mxu1  ;;  %v4034_v4 = vpop.f32.mrb[116].mxu0  ;;  %v2831_v15 = vmax.f32 %v2799_v36, 0.0 }
 0x1e3   : > { %v2834_v6 = vmax.f32 %v2802_v61, 0.0  ;;  %v2552_v3 = vadd.f32 %v4034_v4, %v5049_v33  ;;  %v3947_v8 = vpop.f32.mrb[117].mxu1  ;;  %v2543_v0 = vpop.f32.mrb[117].mxu0 }
 0x1e4   : > { %v2832_v54 = vmax.f32 %v2800_v23, 0.0  ;;  %v3948_v32 = vadd.f32 %v3947_v8, %v3946_v12  ;;  %v2544_v5 = vadd.f32 %v2543_v0, %v5037_v25  ;;  %v3949_v62 = vpop.f32.mrb[118].mxu1  ;;  %v4035_v53 = vpop.f32.mrb[118].mxu0 }
 0x1e5   : > { %v3453_v24 = vpack.c.bf16 %v2834_v6, %v2833_v34  ;;  %v2766_v37 = vmul.f32 %v5108_v41, %v2552_v3  ;;  %v2555_v33 = vadd.f32 %v4035_v53, %v5055_v10  ;;  %v3950_v20 = vpop.f32.mrb[119].mxu1  ;;  %v2546_v31 = vpop.f32.mrb[119].mxu0 }
 0x1e6   : > { %v3448_v18 = vpack.c.bf16 %v2832_v54, %v2831_v15  ;;  %v2764_v60 = vmul.f32 %v5108_v41, %v2544_v5  ;;  %v3951_v43 = vadd.f32 %v3950_v20, %v3949_v62  ;;  %v2547_v47 = vadd.f32 %v2546_v31, %v5043_v44 }
 0x1e7   : > { %3525 = vst [vmem:[%s5138_s26 + $0x8] sm:$0xff] %v3453_v24   ;;  %v2805_v38 = vadd.f32 %v5114_v56, %v2766_v37  ;;  %v2767_v25 = vmul.f32 %v5108_v41, %v2555_v33  ;;  %v5149_v14 = vadd.f32 %v3948_v32, %v5022_v45 }
 0x1e8   : > { %3449 = vst [vmem:[%s5138_s26] sm:$0xff] %v3448_v18   ;;  %v2803_v48 = vadd.f32 %v5114_v56, %v2764_v60  ;;  %v2765_v10 = vmul.f32 %v5108_v41, %v2547_v47  ;;  %v5155_v2 = vadd.f32 %v3951_v43, %v5028_v16 }
 0x1e9   : > { %v2806_v63 = vadd.f32 %v5114_v56, %v2767_v25  ;;  %v2837_v1 = vmax.f32 %v2805_v38, 0.0 }
 0x1ea   : > { %v2804_v44 = vadd.f32 %v5114_v56, %v2765_v10  ;;  %v3952_v35 = vpop.f32.mrb[120].mxu1  ;;  %v4038_v57 = vpop.f32.mrb[120].mxu0  ;;  %v2835_v61 = vmax.f32 %v2803_v48, 0.0 }
 0x1eb   : > { %v2838_v52 = vmax.f32 %v2806_v63, 0.0  ;;  %v2568_v36 = vadd.f32 %v4038_v57, %v5073_v17  ;;  %v3953_v45 = vpop.f32.mrb[121].mxu1  ;;  %v2559_v59 = vpop.f32.mrb[121].mxu0 }
 0x1ec   : > { %v2836_v23 = vmax.f32 %v2804_v44, 0.0  ;;  %v3954_v12 = vadd.f32 %v3953_v45, %v3952_v35  ;;  %v2560_v4 = vadd.f32 %v2559_v59, %v5061_v55  ;;  %v3955_v16 = vpop.f32.mrb[122].mxu1  ;;  %v4039_v34 = vpop.f32.mrb[122].mxu0 }
 0x1ed   : > { %v3463_v6 = vpack.c.bf16 %v2838_v52, %v2837_v1  ;;  %v2770_v3 = vmul.f32 %v5108_v41, %v2568_v36  ;;  %v2571_v8 = vadd.f32 %v4039_v34, %v5079_v29  ;;  %v3956_v0 = vpop.f32.mrb[123].mxu1  ;;  %v2562_v15 = vpop.f32.mrb[123].mxu0 }
 0x1ee   : > { %v3458_v54 = vpack.c.bf16 %v2836_v23, %v2835_v61  ;;  %v2768_v17 = vmul.f32 %v5108_v41, %v2560_v4  ;;  %v3957_v32 = vadd.f32 %v3956_v0, %v3955_v16  ;;  %v2563_v5 = vadd.f32 %v2562_v15, %v5067_v22 }
 0x1ef   : > { %3527 = vst [vmem:[%s5138_s26 + $0x18] sm:$0xff] %v3463_v6   ;;  %v2809_v62 = vadd.f32 %v5114_v56, %v2770_v3  ;;  %v2771_v55 = vmul.f32 %v5108_v41, %v2571_v8  ;;  %v5169_v53 = vadd.f32 %v3954_v12, %v5034_v9 }
 0x1f0   : > { %3526 = vst [vmem:[%s5138_s26 + $0x10] sm:$0xff] %v3458_v54   ;;  %v2807_v24 = vadd.f32 %v5114_v56, %v2768_v17  ;;  %v2769_v29 = vmul.f32 %v5108_v41, %v2563_v5  ;;  %v5175_v37 = vadd.f32 %v3957_v32, %v5040_v11 }
 0x1f1   : > { %v2810_v33 = vadd.f32 %v5114_v56, %v2771_v55  ;;  %v2841_v18 = vmax.f32 %v2809_v62, 0.0 }
 0x1f2   : > { %v2808_v22 = vadd.f32 %v5114_v56, %v2769_v29  ;;  %v3958_v20 = vpop.f32.mrb[124].mxu1  ;;  %v4042_v31 = vpop.f32.mrb[124].mxu0  ;;  %v2839_v38 = vmax.f32 %v2807_v24, 0.0 }
 0x1f3   : > { %v2842_v60 = vmax.f32 %v2810_v33, 0.0  ;;  %v2584_v43 = vadd.f32 %v4042_v31, %v5097_v58  ;;  %v3959_v9 = vpop.f32.mrb[125].mxu1  ;;  %v2575_v47 = vpop.f32.mrb[125].mxu0 }
 0x1f4   : > { %v2840_v25 = vmax.f32 %v2808_v22, 0.0  ;;  %v3960_v48 = vadd.f32 %v3959_v9, %v3958_v20  ;;  %v2576_v10 = vadd.f32 %v2575_v47, %v5085_v39  ;;  %v3961_v11 = vpop.f32.mrb[126].mxu1  ;;  %v4043_v63 = vpop.f32.mrb[126].mxu0 }
 0x1f5   : > { %v3473_v44 = vpack.c.bf16 %v2842_v60, %v2841_v18  ;;  %v2774_v35 = vmul.f32 %v5108_v41, %v2584_v43  ;;  %v2587_v57 = vadd.f32 %v4043_v63, %v5103_v13  ;;  %v3962_v1 = vpop.f32.mrb[127].mxu1  ;;  %v2578_v52 = vpop.f32.mrb[127].mxu0 }
 0x1f6   : > { %v3468_v36 = vpack.c.bf16 %v2840_v25, %v2839_v38  ;;  %v2772_v58 = vmul.f32 %v5108_v41, %v2576_v10  ;;  %v3963_v45 = vadd.f32 %v3962_v1, %v3961_v11  ;;  %v2579_v59 = vadd.f32 %v2578_v52, %v5091_v50 }
 0x1f7   : > { %3529 = vst [vmem:[%s5138_s26 + $0x28] sm:$0xff] %v3473_v44   ;;  %v2813_v61 = vadd.f32 %v5114_v56, %v2774_v35  ;;  %v2775_v39 = vmul.f32 %v5108_v41, %v2587_v57  ;;  %v2455_v23 = vadd.f32 %v3960_v48, %v5046_v40 }
 0x1f8   : > { %3528 = vst [vmem:[%s5138_s26 + $0x20] sm:$0xff] %v3468_v36   ;;  %v2811_v12 = vadd.f32 %v5114_v56, %v2772_v58  ;;  %v2773_v13 = vmul.f32 %v5108_v41, %v2579_v59  ;;  %v2458_v4 = vadd.f32 %v3963_v45, %v5052_v21 }
 0x1f9   : > { %v2814_v16 = vadd.f32 %v5114_v56, %v2775_v39  ;;  %v2845_v3 = vmax.f32 %v2813_v61, 0.0 }
 0x1fa   : > { %v2812_v34 = vadd.f32 %v5114_v56, %v2773_v13  ;;  %v3964_v6 = vpop.f32.mrb[128].mxu1  ;;  %v4046_v50 = vpop.f32.mrb[128].mxu0  ;;  %v2843_v40 = vmax.f32 %v2811_v12, 0.0 }
 0x1fb   : > { %v2846_v8 = vmax.f32 %v2814_v16, 0.0  ;;  %v2600_v0 = vadd.f32 %v4046_v50, %v5149_v14  ;;  %v3965_v15 = vpop.f32.mrb[129].mxu1  ;;  %v2591_v54 = vpop.f32.mrb[129].mxu0 }
 0x1fc   : > { %v2844_v17 = vmax.f32 %v2812_v34, 0.0  ;;  %v3966_v32 = vadd.f32 %v3965_v15, %v3964_v6  ;;  %v2592_v5 = vadd.f32 %v2591_v54, %v5122_v49  ;;  %v3967_v21 = vpop.f32.mrb[130].mxu1  ;;  %v4047_v62 = vpop.f32.mrb[130].mxu0 }
 0x1fd   : > { %v3483_v55 = vpack.c.bf16 %v2846_v8, %v2845_v3  ;;  %v2778_v24 = vmul.f32 %v5108_v41, %v2600_v0  ;;  %v2603_v29 = vadd.f32 %v4047_v62, %v5155_v2  ;;  %v3968_v33 = vpop.f32.mrb[131].mxu1  ;;  %v2594_v22 = vpop.f32.mrb[131].mxu0 }
 0x1fe   : > { %v3478_v20 = vpack.c.bf16 %v2844_v17, %v2843_v40  ;;  %v2776_v14 = vmul.f32 %v5108_v41, %v2592_v5  ;;  %v3969_v31 = vadd.f32 %v3968_v33, %v3967_v21  ;;  %v2595_v18 = vadd.f32 %v2594_v22, %v5129_v28 }
 0x1ff   : > { %3531 = vst [vmem:[%s5138_s26 + $0x38] sm:$0xff] %v3483_v55   ;;  %v2817_v60 = vadd.f32 %v5114_v56, %v2778_v24  ;;  %v2779_v49 = vmul.f32 %v5108_v41, %v2603_v29  ;;  %v2463_v43 = vadd.f32 %v3966_v32, %v5058_v30 }
 0x200   : > { %3530 = vst [vmem:[%s5138_s26 + $0x30] sm:$0xff] %v3478_v20   ;;  %v2815_v9 = vadd.f32 %v5114_v56, %v2776_v14  ;;  %v2777_v2 = vmul.f32 %v5108_v41, %v2595_v18  ;;  %v2466_v47 = vadd.f32 %v3969_v31, %v5064_v19 }
 0x201   : > { %v2818_v38 = vadd.f32 %v5114_v56, %v2779_v49  ;;  %v2849_v10 = vmax.f32 %v2817_v60, 0.0 }
 0x202   : > { %v2816_v25 = vadd.f32 %v5114_v56, %v2777_v2  ;;  %v3970_v48 = vpop.f32.mrb[132].mxu1  ;;  %v4050_v28 = vpop.f32.mrb[132].mxu0  ;;  %v2847_v30 = vmax.f32 %v2815_v9, 0.0 }
 0x203   : > { %v2850_v11 = vmax.f32 %v2818_v38, 0.0  ;;  %v2616_v63 = vadd.f32 %v4050_v28, %v2455_v23  ;;  %v3971_v44 = vpop.f32.mrb[133].mxu1  ;;  %v2607_v35 = vpop.f32.mrb[133].mxu0 }
 0x204   : > { %v2848_v57 = vmax.f32 %v2816_v25, 0.0  ;;  %v3972_v1 = vadd.f32 %v3971_v44, %v3970_v48  ;;  %v2608_v52 = vadd.f32 %v2607_v35, %v5169_v53  ;;  %v3973_v36 = vpop.f32.mrb[134].mxu1  ;;  %v4051_v19 = vpop.f32.mrb[134].mxu0 }
 0x205   : > { %v3493_v58 = vpack.c.bf16 %v2850_v11, %v2849_v10  ;;  %v2782_v45 = vmul.f32 %v5108_v41, %v2616_v63  ;;  %v2619_v59 = vadd.f32 %v4051_v19, %v2458_v4  ;;  %v3974_v61 = vpop.f32.mrb[135].mxu1  ;;  %v2610_v39 = vpop.f32.mrb[135].mxu0 }
 0x206   : > { %v3488_v12 = vpack.c.bf16 %v2848_v57, %v2847_v30  ;;  %v2780_v23 = vmul.f32 %v5108_v41, %v2608_v52  ;;  %v3975_v13 = vadd.f32 %v3974_v61, %v3973_v36  ;;  %v2611_v16 = vadd.f32 %v2610_v39, %v5175_v37 }
 0x207   : > { %3533 = vst [vmem:[%s5138_s26 + $0x48] sm:$0xff] %v3493_v58   ;;  %v2821_v34 = vadd.f32 %v5114_v56, %v2782_v45  ;;  %v2783_v53 = vmul.f32 %v5108_v41, %v2619_v59  ;;  %v2471_v6 = vadd.f32 %v3972_v1, %v5070_v27 }
 0x208   : > { %3532 = vst [vmem:[%s5138_s26 + $0x40] sm:$0xff] %v3488_v12   ;;  %v2819_v50 = vadd.f32 %v5114_v56, %v2780_v23  ;;  %v2781_v4 = vmul.f32 %v5108_v41, %v2611_v16  ;;  %v2474_v3 = vadd.f32 %v3975_v13, %v5076_v42 }
 0x209   : > { %v2822_v8 = vadd.f32 %v5114_v56, %v2783_v53  ;;  %v2853_v54 = vmax.f32 %v2821_v34, 0.0 }
 0x20a   : > { %v2820_v0 = vadd.f32 %v5114_v56, %v2781_v4  ;;  %v3976_v15 = vpop.f32.mrb[136].mxu1  ;;  %v4054_v37 = vpop.f32.mrb[136].mxu0  ;;  %v2851_v27 = vmax.f32 %v2819_v50, 0.0 }
 0x20b   : > { %v2854_v40 = vmax.f32 %v2822_v8, 0.0  ;;  %v2632_v17 = vadd.f32 %v4054_v37, %v2471_v6  ;;  %v3977_v32 = vpop.f32.mrb[137].mxu1  ;;  %v2623_v5 = vpop.f32.mrb[137].mxu0 }
 0x20c   : > { %v2852_v21 = vmax.f32 %v2820_v0, 0.0  ;;  %v3978_v62 = vadd.f32 %v3977_v32, %v3976_v15  ;;  %v2624_v55 = vadd.f32 %v2623_v5, %v2463_v43  ;;  %v3979_v24 = vpop.f32.mrb[138].mxu1  ;;  %v4055_v29 = vpop.f32.mrb[138].mxu0 }
 0x20d   : > { %v3503_v42 = vpack.c.bf16 %v2854_v40, %v2853_v54  ;;  %v2786_v33 = vmul.f32 %v5108_v41, %v2632_v17  ;;  %v2635_v22 = vadd.f32 %v4055_v29, %v2474_v3  ;;  %v3980_v20 = vpop.f32.mrb[139].mxu1  ;;  %v2626_v14 = vpop.f32.mrb[139].mxu0 }
 0x20e   : > { %v3498_v31 = vpack.c.bf16 %v2852_v21, %v2851_v27  ;;  %v2784_v18 = vmul.f32 %v5108_v41, %v2624_v55  ;;  %v3981_v60 = vadd.f32 %v3980_v20, %v3979_v24  ;;  %v2627_v49 = vadd.f32 %v2626_v14, %v2466_v47 }
 0x20f   : > { %3535 = vst [vmem:[%s5138_s26 + $0x58] sm:$0xff] %v3503_v42   ;;  %v2825_v9 = vadd.f32 %v5114_v56, %v2786_v33  ;;  %v2787_v2 = vmul.f32 %v5108_v41, %v2635_v22  ;;  %v2479_v43 = vadd.f32 %v3978_v62, %v5082_v51 }
 0x210   : > { %3534 = vst [vmem:[%s5138_s26 + $0x50] sm:$0xff] %v3498_v31   ;;  %v2823_v38 = vadd.f32 %v5114_v56, %v2784_v18  ;;  %v2785_v25 = vmul.f32 %v5108_v41, %v2627_v49  ;;  %v2482_v48 = vadd.f32 %v3981_v60, %v5088_v7 }
 0x211   : > { %v2826_v28 = vadd.f32 %v5114_v56, %v2787_v2  ;;  %v2857_v63 = vmax.f32 %v2825_v9, 0.0 }
 0x212   : > { %v2824_v10 = vadd.f32 %v5114_v56, %v2785_v25  ;;  %v3982_v11 = vpop.f32.mrb[140].mxu1  ;;  %v4058_v47 = vpop.f32.mrb[140].mxu0  ;;  %v2855_v51 = vmax.f32 %v2823_v38, 0.0 }
 0x213   : > { %v2858_v44 = vmax.f32 %v2826_v28, 0.0  ;;  %v3983_v35 = vpop.f32.mrb[141].mxu1  ;;  %v2639_v30 = vpop.f32.mrb[141].mxu0 }
 0x214   : > { %v2856_v57 = vmax.f32 %v2824_v10, 0.0  ;;  %v3984_v1 = vadd.f32 %v3983_v35, %v3982_v11  ;;  %v2640_v52 = vadd.f32 %v2639_v30, %v2479_v43  ;;  %v3985_v36 = vpop.f32.mrb[142].mxu1  ;;  %v4059_v19 = vpop.f32.mrb[142].mxu0 }
 0x215   : > { %v3513_v58 = vpack.c.bf16 %v2858_v44, %v2857_v63  ;;  %v3986_v7 = vpop.f32.mrb[143].mxu1  ;;  %v2642_v45 = vpop.f32.mrb[143].mxu0 }
 0x216   : > { %v3508_v59 = vpack.c.bf16 %v2856_v57, %v2855_v51  ;;  %v2487_v61 = vadd.f32 %v3984_v1, %v5094_v46  ;;  %v2788_v39 = vmul.f32 %v5108_v41, %v2640_v52  ;;  %v3987_v12 = vadd.f32 %v3986_v7, %v3985_v36 }
 0x217   : > { %3537 = vst [vmem:[%s5138_s26 + $0x68] sm:$0xff] %v3513_v58   ;;  %v2643_v23 = vadd.f32 %v2642_v45, %v2482_v48 }
 0x218   : > { %3536 = vst [vmem:[%s5138_s26 + $0x60] sm:$0xff] %v3508_v59   ;;  %v2648_v13 = vadd.f32 %v4058_v47, %v2487_v61  ;;  %v2490_v16 = vadd.f32 %v3987_v12, %v5100_v26  ;;  %v2827_v34 = vadd.f32 %v5114_v56, %v2788_v39 }
 0x219   : > { %v2789_v53 = vmul.f32 %v5108_v41, %v2643_v23 }
 0x21a   : > { %v2790_v6 = vmul.f32 %v5108_v41, %v2648_v13  ;;  %v2651_v50 = vadd.f32 %v4059_v19, %v2490_v16  ;;  %v2859_v8 = vmax.f32 %v2827_v34, 0.0 }
 0x21b   : > { %v2828_v46 = vadd.f32 %v5114_v56, %v2789_v53 }
 0x21c   : > { %v2829_v4 = vadd.f32 %v5114_v56, %v2790_v6  ;;  %v2791_v3 = vmul.f32 %v5108_v41, %v2651_v50 }
 0x21d   : > { %v2860_v0 = vmax.f32 %v2828_v46, 0.0 }
 0x21e   : > { %v2830_v15 = vadd.f32 %v5114_v56, %v2791_v3  ;;  %v2861_v26 = vmax.f32 %v2829_v4, 0.0 }
 0x21f   : > { %v3518_v37 = vpack.c.bf16 %v2860_v0, %v2859_v8 }
 0x220   : > { %v2862_v54 = vmax.f32 %v2830_v15, 0.0 }
 0x221   : > { %3538 = vst [vmem:[%s5138_s26 + $0x70] sm:$0xff] %v3518_v37  }
 0x222   : > { %v3523_v40 = vpack.c.bf16 %v2862_v54, %v2861_v26 }
 0x224   : > { %3539 = vst [vmem:[%s5138_s26 + $0x78] sm:$0xff] %v3523_v40  }
 0x225 PF: > { %s14_s17 = sadd.s32 1, %s4403_s17   ;;  %s5265_s15 = smov %s4399_s16 }
 0x226   : > { %p11_p5 = scmp.ge.s32.totalorder %s14_s17, 4   ;;  %s5266_s16 = smov %s5268_s18 }
 0x228   :  { %13 = sbr.rel (!%p11_p5) target bundleno = 2 (0x2), region = 83 }

// kernel: simplenet_forward.10
= control target key start
LH: loop header
LB: loop body
LE: loop exit
PB: predicated region body
PF: predicated region fallthrough
CT: control target
= control target key end

     0   :  { %s885_s0 = inlined_call_operand.vmem [shape: bf16[2,8,8,128], index: 0, kind: input, shape index: {}]   ;;  %s886_s1 = inlined_call_operand.vmem [shape: bf16[2,8,8,128], index: 1, kind: input, shape index: {}]   ;;  %s887_s2 = inlined_call_operand.vmem [shape: bf16[2,8,8,128], index: 2, kind: input, shape index: {}]   ;;  %s888_s3 = inlined_call_operand.vmem [shape: bf16[2,8,8,128], index: 3, kind: input, shape index: {}]   ;;  %s889_s4 = inlined_call_operand.vmem [shape: bf16[2,8,8,128], index: 4, kind: input, shape index: {}]   ;;  %s890_s5 = inlined_call_operand.vmem [shape: bf16[2,8,8,128], index: 5, kind: input, shape index: {}]   ;;  %s891_s6 = inlined_call_operand.vmem [shape: bf16[2,8,8,128], index: 6, kind: input, shape index: {}]   ;;  %s892_s7 = inlined_call_operand.vmem [shape: bf16[2,8,8,128], index: 7, kind: input, shape index: {}]   ;;  %s893_s8 = inlined_call_operand.vmem [shape: bf16[2,8,8,128], index: 8, kind: input, shape index: {}]   ;;  %s894_s9 = inlined_call_operand.vmem [shape: bf16[2,8,8,128], index: 9, kind: output, shape index: {}]  }
   0x1   :  { %v32_v0 = vld [vmem:[%s885_s0] sm:$0xf]  ;;  %v33_v1 = vld [vmem:[%s885_s0 + $0x4] sm:$0xf]  ;;  %v34_v18 = vld [vmem:[%s885_s0 + $0x8] sm:$0xf] }
   0x2   :  { %v48_v2 = vld [vmem:[%s886_s1] sm:$0xf]  ;;  %v49_v3 = vld [vmem:[%s886_s1 + $0x4] sm:$0xf]  ;;  %v35_v19 = vld [vmem:[%s885_s0 + $0xc] sm:$0xf] }
   0x3   :  { %v64_v4 = vmax.bf16 %v48_v2, %v32_v0  ;;  %v80_v5 = vld [vmem:[%s887_s2] sm:$0xf]  ;;  %v81_v6 = vld [vmem:[%s887_s2 + $0x4] sm:$0xf]  ;;  %v65_v7 = vmax.bf16 %v49_v3, %v33_v1  ;;  %v50_v20 = vld [vmem:[%s886_s1 + $0x8] sm:$0xf] }
   0x4   :  { %v112_v8 = vld [vmem:[%s888_s3] sm:$0xf]  ;;  %v113_v10 = vld [vmem:[%s888_s3 + $0x4] sm:$0xf]  ;;  %v51_v22 = vld [vmem:[%s886_s1 + $0xc] sm:$0xf]  ;;  %v66_v23 = vmax.bf16 %v50_v20, %v34_v18 }
   0x5   :  { %v96_v9 = vmax.bf16 %v80_v5, %v64_v4  ;;  %v97_v11 = vmax.bf16 %v81_v6, %v65_v7  ;;  %v144_v12 = vld [vmem:[%s889_s4] sm:$0xf]  ;;  %v145_v14 = vld [vmem:[%s889_s4 + $0x4] sm:$0xf]  ;;  %v82_v24 = vld [vmem:[%s887_s2 + $0x8] sm:$0xf]  ;;  %v67_v28 = vmax.bf16 %v51_v22, %v35_v19 }
   0x6   :  { %v176_v15 = vld [vmem:[%s890_s5] sm:$0xf]  ;;  %v177_v16 = vld [vmem:[%s890_s5 + $0x4] sm:$0xf]  ;;  %v83_v25 = vld [vmem:[%s887_s2 + $0xc] sm:$0xf]  ;;  %v98_v33 = vmax.bf16 %v82_v24, %v66_v23 }
   0x7   :  { %v128_v13 = vmax.bf16 %v112_v8, %v96_v9  ;;  %v129_v17 = vmax.bf16 %v113_v10, %v97_v11  ;;  %v208_v27 = vld [vmem:[%s891_s6] sm:$0xf]  ;;  %v114_v29 = vld [vmem:[%s888_s3 + $0x8] sm:$0xf]  ;;  %v209_v31 = vld [vmem:[%s891_s6 + $0x4] sm:$0xf]  ;;  %v99_v38 = vmax.bf16 %v83_v25, %v67_v28 }
   0x8   :  { %v240_v32 = vld [vmem:[%s892_s7] sm:$0xf]  ;;  %v115_v34 = vld [vmem:[%s888_s3 + $0xc] sm:$0xf]  ;;  %v241_v36 = vld [vmem:[%s892_s7 + $0x4] sm:$0xf]  ;;  %v130_v42 = vmax.bf16 %v114_v29, %v98_v33 }
   0x9   :  { %v160_v21 = vmax.bf16 %v144_v12, %v128_v13  ;;  %v161_v26 = vmax.bf16 %v145_v14, %v129_v17  ;;  %v272_v37 = vld [vmem:[%s893_s8] sm:$0xf]  ;;  %v146_v39 = vld [vmem:[%s889_s4 + $0x8] sm:$0xf]  ;;  %v273_v41 = vld [vmem:[%s893_s8 + $0x4] sm:$0xf]  ;;  %v131_v47 = vmax.bf16 %v115_v34, %v99_v38 }
   0xa   :  { %v147_v43 = vld [vmem:[%s889_s4 + $0xc] sm:$0xf]  ;;  %v178_v44 = vld [vmem:[%s890_s5 + $0x8] sm:$0xf]  ;;  %v36_v48 = vld [vmem:[%s885_s0 + $0x10] sm:$0xf]  ;;  %v162_v52 = vmax.bf16 %v146_v39, %v130_v42 }
   0xb   :  { %v192_v30 = vmax.bf16 %v176_v15, %v160_v21  ;;  %v193_v35 = vmax.bf16 %v177_v16, %v161_v26  ;;  %v179_v45 = vld [vmem:[%s890_s5 + $0xc] sm:$0xf]  ;;  %v37_v49 = vld [vmem:[%s885_s0 + $0x14] sm:$0xf]  ;;  %v52_v50 = vld [vmem:[%s886_s1 + $0x10] sm:$0xf]  ;;  %v163_v58 = vmax.bf16 %v147_v43, %v131_v47 }
   0xc   :  { %v53_v53 = vld [vmem:[%s886_s1 + $0x14] sm:$0xf]  ;;  %v68_v54 = vmax.bf16 %v52_v50, %v36_v48  ;;  %v84_v55 = vld [vmem:[%s887_s2 + $0x10] sm:$0xf]  ;;  %v210_v59 = vld [vmem:[%s891_s6 + $0x8] sm:$0xf]  ;;  %v194_v63 = vmax.bf16 %v178_v44, %v162_v52 }
   0xd   :  { %v224_v40 = vmax.bf16 %v208_v27, %v192_v30  ;;  %v225_v46 = vmax.bf16 %v209_v31, %v193_v35  ;;  %v85_v56 = vld [vmem:[%s887_s2 + $0x14] sm:$0xf]  ;;  %v69_v60 = vmax.bf16 %v53_v53, %v37_v49  ;;  %v116_v61 = vld [vmem:[%s888_s3 + $0x10] sm:$0xf]  ;;  %v211_v0 = vld [vmem:[%s891_s6 + $0xc] sm:$0xf]  ;;  %v195_v5 = vmax.bf16 %v179_v45, %v163_v58 }
   0xe   :  { %v242_v1 = vld [vmem:[%s892_s7 + $0x8] sm:$0xf]  ;;  %v100_v2 = vmax.bf16 %v84_v55, %v68_v54  ;;  %v117_v3 = vld [vmem:[%s888_s3 + $0x14] sm:$0xf]  ;;  %v243_v6 = vld [vmem:[%s892_s7 + $0xc] sm:$0xf]  ;;  %v226_v10 = vmax.bf16 %v210_v59, %v194_v63 }
   0xf   :  { %v256_v51 = vmax.bf16 %v240_v32, %v224_v40  ;;  %v257_v57 = vmax.bf16 %v241_v36, %v225_v46  ;;  %v274_v7 = vld [vmem:[%s893_s8 + $0x8] sm:$0xf]  ;;  %v101_v8 = vmax.bf16 %v85_v56, %v69_v60  ;;  %v148_v9 = vld [vmem:[%s889_s4 + $0x10] sm:$0xf]  ;;  %v275_v11 = vld [vmem:[%s893_s8 + $0xc] sm:$0xf]  ;;  %v227_v17 = vmax.bf16 %v211_v0, %v195_v5 }
  0x10   :  { %v132_v12 = vmax.bf16 %v116_v61, %v100_v2  ;;  %v149_v13 = vld [vmem:[%s889_s4 + $0x14] sm:$0xf]  ;;  %v180_v14 = vld [vmem:[%s890_s5 + $0x10] sm:$0xf]  ;;  %v38_v19 = vld [vmem:[%s885_s0 + $0x18] sm:$0xf]  ;;  %v258_v22 = vmax.bf16 %v242_v1, %v226_v10 }
  0x11   :  { %v288_v62 = vmax.bf16 %v272_v37, %v256_v51  ;;  %v289_v4 = vmax.bf16 %v273_v41, %v257_v57  ;;  %v181_v15 = vld [vmem:[%s890_s5 + $0x14] sm:$0xf]  ;;  %v133_v18 = vmax.bf16 %v117_v3, %v101_v8  ;;  %v39_v20 = vld [vmem:[%s885_s0 + $0x1c] sm:$0xf]  ;;  %v54_v21 = vld [vmem:[%s886_s1 + $0x18] sm:$0xf]  ;;  %v259_v28 = vmax.bf16 %v243_v6, %v227_v17 }
  0x12   :  { %v164_v23 = vmax.bf16 %v148_v9, %v132_v12  ;;  %v55_v24 = vld [vmem:[%s886_s1 + $0x1c] sm:$0xf]  ;;  %v70_v25 = vmax.bf16 %v54_v21, %v38_v19  ;;  %v86_v26 = vld [vmem:[%s887_s2 + $0x18] sm:$0xf]  ;;  %v212_v30 = vld [vmem:[%s891_s6 + $0x10] sm:$0xf]  ;;  %v290_v33 = vmax.bf16 %v274_v7, %v258_v22 }
  0x13   :  { %v364_v16 = vcombine.low %v288_v62, %v289_v4  ;;  %v87_v27 = vld [vmem:[%s887_s2 + $0x1c] sm:$0xf]  ;;  %v165_v29 = vmax.bf16 %v149_v13, %v133_v18  ;;  %v71_v31 = vmax.bf16 %v55_v24, %v39_v20  ;;  %v118_v32 = vld [vmem:[%s888_s3 + $0x18] sm:$0xf]  ;;  %v213_v35 = vld [vmem:[%s891_s6 + $0x14] sm:$0xf]  ;;  %v291_v39 = vmax.bf16 %v275_v11, %v259_v28 }
  0x14   :  { %v196_v34 = vmax.bf16 %v180_v14, %v164_v23  ;;  %v244_v36 = vld [vmem:[%s892_s7 + $0x10] sm:$0xf]  ;;  %v102_v37 = vmax.bf16 %v86_v26, %v70_v25  ;;  %v119_v38 = vld [vmem:[%s888_s3 + $0x1c] sm:$0xf]  ;;  %v245_v41 = vld [vmem:[%s892_s7 + $0x14] sm:$0xf] }
  0x15   :  { %328 = vst [vmem:[%s894_s9] sm:$0xff] %v364_v16   ;;  %v197_v40 = vmax.bf16 %v181_v15, %v165_v29  ;;  %v276_v42 = vld [vmem:[%s893_s8 + $0x10] sm:$0xf]  ;;  %v103_v43 = vmax.bf16 %v87_v27, %v71_v31  ;;  %v150_v44 = vld [vmem:[%s889_s4 + $0x18] sm:$0xf]  ;;  %v277_v46 = vld [vmem:[%s893_s8 + $0x14] sm:$0xf]  ;;  %v365_v51 = vcombine.low %v290_v33, %v291_v39 }
  0x16   :  { %v228_v45 = vmax.bf16 %v212_v30, %v196_v34  ;;  %v134_v47 = vmax.bf16 %v118_v32, %v102_v37  ;;  %v151_v48 = vld [vmem:[%s889_s4 + $0x1c] sm:$0xf]  ;;  %v182_v49 = vld [vmem:[%s890_s5 + $0x18] sm:$0xf]  ;;  %v40_v54 = vld [vmem:[%s885_s0 + $0x20] sm:$0xf] }
  0x17   :  { %v183_v50 = vld [vmem:[%s890_s5 + $0x1c] sm:$0xf]  ;;  %v229_v52 = vmax.bf16 %v213_v35, %v197_v40  ;;  %v135_v53 = vmax.bf16 %v119_v38, %v103_v43  ;;  %v41_v55 = vld [vmem:[%s885_s0 + $0x24] sm:$0xf]  ;;  %v56_v56 = vld [vmem:[%s886_s1 + $0x20] sm:$0xf] }
  0x18   :  { %v260_v57 = vmax.bf16 %v244_v36, %v228_v45  ;;  %v166_v58 = vmax.bf16 %v150_v44, %v134_v47  ;;  %v57_v59 = vld [vmem:[%s886_s1 + $0x24] sm:$0xf]  ;;  %v72_v60 = vmax.bf16 %v56_v56, %v40_v54  ;;  %v88_v61 = vld [vmem:[%s887_s2 + $0x20] sm:$0xf]  ;;  %366 = vst [vmem:[%s894_s9 + $0x8] sm:$0xff] %v365_v51  }
  0x19   :  { %v89_v62 = vld [vmem:[%s887_s2 + $0x24] sm:$0xf]  ;;  %v261_v63 = vmax.bf16 %v245_v41, %v229_v52  ;;  %v167_v0 = vmax.bf16 %v151_v48, %v135_v53  ;;  %v214_v1 = vld [vmem:[%s891_s6 + $0x18] sm:$0xf]  ;;  %v73_v2 = vmax.bf16 %v57_v59, %v41_v55  ;;  %v120_v3 = vld [vmem:[%s888_s3 + $0x20] sm:$0xf] }
  0x1a   :  { %v292_v4 = vmax.bf16 %v276_v42, %v260_v57  ;;  %v198_v5 = vmax.bf16 %v182_v49, %v166_v58  ;;  %v215_v6 = vld [vmem:[%s891_s6 + $0x1c] sm:$0xf]  ;;  %v246_v7 = vld [vmem:[%s892_s7 + $0x18] sm:$0xf]  ;;  %v104_v8 = vmax.bf16 %v88_v61, %v72_v60  ;;  %v121_v9 = vld [vmem:[%s888_s3 + $0x24] sm:$0xf] }
  0x1b   :  { %v293_v10 = vmax.bf16 %v277_v46, %v261_v63  ;;  %v199_v11 = vmax.bf16 %v183_v50, %v167_v0  ;;  %v247_v12 = vld [vmem:[%s892_s7 + $0x1c] sm:$0xf]  ;;  %v278_v13 = vld [vmem:[%s893_s8 + $0x18] sm:$0xf]  ;;  %v105_v14 = vmax.bf16 %v89_v62, %v73_v2  ;;  %v152_v15 = vld [vmem:[%s889_s4 + $0x20] sm:$0xf] }
  0x1c   :  { %v230_v16 = vmax.bf16 %v214_v1, %v198_v5  ;;  %v279_v17 = vld [vmem:[%s893_s8 + $0x1c] sm:$0xf]  ;;  %v136_v18 = vmax.bf16 %v120_v3, %v104_v8  ;;  %v153_v19 = vld [vmem:[%s889_s4 + $0x24] sm:$0xf]  ;;  %v184_v20 = vld [vmem:[%s890_s5 + $0x20] sm:$0xf] }
  0x1d   :  { %v185_v21 = vld [vmem:[%s890_s5 + $0x24] sm:$0xf]  ;;  %v367_v22 = vcombine.low %v292_v4, %v293_v10  ;;  %v231_v23 = vmax.bf16 %v215_v6, %v199_v11  ;;  %v137_v24 = vmax.bf16 %v121_v9, %v105_v14  ;;  %v42_v25 = vld [vmem:[%s885_s0 + $0x28] sm:$0xf]  ;;  %v43_v26 = vld [vmem:[%s885_s0 + $0x2c] sm:$0xf] }
  0x1e   :  { %v58_v27 = vld [vmem:[%s886_s1 + $0x28] sm:$0xf]  ;;  %v262_v28 = vmax.bf16 %v246_v7, %v230_v16  ;;  %v168_v29 = vmax.bf16 %v152_v15, %v136_v18  ;;  %v59_v30 = vld [vmem:[%s886_s1 + $0x2c] sm:$0xf]  ;;  %v216_v36 = vld [vmem:[%s891_s6 + $0x20] sm:$0xf] }
  0x1f   :  { %v74_v31 = vmax.bf16 %v58_v27, %v42_v25  ;;  %v90_v32 = vld [vmem:[%s887_s2 + $0x28] sm:$0xf]  ;;  %v91_v33 = vld [vmem:[%s887_s2 + $0x2c] sm:$0xf]  ;;  %368 = vst [vmem:[%s894_s9 + $0x10] sm:$0xff] %v367_v22   ;;  %v263_v34 = vmax.bf16 %v247_v12, %v231_v23  ;;  %v169_v35 = vmax.bf16 %v153_v19, %v137_v24  ;;  %v75_v37 = vmax.bf16 %v59_v30, %v43_v26 }
  0x20   :  { %v122_v38 = vld [vmem:[%s888_s3 + $0x28] sm:$0xf]  ;;  %v294_v39 = vmax.bf16 %v278_v13, %v262_v28  ;;  %v200_v40 = vmax.bf16 %v184_v20, %v168_v29  ;;  %v217_v41 = vld [vmem:[%s891_s6 + $0x24] sm:$0xf]  ;;  %v248_v42 = vld [vmem:[%s892_s7 + $0x20] sm:$0xf] }
  0x21   :  { %v106_v43 = vmax.bf16 %v90_v32, %v74_v31  ;;  %v123_v44 = vld [vmem:[%s888_s3 + $0x2c] sm:$0xf]  ;;  %v295_v45 = vmax.bf16 %v279_v17, %v263_v34  ;;  %v201_v46 = vmax.bf16 %v185_v21, %v169_v35  ;;  %v249_v47 = vld [vmem:[%s892_s7 + $0x24] sm:$0xf]  ;;  %v280_v48 = vld [vmem:[%s893_s8 + $0x20] sm:$0xf]  ;;  %v107_v49 = vmax.bf16 %v91_v33, %v75_v37 }
  0x22   :  { %v154_v50 = vld [vmem:[%s889_s4 + $0x28] sm:$0xf]  ;;  %v232_v51 = vmax.bf16 %v216_v36, %v200_v40  ;;  %v281_v52 = vld [vmem:[%s893_s8 + $0x24] sm:$0xf]  ;;  %v155_v54 = vld [vmem:[%s889_s4 + $0x2c] sm:$0xf] }
  0x23   :  { %v138_v53 = vmax.bf16 %v122_v38, %v106_v43  ;;  %v186_v55 = vld [vmem:[%s890_s5 + $0x28] sm:$0xf]  ;;  %v187_v56 = vld [vmem:[%s890_s5 + $0x2c] sm:$0xf]  ;;  %v369_v57 = vcombine.low %v294_v39, %v295_v45  ;;  %v233_v58 = vmax.bf16 %v217_v41, %v201_v46  ;;  %v139_v59 = vmax.bf16 %v123_v44, %v107_v49  ;;  %v44_v60 = vld [vmem:[%s885_s0 + $0x30] sm:$0xf] }
  0x24   :  { %v45_v61 = vld [vmem:[%s885_s0 + $0x34] sm:$0xf]  ;;  %v60_v62 = vld [vmem:[%s886_s1 + $0x30] sm:$0xf]  ;;  %v264_v63 = vmax.bf16 %v248_v42, %v232_v51  ;;  %v218_v7 = vld [vmem:[%s891_s6 + $0x28] sm:$0xf] }
  0x25   :  { %v170_v0 = vmax.bf16 %v154_v50, %v138_v53  ;;  %v61_v1 = vld [vmem:[%s886_s1 + $0x34] sm:$0xf]  ;;  %v76_v2 = vmax.bf16 %v60_v62, %v44_v60  ;;  %v92_v3 = vld [vmem:[%s887_s2 + $0x30] sm:$0xf]  ;;  %370 = vst [vmem:[%s894_s9 + $0x18] sm:$0xff] %v369_v57   ;;  %v265_v5 = vmax.bf16 %v249_v47, %v233_v58  ;;  %v171_v6 = vmax.bf16 %v155_v54, %v139_v59 }
  0x26   :  { %v93_v4 = vld [vmem:[%s887_s2 + $0x34] sm:$0xf]  ;;  %v77_v8 = vmax.bf16 %v61_v1, %v45_v61  ;;  %v124_v9 = vld [vmem:[%s888_s3 + $0x30] sm:$0xf]  ;;  %v296_v10 = vmax.bf16 %v280_v48, %v264_v63  ;;  %v219_v12 = vld [vmem:[%s891_s6 + $0x2c] sm:$0xf] }
  0x27   :  { %v202_v11 = vmax.bf16 %v186_v55, %v170_v0  ;;  %v250_v13 = vld [vmem:[%s892_s7 + $0x28] sm:$0xf]  ;;  %v108_v14 = vmax.bf16 %v92_v3, %v76_v2  ;;  %v125_v15 = vld [vmem:[%s888_s3 + $0x34] sm:$0xf]  ;;  %v297_v16 = vmax.bf16 %v281_v52, %v265_v5  ;;  %v203_v17 = vmax.bf16 %v187_v56, %v171_v6  ;;  %v251_v18 = vld [vmem:[%s892_s7 + $0x2c] sm:$0xf] }
  0x28   :  { %v282_v19 = vld [vmem:[%s893_s8 + $0x28] sm:$0xf]  ;;  %v109_v20 = vmax.bf16 %v93_v4, %v77_v8  ;;  %v156_v21 = vld [vmem:[%s889_s4 + $0x30] sm:$0xf]  ;;  %v283_v23 = vld [vmem:[%s893_s8 + $0x2c] sm:$0xf] }
  0x29   :  { %v234_v22 = vmax.bf16 %v218_v7, %v202_v11  ;;  %v140_v24 = vmax.bf16 %v124_v9, %v108_v14  ;;  %v157_v25 = vld [vmem:[%s889_s4 + $0x34] sm:$0xf]  ;;  %v188_v26 = vld [vmem:[%s890_s5 + $0x30] sm:$0xf]  ;;  %v371_v28 = vcombine.low %v296_v10, %v297_v16  ;;  %v235_v29 = vmax.bf16 %v219_v12, %v203_v17  ;;  %v46_v31 = vld [vmem:[%s885_s0 + $0x38] sm:$0xf] }
  0x2a   :  { %v189_v27 = vld [vmem:[%s890_s5 + $0x34] sm:$0xf]  ;;  %v141_v30 = vmax.bf16 %v125_v15, %v109_v20  ;;  %v47_v32 = vld [vmem:[%s885_s0 + $0x3c] sm:$0xf]  ;;  %v62_v33 = vld [vmem:[%s886_s1 + $0x38] sm:$0xf] }
  0x2b   :  { %v266_v34 = vmax.bf16 %v250_v13, %v234_v22  ;;  %v172_v35 = vmax.bf16 %v156_v21, %v140_v24  ;;  %v63_v36 = vld [vmem:[%s886_s1 + $0x3c] sm:$0xf]  ;;  %v78_v37 = vmax.bf16 %v62_v33, %v46_v31  ;;  %v94_v38 = vld [vmem:[%s887_s2 + $0x38] sm:$0xf]  ;;  %372 = vst [vmem:[%s894_s9 + $0x20] sm:$0xff] %v371_v28   ;;  %v267_v40 = vmax.bf16 %v251_v18, %v235_v29 }
  0x2c   :  { %v95_v39 = vld [vmem:[%s887_s2 + $0x3c] sm:$0xf]  ;;  %v173_v41 = vmax.bf16 %v157_v25, %v141_v30  ;;  %v220_v42 = vld [vmem:[%s891_s6 + $0x30] sm:$0xf]  ;;  %v79_v43 = vmax.bf16 %v63_v36, %v47_v32  ;;  %v126_v44 = vld [vmem:[%s888_s3 + $0x38] sm:$0xf] }
  0x2d   :  { %v298_v45 = vmax.bf16 %v282_v19, %v266_v34  ;;  %v204_v46 = vmax.bf16 %v188_v26, %v172_v35  ;;  %v221_v47 = vld [vmem:[%s891_s6 + $0x34] sm:$0xf]  ;;  %v110_v48 = vmax.bf16 %v94_v38, %v78_v37  ;;  %v127_v49 = vld [vmem:[%s888_s3 + $0x3c] sm:$0xf]  ;;  %v299_v50 = vmax.bf16 %v283_v23, %v267_v40  ;;  %v252_v52 = vld [vmem:[%s892_s7 + $0x30] sm:$0xf] }
  0x2e   :  { %v205_v51 = vmax.bf16 %v189_v27, %v173_v41  ;;  %v111_v53 = vmax.bf16 %v95_v39, %v79_v43  ;;  %v158_v54 = vld [vmem:[%s889_s4 + $0x38] sm:$0xf]  ;;  %v253_v56 = vld [vmem:[%s892_s7 + $0x34] sm:$0xf]  ;;  %v159_v58 = vld [vmem:[%s889_s4 + $0x3c] sm:$0xf] }
  0x2f   :  { %v236_v55 = vmax.bf16 %v220_v42, %v204_v46  ;;  %v142_v57 = vmax.bf16 %v126_v44, %v110_v48  ;;  %v373_v59 = vcombine.low %v298_v45, %v299_v50  ;;  %v284_v61 = vld [vmem:[%s893_s8 + $0x30] sm:$0xf]  ;;  %v190_v63 = vld [vmem:[%s890_s5 + $0x38] sm:$0xf]  ;;  %v285_v1 = vld [vmem:[%s893_s8 + $0x34] sm:$0xf] }
  0x30   :  { %v237_v60 = vmax.bf16 %v221_v47, %v205_v51  ;;  %v143_v62 = vmax.bf16 %v127_v49, %v111_v53  ;;  %v191_v3 = vld [vmem:[%s890_s5 + $0x3c] sm:$0xf]  ;;  %v222_v6 = vld [vmem:[%s891_s6 + $0x38] sm:$0xf] }
  0x31   :  { %v268_v0 = vmax.bf16 %v252_v52, %v236_v55  ;;  %v174_v2 = vmax.bf16 %v158_v54, %v142_v57  ;;  %374 = vst [vmem:[%s894_s9 + $0x28] sm:$0xff] %v373_v59   ;;  %v223_v9 = vld [vmem:[%s891_s6 + $0x3c] sm:$0xf]  ;;  %v254_v12 = vld [vmem:[%s892_s7 + $0x38] sm:$0xf] }
  0x32   :  { %v269_v4 = vmax.bf16 %v253_v56, %v237_v60  ;;  %v175_v5 = vmax.bf16 %v159_v58, %v143_v62  ;;  %v255_v14 = vld [vmem:[%s892_s7 + $0x3c] sm:$0xf]  ;;  %v286_v17 = vld [vmem:[%s893_s8 + $0x38] sm:$0xf] }
  0x33   :  { %v300_v7 = vmax.bf16 %v284_v61, %v268_v0  ;;  %v206_v8 = vmax.bf16 %v190_v63, %v174_v2  ;;  %v287_v19 = vld [vmem:[%s893_s8 + $0x3c] sm:$0xf] }
  0x34   :  { %v301_v10 = vmax.bf16 %v285_v1, %v269_v4  ;;  %v207_v11 = vmax.bf16 %v191_v3, %v175_v5 }
  0x35   :  { %v238_v13 = vmax.bf16 %v222_v6, %v206_v8 }
  0x36   :  { %v375_v15 = vcombine.low %v300_v7, %v301_v10  ;;  %v239_v16 = vmax.bf16 %v223_v9, %v207_v11 }
  0x37   :  { %v270_v18 = vmax.bf16 %v254_v12, %v238_v13 }
  0x38   :  { %376 = vst [vmem:[%s894_s9 + $0x30] sm:$0xff] %v375_v15   ;;  %v271_v20 = vmax.bf16 %v255_v14, %v239_v16 }
  0x39   :  { %v302_v21 = vmax.bf16 %v286_v17, %v270_v18 }
  0x3a   :  { %v303_v22 = vmax.bf16 %v287_v19, %v271_v20 }
  0x3c   :  { %v377_v23 = vcombine.low %v302_v21, %v303_v22 }
  0x3e   :  { %378 = vst [vmem:[%s894_s9 + $0x38] sm:$0xff] %v377_v23  }

// kernel: simplenet_forward.11
= control target key start
LH: loop header
LB: loop body
LE: loop exit
PB: predicated region body
PF: predicated region fallthrough
CT: control target
= control target key end

     0   :  { %s2377_s1 = inlined_call_operand.vmem [shape: bf16[1152,256], index: 1, kind: input, shape index: {}]   ;;  %s2378_s0 = inlined_call_operand.vmem [shape: bf16[32,1152], index: 0, kind: input, shape index: {}]   ;;  %s2379_s2 = inlined_call_operand.vmem [shape: f32[1,256], index: 2, kind: input, shape index: {}]   ;;  %s2380_s3 = inlined_call_operand.vmem [shape: f32[1,256], index: 3, kind: input, shape index: {}]   ;;  %s2381_s4 = inlined_call_operand.vmem [shape: bf16[32,256], index: 4, kind: output, shape index: {}]  }
   0x1   :  { %v1605_v0 = vld [vmem:[%s2377_s1 + $0x4] ss:$8 sps:$4 sm:$0xff]   ;;  %v1609_v2 = vld [vmem:[%s2377_s1] ss:$8 sps:$4 sm:$0xff]   ;;  %v1611_v4 = vld [vmem:[%s2377_s1 + $0x14] ss:$8 sps:$4 sm:$0xff]  }
   0x2   :  { %v1607_v1 = vld [vmem:[%s2377_s1 + $0x204] ss:$8 sps:$4 sm:$0xff]   ;;  %1014 = vmatprep.subr.bf16.mxu1 %v1605_v0  ;;  %v1610_v3 = vld [vmem:[%s2377_s1 + $0x200] ss:$8 sps:$4 sm:$0xff]   ;;  %v1613_v5 = vld [vmem:[%s2377_s1 + $0x214] ss:$8 sps:$4 sm:$0xff]  }
   0x3   :  { %1120 = vmatprep.subr.bf16.mxu0 %v1607_v1  ;;  %1015 = vmatpush1.bf16.msra.mxu1 %v1609_v2  ;;  %v1615_v6 = vld [vmem:[%s2377_s1 + $0x10] ss:$8 sps:$4 sm:$0xff]   ;;  %v1617_v8 = vld [vmem:[%s2377_s1 + $0x24] ss:$8 sps:$4 sm:$0xff]   ;;  %v1621_v10 = vld [vmem:[%s2377_s1 + $0x20] ss:$8 sps:$4 sm:$0xff]  }
   0x4   :  { %1121 = vmatpush1.bf16.msra.mxu0 %v1610_v3  ;;  %1016 = vmatprep.subr.bf16.mxu1 %v1611_v4  ;;  %v1616_v7 = vld [vmem:[%s2377_s1 + $0x210] ss:$8 sps:$4 sm:$0xff]   ;;  %v1619_v9 = vld [vmem:[%s2377_s1 + $0x224] ss:$8 sps:$4 sm:$0xff]   ;;  %v1622_v11 = vld [vmem:[%s2377_s1 + $0x220] ss:$8 sps:$4 sm:$0xff]  }
   0x5   :  { %1122 = vmatprep.subr.bf16.mxu0 %v1613_v5  ;;  %v1623_v12 = vld [vmem:[%s2377_s1 + $0x34] ss:$8 sps:$4 sm:$0xff]   ;;  %v1627_v14 = vld [vmem:[%s2377_s1 + $0x30] ss:$8 sps:$4 sm:$0xff]   ;;  %v1629_v16 = vld [vmem:[%s2377_s1 + $0x44] ss:$8 sps:$4 sm:$0xff]  }
   0x6   :  { %v1625_v13 = vld [vmem:[%s2377_s1 + $0x234] ss:$8 sps:$4 sm:$0xff]   ;;  %v1628_v15 = vld [vmem:[%s2377_s1 + $0x230] ss:$8 sps:$4 sm:$0xff]   ;;  %v1631_v17 = vld [vmem:[%s2377_s1 + $0x244] ss:$8 sps:$4 sm:$0xff]  }
   0x7   :  { %1017 = vmatpush1.bf16.msra.mxu1 %v1615_v6  ;;  %v1633_v18 = vld [vmem:[%s2377_s1 + $0x40] ss:$8 sps:$4 sm:$0xff]   ;;  %v1635_v20 = vld [vmem:[%s2377_s1 + $0x54] ss:$8 sps:$4 sm:$0xff]   ;;  %v1639_v22 = vld [vmem:[%s2377_s1 + $0x50] ss:$8 sps:$4 sm:$0xff]  }
   0x8   :  { %1123 = vmatpush1.bf16.msra.mxu0 %v1616_v7  ;;  %1018 = vmatprep.subr.bf16.mxu1 %v1617_v8  ;;  %v1634_v19 = vld [vmem:[%s2377_s1 + $0x240] ss:$8 sps:$4 sm:$0xff]   ;;  %v1637_v21 = vld [vmem:[%s2377_s1 + $0x254] ss:$8 sps:$4 sm:$0xff]   ;;  %v1640_v23 = vld [vmem:[%s2377_s1 + $0x250] ss:$8 sps:$4 sm:$0xff]  }
   0x9   :  { %1124 = vmatprep.subr.bf16.mxu0 %v1619_v9  ;;  %v1641_v24 = vld [vmem:[%s2377_s1 + $0x64] ss:$8 sps:$4 sm:$0xff]   ;;  %v1645_v26 = vld [vmem:[%s2377_s1 + $0x60] ss:$8 sps:$4 sm:$0xff]   ;;  %v1647_v28 = vld [vmem:[%s2377_s1 + $0x74] ss:$8 sps:$4 sm:$0xff]  }
   0xa   :  { %v1643_v25 = vld [vmem:[%s2377_s1 + $0x264] ss:$8 sps:$4 sm:$0xff]   ;;  %v1646_v27 = vld [vmem:[%s2377_s1 + $0x260] ss:$8 sps:$4 sm:$0xff]   ;;  %v1649_v29 = vld [vmem:[%s2377_s1 + $0x274] ss:$8 sps:$4 sm:$0xff]  }
   0xb   :  { %1019 = vmatpush1.bf16.msra.mxu1 %v1621_v10  ;;  %v1651_v30 = vld [vmem:[%s2377_s1 + $0x70] ss:$8 sps:$4 sm:$0xff]   ;;  %v1653_v32 = vld [vmem:[%s2377_s1 + $0x84] ss:$8 sps:$4 sm:$0xff]   ;;  %v1657_v34 = vld [vmem:[%s2377_s1 + $0x80] ss:$8 sps:$4 sm:$0xff]  }
   0xc   :  { %1125 = vmatpush1.bf16.msra.mxu0 %v1622_v11  ;;  %1020 = vmatprep.subr.bf16.mxu1 %v1623_v12  ;;  %v1652_v31 = vld [vmem:[%s2377_s1 + $0x270] ss:$8 sps:$4 sm:$0xff]   ;;  %v1655_v33 = vld [vmem:[%s2377_s1 + $0x284] ss:$8 sps:$4 sm:$0xff]   ;;  %v1658_v35 = vld [vmem:[%s2377_s1 + $0x280] ss:$8 sps:$4 sm:$0xff]  }
   0xd   :  { %1126 = vmatprep.subr.bf16.mxu0 %v1625_v13  ;;  %v1659_v36 = vld [vmem:[%s2377_s1 + $0x94] ss:$8 sps:$4 sm:$0xff]   ;;  %v1663_v38 = vld [vmem:[%s2377_s1 + $0x90] ss:$8 sps:$4 sm:$0xff]   ;;  %v1665_v40 = vld [vmem:[%s2377_s1 + $0xa4] ss:$8 sps:$4 sm:$0xff]  }
   0xe   :  { %v1661_v37 = vld [vmem:[%s2377_s1 + $0x294] ss:$8 sps:$4 sm:$0xff]   ;;  %v1664_v39 = vld [vmem:[%s2377_s1 + $0x290] ss:$8 sps:$4 sm:$0xff]   ;;  %v1667_v41 = vld [vmem:[%s2377_s1 + $0x2a4] ss:$8 sps:$4 sm:$0xff]  }
   0xf   :  { %1021 = vmatpush1.bf16.msra.mxu1 %v1627_v14  ;;  %v1669_v42 = vld [vmem:[%s2377_s1 + $0xa0] ss:$8 sps:$4 sm:$0xff]   ;;  %v1671_v44 = vld [vmem:[%s2377_s1 + $0xb4] ss:$8 sps:$4 sm:$0xff]   ;;  %v1675_v46 = vld [vmem:[%s2377_s1 + $0xb0] ss:$8 sps:$4 sm:$0xff]  }
  0x10   :  { %1127 = vmatpush1.bf16.msra.mxu0 %v1628_v15  ;;  %1022 = vmatprep.subr.bf16.mxu1 %v1629_v16  ;;  %v1670_v43 = vld [vmem:[%s2377_s1 + $0x2a0] ss:$8 sps:$4 sm:$0xff]   ;;  %v1673_v45 = vld [vmem:[%s2377_s1 + $0x2b4] ss:$8 sps:$4 sm:$0xff]   ;;  %v1676_v47 = vld [vmem:[%s2377_s1 + $0x2b0] ss:$8 sps:$4 sm:$0xff]  }
  0x11   :  { %1128 = vmatprep.subr.bf16.mxu0 %v1631_v17  ;;  %v1703_v48 = vld [vmem:[%s2378_s0 + $0x4] ss:$36 sps:$4 sm:$0xff]   ;;  %v1709_v51 = vld [vmem:[%s2378_s0 + $0x14] ss:$36 sps:$4 sm:$0xff]  }
  0x12   :  { %v1677_v49 = vld [vmem:[%s2377_s1 + $0xc4] ss:$8 sps:$4 sm:$0xff]   ;;  %1046 = vmatprep.mubr.bf16.mxu1 %v1703_v48  ;;  %v1681_v52 = vld [vmem:[%s2377_s1 + $0xc0] ss:$8 sps:$4 sm:$0xff]   ;;  %v1683_v54 = vld [vmem:[%s2377_s1 + $0xd4] ss:$8 sps:$4 sm:$0xff]   ;;  %1152 = vmatprep.mubr.bf16.mxu0 %v1709_v51 }
  0x13   :  { %1023 = vmatpush1.bf16.msra.mxu1 %v1633_v18  ;;  %v1679_v50 = vld [vmem:[%s2377_s1 + $0x2c4] ss:$8 sps:$4 sm:$0xff]   ;;  %v1682_v53 = vld [vmem:[%s2377_s1 + $0x2c0] ss:$8 sps:$4 sm:$0xff]   ;;  %v1685_v55 = vld [vmem:[%s2377_s1 + $0x2d4] ss:$8 sps:$4 sm:$0xff]  }
  0x14   :  { %1129 = vmatpush1.bf16.msra.mxu0 %v1634_v19  ;;  %1024 = vmatprep.subr.bf16.mxu1 %v1635_v20  ;;  %v1687_v56 = vld [vmem:[%s2377_s1 + $0xd0] ss:$8 sps:$4 sm:$0xff]   ;;  %v1689_v58 = vld [vmem:[%s2377_s1 + $0xe4] ss:$8 sps:$4 sm:$0xff]   ;;  %v1693_v60 = vld [vmem:[%s2377_s1 + $0xe0] ss:$8 sps:$4 sm:$0xff]  }
  0x15   :  { %1130 = vmatprep.subr.bf16.mxu0 %v1637_v21  ;;  %v1688_v57 = vld [vmem:[%s2377_s1 + $0x2d0] ss:$8 sps:$4 sm:$0xff]   ;;  %v1691_v59 = vld [vmem:[%s2377_s1 + $0x2e4] ss:$8 sps:$4 sm:$0xff]   ;;  %v1694_v61 = vld [vmem:[%s2377_s1 + $0x2e0] ss:$8 sps:$4 sm:$0xff]  }
  0x16   :  { %v1695_v62 = vld [vmem:[%s2377_s1 + $0xf4] ss:$8 sps:$4 sm:$0xff]   ;;  %v1699_v0 = vld [vmem:[%s2377_s1 + $0xf0] ss:$8 sps:$4 sm:$0xff]   ;;  %v1706_v2 = vld [vmem:[%s2377_s1 + $0x104] ss:$8 sps:$4 sm:$0xff]  }
  0x17   :  { %1025 = vmatpush1.bf16.msra.mxu1 %v1639_v22  ;;  %v1697_v63 = vld [vmem:[%s2377_s1 + $0x2f4] ss:$8 sps:$4 sm:$0xff]   ;;  %v1700_v1 = vld [vmem:[%s2377_s1 + $0x2f0] ss:$8 sps:$4 sm:$0xff]   ;;  %v1712_v3 = vld [vmem:[%s2377_s1 + $0x304] ss:$8 sps:$4 sm:$0xff]  }
  0x18   :  { %1131 = vmatpush1.bf16.msra.mxu0 %v1640_v23  ;;  %1026 = vmatprep.subr.bf16.mxu1 %v1641_v24  ;;  %v1701_v4 = vld [vmem:[%s2378_s0] ss:$36 sps:$4 sm:$0xff]   ;;  %v1707_v6 = vld [vmem:[%s2378_s0 + $0x10] ss:$36 sps:$4 sm:$0xff]  }
  0x19   :  { %1132 = vmatprep.subr.bf16.mxu0 %v1643_v25  ;;  %v1704_v5 = vld [vmem:[%s2377_s1 + $0x100] ss:$8 sps:$4 sm:$0xff]   ;;  %v1715_v8 = vld [vmem:[%s2377_s1 + $0x114] ss:$8 sps:$4 sm:$0xff]   ;;  %v1713_v10 = vld [vmem:[%s2377_s1 + $0x110] ss:$8 sps:$4 sm:$0xff]  }
  0x1a   :  { %v1710_v7 = vld [vmem:[%s2377_s1 + $0x300] ss:$8 sps:$4 sm:$0xff]   ;;  %v1718_v9 = vld [vmem:[%s2377_s1 + $0x314] ss:$8 sps:$4 sm:$0xff]   ;;  %v1716_v11 = vld [vmem:[%s2377_s1 + $0x310] ss:$8 sps:$4 sm:$0xff]  }
  0x1b   :  { %1027 = vmatpush1.bf16.msra.mxu1 %v1645_v26  ;;  %v1721_v12 = vld [vmem:[%s2377_s1 + $0x124] ss:$8 sps:$4 sm:$0xff]   ;;  %v1719_v14 = vld [vmem:[%s2377_s1 + $0x120] ss:$8 sps:$4 sm:$0xff]   ;;  %v1727_v16 = vld [vmem:[%s2377_s1 + $0x134] ss:$8 sps:$4 sm:$0xff]  }
  0x1c   :  { %1133 = vmatpush1.bf16.msra.mxu0 %v1646_v27  ;;  %1028 = vmatprep.subr.bf16.mxu1 %v1647_v28  ;;  %v1724_v13 = vld [vmem:[%s2377_s1 + $0x324] ss:$8 sps:$4 sm:$0xff]   ;;  %v1722_v15 = vld [vmem:[%s2377_s1 + $0x320] ss:$8 sps:$4 sm:$0xff]   ;;  %v1730_v17 = vld [vmem:[%s2377_s1 + $0x334] ss:$8 sps:$4 sm:$0xff]  }
  0x1d   :  { %1134 = vmatprep.subr.bf16.mxu0 %v1649_v29  ;;  %v1725_v18 = vld [vmem:[%s2377_s1 + $0x130] ss:$8 sps:$4 sm:$0xff]   ;;  %v1733_v20 = vld [vmem:[%s2377_s1 + $0x144] ss:$8 sps:$4 sm:$0xff]   ;;  %v1731_v22 = vld [vmem:[%s2377_s1 + $0x140] ss:$8 sps:$4 sm:$0xff]  }
  0x1e   :  { %v1728_v19 = vld [vmem:[%s2377_s1 + $0x330] ss:$8 sps:$4 sm:$0xff]   ;;  %v1736_v21 = vld [vmem:[%s2377_s1 + $0x344] ss:$8 sps:$4 sm:$0xff]   ;;  %v1734_v23 = vld [vmem:[%s2377_s1 + $0x340] ss:$8 sps:$4 sm:$0xff]  }
  0x1f   :  { %1029 = vmatpush1.bf16.msra.mxu1 %v1651_v30  ;;  %v1739_v24 = vld [vmem:[%s2377_s1 + $0x154] ss:$8 sps:$4 sm:$0xff]   ;;  %v1737_v26 = vld [vmem:[%s2377_s1 + $0x150] ss:$8 sps:$4 sm:$0xff]   ;;  %v1745_v28 = vld [vmem:[%s2377_s1 + $0x164] ss:$8 sps:$4 sm:$0xff]  }
  0x20   :  { %1135 = vmatpush1.bf16.msra.mxu0 %v1652_v31  ;;  %1030 = vmatprep.subr.bf16.mxu1 %v1653_v32  ;;  %v1742_v25 = vld [vmem:[%s2377_s1 + $0x354] ss:$8 sps:$4 sm:$0xff]   ;;  %v1740_v27 = vld [vmem:[%s2377_s1 + $0x350] ss:$8 sps:$4 sm:$0xff]   ;;  %v1795_v31 = vld [vmem:[%s2378_s0 + $0x48] ss:$36 sps:$4 sm:$0xff]  }
  0x21   :  { %1136 = vmatprep.subr.bf16.mxu0 %v1655_v33  ;;  %v1791_v29 = vld [vmem:[%s2378_s0 + $0x4c] ss:$36 sps:$4 sm:$0xff]   ;;  %v1793_v30 = vld [vmem:[%s2378_s0 + $0x5c] ss:$36 sps:$4 sm:$0xff]  }
  0x22   :  { %v1748_v32 = vld [vmem:[%s2377_s1 + $0x364] ss:$8 sps:$4 sm:$0xff]   ;;  %v1799_v33 = vld [vmem:[%s2378_s0 + $0x58] ss:$36 sps:$4 sm:$0xff]  }
  0x23   :  { %1031 = vmatpush1.bf16.msra.mxu1 %v1657_v34  ;;  %v1743_v34 = vld [vmem:[%s2377_s1 + $0x160] ss:$8 sps:$4 sm:$0xff]   ;;  %v1761_v48 = vld [vmem:[%s2377_s1 + $0x190] ss:$8 sps:$4 sm:$0xff]   ;;  %v1772_v51 = vld [vmem:[%s2377_s1 + $0x3a4] ss:$8 sps:$4 sm:$0xff]  }
  0x24   :  { %1137 = vmatpush1.bf16.msra.mxu0 %v1658_v35  ;;  %1032 = vmatprep.subr.bf16.mxu1 %v1659_v36  ;;  %v1746_v35 = vld [vmem:[%s2377_s1 + $0x360] ss:$8 sps:$4 sm:$0xff]   ;;  %v1751_v36 = vld [vmem:[%s2377_s1 + $0x174] ss:$8 sps:$4 sm:$0xff]  }
  0x25   :  { %1138 = vmatprep.subr.bf16.mxu0 %v1661_v37  ;;  %v1754_v37 = vld [vmem:[%s2377_s1 + $0x374] ss:$8 sps:$4 sm:$0xff]  }
  0x27   :  { %1033 = vmatpush1.bf16.msra.mxu1 %v1663_v38  ;;  %v1749_v38 = vld [vmem:[%s2377_s1 + $0x170] ss:$8 sps:$4 sm:$0xff]  }
  0x28   :  { %1139 = vmatpush1.bf16.msra.mxu0 %v1664_v39  ;;  %1034 = vmatprep.subr.bf16.mxu1 %v1665_v40  ;;  %v1752_v39 = vld [vmem:[%s2377_s1 + $0x370] ss:$8 sps:$4 sm:$0xff]   ;;  %v1757_v40 = vld [vmem:[%s2377_s1 + $0x184] ss:$8 sps:$4 sm:$0xff]  }
  0x29   :  { %1140 = vmatprep.subr.bf16.mxu0 %v1667_v41  ;;  %v1811_v41 = vld [vmem:[%s2378_s0 + $0xc] ss:$36 sps:$4 sm:$0xff]  }
  0x2b   :  { %1035 = vmatpush1.bf16.msra.mxu1 %v1669_v42  ;;  %v1760_v42 = vld [vmem:[%s2377_s1 + $0x384] ss:$8 sps:$4 sm:$0xff]  }
  0x2c   :  { %1141 = vmatpush1.bf16.msra.mxu0 %v1670_v43  ;;  %1036 = vmatprep.subr.bf16.mxu1 %v1671_v44  ;;  %v1814_v43 = vld [vmem:[%s2378_s0 + $0x1c] ss:$36 sps:$4 sm:$0xff]  }
  0x2d   :  { %1142 = vmatprep.subr.bf16.mxu0 %v1673_v45  ;;  %v1755_v44 = vld [vmem:[%s2377_s1 + $0x180] ss:$8 sps:$4 sm:$0xff]  }
  0x2e   :  { %v1758_v45 = vld [vmem:[%s2377_s1 + $0x380] ss:$8 sps:$4 sm:$0xff]  }
  0x2f   :  { %1037 = vmatpush1.bf16.msra.mxu1 %v1675_v46  ;;  %v1763_v46 = vld [vmem:[%s2377_s1 + $0x194] ss:$8 sps:$4 sm:$0xff]  }
  0x30   :  { %1143 = vmatpush1.bf16.msra.mxu0 %v1676_v47  ;;  %1038 = vmatprep.subr.bf16.mxu1 %v1677_v49  ;;  %v1766_v47 = vld [vmem:[%s2377_s1 + $0x394] ss:$8 sps:$4 sm:$0xff]   ;;  %v1764_v49 = vld [vmem:[%s2377_s1 + $0x390] ss:$8 sps:$4 sm:$0xff]  }
  0x31   :  { %1144 = vmatprep.subr.bf16.mxu0 %v1679_v50  ;;  %v1769_v50 = vld [vmem:[%s2377_s1 + $0x1a4] ss:$8 sps:$4 sm:$0xff]  }
  0x33   :  { %1039 = vmatpush1.bf16.msra.mxu1 %v1681_v52  ;;  %v1767_v52 = vld [vmem:[%s2377_s1 + $0x1a0] ss:$8 sps:$4 sm:$0xff]  }
  0x34   :  { %1145 = vmatpush1.bf16.msra.mxu0 %v1682_v53  ;;  %1040 = vmatprep.subr.bf16.mxu1 %v1683_v54  ;;  %v1770_v53 = vld [vmem:[%s2377_s1 + $0x3a0] ss:$8 sps:$4 sm:$0xff]   ;;  %v1775_v54 = vld [vmem:[%s2377_s1 + $0x1b4] ss:$8 sps:$4 sm:$0xff]  }
  0x35   :  { %1146 = vmatprep.subr.bf16.mxu0 %v1685_v55  ;;  %v1778_v55 = vld [vmem:[%s2377_s1 + $0x3b4] ss:$8 sps:$4 sm:$0xff]  }
  0x37   :  { %1041 = vmatpush1.bf16.msra.mxu1 %v1687_v56  ;;  %v1773_v56 = vld [vmem:[%s2377_s1 + $0x1b0] ss:$8 sps:$4 sm:$0xff]  }
  0x38   :  { %1147 = vmatpush1.bf16.msra.mxu0 %v1688_v57  ;;  %1042 = vmatprep.subr.bf16.mxu1 %v1689_v58  ;;  %v1776_v57 = vld [vmem:[%s2377_s1 + $0x3b0] ss:$8 sps:$4 sm:$0xff]   ;;  %v1781_v58 = vld [vmem:[%s2377_s1 + $0x1c4] ss:$8 sps:$4 sm:$0xff]  }
  0x39   :  { %1148 = vmatprep.subr.bf16.mxu0 %v1691_v59  ;;  %v1784_v59 = vld [vmem:[%s2377_s1 + $0x3c4] ss:$8 sps:$4 sm:$0xff]  }
  0x3b   :  { %1043 = vmatpush1.bf16.msra.mxu1 %v1693_v60  ;;  %v1779_v60 = vld [vmem:[%s2377_s1 + $0x1c0] ss:$8 sps:$4 sm:$0xff]  }
  0x3c   :  { %1149 = vmatpush1.bf16.msra.mxu0 %v1694_v61  ;;  %1044 = vmatprep.subr.bf16.mxu1 %v1695_v62  ;;  %v1782_v61 = vld [vmem:[%s2377_s1 + $0x3c0] ss:$8 sps:$4 sm:$0xff]   ;;  %v1787_v62 = vld [vmem:[%s2377_s1 + $0x1d4] ss:$8 sps:$4 sm:$0xff]  }
  0x3d   :  { %1150 = vmatprep.subr.bf16.mxu0 %v1697_v63  ;;  %v1790_v63 = vld [vmem:[%s2377_s1 + $0x3d4] ss:$8 sps:$4 sm:$0xff]  }
  0x3f   :  { %1045 = vmatpush1.bf16.msra.mxu1 %v1699_v0  ;;  %v1785_v0 = vld [vmem:[%s2377_s1 + $0x1d0] ss:$8 sps:$4 sm:$0xff]  }
  0x40   :  { %1151 = vmatpush1.bf16.msra.mxu0 %v1700_v1  ;;  %1067 = vmatprep.subr.bf16.mxu1 %v1706_v2  ;;  %v1788_v1 = vld [vmem:[%s2377_s1 + $0x3d0] ss:$8 sps:$4 sm:$0xff]   ;;  %v1798_v2 = vld [vmem:[%s2377_s1 + $0x1e4] ss:$8 sps:$4 sm:$0xff]  }
  0x41   :  { %1173 = vmatprep.subr.bf16.mxu0 %v1712_v3  ;;  %v1802_v3 = vld [vmem:[%s2377_s1 + $0x3e4] ss:$8 sps:$4 sm:$0xff]  }
  0x42   :  { %1047 = vmatmul.mubr.bf16.vlgmr.msra.gmra.mrb[0].mxu1 %v1701_v4  ;;  %v1796_v4 = vld [vmem:[%s2377_s1 + $0x1e0] ss:$8 sps:$4 sm:$0xff]  }
  0x43   :  { %1153 = vmatmul.mubr.bf16.vlgmr.msra.gmra.mrb[0].mxu0 %v1707_v6  ;;  %1068 = vmatpush1.bf16.msra.mxu1 %v1704_v5  ;;  %v1800_v5 = vld [vmem:[%s2377_s1 + $0x3e0] ss:$8 sps:$4 sm:$0xff]   ;;  %v1805_v6 = vld [vmem:[%s2377_s1 + $0x1f4] ss:$8 sps:$4 sm:$0xff]  }
  0x44   :  { %1174 = vmatpush1.bf16.msra.mxu0 %v1710_v7  ;;  %1069 = vmatprep.subr.bf16.mxu1 %v1715_v8  ;;  %v1808_v7 = vld [vmem:[%s2377_s1 + $0x3f4] ss:$8 sps:$4 sm:$0xff]   ;;  %v1803_v8 = vld [vmem:[%s2377_s1 + $0x1f0] ss:$8 sps:$4 sm:$0xff]  }
  0x45   :  { %1175 = vmatprep.subr.bf16.mxu0 %v1718_v9  ;;  %1056 = vmatprep.mubr.bf16.mxu1 %v1791_v29  ;;  %v1806_v9 = vld [vmem:[%s2377_s1 + $0x3f0] ss:$8 sps:$4 sm:$0xff]   ;;  %v1841_v29 = vld [vmem:[%s2377_s1 + $0x464] ss:$8 sps:$4 sm:$0xff]  }
  0x46   :  { %1162 = vmatprep.mubr.bf16.mxu0 %v1793_v30  ;;  %v1839_v30 = vld [vmem:[%s2377_s1 + $0x460] ss:$8 sps:$4 sm:$0xff]  }
  0x47   :  { %1070 = vmatpush1.bf16.msra.mxu1 %v1713_v10  ;;  %v1817_v10 = vld [vmem:[%s2377_s1 + $0x404] ss:$8 sps:$4 sm:$0xff]  }
  0x48   :  { %1176 = vmatpush1.bf16.msra.mxu0 %v1716_v11  ;;  %1071 = vmatprep.subr.bf16.mxu1 %v1721_v12  ;;  %v1809_v11 = vld [vmem:[%s2378_s0 + $0x8] ss:$36 sps:$4 sm:$0xff]   ;;  %v1812_v12 = vld [vmem:[%s2378_s0 + $0x18] ss:$36 sps:$4 sm:$0xff]  }
  0x49   :  { %1177 = vmatprep.subr.bf16.mxu0 %v1724_v13  ;;  %v1815_v13 = vld [vmem:[%s2377_s1 + $0x400] ss:$8 sps:$4 sm:$0xff]  }
  0x4a   :  { %1057 = vmatmul.mubr.bf16.gmra.mrb[4].mxu1 %v1795_v31  ;;  %v1844_v31 = vld [vmem:[%s2377_s1 + $0x474] ss:$8 sps:$4 sm:$0xff]  }
  0x4b   :  { %1072 = vmatpush1.bf16.msra.mxu1 %v1719_v14  ;;  %1163 = vmatmul.mubr.bf16.gmra.mrb[4].mxu0 %v1799_v33  ;;  %v1820_v14 = vld [vmem:[%s2377_s1 + $0x414] ss:$8 sps:$4 sm:$0xff]   ;;  %v1845_v33 = vld [vmem:[%s2378_s0 + $0x20] ss:$36 sps:$4 sm:$0xff]  }
  0x4c   :  { %1178 = vmatpush1.bf16.msra.mxu0 %v1722_v15  ;;  %1073 = vmatprep.subr.bf16.mxu1 %v1727_v16  ;;  %v1821_v15 = vld [vmem:[%s2378_s0 + $0x54] ss:$36 sps:$4 sm:$0xff]   ;;  %v1823_v16 = vld [vmem:[%s2378_s0 + $0x64] ss:$36 sps:$4 sm:$0xff]  }
  0x4d   :  { %1179 = vmatprep.subr.bf16.mxu0 %v1730_v17  ;;  %1099 = vmatprep.mubr.bf16.mxu1 %v1811_v41  ;;  %v1818_v17 = vld [vmem:[%s2377_s1 + $0x410] ss:$8 sps:$4 sm:$0xff]  }
  0x4e   :  { %1205 = vmatprep.mubr.bf16.mxu0 %v1814_v43 }
  0x4f   :  { %1074 = vmatpush1.bf16.msra.mxu1 %v1725_v18  ;;  %v1829_v18 = vld [vmem:[%s2377_s1 + $0x424] ss:$8 sps:$4 sm:$0xff]  }
  0x50   :  { %1180 = vmatpush1.bf16.msra.mxu0 %v1728_v19  ;;  %1075 = vmatprep.subr.bf16.mxu1 %v1733_v20  ;;  %v1825_v19 = vld [vmem:[%s2378_s0 + $0x50] ss:$36 sps:$4 sm:$0xff]   ;;  %v1826_v20 = vld [vmem:[%s2378_s0 + $0x60] ss:$36 sps:$4 sm:$0xff]  }
  0x51   :  { %1181 = vmatprep.subr.bf16.mxu0 %v1736_v21  ;;  %v1827_v21 = vld [vmem:[%s2377_s1 + $0x420] ss:$8 sps:$4 sm:$0xff]  }
  0x53   :  { %1076 = vmatpush1.bf16.msra.mxu1 %v1731_v22  ;;  %v1832_v22 = vld [vmem:[%s2377_s1 + $0x434] ss:$8 sps:$4 sm:$0xff]  }
  0x54   :  { %1182 = vmatpush1.bf16.msra.mxu0 %v1734_v23  ;;  %1077 = vmatprep.subr.bf16.mxu1 %v1739_v24  ;;  %v1830_v23 = vld [vmem:[%s2377_s1 + $0x430] ss:$8 sps:$4 sm:$0xff]   ;;  %v1835_v24 = vld [vmem:[%s2377_s1 + $0x444] ss:$8 sps:$4 sm:$0xff]  }
  0x55   :  { %1183 = vmatprep.subr.bf16.mxu0 %v1742_v25  ;;  %v1847_v25 = vmov 0  }
  0x57   :  { %1078 = vmatpush1.bf16.msra.mxu1 %v1737_v26  ;;  %v1833_v26 = vld [vmem:[%s2377_s1 + $0x440] ss:$8 sps:$4 sm:$0xff]  }
  0x58   :  { %1184 = vmatpush1.bf16.msra.mxu0 %v1740_v27  ;;  %1079 = vmatprep.subr.bf16.mxu1 %v1745_v28  ;;  %v1838_v27 = vld [vmem:[%s2377_s1 + $0x454] ss:$8 sps:$4 sm:$0xff]   ;;  %v1836_v28 = vld [vmem:[%s2377_s1 + $0x450] ss:$8 sps:$4 sm:$0xff]  }
  0x59   :  { %1185 = vmatprep.subr.bf16.mxu0 %v1748_v32  ;;  %v1842_v32 = vld [vmem:[%s2377_s1 + $0x470] ss:$8 sps:$4 sm:$0xff]  }
  0x5b   :  { %1080 = vmatpush1.bf16.msra.mxu1 %v1743_v34  ;;  %v1846_v34 = vld [vmem:[%s2378_s0 + $0x68] ss:$36 sps:$4 sm:$0xff]  }
  0x5c   :  { %1186 = vmatpush1.bf16.msra.mxu0 %v1746_v35  ;;  %1081 = vmatprep.subr.bf16.mxu1 %v1751_v36 }
  0x5d   :  { %1187 = vmatprep.subr.bf16.mxu0 %v1754_v37 }
  0x5f   :  { %1082 = vmatpush1.bf16.msra.mxu1 %v1749_v38 }
  0x60   :  { %1188 = vmatpush1.bf16.msra.mxu0 %v1752_v39  ;;  %1083 = vmatprep.subr.bf16.mxu1 %v1757_v40 }
  0x61   :  { %1189 = vmatprep.subr.bf16.mxu0 %v1760_v42 }
  0x63   :  { %1084 = vmatpush1.bf16.msra.mxu1 %v1755_v44 }
  0x64   :  { %1190 = vmatpush1.bf16.msra.mxu0 %v1758_v45  ;;  %1085 = vmatprep.subr.bf16.mxu1 %v1763_v46 }
  0x65   :  { %1191 = vmatprep.subr.bf16.mxu0 %v1766_v47 }
  0x67   :  { %1086 = vmatpush1.bf16.msra.mxu1 %v1761_v48 }
  0x68   :  { %1192 = vmatpush1.bf16.msra.mxu0 %v1764_v49  ;;  %1087 = vmatprep.subr.bf16.mxu1 %v1769_v50 }
  0x69   :  { %1193 = vmatprep.subr.bf16.mxu0 %v1772_v51  ;;  %v1308_v51 = vlaneseq }
  0x6b   :  { %1088 = vmatpush1.bf16.msra.mxu1 %v1767_v52  ;;  %v1309_v52 = vshrl.u32 %v1308_v51, 7 }
  0x6c   :  { %1194 = vmatpush1.bf16.msra.mxu0 %v1770_v53  ;;  %1089 = vmatprep.subr.bf16.mxu1 %v1775_v54  ;;  %v1306_v54 = vld [vmem:[%s2379_s2] sm:$0x3] }
  0x6d   :  { %1195 = vmatprep.subr.bf16.mxu0 %v1778_v55  ;;  %v1310_v53 = vsub.s32 0, %v1309_v52  ;;  %v1314_v55 = vsub.s32 1, %v1309_v52 }
  0x6f   :  { %1090 = vmatpush1.bf16.msra.mxu1 %v1773_v56  ;;  %v1326_v56 = vld [vmem:[%s2380_s3] sm:$0x3] }
  0x70   :  { %1196 = vmatpush1.bf16.msra.mxu0 %v1776_v57  ;;  %1091 = vmatprep.subr.bf16.mxu1 %v1781_v58  ;;  %v1311_v57 = vrot.slane %v1306_v54, %v1310_v53 }
  0x71   :  { %1197 = vmatprep.subr.bf16.mxu0 %v1784_v59 }
  0x73   :  { %1092 = vmatpush1.bf16.msra.mxu1 %v1779_v60  ;;  %v1315_v60 = vrot.slane %v1306_v54, %v1314_v55 }
  0x74   :  { %1198 = vmatpush1.bf16.msra.mxu0 %v1782_v61  ;;  %1093 = vmatprep.subr.bf16.mxu1 %v1787_v62  ;;  %v1331_v62 = vrot.slane %v1326_v56, %v1310_v53 }
  0x75   :  { %1199 = vmatprep.subr.bf16.mxu0 %v1790_v63 }
  0x77   :  { %1094 = vmatpush1.bf16.msra.mxu1 %v1785_v0 }
  0x78   :  { %1200 = vmatpush1.bf16.msra.mxu0 %v1788_v1  ;;  %1095 = vmatprep.subr.bf16.mxu1 %v1798_v2 }
  0x79   :  { %1201 = vmatprep.subr.bf16.mxu0 %v1802_v3  ;;  %v1335_v3 = vrot.slane %v1326_v56, %v1314_v55 }
  0x7b   :  { %1096 = vmatpush1.bf16.msra.mxu1 %v1796_v4 }
  0x7c   :  { %1202 = vmatpush1.bf16.msra.mxu0 %v1800_v5  ;;  %1097 = vmatprep.subr.bf16.mxu1 %v1805_v6 }
  0x7d   :  { %1203 = vmatprep.subr.bf16.mxu0 %v1808_v7 }
  0x7f   :  { %1098 = vmatpush1.bf16.msra.mxu1 %v1803_v8 }
  0x80   :  { %1204 = vmatpush1.bf16.msra.mxu0 %v1806_v9  ;;  %1556 = vmatprep.subr.bf16.mxu1 %v1817_v10 }
  0x81   :  { %1226 = vmatprep.subr.bf16.mxu0 %v1817_v10 }
  0x82   :  { %1100 = vmatmul.mubr.bf16.vlgmr.msra.gmra.mrb[0].mxu1 %v1809_v11 }
  0x83   :  { %1206 = vmatmul.mubr.bf16.vlgmr.msra.gmra.mrb[0].mxu0 %v1812_v12  ;;  %1564 = vmatpush1.bf16.msra.mxu1 %v1815_v13 }
  0x84   :  { %1227 = vmatpush1.bf16.msra.mxu0 %v1815_v13  ;;  %1557 = vmatprep.subr.bf16.mxu1 %v1820_v14 }
  0x85   :  { %1228 = vmatprep.subr.bf16.mxu0 %v1820_v14  ;;  %1109 = vmatprep.mubr.bf16.mxu1 %v1821_v15 }
  0x86   :  { %1215 = vmatprep.mubr.bf16.mxu0 %v1823_v16 }
  0x87   :  { %1565 = vmatpush1.bf16.msra.mxu1 %v1818_v17 }
  0x88   :  { %1229 = vmatpush1.bf16.msra.mxu0 %v1818_v17  ;;  %1558 = vmatprep.subr.bf16.mxu1 %v1829_v18 }
  0x89   :  { %1230 = vmatprep.subr.bf16.mxu0 %v1829_v18 }
  0x8a   :  { %1110 = vmatmul.mubr.bf16.gmra.mrb[4].mxu1 %v1825_v19 }
  0x8b   :  { %1216 = vmatmul.mubr.bf16.gmra.mrb[4].mxu0 %v1826_v20  ;;  %1566 = vmatpush1.bf16.msra.mxu1 %v1827_v21 }
  0x8c   :  { %1231 = vmatpush1.bf16.msra.mxu0 %v1827_v21  ;;  %1559 = vmatprep.subr.bf16.mxu1 %v1832_v22 }
  0x8d   :  { %1232 = vmatprep.subr.bf16.mxu0 %v1832_v22  ;;  %1258 = vmatprep.mubr.bf16.mxu0 %v1847_v25 }
  0x8e   :  { %1268 = vmatprep.mubr.bf16.mxu1 %v1847_v25 }
  0x8f   :  { %1567 = vmatpush1.bf16.msra.mxu1 %v1830_v23 }
  0x90   :  { %1233 = vmatpush1.bf16.msra.mxu0 %v1830_v23  ;;  %1560 = vmatprep.subr.bf16.mxu1 %v1835_v24 }
  0x91   :  { %1234 = vmatprep.subr.bf16.mxu0 %v1835_v24 }
  0x93   :  { %1568 = vmatpush1.bf16.msra.mxu1 %v1833_v26 }
  0x94   :  { %1235 = vmatpush1.bf16.msra.mxu0 %v1833_v26  ;;  %1561 = vmatprep.subr.bf16.mxu1 %v1838_v27 }
  0x95   :  { %1236 = vmatprep.subr.bf16.mxu0 %v1838_v27 }
  0x97   :  { %1569 = vmatpush1.bf16.msra.mxu1 %v1836_v28 }
  0x98   :  { %1237 = vmatpush1.bf16.msra.mxu0 %v1836_v28  ;;  %1562 = vmatprep.subr.bf16.mxu1 %v1841_v29 }
  0x99   :  { %1238 = vmatprep.subr.bf16.mxu0 %v1841_v29 }
  0x9b   :  { %1570 = vmatpush1.bf16.msra.mxu1 %v1839_v30 }
  0x9c   :  { %1239 = vmatpush1.bf16.msra.mxu0 %v1839_v30  ;;  %1563 = vmatprep.subr.bf16.mxu1 %v1844_v31 }
  0x9d   :  { %1240 = vmatprep.subr.bf16.mxu0 %v1844_v31 }
  0x9f   :  { %1571 = vmatpush1.bf16.msra.mxu1 %v1842_v32 }
  0xa0   :  { %1241 = vmatpush1.bf16.msra.mxu0 %v1842_v32 }
  0xa2   :  { %1269 = vmatmul.mubr.bf16.vlgmr.msra.gmra.mrb[8].mxu1 %v1846_v34 }
  0xa3   :  { %1259 = vmatmul.mubr.bf16.vlgmr.msra.gmra.mrb[0].mxu0 %v1845_v33 }
 0x155   :  { %v1101_v35 = vpop.f32.mrb[0].mxu1 }
 0x156   :  { %v1103_v36 = vpop.f32.mrb[1].mxu1 }
 0x157   :  { %v1105_v37 = vpop.f32.mrb[2].mxu1 }
 0x158   :  { %v1107_v38 = vpop.f32.mrb[3].mxu1 }
 0x15d   :  { %v1111_v39 = vpop.f32.mrb[4].mxu1 }
 0x15e   :  { %v1217_v40 = vpop.f32.mrb[4].mxu0  ;;  %v1113_v42 = vpop.f32.mrb[5].mxu1 }
 0x15f   :  { %v1576_v41 = vadd.f32 %v1217_v40, %v1111_v39  ;;  %v1219_v43 = vpop.f32.mrb[5].mxu0  ;;  %v1115_v45 = vpop.f32.mrb[6].mxu1 }
 0x160   :  { %v1578_v44 = vadd.f32 %v1219_v43, %v1113_v42  ;;  %v1221_v46 = vpop.f32.mrb[6].mxu0  ;;  %v1117_v48 = vpop.f32.mrb[7].mxu1 }
 0x161   :  { %v1580_v47 = vadd.f32 %v1221_v46, %v1115_v45  ;;  %v1223_v49 = vpop.f32.mrb[7].mxu0 }
 0x162   :  { %v1582_v50 = vadd.f32 %v1223_v49, %v1117_v48 }
 0x175   :  { %v1270_v59 = vpop.f32.mrb[8].mxu1 }
 0x176   :  { %v1260_v58 = vpop.f32.mrb[0].mxu0  ;;  %v1577_v63 = vadd.f32 %v1576_v41, %v1270_v59  ;;  %v1272_v1 = vpop.f32.mrb[9].mxu1 }
 0x177   :  { %v1572_v61 = vadd.f32 %v1260_v58, %v1101_v35  ;;  %v1262_v0 = vpop.f32.mrb[1].mxu0  ;;  %v1579_v4 = vadd.f32 %v1578_v44, %v1272_v1  ;;  %v1274_v6 = vpop.f32.mrb[10].mxu1 }
 0x178   :  { %v1573_v2 = vadd.f32 %v1262_v0, %v1103_v36  ;;  %v1264_v5 = vpop.f32.mrb[2].mxu0  ;;  %v1322_v8 = vmul.f32 %v1577_v63, %v1311_v57  ;;  %v1581_v10 = vadd.f32 %v1580_v47, %v1274_v6  ;;  %v1276_v12 = vpop.f32.mrb[11].mxu1 }
 0x179   :  { %v1318_v7 = vmul.f32 %v1572_v61, %v1311_v57  ;;  %v1574_v9 = vadd.f32 %v1264_v5, %v1105_v37  ;;  %v1266_v11 = vpop.f32.mrb[3].mxu0  ;;  %v1323_v14 = vmul.f32 %v1579_v4, %v1315_v60  ;;  %v1583_v16 = vadd.f32 %v1582_v50, %v1276_v12 }
 0x17a   :  { %v1319_v13 = vmul.f32 %v1573_v2, %v1315_v60  ;;  %v1575_v15 = vadd.f32 %v1266_v11, %v1107_v38  ;;  %v1342_v18 = vadd.f32 %v1331_v62, %v1322_v8  ;;  %v1324_v20 = vmul.f32 %v1581_v10, %v1311_v57 }
 0x17b   :  { %v1338_v17 = vadd.f32 %v1331_v62, %v1318_v7  ;;  %v1320_v19 = vmul.f32 %v1574_v9, %v1311_v57  ;;  %v1343_v22 = vadd.f32 %v1335_v3, %v1323_v14  ;;  %v1325_v24 = vmul.f32 %v1583_v16, %v1315_v60 }
 0x17c   :  { %v1339_v21 = vadd.f32 %v1335_v3, %v1319_v13  ;;  %v1321_v23 = vmul.f32 %v1575_v15, %v1315_v60  ;;  %v1350_v26 = vmax.f32 %v1342_v18, 0.0  ;;  %v1344_v28 = vadd.f32 %v1331_v62, %v1324_v20 }
 0x17d   :  { %v1346_v25 = vmax.f32 %v1338_v17, 0.0  ;;  %v1340_v27 = vadd.f32 %v1331_v62, %v1320_v19  ;;  %v1351_v30 = vmax.f32 %v1343_v22, 0.0  ;;  %v1345_v32 = vadd.f32 %v1335_v3, %v1325_v24 }
 0x17e   :  { %v1347_v29 = vmax.f32 %v1339_v21, 0.0  ;;  %v1341_v31 = vadd.f32 %v1335_v3, %v1321_v23  ;;  %v1352_v34 = vmax.f32 %v1344_v28, 0.0 }
 0x17f   :  { %v1348_v33 = vmax.f32 %v1340_v27, 0.0  ;;  %v1554_v36 = vpack.c.bf16 %v1351_v30, %v1350_v26  ;;  %v1353_v38 = vmax.f32 %v1345_v32, 0.0 }
 0x180   :  { %v1552_v35 = vpack.c.bf16 %v1347_v29, %v1346_v25  ;;  %v1349_v37 = vmax.f32 %v1341_v31, 0.0 }
 0x181   :  { %1380 = vst [vmem:[%s2381_s4 + $0x10] sm:$0xff] %v1554_v36  ;;  %v1555_v40 = vpack.c.bf16 %v1353_v38, %v1352_v34 }
 0x182   :  { %1378 = vst [vmem:[%s2381_s4] sm:$0xff] %v1552_v35  ;;  %v1553_v39 = vpack.c.bf16 %v1349_v37, %v1348_v33 }
 0x183   :  { %1381 = vst [vmem:[%s2381_s4 + $0x18] sm:$0xff] %v1555_v40 }
 0x184   :  { %1379 = vst [vmem:[%s2381_s4 + $0x8] sm:$0xff] %v1553_v39 }

// kernel: simplenet_forward.12
= control target key start
LH: loop header
LB: loop body
LE: loop exit
PB: predicated region body
PF: predicated region fallthrough
CT: control target
= control target key end

     0   :  { %s7772_s1 = inlined_call_operand.vmem [shape: bf16[2304,512], index: 1, kind: input, shape index: {}]   ;;  %s7773_s0 = inlined_call_operand.vmem [shape: bf16[8,2304], index: 0, kind: input, shape index: {}]   ;;  %s7774_s2 = inlined_call_operand.vmem [shape: f32[1,512], index: 2, kind: input, shape index: {}]   ;;  %s7775_s3 = inlined_call_operand.vmem [shape: f32[1,512], index: 3, kind: input, shape index: {}]   ;;  %s7776_s4 = inlined_call_operand.vmem [shape: bf16[8,512], index: 4, kind: output, shape index: {}]  }
   0x1   :  { %v5050_v0 = vld [vmem:[%s7772_s1 + $0x4] ss:$16 sps:$4 sm:$0xff]   ;;  %v5052_v1 = vld [vmem:[%s7772_s1 + $0xc] ss:$16 sps:$4 sm:$0xff]   ;;  %v5054_v2 = vld [vmem:[%s7772_s1] ss:$16 sps:$4 sm:$0xff]  }
   0x2   :  { %3557 = vmatprep.subr.bf16.mxu0 %v5050_v0  ;;  %v5055_v3 = vld [vmem:[%s7772_s1 + $0x8] ss:$16 sps:$4 sm:$0xff]   ;;  %3926 = vmatprep.subr.bf16.mxu1 %v5052_v1  ;;  %v5056_v4 = vld [vmem:[%s7772_s1 + $0x24] ss:$16 sps:$4 sm:$0xff]   ;;  %v5058_v5 = vld [vmem:[%s7772_s1 + $0x2c] ss:$16 sps:$4 sm:$0xff]  }
   0x3   :  { %3558 = vmatpush1.bf16.msra.mxu0 %v5054_v2  ;;  %3927 = vmatpush1.bf16.msra.mxu1 %v5055_v3  ;;  %v5060_v6 = vld [vmem:[%s7772_s1 + $0x20] ss:$16 sps:$4 sm:$0xff]   ;;  %v5061_v7 = vld [vmem:[%s7772_s1 + $0x28] ss:$16 sps:$4 sm:$0xff]   ;;  %v5062_v8 = vld [vmem:[%s7772_s1 + $0x44] ss:$16 sps:$4 sm:$0xff]  }
   0x4   :  { %3559 = vmatprep.subr.bf16.mxu0 %v5056_v4  ;;  %3928 = vmatprep.subr.bf16.mxu1 %v5058_v5  ;;  %v5064_v9 = vld [vmem:[%s7772_s1 + $0x4c] ss:$16 sps:$4 sm:$0xff]   ;;  %v5066_v10 = vld [vmem:[%s7772_s1 + $0x40] ss:$16 sps:$4 sm:$0xff]   ;;  %v5067_v11 = vld [vmem:[%s7772_s1 + $0x48] ss:$16 sps:$4 sm:$0xff]  }
   0x5   :  { %v5068_v12 = vld [vmem:[%s7772_s1 + $0x64] ss:$16 sps:$4 sm:$0xff]   ;;  %v5070_v13 = vld [vmem:[%s7772_s1 + $0x6c] ss:$16 sps:$4 sm:$0xff]   ;;  %v5072_v14 = vld [vmem:[%s7772_s1 + $0x60] ss:$16 sps:$4 sm:$0xff]  }
   0x6   :  { %v5073_v15 = vld [vmem:[%s7772_s1 + $0x68] ss:$16 sps:$4 sm:$0xff]   ;;  %v5074_v16 = vld [vmem:[%s7772_s1 + $0x84] ss:$16 sps:$4 sm:$0xff]   ;;  %v5076_v17 = vld [vmem:[%s7772_s1 + $0x8c] ss:$16 sps:$4 sm:$0xff]  }
   0x7   :  { %3560 = vmatpush1.bf16.msra.mxu0 %v5060_v6  ;;  %3929 = vmatpush1.bf16.msra.mxu1 %v5061_v7  ;;  %v5078_v18 = vld [vmem:[%s7772_s1 + $0x80] ss:$16 sps:$4 sm:$0xff]   ;;  %v5079_v19 = vld [vmem:[%s7772_s1 + $0x88] ss:$16 sps:$4 sm:$0xff]   ;;  %v5080_v20 = vld [vmem:[%s7772_s1 + $0xa4] ss:$16 sps:$4 sm:$0xff]  }
   0x8   :  { %3561 = vmatprep.subr.bf16.mxu0 %v5062_v8  ;;  %3930 = vmatprep.subr.bf16.mxu1 %v5064_v9  ;;  %v5082_v21 = vld [vmem:[%s7772_s1 + $0xac] ss:$16 sps:$4 sm:$0xff]   ;;  %v5084_v22 = vld [vmem:[%s7772_s1 + $0xa0] ss:$16 sps:$4 sm:$0xff]   ;;  %v5085_v23 = vld [vmem:[%s7772_s1 + $0xa8] ss:$16 sps:$4 sm:$0xff]  }
   0x9   :  { %v5086_v24 = vld [vmem:[%s7772_s1 + $0xc4] ss:$16 sps:$4 sm:$0xff]   ;;  %v5088_v25 = vld [vmem:[%s7772_s1 + $0xcc] ss:$16 sps:$4 sm:$0xff]   ;;  %v5090_v26 = vld [vmem:[%s7772_s1 + $0xc0] ss:$16 sps:$4 sm:$0xff]  }
   0xa   :  { %v5091_v27 = vld [vmem:[%s7772_s1 + $0xc8] ss:$16 sps:$4 sm:$0xff]   ;;  %v5092_v28 = vld [vmem:[%s7772_s1 + $0xe4] ss:$16 sps:$4 sm:$0xff]   ;;  %v5094_v29 = vld [vmem:[%s7772_s1 + $0xec] ss:$16 sps:$4 sm:$0xff]  }
   0xb   :  { %3562 = vmatpush1.bf16.msra.mxu0 %v5066_v10  ;;  %3931 = vmatpush1.bf16.msra.mxu1 %v5067_v11  ;;  %v5096_v30 = vld [vmem:[%s7772_s1 + $0xe0] ss:$16 sps:$4 sm:$0xff]   ;;  %v5097_v31 = vld [vmem:[%s7772_s1 + $0xe8] ss:$16 sps:$4 sm:$0xff]   ;;  %v5098_v32 = vld [vmem:[%s7772_s1 + $0x104] ss:$16 sps:$4 sm:$0xff]  }
   0xc   :  { %3563 = vmatprep.subr.bf16.mxu0 %v5068_v12  ;;  %3932 = vmatprep.subr.bf16.mxu1 %v5070_v13  ;;  %v5100_v33 = vld [vmem:[%s7772_s1 + $0x10c] ss:$16 sps:$4 sm:$0xff]   ;;  %v5102_v34 = vld [vmem:[%s7772_s1 + $0x100] ss:$16 sps:$4 sm:$0xff]   ;;  %v5103_v35 = vld [vmem:[%s7772_s1 + $0x108] ss:$16 sps:$4 sm:$0xff]  }
   0xd   :  { %v5104_v36 = vld [vmem:[%s7772_s1 + $0x124] ss:$16 sps:$4 sm:$0xff]   ;;  %v5106_v37 = vld [vmem:[%s7772_s1 + $0x12c] ss:$16 sps:$4 sm:$0xff]   ;;  %v5108_v38 = vld [vmem:[%s7772_s1 + $0x120] ss:$16 sps:$4 sm:$0xff]  }
   0xe   :  { %v5109_v39 = vld [vmem:[%s7772_s1 + $0x128] ss:$16 sps:$4 sm:$0xff]   ;;  %v5110_v40 = vld [vmem:[%s7772_s1 + $0x144] ss:$16 sps:$4 sm:$0xff]   ;;  %v5112_v41 = vld [vmem:[%s7772_s1 + $0x14c] ss:$16 sps:$4 sm:$0xff]  }
   0xf   :  { %3564 = vmatpush1.bf16.msra.mxu0 %v5072_v14  ;;  %3933 = vmatpush1.bf16.msra.mxu1 %v5073_v15  ;;  %v5114_v42 = vld [vmem:[%s7772_s1 + $0x140] ss:$16 sps:$4 sm:$0xff]   ;;  %v5115_v43 = vld [vmem:[%s7772_s1 + $0x148] ss:$16 sps:$4 sm:$0xff]   ;;  %v5116_v44 = vld [vmem:[%s7772_s1 + $0x164] ss:$16 sps:$4 sm:$0xff]  }
  0x10   :  { %3565 = vmatprep.subr.bf16.mxu0 %v5074_v16  ;;  %3934 = vmatprep.subr.bf16.mxu1 %v5076_v17  ;;  %v5118_v45 = vld [vmem:[%s7772_s1 + $0x16c] ss:$16 sps:$4 sm:$0xff]   ;;  %v29_v46 = vld [vmem:[%s7773_s0] sm:$0xff]  ;;  %v5121_v49 = vld [vmem:[%s7772_s1 + $0x168] ss:$16 sps:$4 sm:$0xff]  }
  0x11   :  { %v5120_v47 = vld [vmem:[%s7772_s1 + $0x160] ss:$16 sps:$4 sm:$0xff]   ;;  %v4389_v48 = vcombine.high %v29_v46, %v29_v46  ;;  %v5122_v50 = vld [vmem:[%s7772_s1 + $0x184] ss:$16 sps:$4 sm:$0xff]   ;;  %v5124_v51 = vld [vmem:[%s7772_s1 + $0x18c] ss:$16 sps:$4 sm:$0xff]   ;;  %v4388_v4 = vcombine.low %v29_v46, %v29_v46 }
  0x12   :  { %v5126_v52 = vld [vmem:[%s7772_s1 + $0x180] ss:$16 sps:$4 sm:$0xff]   ;;  %v5127_v53 = vld [vmem:[%s7772_s1 + $0x188] ss:$16 sps:$4 sm:$0xff]   ;;  %v5128_v54 = vld [vmem:[%s7772_s1 + $0x1a4] ss:$16 sps:$4 sm:$0xff]  }
  0x13   :  { %3566 = vmatpush1.bf16.msra.mxu0 %v5078_v18  ;;  %3935 = vmatpush1.bf16.msra.mxu1 %v5079_v19  ;;  %v5130_v55 = vld [vmem:[%s7772_s1 + $0x1ac] ss:$16 sps:$4 sm:$0xff]   ;;  %v5132_v56 = vld [vmem:[%s7772_s1 + $0x1a0] ss:$16 sps:$4 sm:$0xff]   ;;  %v5133_v57 = vld [vmem:[%s7772_s1 + $0x1a8] ss:$16 sps:$4 sm:$0xff]  }
  0x14   :  { %3567 = vmatprep.subr.bf16.mxu0 %v5080_v20  ;;  %3936 = vmatprep.subr.bf16.mxu1 %v5082_v21  ;;  %v5134_v58 = vld [vmem:[%s7772_s1 + $0x1c4] ss:$16 sps:$4 sm:$0xff]   ;;  %v5136_v59 = vld [vmem:[%s7772_s1 + $0x1cc] ss:$16 sps:$4 sm:$0xff]   ;;  %v5138_v60 = vld [vmem:[%s7772_s1 + $0x1c0] ss:$16 sps:$4 sm:$0xff]  }
  0x15   :  { %3589 = vmatprep.mubr.bf16.mxu0 %v4389_v48  ;;  %3958 = vmatprep.mubr.bf16.mxu1 %v4389_v48  ;;  %v5139_v61 = vld [vmem:[%s7772_s1 + $0x1c8] ss:$16 sps:$4 sm:$0xff]   ;;  %v5140_v62 = vld [vmem:[%s7772_s1 + $0x1e4] ss:$16 sps:$4 sm:$0xff]   ;;  %v5142_v63 = vld [vmem:[%s7772_s1 + $0x1ec] ss:$16 sps:$4 sm:$0xff]  }
  0x16   :  { %v5144_v0 = vld [vmem:[%s7772_s1 + $0x1e0] ss:$16 sps:$4 sm:$0xff]   ;;  %v5145_v1 = vld [vmem:[%s7772_s1 + $0x1e8] ss:$16 sps:$4 sm:$0xff]   ;;  %v5150_v2 = vld [vmem:[%s7772_s1 + $0x204] ss:$16 sps:$4 sm:$0xff]  }
  0x17   :  { %3568 = vmatpush1.bf16.msra.mxu0 %v5084_v22  ;;  %3937 = vmatpush1.bf16.msra.mxu1 %v5085_v23  ;;  %v5153_v3 = vld [vmem:[%s7772_s1 + $0x20c] ss:$16 sps:$4 sm:$0xff]   ;;  %v5148_v5 = vld [vmem:[%s7772_s1 + $0x200] ss:$16 sps:$4 sm:$0xff]   ;;  %v5151_v6 = vld [vmem:[%s7772_s1 + $0x208] ss:$16 sps:$4 sm:$0xff]  }
  0x18   :  { %3569 = vmatprep.subr.bf16.mxu0 %v5086_v24  ;;  %3938 = vmatprep.subr.bf16.mxu1 %v5088_v25  ;;  %v5156_v7 = vld [vmem:[%s7772_s1 + $0x224] ss:$16 sps:$4 sm:$0xff]   ;;  %v5159_v8 = vld [vmem:[%s7772_s1 + $0x22c] ss:$16 sps:$4 sm:$0xff]   ;;  %v5154_v9 = vld [vmem:[%s7772_s1 + $0x220] ss:$16 sps:$4 sm:$0xff]  }
  0x19   :  { %v5157_v10 = vld [vmem:[%s7772_s1 + $0x228] ss:$16 sps:$4 sm:$0xff]   ;;  %v5162_v11 = vld [vmem:[%s7772_s1 + $0x244] ss:$16 sps:$4 sm:$0xff]   ;;  %v5165_v12 = vld [vmem:[%s7772_s1 + $0x24c] ss:$16 sps:$4 sm:$0xff]  }
  0x1a   :  { %v5160_v13 = vld [vmem:[%s7772_s1 + $0x240] ss:$16 sps:$4 sm:$0xff]   ;;  %v5163_v14 = vld [vmem:[%s7772_s1 + $0x248] ss:$16 sps:$4 sm:$0xff]   ;;  %v5168_v15 = vld [vmem:[%s7772_s1 + $0x264] ss:$16 sps:$4 sm:$0xff]  }
  0x1b   :  { %3570 = vmatpush1.bf16.msra.mxu0 %v5090_v26  ;;  %3939 = vmatpush1.bf16.msra.mxu1 %v5091_v27  ;;  %v5171_v16 = vld [vmem:[%s7772_s1 + $0x26c] ss:$16 sps:$4 sm:$0xff]   ;;  %v5166_v17 = vld [vmem:[%s7772_s1 + $0x260] ss:$16 sps:$4 sm:$0xff]   ;;  %v5169_v18 = vld [vmem:[%s7772_s1 + $0x268] ss:$16 sps:$4 sm:$0xff]  }
  0x1c   :  { %3571 = vmatprep.subr.bf16.mxu0 %v5092_v28  ;;  %3940 = vmatprep.subr.bf16.mxu1 %v5094_v29  ;;  %v5174_v19 = vld [vmem:[%s7772_s1 + $0x284] ss:$16 sps:$4 sm:$0xff]   ;;  %v5177_v20 = vld [vmem:[%s7772_s1 + $0x28c] ss:$16 sps:$4 sm:$0xff]   ;;  %v5172_v21 = vld [vmem:[%s7772_s1 + $0x280] ss:$16 sps:$4 sm:$0xff]  }
  0x1d   :  { %v5175_v22 = vld [vmem:[%s7772_s1 + $0x288] ss:$16 sps:$4 sm:$0xff]   ;;  %v5180_v23 = vld [vmem:[%s7772_s1 + $0x2a4] ss:$16 sps:$4 sm:$0xff]   ;;  %v5183_v24 = vld [vmem:[%s7772_s1 + $0x2ac] ss:$16 sps:$4 sm:$0xff]  }
  0x1e   :  { %v5178_v25 = vld [vmem:[%s7772_s1 + $0x2a0] ss:$16 sps:$4 sm:$0xff]   ;;  %v5181_v26 = vld [vmem:[%s7772_s1 + $0x2a8] ss:$16 sps:$4 sm:$0xff]   ;;  %v5186_v27 = vld [vmem:[%s7772_s1 + $0x2c4] ss:$16 sps:$4 sm:$0xff]  }
  0x1f   :  { %3572 = vmatpush1.bf16.msra.mxu0 %v5096_v30  ;;  %3941 = vmatpush1.bf16.msra.mxu1 %v5097_v31  ;;  %v5189_v28 = vld [vmem:[%s7772_s1 + $0x2cc] ss:$16 sps:$4 sm:$0xff]   ;;  %v5184_v31 = vld [vmem:[%s7772_s1 + $0x2c0] ss:$16 sps:$4 sm:$0xff]   ;;  %v5211_v48 = vld [vmem:[%s7772_s1 + $0x348] ss:$16 sps:$4 sm:$0xff]  }
  0x20   :  { %3573 = vmatprep.subr.bf16.mxu0 %v5098_v32  ;;  %3942 = vmatprep.subr.bf16.mxu1 %v5100_v33  ;;  %v6233_v29 = vld [vmem:[%s7773_s0 + $0x8] sm:$0xff]  ;;  %v5192_v33 = vld [vmem:[%s7772_s1 + $0x2e4] ss:$16 sps:$4 sm:$0xff]  }
  0x21   :  { %v4391_v30 = vcombine.high %v6233_v29, %v6233_v29  ;;  %v5187_v32 = vld [vmem:[%s7772_s1 + $0x2c8] ss:$16 sps:$4 sm:$0xff]   ;;  %v5213_v46 = vld [vmem:[%s7772_s1 + $0x34c] ss:$16 sps:$4 sm:$0xff]  }
  0x23   :  { %3574 = vmatpush1.bf16.msra.mxu0 %v5102_v34  ;;  %3943 = vmatpush1.bf16.msra.mxu1 %v5103_v35  ;;  %v5195_v34 = vld [vmem:[%s7772_s1 + $0x2ec] ss:$16 sps:$4 sm:$0xff]   ;;  %v5190_v35 = vld [vmem:[%s7772_s1 + $0x2e0] ss:$16 sps:$4 sm:$0xff]  }
  0x24   :  { %3575 = vmatprep.subr.bf16.mxu0 %v5104_v36  ;;  %3944 = vmatprep.subr.bf16.mxu1 %v5106_v37  ;;  %v5193_v36 = vld [vmem:[%s7772_s1 + $0x2e8] ss:$16 sps:$4 sm:$0xff]   ;;  %v5198_v37 = vld [vmem:[%s7772_s1 + $0x304] ss:$16 sps:$4 sm:$0xff]  }
  0x27   :  { %3576 = vmatpush1.bf16.msra.mxu0 %v5108_v38  ;;  %3945 = vmatpush1.bf16.msra.mxu1 %v5109_v39  ;;  %v5201_v38 = vld [vmem:[%s7772_s1 + $0x30c] ss:$16 sps:$4 sm:$0xff]   ;;  %v5196_v39 = vld [vmem:[%s7772_s1 + $0x300] ss:$16 sps:$4 sm:$0xff]  }
  0x28   :  { %3577 = vmatprep.subr.bf16.mxu0 %v5110_v40  ;;  %3946 = vmatprep.subr.bf16.mxu1 %v5112_v41  ;;  %v5199_v40 = vld [vmem:[%s7772_s1 + $0x308] ss:$16 sps:$4 sm:$0xff]   ;;  %v5204_v41 = vld [vmem:[%s7772_s1 + $0x324] ss:$16 sps:$4 sm:$0xff]  }
  0x2b   :  { %3578 = vmatpush1.bf16.msra.mxu0 %v5114_v42  ;;  %3947 = vmatpush1.bf16.msra.mxu1 %v5115_v43  ;;  %v5207_v42 = vld [vmem:[%s7772_s1 + $0x32c] ss:$16 sps:$4 sm:$0xff]   ;;  %v5202_v43 = vld [vmem:[%s7772_s1 + $0x320] ss:$16 sps:$4 sm:$0xff]  }
  0x2c   :  { %3579 = vmatprep.subr.bf16.mxu0 %v5116_v44  ;;  %3948 = vmatprep.subr.bf16.mxu1 %v5118_v45  ;;  %v5205_v44 = vld [vmem:[%s7772_s1 + $0x328] ss:$16 sps:$4 sm:$0xff]   ;;  %v5210_v45 = vld [vmem:[%s7772_s1 + $0x344] ss:$16 sps:$4 sm:$0xff]  }
  0x2f   :  { %3580 = vmatpush1.bf16.msra.mxu0 %v5120_v47  ;;  %3949 = vmatpush1.bf16.msra.mxu1 %v5121_v49  ;;  %v5208_v47 = vld [vmem:[%s7772_s1 + $0x340] ss:$16 sps:$4 sm:$0xff]   ;;  %v5216_v49 = vld [vmem:[%s7772_s1 + $0x364] ss:$16 sps:$4 sm:$0xff]  }
  0x30   :  { %3581 = vmatprep.subr.bf16.mxu0 %v5122_v50  ;;  %3950 = vmatprep.subr.bf16.mxu1 %v5124_v51  ;;  %v5219_v50 = vld [vmem:[%s7772_s1 + $0x36c] ss:$16 sps:$4 sm:$0xff]   ;;  %v5214_v51 = vld [vmem:[%s7772_s1 + $0x360] ss:$16 sps:$4 sm:$0xff]  }
  0x33   :  { %3582 = vmatpush1.bf16.msra.mxu0 %v5126_v52  ;;  %3951 = vmatpush1.bf16.msra.mxu1 %v5127_v53  ;;  %v5217_v52 = vld [vmem:[%s7772_s1 + $0x368] ss:$16 sps:$4 sm:$0xff]   ;;  %v5222_v53 = vld [vmem:[%s7772_s1 + $0x384] ss:$16 sps:$4 sm:$0xff]  }
  0x34   :  { %3583 = vmatprep.subr.bf16.mxu0 %v5128_v54  ;;  %3952 = vmatprep.subr.bf16.mxu1 %v5130_v55  ;;  %v5225_v54 = vld [vmem:[%s7772_s1 + $0x38c] ss:$16 sps:$4 sm:$0xff]   ;;  %v5220_v55 = vld [vmem:[%s7772_s1 + $0x380] ss:$16 sps:$4 sm:$0xff]  }
  0x37   :  { %3584 = vmatpush1.bf16.msra.mxu0 %v5132_v56  ;;  %3953 = vmatpush1.bf16.msra.mxu1 %v5133_v57  ;;  %v5223_v56 = vld [vmem:[%s7772_s1 + $0x388] ss:$16 sps:$4 sm:$0xff]   ;;  %v5228_v57 = vld [vmem:[%s7772_s1 + $0x3a4] ss:$16 sps:$4 sm:$0xff]  }
  0x38   :  { %3585 = vmatprep.subr.bf16.mxu0 %v5134_v58  ;;  %3954 = vmatprep.subr.bf16.mxu1 %v5136_v59  ;;  %v5231_v58 = vld [vmem:[%s7772_s1 + $0x3ac] ss:$16 sps:$4 sm:$0xff]   ;;  %v5226_v59 = vld [vmem:[%s7772_s1 + $0x3a0] ss:$16 sps:$4 sm:$0xff]  }
  0x3b   :  { %3586 = vmatpush1.bf16.msra.mxu0 %v5138_v60  ;;  %3955 = vmatpush1.bf16.msra.mxu1 %v5139_v61  ;;  %v5229_v60 = vld [vmem:[%s7772_s1 + $0x3a8] ss:$16 sps:$4 sm:$0xff]   ;;  %v5234_v61 = vld [vmem:[%s7772_s1 + $0x3c4] ss:$16 sps:$4 sm:$0xff]  }
  0x3c   :  { %3587 = vmatprep.subr.bf16.mxu0 %v5140_v62  ;;  %3956 = vmatprep.subr.bf16.mxu1 %v5142_v63  ;;  %v5237_v62 = vld [vmem:[%s7772_s1 + $0x3cc] ss:$16 sps:$4 sm:$0xff]   ;;  %v5232_v63 = vld [vmem:[%s7772_s1 + $0x3c0] ss:$16 sps:$4 sm:$0xff]  }
  0x3f   :  { %3588 = vmatpush1.bf16.msra.mxu0 %v5144_v0  ;;  %3957 = vmatpush1.bf16.msra.mxu1 %v5145_v1  ;;  %v5235_v0 = vld [vmem:[%s7772_s1 + $0x3c8] ss:$16 sps:$4 sm:$0xff]   ;;  %v5240_v1 = vld [vmem:[%s7772_s1 + $0x3e4] ss:$16 sps:$4 sm:$0xff]  }
  0x40   :  { %3598 = vmatprep.subr.bf16.mxu0 %v5150_v2  ;;  %3967 = vmatprep.subr.bf16.mxu1 %v5153_v3  ;;  %v5243_v2 = vld [vmem:[%s7772_s1 + $0x3ec] ss:$16 sps:$4 sm:$0xff]   ;;  %v5238_v3 = vld [vmem:[%s7772_s1 + $0x3e0] ss:$16 sps:$4 sm:$0xff]  }
  0x42   :  { %3590 = vmatmul.mubr.bf16.vlgmr.msra.gmra.mrb[0].mxu0 %v4388_v4  ;;  %3959 = vmatmul.mubr.bf16.vlgmr.msra.gmra.mrb[0].mxu1 %v4388_v4  ;;  %v5241_v4 = vld [vmem:[%s7772_s1 + $0x3e8] ss:$16 sps:$4 sm:$0xff]  }
  0x43   :  { %3599 = vmatpush1.bf16.msra.mxu0 %v5148_v5  ;;  %3968 = vmatpush1.bf16.msra.mxu1 %v5151_v6  ;;  %v5248_v5 = vld [vmem:[%s7772_s1 + $0x404] ss:$16 sps:$4 sm:$0xff]   ;;  %v5251_v6 = vld [vmem:[%s7772_s1 + $0x40c] ss:$16 sps:$4 sm:$0xff]  }
  0x44   :  { %3600 = vmatprep.subr.bf16.mxu0 %v5156_v7  ;;  %3969 = vmatprep.subr.bf16.mxu1 %v5159_v8  ;;  %v4390_v7 = vcombine.low %v6233_v29, %v6233_v29  ;;  %v5246_v8 = vld [vmem:[%s7772_s1 + $0x400] ss:$16 sps:$4 sm:$0xff]   ;;  %v5281_v29 = vld [vmem:[%s7772_s1 + $0x4ac] ss:$16 sps:$4 sm:$0xff]  }
  0x45   :  { %3630 = vmatprep.mubr.bf16.mxu0 %v4391_v30  ;;  %3999 = vmatprep.mubr.bf16.mxu1 %v4391_v30  ;;  %v5276_v30 = vld [vmem:[%s7772_s1 + $0x4a0] ss:$16 sps:$4 sm:$0xff]  }
  0x47   :  { %3601 = vmatpush1.bf16.msra.mxu0 %v5154_v9  ;;  %3970 = vmatpush1.bf16.msra.mxu1 %v5157_v10  ;;  %v5249_v9 = vld [vmem:[%s7772_s1 + $0x408] ss:$16 sps:$4 sm:$0xff]   ;;  %v5254_v10 = vld [vmem:[%s7772_s1 + $0x424] ss:$16 sps:$4 sm:$0xff]  }
  0x48   :  { %3602 = vmatprep.subr.bf16.mxu0 %v5162_v11  ;;  %3971 = vmatprep.subr.bf16.mxu1 %v5165_v12  ;;  %v6371_v11 = vld [vmem:[%s7773_s0 + $0x10] sm:$0xff]  ;;  %v5257_v12 = vld [vmem:[%s7772_s1 + $0x42c] ss:$16 sps:$4 sm:$0xff]  }
  0x4b   :  { %3603 = vmatpush1.bf16.msra.mxu0 %v5160_v13  ;;  %3972 = vmatpush1.bf16.msra.mxu1 %v5163_v14  ;;  %v4393_v13 = vcombine.high %v6371_v11, %v6371_v11  ;;  %v5252_v14 = vld [vmem:[%s7772_s1 + $0x420] ss:$16 sps:$4 sm:$0xff]  }
  0x4c   :  { %3604 = vmatprep.subr.bf16.mxu0 %v5168_v15  ;;  %3973 = vmatprep.subr.bf16.mxu1 %v5171_v16  ;;  %v5255_v15 = vld [vmem:[%s7772_s1 + $0x428] ss:$16 sps:$4 sm:$0xff]   ;;  %v5260_v16 = vld [vmem:[%s7772_s1 + $0x444] ss:$16 sps:$4 sm:$0xff]  }
  0x4f   :  { %3605 = vmatpush1.bf16.msra.mxu0 %v5166_v17  ;;  %3974 = vmatpush1.bf16.msra.mxu1 %v5169_v18  ;;  %v5263_v17 = vld [vmem:[%s7772_s1 + $0x44c] ss:$16 sps:$4 sm:$0xff]   ;;  %v5258_v18 = vld [vmem:[%s7772_s1 + $0x440] ss:$16 sps:$4 sm:$0xff]  }
  0x50   :  { %3606 = vmatprep.subr.bf16.mxu0 %v5174_v19  ;;  %3975 = vmatprep.subr.bf16.mxu1 %v5177_v20  ;;  %v5261_v19 = vld [vmem:[%s7772_s1 + $0x448] ss:$16 sps:$4 sm:$0xff]   ;;  %v5266_v20 = vld [vmem:[%s7772_s1 + $0x464] ss:$16 sps:$4 sm:$0xff]  }
  0x53   :  { %3607 = vmatpush1.bf16.msra.mxu0 %v5172_v21  ;;  %3976 = vmatpush1.bf16.msra.mxu1 %v5175_v22  ;;  %v5269_v21 = vld [vmem:[%s7772_s1 + $0x46c] ss:$16 sps:$4 sm:$0xff]   ;;  %v5264_v22 = vld [vmem:[%s7772_s1 + $0x460] ss:$16 sps:$4 sm:$0xff]  }
  0x54   :  { %3608 = vmatprep.subr.bf16.mxu0 %v5180_v23  ;;  %3977 = vmatprep.subr.bf16.mxu1 %v5183_v24  ;;  %v5267_v23 = vld [vmem:[%s7772_s1 + $0x468] ss:$16 sps:$4 sm:$0xff]   ;;  %v5272_v24 = vld [vmem:[%s7772_s1 + $0x484] ss:$16 sps:$4 sm:$0xff]  }
  0x57   :  { %3609 = vmatpush1.bf16.msra.mxu0 %v5178_v25  ;;  %3978 = vmatpush1.bf16.msra.mxu1 %v5181_v26  ;;  %v5275_v25 = vld [vmem:[%s7772_s1 + $0x48c] ss:$16 sps:$4 sm:$0xff]   ;;  %v5270_v26 = vld [vmem:[%s7772_s1 + $0x480] ss:$16 sps:$4 sm:$0xff]  }
  0x58   :  { %3610 = vmatprep.subr.bf16.mxu0 %v5186_v27  ;;  %3979 = vmatprep.subr.bf16.mxu1 %v5189_v28  ;;  %v5273_v27 = vld [vmem:[%s7772_s1 + $0x488] ss:$16 sps:$4 sm:$0xff]   ;;  %v5278_v28 = vld [vmem:[%s7772_s1 + $0x4a4] ss:$16 sps:$4 sm:$0xff]  }
  0x5b   :  { %3611 = vmatpush1.bf16.msra.mxu0 %v5184_v31  ;;  %3980 = vmatpush1.bf16.msra.mxu1 %v5187_v32  ;;  %v5279_v31 = vld [vmem:[%s7772_s1 + $0x4a8] ss:$16 sps:$4 sm:$0xff]   ;;  %v5284_v32 = vld [vmem:[%s7772_s1 + $0x4c4] ss:$16 sps:$4 sm:$0xff]  }
  0x5c   :  { %3612 = vmatprep.subr.bf16.mxu0 %v5192_v33  ;;  %3981 = vmatprep.subr.bf16.mxu1 %v5195_v34  ;;  %v5287_v33 = vld [vmem:[%s7772_s1 + $0x4cc] ss:$16 sps:$4 sm:$0xff]   ;;  %v5282_v34 = vld [vmem:[%s7772_s1 + $0x4c0] ss:$16 sps:$4 sm:$0xff]  }
  0x5f   :  { %3613 = vmatpush1.bf16.msra.mxu0 %v5190_v35  ;;  %3982 = vmatpush1.bf16.msra.mxu1 %v5193_v36  ;;  %v5285_v35 = vld [vmem:[%s7772_s1 + $0x4c8] ss:$16 sps:$4 sm:$0xff]   ;;  %v5290_v36 = vld [vmem:[%s7772_s1 + $0x4e4] ss:$16 sps:$4 sm:$0xff]  }
  0x60   :  { %3614 = vmatprep.subr.bf16.mxu0 %v5198_v37  ;;  %3983 = vmatprep.subr.bf16.mxu1 %v5201_v38  ;;  %v5293_v37 = vld [vmem:[%s7772_s1 + $0x4ec] ss:$16 sps:$4 sm:$0xff]   ;;  %v5288_v38 = vld [vmem:[%s7772_s1 + $0x4e0] ss:$16 sps:$4 sm:$0xff]  }
  0x63   :  { %3615 = vmatpush1.bf16.msra.mxu0 %v5196_v39  ;;  %3984 = vmatpush1.bf16.msra.mxu1 %v5199_v40  ;;  %v5291_v39 = vld [vmem:[%s7772_s1 + $0x4e8] ss:$16 sps:$4 sm:$0xff]   ;;  %v5296_v40 = vld [vmem:[%s7772_s1 + $0x504] ss:$16 sps:$4 sm:$0xff]  }
  0x64   :  { %3616 = vmatprep.subr.bf16.mxu0 %v5204_v41  ;;  %3985 = vmatprep.subr.bf16.mxu1 %v5207_v42  ;;  %v5299_v41 = vld [vmem:[%s7772_s1 + $0x50c] ss:$16 sps:$4 sm:$0xff]   ;;  %v5294_v42 = vld [vmem:[%s7772_s1 + $0x500] ss:$16 sps:$4 sm:$0xff]  }
  0x67   :  { %3617 = vmatpush1.bf16.msra.mxu0 %v5202_v43  ;;  %3986 = vmatpush1.bf16.msra.mxu1 %v5205_v44  ;;  %v5297_v43 = vld [vmem:[%s7772_s1 + $0x508] ss:$16 sps:$4 sm:$0xff]   ;;  %v5302_v44 = vld [vmem:[%s7772_s1 + $0x524] ss:$16 sps:$4 sm:$0xff]  }
  0x68   :  { %3618 = vmatprep.subr.bf16.mxu0 %v5210_v45  ;;  %3987 = vmatprep.subr.bf16.mxu1 %v5213_v46  ;;  %v5305_v45 = vld [vmem:[%s7772_s1 + $0x52c] ss:$16 sps:$4 sm:$0xff]   ;;  %v5300_v46 = vld [vmem:[%s7772_s1 + $0x520] ss:$16 sps:$4 sm:$0xff]  }
  0x6b   :  { %3619 = vmatpush1.bf16.msra.mxu0 %v5208_v47  ;;  %3988 = vmatpush1.bf16.msra.mxu1 %v5211_v48  ;;  %v5303_v47 = vld [vmem:[%s7772_s1 + $0x528] ss:$16 sps:$4 sm:$0xff]   ;;  %v5308_v48 = vld [vmem:[%s7772_s1 + $0x544] ss:$16 sps:$4 sm:$0xff]  }
  0x6c   :  { %3620 = vmatprep.subr.bf16.mxu0 %v5216_v49  ;;  %3989 = vmatprep.subr.bf16.mxu1 %v5219_v50  ;;  %v5311_v49 = vld [vmem:[%s7772_s1 + $0x54c] ss:$16 sps:$4 sm:$0xff]   ;;  %v5306_v50 = vld [vmem:[%s7772_s1 + $0x540] ss:$16 sps:$4 sm:$0xff]  }
  0x6f   :  { %3621 = vmatpush1.bf16.msra.mxu0 %v5214_v51  ;;  %3990 = vmatpush1.bf16.msra.mxu1 %v5217_v52  ;;  %v5309_v51 = vld [vmem:[%s7772_s1 + $0x548] ss:$16 sps:$4 sm:$0xff]   ;;  %v5314_v52 = vld [vmem:[%s7772_s1 + $0x564] ss:$16 sps:$4 sm:$0xff]  }
  0x70   :  { %3622 = vmatprep.subr.bf16.mxu0 %v5222_v53  ;;  %3991 = vmatprep.subr.bf16.mxu1 %v5225_v54  ;;  %v5317_v53 = vld [vmem:[%s7772_s1 + $0x56c] ss:$16 sps:$4 sm:$0xff]   ;;  %v5312_v54 = vld [vmem:[%s7772_s1 + $0x560] ss:$16 sps:$4 sm:$0xff]  }
  0x73   :  { %3623 = vmatpush1.bf16.msra.mxu0 %v5220_v55  ;;  %3992 = vmatpush1.bf16.msra.mxu1 %v5223_v56  ;;  %v5315_v55 = vld [vmem:[%s7772_s1 + $0x568] ss:$16 sps:$4 sm:$0xff]   ;;  %v5320_v56 = vld [vmem:[%s7772_s1 + $0x584] ss:$16 sps:$4 sm:$0xff]  }
  0x74   :  { %3624 = vmatprep.subr.bf16.mxu0 %v5228_v57  ;;  %3993 = vmatprep.subr.bf16.mxu1 %v5231_v58  ;;  %v5323_v57 = vld [vmem:[%s7772_s1 + $0x58c] ss:$16 sps:$4 sm:$0xff]   ;;  %v5318_v58 = vld [vmem:[%s7772_s1 + $0x580] ss:$16 sps:$4 sm:$0xff]  }
  0x77   :  { %3625 = vmatpush1.bf16.msra.mxu0 %v5226_v59  ;;  %3994 = vmatpush1.bf16.msra.mxu1 %v5229_v60  ;;  %v5321_v59 = vld [vmem:[%s7772_s1 + $0x588] ss:$16 sps:$4 sm:$0xff]   ;;  %v5326_v60 = vld [vmem:[%s7772_s1 + $0x5a4] ss:$16 sps:$4 sm:$0xff]  }
  0x78   :  { %3626 = vmatprep.subr.bf16.mxu0 %v5234_v61  ;;  %3995 = vmatprep.subr.bf16.mxu1 %v5237_v62  ;;  %v5329_v61 = vld [vmem:[%s7772_s1 + $0x5ac] ss:$16 sps:$4 sm:$0xff]   ;;  %v5324_v62 = vld [vmem:[%s7772_s1 + $0x5a0] ss:$16 sps:$4 sm:$0xff]  }
  0x7b   :  { %3627 = vmatpush1.bf16.msra.mxu0 %v5232_v63  ;;  %3996 = vmatpush1.bf16.msra.mxu1 %v5235_v0  ;;  %v5327_v63 = vld [vmem:[%s7772_s1 + $0x5a8] ss:$16 sps:$4 sm:$0xff]   ;;  %v5332_v0 = vld [vmem:[%s7772_s1 + $0x5c4] ss:$16 sps:$4 sm:$0xff]  }
  0x7c   :  { %3628 = vmatprep.subr.bf16.mxu0 %v5240_v1  ;;  %3997 = vmatprep.subr.bf16.mxu1 %v5243_v2  ;;  %v5335_v1 = vld [vmem:[%s7772_s1 + $0x5cc] ss:$16 sps:$4 sm:$0xff]   ;;  %v5330_v2 = vld [vmem:[%s7772_s1 + $0x5c0] ss:$16 sps:$4 sm:$0xff]  }
  0x7f   :  { %3629 = vmatpush1.bf16.msra.mxu0 %v5238_v3  ;;  %3998 = vmatpush1.bf16.msra.mxu1 %v5241_v4  ;;  %v5333_v3 = vld [vmem:[%s7772_s1 + $0x5c8] ss:$16 sps:$4 sm:$0xff]   ;;  %v5338_v4 = vld [vmem:[%s7772_s1 + $0x5e4] ss:$16 sps:$4 sm:$0xff]  }
  0x80   :  { %3639 = vmatprep.subr.bf16.mxu0 %v5248_v5  ;;  %4008 = vmatprep.subr.bf16.mxu1 %v5251_v6  ;;  %v5341_v5 = vld [vmem:[%s7772_s1 + $0x5ec] ss:$16 sps:$4 sm:$0xff]   ;;  %v5336_v6 = vld [vmem:[%s7772_s1 + $0x5e0] ss:$16 sps:$4 sm:$0xff]  }
  0x82   :  { %3631 = vmatmul.mubr.bf16.vlgmr.msra.gmra.mrb[0].mxu0 %v4390_v7  ;;  %4000 = vmatmul.mubr.bf16.vlgmr.msra.gmra.mrb[0].mxu1 %v4390_v7  ;;  %v5339_v7 = vld [vmem:[%s7772_s1 + $0x5e8] ss:$16 sps:$4 sm:$0xff]  }
  0x83   :  { %3640 = vmatpush1.bf16.msra.mxu0 %v5246_v8  ;;  %4009 = vmatpush1.bf16.msra.mxu1 %v5249_v9  ;;  %v5346_v8 = vld [vmem:[%s7772_s1 + $0x604] ss:$16 sps:$4 sm:$0xff]   ;;  %v5349_v9 = vld [vmem:[%s7772_s1 + $0x60c] ss:$16 sps:$4 sm:$0xff]  }
  0x84   :  { %3641 = vmatprep.subr.bf16.mxu0 %v5254_v10  ;;  %4010 = vmatprep.subr.bf16.mxu1 %v5257_v12  ;;  %v5344_v10 = vld [vmem:[%s7772_s1 + $0x600] ss:$16 sps:$4 sm:$0xff]   ;;  %v4392_v12 = vcombine.low %v6371_v11, %v6371_v11  ;;  %v5355_v11 = vld [vmem:[%s7772_s1 + $0x62c] ss:$16 sps:$4 sm:$0xff]  }
  0x85   :  { %3671 = vmatprep.mubr.bf16.mxu0 %v4393_v13  ;;  %4040 = vmatprep.mubr.bf16.mxu1 %v4393_v13  ;;  %v5347_v13 = vld [vmem:[%s7772_s1 + $0x608] ss:$16 sps:$4 sm:$0xff]  }
  0x87   :  { %3642 = vmatpush1.bf16.msra.mxu0 %v5252_v14  ;;  %4011 = vmatpush1.bf16.msra.mxu1 %v5255_v15  ;;  %v6569_v14 = vld [vmem:[%s7773_s0 + $0x18] sm:$0xff]  ;;  %v5352_v15 = vld [vmem:[%s7772_s1 + $0x624] ss:$16 sps:$4 sm:$0xff]  }
  0x88   :  { %3643 = vmatprep.subr.bf16.mxu0 %v5260_v16  ;;  %4012 = vmatprep.subr.bf16.mxu1 %v5263_v17  ;;  %v4395_v16 = vcombine.high %v6569_v14, %v6569_v14  ;;  %v5350_v17 = vld [vmem:[%s7772_s1 + $0x620] ss:$16 sps:$4 sm:$0xff]  }
  0x8b   :  { %3644 = vmatpush1.bf16.msra.mxu0 %v5258_v18  ;;  %4013 = vmatpush1.bf16.msra.mxu1 %v5261_v19  ;;  %v5353_v18 = vld [vmem:[%s7772_s1 + $0x628] ss:$16 sps:$4 sm:$0xff]   ;;  %v5358_v19 = vld [vmem:[%s7772_s1 + $0x644] ss:$16 sps:$4 sm:$0xff]  }
  0x8c   :  { %3645 = vmatprep.subr.bf16.mxu0 %v5266_v20  ;;  %4014 = vmatprep.subr.bf16.mxu1 %v5269_v21  ;;  %v5361_v20 = vld [vmem:[%s7772_s1 + $0x64c] ss:$16 sps:$4 sm:$0xff]   ;;  %v5356_v21 = vld [vmem:[%s7772_s1 + $0x640] ss:$16 sps:$4 sm:$0xff]  }
  0x8f   :  { %3646 = vmatpush1.bf16.msra.mxu0 %v5264_v22  ;;  %4015 = vmatpush1.bf16.msra.mxu1 %v5267_v23  ;;  %v5359_v22 = vld [vmem:[%s7772_s1 + $0x648] ss:$16 sps:$4 sm:$0xff]   ;;  %v5364_v23 = vld [vmem:[%s7772_s1 + $0x664] ss:$16 sps:$4 sm:$0xff]  }
  0x90   :  { %3647 = vmatprep.subr.bf16.mxu0 %v5272_v24  ;;  %4016 = vmatprep.subr.bf16.mxu1 %v5275_v25  ;;  %v5367_v24 = vld [vmem:[%s7772_s1 + $0x66c] ss:$16 sps:$4 sm:$0xff]   ;;  %v5362_v25 = vld [vmem:[%s7772_s1 + $0x660] ss:$16 sps:$4 sm:$0xff]  }
  0x93   :  { %3648 = vmatpush1.bf16.msra.mxu0 %v5270_v26  ;;  %4017 = vmatpush1.bf16.msra.mxu1 %v5273_v27  ;;  %v5365_v26 = vld [vmem:[%s7772_s1 + $0x668] ss:$16 sps:$4 sm:$0xff]   ;;  %v5370_v27 = vld [vmem:[%s7772_s1 + $0x684] ss:$16 sps:$4 sm:$0xff]  }
  0x94   :  { %3649 = vmatprep.subr.bf16.mxu0 %v5278_v28  ;;  %4018 = vmatprep.subr.bf16.mxu1 %v5281_v29  ;;  %v5373_v28 = vld [vmem:[%s7772_s1 + $0x68c] ss:$16 sps:$4 sm:$0xff]   ;;  %v5368_v29 = vld [vmem:[%s7772_s1 + $0x680] ss:$16 sps:$4 sm:$0xff]  }
  0x97   :  { %3650 = vmatpush1.bf16.msra.mxu0 %v5276_v30  ;;  %4019 = vmatpush1.bf16.msra.mxu1 %v5279_v31  ;;  %v5371_v30 = vld [vmem:[%s7772_s1 + $0x688] ss:$16 sps:$4 sm:$0xff]   ;;  %v5376_v31 = vld [vmem:[%s7772_s1 + $0x6a4] ss:$16 sps:$4 sm:$0xff]  }
  0x98   :  { %3651 = vmatprep.subr.bf16.mxu0 %v5284_v32  ;;  %4020 = vmatprep.subr.bf16.mxu1 %v5287_v33  ;;  %v5379_v32 = vld [vmem:[%s7772_s1 + $0x6ac] ss:$16 sps:$4 sm:$0xff]   ;;  %v5374_v33 = vld [vmem:[%s7772_s1 + $0x6a0] ss:$16 sps:$4 sm:$0xff]  }
  0x9b   :  { %3652 = vmatpush1.bf16.msra.mxu0 %v5282_v34  ;;  %4021 = vmatpush1.bf16.msra.mxu1 %v5285_v35  ;;  %v5377_v34 = vld [vmem:[%s7772_s1 + $0x6a8] ss:$16 sps:$4 sm:$0xff]   ;;  %v5382_v35 = vld [vmem:[%s7772_s1 + $0x6c4] ss:$16 sps:$4 sm:$0xff]  }
  0x9c   :  { %3653 = vmatprep.subr.bf16.mxu0 %v5290_v36  ;;  %4022 = vmatprep.subr.bf16.mxu1 %v5293_v37  ;;  %v5385_v36 = vld [vmem:[%s7772_s1 + $0x6cc] ss:$16 sps:$4 sm:$0xff]   ;;  %v5380_v37 = vld [vmem:[%s7772_s1 + $0x6c0] ss:$16 sps:$4 sm:$0xff]  }
  0x9f   :  { %3654 = vmatpush1.bf16.msra.mxu0 %v5288_v38  ;;  %4023 = vmatpush1.bf16.msra.mxu1 %v5291_v39  ;;  %v5383_v38 = vld [vmem:[%s7772_s1 + $0x6c8] ss:$16 sps:$4 sm:$0xff]   ;;  %v5388_v39 = vld [vmem:[%s7772_s1 + $0x6e4] ss:$16 sps:$4 sm:$0xff]  }
  0xa0   :  { %3655 = vmatprep.subr.bf16.mxu0 %v5296_v40  ;;  %4024 = vmatprep.subr.bf16.mxu1 %v5299_v41  ;;  %v5391_v40 = vld [vmem:[%s7772_s1 + $0x6ec] ss:$16 sps:$4 sm:$0xff]   ;;  %v5386_v41 = vld [vmem:[%s7772_s1 + $0x6e0] ss:$16 sps:$4 sm:$0xff]  }
  0xa3   :  { %3656 = vmatpush1.bf16.msra.mxu0 %v5294_v42  ;;  %4025 = vmatpush1.bf16.msra.mxu1 %v5297_v43  ;;  %v5389_v42 = vld [vmem:[%s7772_s1 + $0x6e8] ss:$16 sps:$4 sm:$0xff]   ;;  %v5394_v43 = vld [vmem:[%s7772_s1 + $0x704] ss:$16 sps:$4 sm:$0xff]  }
  0xa4   :  { %3657 = vmatprep.subr.bf16.mxu0 %v5302_v44  ;;  %4026 = vmatprep.subr.bf16.mxu1 %v5305_v45  ;;  %v5397_v44 = vld [vmem:[%s7772_s1 + $0x70c] ss:$16 sps:$4 sm:$0xff]   ;;  %v5392_v45 = vld [vmem:[%s7772_s1 + $0x700] ss:$16 sps:$4 sm:$0xff]  }
  0xa7   :  { %3658 = vmatpush1.bf16.msra.mxu0 %v5300_v46  ;;  %4027 = vmatpush1.bf16.msra.mxu1 %v5303_v47  ;;  %v5395_v46 = vld [vmem:[%s7772_s1 + $0x708] ss:$16 sps:$4 sm:$0xff]   ;;  %v5400_v47 = vld [vmem:[%s7772_s1 + $0x724] ss:$16 sps:$4 sm:$0xff]  }
  0xa8   :  { %3659 = vmatprep.subr.bf16.mxu0 %v5308_v48  ;;  %4028 = vmatprep.subr.bf16.mxu1 %v5311_v49  ;;  %v5403_v48 = vld [vmem:[%s7772_s1 + $0x72c] ss:$16 sps:$4 sm:$0xff]   ;;  %v5398_v49 = vld [vmem:[%s7772_s1 + $0x720] ss:$16 sps:$4 sm:$0xff]  }
  0xab   :  { %3660 = vmatpush1.bf16.msra.mxu0 %v5306_v50  ;;  %4029 = vmatpush1.bf16.msra.mxu1 %v5309_v51  ;;  %v5401_v50 = vld [vmem:[%s7772_s1 + $0x728] ss:$16 sps:$4 sm:$0xff]   ;;  %v5406_v51 = vld [vmem:[%s7772_s1 + $0x744] ss:$16 sps:$4 sm:$0xff]  }
  0xac   :  { %3661 = vmatprep.subr.bf16.mxu0 %v5314_v52  ;;  %4030 = vmatprep.subr.bf16.mxu1 %v5317_v53  ;;  %v5409_v52 = vld [vmem:[%s7772_s1 + $0x74c] ss:$16 sps:$4 sm:$0xff]   ;;  %v5404_v53 = vld [vmem:[%s7772_s1 + $0x740] ss:$16 sps:$4 sm:$0xff]  }
  0xaf   :  { %3662 = vmatpush1.bf16.msra.mxu0 %v5312_v54  ;;  %4031 = vmatpush1.bf16.msra.mxu1 %v5315_v55  ;;  %v5407_v54 = vld [vmem:[%s7772_s1 + $0x748] ss:$16 sps:$4 sm:$0xff]   ;;  %v5412_v55 = vld [vmem:[%s7772_s1 + $0x764] ss:$16 sps:$4 sm:$0xff]  }
  0xb0   :  { %3663 = vmatprep.subr.bf16.mxu0 %v5320_v56  ;;  %4032 = vmatprep.subr.bf16.mxu1 %v5323_v57  ;;  %v5415_v56 = vld [vmem:[%s7772_s1 + $0x76c] ss:$16 sps:$4 sm:$0xff]   ;;  %v5410_v57 = vld [vmem:[%s7772_s1 + $0x760] ss:$16 sps:$4 sm:$0xff]  }
  0xb3   :  { %3664 = vmatpush1.bf16.msra.mxu0 %v5318_v58  ;;  %4033 = vmatpush1.bf16.msra.mxu1 %v5321_v59  ;;  %v5413_v58 = vld [vmem:[%s7772_s1 + $0x768] ss:$16 sps:$4 sm:$0xff]   ;;  %v5418_v59 = vld [vmem:[%s7772_s1 + $0x784] ss:$16 sps:$4 sm:$0xff]  }
  0xb4   :  { %3665 = vmatprep.subr.bf16.mxu0 %v5326_v60  ;;  %4034 = vmatprep.subr.bf16.mxu1 %v5329_v61  ;;  %v5421_v60 = vld [vmem:[%s7772_s1 + $0x78c] ss:$16 sps:$4 sm:$0xff]   ;;  %v5416_v61 = vld [vmem:[%s7772_s1 + $0x780] ss:$16 sps:$4 sm:$0xff]  }
  0xb7   :  { %3666 = vmatpush1.bf16.msra.mxu0 %v5324_v62  ;;  %4035 = vmatpush1.bf16.msra.mxu1 %v5327_v63  ;;  %v5419_v62 = vld [vmem:[%s7772_s1 + $0x788] ss:$16 sps:$4 sm:$0xff]   ;;  %v5424_v63 = vld [vmem:[%s7772_s1 + $0x7a4] ss:$16 sps:$4 sm:$0xff]  }
  0xb8   :  { %3667 = vmatprep.subr.bf16.mxu0 %v5332_v0  ;;  %4036 = vmatprep.subr.bf16.mxu1 %v5335_v1  ;;  %v5427_v0 = vld [vmem:[%s7772_s1 + $0x7ac] ss:$16 sps:$4 sm:$0xff]   ;;  %v5422_v1 = vld [vmem:[%s7772_s1 + $0x7a0] ss:$16 sps:$4 sm:$0xff]  }
  0xbb   :  { %3668 = vmatpush1.bf16.msra.mxu0 %v5330_v2  ;;  %4037 = vmatpush1.bf16.msra.mxu1 %v5333_v3  ;;  %v5425_v2 = vld [vmem:[%s7772_s1 + $0x7a8] ss:$16 sps:$4 sm:$0xff]   ;;  %v5430_v3 = vld [vmem:[%s7772_s1 + $0x7c4] ss:$16 sps:$4 sm:$0xff]  }
  0xbc   :  { %3669 = vmatprep.subr.bf16.mxu0 %v5338_v4  ;;  %4038 = vmatprep.subr.bf16.mxu1 %v5341_v5  ;;  %v5433_v4 = vld [vmem:[%s7772_s1 + $0x7cc] ss:$16 sps:$4 sm:$0xff]   ;;  %v5428_v5 = vld [vmem:[%s7772_s1 + $0x7c0] ss:$16 sps:$4 sm:$0xff]  }
  0xbf   :  { %3670 = vmatpush1.bf16.msra.mxu0 %v5336_v6  ;;  %4039 = vmatpush1.bf16.msra.mxu1 %v5339_v7  ;;  %v5431_v6 = vld [vmem:[%s7772_s1 + $0x7c8] ss:$16 sps:$4 sm:$0xff]   ;;  %v5436_v7 = vld [vmem:[%s7772_s1 + $0x7e4] ss:$16 sps:$4 sm:$0xff]  }
  0xc0   :  { %3680 = vmatprep.subr.bf16.mxu0 %v5346_v8  ;;  %4049 = vmatprep.subr.bf16.mxu1 %v5349_v9  ;;  %v5439_v8 = vld [vmem:[%s7772_s1 + $0x7ec] ss:$16 sps:$4 sm:$0xff]   ;;  %v5434_v9 = vld [vmem:[%s7772_s1 + $0x7e0] ss:$16 sps:$4 sm:$0xff]  }
  0xc2   :  { %3672 = vmatmul.mubr.bf16.vlgmr.msra.gmra.mrb[0].mxu0 %v4392_v12  ;;  %4041 = vmatmul.mubr.bf16.vlgmr.msra.gmra.mrb[0].mxu1 %v4392_v12  ;;  %v5444_v12 = vld [vmem:[%s7772_s1 + $0x804] ss:$16 sps:$4 sm:$0xff]  }
  0xc3   :  { %3681 = vmatpush1.bf16.msra.mxu0 %v5344_v10  ;;  %4050 = vmatpush1.bf16.msra.mxu1 %v5347_v13  ;;  %v5437_v10 = vld [vmem:[%s7772_s1 + $0x7e8] ss:$16 sps:$4 sm:$0xff]   ;;  %v5447_v13 = vld [vmem:[%s7772_s1 + $0x80c] ss:$16 sps:$4 sm:$0xff]  }
  0xc4   :  { %3682 = vmatprep.subr.bf16.mxu0 %v5352_v15  ;;  %4051 = vmatprep.subr.bf16.mxu1 %v5355_v11  ;;  %v5442_v15 = vld [vmem:[%s7772_s1 + $0x800] ss:$16 sps:$4 sm:$0xff]   ;;  %v4394_v11 = vcombine.low %v6569_v14, %v6569_v14  ;;  %v5453_v14 = vld [vmem:[%s7772_s1 + $0x82c] ss:$16 sps:$4 sm:$0xff]  }
  0xc5   :  { %3712 = vmatprep.mubr.bf16.mxu0 %v4395_v16  ;;  %4081 = vmatprep.mubr.bf16.mxu1 %v4395_v16  ;;  %v6767_v16 = vld [vmem:[%s7773_s0 + $0x20] sm:$0xff] }
  0xc7   :  { %3683 = vmatpush1.bf16.msra.mxu0 %v5350_v17  ;;  %4052 = vmatpush1.bf16.msra.mxu1 %v5353_v18  ;;  %v5445_v17 = vld [vmem:[%s7772_s1 + $0x808] ss:$16 sps:$4 sm:$0xff]   ;;  %v5450_v18 = vld [vmem:[%s7772_s1 + $0x824] ss:$16 sps:$4 sm:$0xff]  }
  0xc8   :  { %3684 = vmatprep.subr.bf16.mxu0 %v5358_v19  ;;  %4053 = vmatprep.subr.bf16.mxu1 %v5361_v20  ;;  %v4397_v19 = vcombine.high %v6767_v16, %v6767_v16  ;;  %v5448_v20 = vld [vmem:[%s7772_s1 + $0x820] ss:$16 sps:$4 sm:$0xff]  }
  0xcb   :  { %3685 = vmatpush1.bf16.msra.mxu0 %v5356_v21  ;;  %4054 = vmatpush1.bf16.msra.mxu1 %v5359_v22  ;;  %v5451_v21 = vld [vmem:[%s7772_s1 + $0x828] ss:$16 sps:$4 sm:$0xff]   ;;  %v5456_v22 = vld [vmem:[%s7772_s1 + $0x844] ss:$16 sps:$4 sm:$0xff]  }
  0xcc   :  { %3686 = vmatprep.subr.bf16.mxu0 %v5364_v23  ;;  %4055 = vmatprep.subr.bf16.mxu1 %v5367_v24  ;;  %v5459_v23 = vld [vmem:[%s7772_s1 + $0x84c] ss:$16 sps:$4 sm:$0xff]   ;;  %v5454_v24 = vld [vmem:[%s7772_s1 + $0x840] ss:$16 sps:$4 sm:$0xff]  }
  0xcf   :  { %3687 = vmatpush1.bf16.msra.mxu0 %v5362_v25  ;;  %4056 = vmatpush1.bf16.msra.mxu1 %v5365_v26  ;;  %v5457_v25 = vld [vmem:[%s7772_s1 + $0x848] ss:$16 sps:$4 sm:$0xff]   ;;  %v5462_v26 = vld [vmem:[%s7772_s1 + $0x864] ss:$16 sps:$4 sm:$0xff]  }
  0xd0   :  { %3688 = vmatprep.subr.bf16.mxu0 %v5370_v27  ;;  %4057 = vmatprep.subr.bf16.mxu1 %v5373_v28  ;;  %v5465_v27 = vld [vmem:[%s7772_s1 + $0x86c] ss:$16 sps:$4 sm:$0xff]   ;;  %v5460_v28 = vld [vmem:[%s7772_s1 + $0x860] ss:$16 sps:$4 sm:$0xff]  }
  0xd3   :  { %3689 = vmatpush1.bf16.msra.mxu0 %v5368_v29  ;;  %4058 = vmatpush1.bf16.msra.mxu1 %v5371_v30  ;;  %v5463_v29 = vld [vmem:[%s7772_s1 + $0x868] ss:$16 sps:$4 sm:$0xff]   ;;  %v5468_v30 = vld [vmem:[%s7772_s1 + $0x884] ss:$16 sps:$4 sm:$0xff]  }
  0xd4   :  { %3690 = vmatprep.subr.bf16.mxu0 %v5376_v31  ;;  %4059 = vmatprep.subr.bf16.mxu1 %v5379_v32  ;;  %v5471_v31 = vld [vmem:[%s7772_s1 + $0x88c] ss:$16 sps:$4 sm:$0xff]   ;;  %v5466_v32 = vld [vmem:[%s7772_s1 + $0x880] ss:$16 sps:$4 sm:$0xff]  }
  0xd7   :  { %3691 = vmatpush1.bf16.msra.mxu0 %v5374_v33  ;;  %4060 = vmatpush1.bf16.msra.mxu1 %v5377_v34  ;;  %v5469_v33 = vld [vmem:[%s7772_s1 + $0x888] ss:$16 sps:$4 sm:$0xff]   ;;  %v5474_v34 = vld [vmem:[%s7772_s1 + $0x8a4] ss:$16 sps:$4 sm:$0xff]  }
  0xd8   :  { %3692 = vmatprep.subr.bf16.mxu0 %v5382_v35  ;;  %4061 = vmatprep.subr.bf16.mxu1 %v5385_v36  ;;  %v5477_v35 = vld [vmem:[%s7772_s1 + $0x8ac] ss:$16 sps:$4 sm:$0xff]   ;;  %v5472_v36 = vld [vmem:[%s7772_s1 + $0x8a0] ss:$16 sps:$4 sm:$0xff]  }
  0xdb   :  { %3693 = vmatpush1.bf16.msra.mxu0 %v5380_v37  ;;  %4062 = vmatpush1.bf16.msra.mxu1 %v5383_v38  ;;  %v5475_v37 = vld [vmem:[%s7772_s1 + $0x8a8] ss:$16 sps:$4 sm:$0xff]   ;;  %v5480_v38 = vld [vmem:[%s7772_s1 + $0x8c4] ss:$16 sps:$4 sm:$0xff]  }
  0xdc   :  { %3694 = vmatprep.subr.bf16.mxu0 %v5388_v39  ;;  %4063 = vmatprep.subr.bf16.mxu1 %v5391_v40  ;;  %v5483_v39 = vld [vmem:[%s7772_s1 + $0x8cc] ss:$16 sps:$4 sm:$0xff]   ;;  %v5478_v40 = vld [vmem:[%s7772_s1 + $0x8c0] ss:$16 sps:$4 sm:$0xff]  }
  0xdf   :  { %3695 = vmatpush1.bf16.msra.mxu0 %v5386_v41  ;;  %4064 = vmatpush1.bf16.msra.mxu1 %v5389_v42  ;;  %v5481_v41 = vld [vmem:[%s7772_s1 + $0x8c8] ss:$16 sps:$4 sm:$0xff]   ;;  %v5486_v42 = vld [vmem:[%s7772_s1 + $0x8e4] ss:$16 sps:$4 sm:$0xff]  }
  0xe0   :  { %3696 = vmatprep.subr.bf16.mxu0 %v5394_v43  ;;  %4065 = vmatprep.subr.bf16.mxu1 %v5397_v44  ;;  %v5489_v43 = vld [vmem:[%s7772_s1 + $0x8ec] ss:$16 sps:$4 sm:$0xff]   ;;  %v5484_v44 = vld [vmem:[%s7772_s1 + $0x8e0] ss:$16 sps:$4 sm:$0xff]  }
  0xe3   :  { %3697 = vmatpush1.bf16.msra.mxu0 %v5392_v45  ;;  %4066 = vmatpush1.bf16.msra.mxu1 %v5395_v46  ;;  %v5487_v45 = vld [vmem:[%s7772_s1 + $0x8e8] ss:$16 sps:$4 sm:$0xff]   ;;  %v5492_v46 = vld [vmem:[%s7772_s1 + $0x904] ss:$16 sps:$4 sm:$0xff]  }
  0xe4   :  { %3698 = vmatprep.subr.bf16.mxu0 %v5400_v47  ;;  %4067 = vmatprep.subr.bf16.mxu1 %v5403_v48  ;;  %v5495_v47 = vld [vmem:[%s7772_s1 + $0x90c] ss:$16 sps:$4 sm:$0xff]   ;;  %v5490_v48 = vld [vmem:[%s7772_s1 + $0x900] ss:$16 sps:$4 sm:$0xff]  }
  0xe7   :  { %3699 = vmatpush1.bf16.msra.mxu0 %v5398_v49  ;;  %4068 = vmatpush1.bf16.msra.mxu1 %v5401_v50  ;;  %v5493_v49 = vld [vmem:[%s7772_s1 + $0x908] ss:$16 sps:$4 sm:$0xff]   ;;  %v5498_v50 = vld [vmem:[%s7772_s1 + $0x924] ss:$16 sps:$4 sm:$0xff]  }
  0xe8   :  { %3700 = vmatprep.subr.bf16.mxu0 %v5406_v51  ;;  %4069 = vmatprep.subr.bf16.mxu1 %v5409_v52  ;;  %v5501_v51 = vld [vmem:[%s7772_s1 + $0x92c] ss:$16 sps:$4 sm:$0xff]   ;;  %v5496_v52 = vld [vmem:[%s7772_s1 + $0x920] ss:$16 sps:$4 sm:$0xff]  }
  0xeb   :  { %3701 = vmatpush1.bf16.msra.mxu0 %v5404_v53  ;;  %4070 = vmatpush1.bf16.msra.mxu1 %v5407_v54  ;;  %v5499_v53 = vld [vmem:[%s7772_s1 + $0x928] ss:$16 sps:$4 sm:$0xff]   ;;  %v5504_v54 = vld [vmem:[%s7772_s1 + $0x944] ss:$16 sps:$4 sm:$0xff]  }
  0xec   :  { %3702 = vmatprep.subr.bf16.mxu0 %v5412_v55  ;;  %4071 = vmatprep.subr.bf16.mxu1 %v5415_v56  ;;  %v5507_v55 = vld [vmem:[%s7772_s1 + $0x94c] ss:$16 sps:$4 sm:$0xff]   ;;  %v5502_v56 = vld [vmem:[%s7772_s1 + $0x940] ss:$16 sps:$4 sm:$0xff]  }
  0xef   :  { %3703 = vmatpush1.bf16.msra.mxu0 %v5410_v57  ;;  %4072 = vmatpush1.bf16.msra.mxu1 %v5413_v58  ;;  %v5505_v57 = vld [vmem:[%s7772_s1 + $0x948] ss:$16 sps:$4 sm:$0xff]   ;;  %v5510_v58 = vld [vmem:[%s7772_s1 + $0x964] ss:$16 sps:$4 sm:$0xff]  }
  0xf0   :  { %3704 = vmatprep.subr.bf16.mxu0 %v5418_v59  ;;  %4073 = vmatprep.subr.bf16.mxu1 %v5421_v60  ;;  %v5513_v59 = vld [vmem:[%s7772_s1 + $0x96c] ss:$16 sps:$4 sm:$0xff]   ;;  %v5508_v60 = vld [vmem:[%s7772_s1 + $0x960] ss:$16 sps:$4 sm:$0xff]  }
  0xf3   :  { %3705 = vmatpush1.bf16.msra.mxu0 %v5416_v61  ;;  %4074 = vmatpush1.bf16.msra.mxu1 %v5419_v62  ;;  %v5511_v61 = vld [vmem:[%s7772_s1 + $0x968] ss:$16 sps:$4 sm:$0xff]   ;;  %v5516_v62 = vld [vmem:[%s7772_s1 + $0x984] ss:$16 sps:$4 sm:$0xff]  }
  0xf4   :  { %3706 = vmatprep.subr.bf16.mxu0 %v5424_v63  ;;  %4075 = vmatprep.subr.bf16.mxu1 %v5427_v0  ;;  %v5519_v63 = vld [vmem:[%s7772_s1 + $0x98c] ss:$16 sps:$4 sm:$0xff]   ;;  %v5514_v0 = vld [vmem:[%s7772_s1 + $0x980] ss:$16 sps:$4 sm:$0xff]  }
  0xf7   :  { %3707 = vmatpush1.bf16.msra.mxu0 %v5422_v1  ;;  %4076 = vmatpush1.bf16.msra.mxu1 %v5425_v2  ;;  %v5517_v1 = vld [vmem:[%s7772_s1 + $0x988] ss:$16 sps:$4 sm:$0xff]   ;;  %v5522_v2 = vld [vmem:[%s7772_s1 + $0x9a4] ss:$16 sps:$4 sm:$0xff]  }
  0xf8   :  { %3708 = vmatprep.subr.bf16.mxu0 %v5430_v3  ;;  %4077 = vmatprep.subr.bf16.mxu1 %v5433_v4  ;;  %v5525_v3 = vld [vmem:[%s7772_s1 + $0x9ac] ss:$16 sps:$4 sm:$0xff]   ;;  %v5520_v4 = vld [vmem:[%s7772_s1 + $0x9a0] ss:$16 sps:$4 sm:$0xff]  }
  0xfb   :  { %3709 = vmatpush1.bf16.msra.mxu0 %v5428_v5  ;;  %4078 = vmatpush1.bf16.msra.mxu1 %v5431_v6  ;;  %v5523_v5 = vld [vmem:[%s7772_s1 + $0x9a8] ss:$16 sps:$4 sm:$0xff]   ;;  %v5528_v6 = vld [vmem:[%s7772_s1 + $0x9c4] ss:$16 sps:$4 sm:$0xff]  }
  0xfc   :  { %3710 = vmatprep.subr.bf16.mxu0 %v5436_v7  ;;  %4079 = vmatprep.subr.bf16.mxu1 %v5439_v8  ;;  %v5531_v7 = vld [vmem:[%s7772_s1 + $0x9cc] ss:$16 sps:$4 sm:$0xff]   ;;  %v5526_v8 = vld [vmem:[%s7772_s1 + $0x9c0] ss:$16 sps:$4 sm:$0xff]  }
  0xff   :  { %3711 = vmatpush1.bf16.msra.mxu0 %v5434_v9  ;;  %4080 = vmatpush1.bf16.msra.mxu1 %v5437_v10  ;;  %v5529_v9 = vld [vmem:[%s7772_s1 + $0x9c8] ss:$16 sps:$4 sm:$0xff]   ;;  %v5534_v10 = vld [vmem:[%s7772_s1 + $0x9e4] ss:$16 sps:$4 sm:$0xff]  }
 0x100   :  { %3721 = vmatprep.subr.bf16.mxu0 %v5444_v12  ;;  %4090 = vmatprep.subr.bf16.mxu1 %v5447_v13  ;;  %v5537_v12 = vld [vmem:[%s7772_s1 + $0x9ec] ss:$16 sps:$4 sm:$0xff]   ;;  %v5532_v13 = vld [vmem:[%s7772_s1 + $0x9e0] ss:$16 sps:$4 sm:$0xff]  }
 0x102   :  { %3713 = vmatmul.mubr.bf16.vlgmr.msra.gmra.mrb[0].mxu0 %v4394_v11  ;;  %4082 = vmatmul.mubr.bf16.vlgmr.msra.gmra.mrb[0].mxu1 %v4394_v11  ;;  %v5542_v11 = vld [vmem:[%s7772_s1 + $0xa04] ss:$16 sps:$4 sm:$0xff]  }
 0x103   :  { %3722 = vmatpush1.bf16.msra.mxu0 %v5442_v15  ;;  %4091 = vmatpush1.bf16.msra.mxu1 %v5445_v17  ;;  %v5535_v15 = vld [vmem:[%s7772_s1 + $0x9e8] ss:$16 sps:$4 sm:$0xff]   ;;  %v5545_v17 = vld [vmem:[%s7772_s1 + $0xa0c] ss:$16 sps:$4 sm:$0xff]  }
 0x104   :  { %3723 = vmatprep.subr.bf16.mxu0 %v5450_v18  ;;  %4092 = vmatprep.subr.bf16.mxu1 %v5453_v14  ;;  %v6963_v18 = vld [vmem:[%s7773_s0 + $0x28] sm:$0xff]  ;;  %v4396_v14 = vcombine.low %v6767_v16, %v6767_v16 }
 0x105   :  { %3753 = vmatprep.mubr.bf16.mxu0 %v4397_v19  ;;  %4122 = vmatprep.mubr.bf16.mxu1 %v4397_v19  ;;  %v5540_v19 = vld [vmem:[%s7772_s1 + $0xa00] ss:$16 sps:$4 sm:$0xff]   ;;  %v5551_v16 = vld [vmem:[%s7772_s1 + $0xa2c] ss:$16 sps:$4 sm:$0xff]  }
 0x107   :  { %3724 = vmatpush1.bf16.msra.mxu0 %v5448_v20  ;;  %4093 = vmatpush1.bf16.msra.mxu1 %v5451_v21  ;;  %v5543_v20 = vld [vmem:[%s7772_s1 + $0xa08] ss:$16 sps:$4 sm:$0xff]   ;;  %v5548_v21 = vld [vmem:[%s7772_s1 + $0xa24] ss:$16 sps:$4 sm:$0xff]  }
 0x108   :  { %3725 = vmatprep.subr.bf16.mxu0 %v5456_v22  ;;  %4094 = vmatprep.subr.bf16.mxu1 %v5459_v23  ;;  %v4399_v22 = vcombine.high %v6963_v18, %v6963_v18  ;;  %v5546_v23 = vld [vmem:[%s7772_s1 + $0xa20] ss:$16 sps:$4 sm:$0xff]  }
 0x10b   :  { %3726 = vmatpush1.bf16.msra.mxu0 %v5454_v24  ;;  %4095 = vmatpush1.bf16.msra.mxu1 %v5457_v25  ;;  %v5549_v24 = vld [vmem:[%s7772_s1 + $0xa28] ss:$16 sps:$4 sm:$0xff]   ;;  %v5554_v25 = vld [vmem:[%s7772_s1 + $0xa44] ss:$16 sps:$4 sm:$0xff]  }
 0x10c   :  { %3727 = vmatprep.subr.bf16.mxu0 %v5462_v26  ;;  %4096 = vmatprep.subr.bf16.mxu1 %v5465_v27  ;;  %v5557_v26 = vld [vmem:[%s7772_s1 + $0xa4c] ss:$16 sps:$4 sm:$0xff]   ;;  %v5552_v27 = vld [vmem:[%s7772_s1 + $0xa40] ss:$16 sps:$4 sm:$0xff]  }
 0x10f   :  { %3728 = vmatpush1.bf16.msra.mxu0 %v5460_v28  ;;  %4097 = vmatpush1.bf16.msra.mxu1 %v5463_v29  ;;  %v5555_v28 = vld [vmem:[%s7772_s1 + $0xa48] ss:$16 sps:$4 sm:$0xff]   ;;  %v5560_v29 = vld [vmem:[%s7772_s1 + $0xa64] ss:$16 sps:$4 sm:$0xff]  }
 0x110   :  { %3729 = vmatprep.subr.bf16.mxu0 %v5468_v30  ;;  %4098 = vmatprep.subr.bf16.mxu1 %v5471_v31  ;;  %v5563_v30 = vld [vmem:[%s7772_s1 + $0xa6c] ss:$16 sps:$4 sm:$0xff]   ;;  %v5558_v31 = vld [vmem:[%s7772_s1 + $0xa60] ss:$16 sps:$4 sm:$0xff]  }
 0x113   :  { %3730 = vmatpush1.bf16.msra.mxu0 %v5466_v32  ;;  %4099 = vmatpush1.bf16.msra.mxu1 %v5469_v33  ;;  %v5561_v32 = vld [vmem:[%s7772_s1 + $0xa68] ss:$16 sps:$4 sm:$0xff]   ;;  %v5566_v33 = vld [vmem:[%s7772_s1 + $0xa84] ss:$16 sps:$4 sm:$0xff]  }
 0x114   :  { %3731 = vmatprep.subr.bf16.mxu0 %v5474_v34  ;;  %4100 = vmatprep.subr.bf16.mxu1 %v5477_v35  ;;  %v5569_v34 = vld [vmem:[%s7772_s1 + $0xa8c] ss:$16 sps:$4 sm:$0xff]   ;;  %v5564_v35 = vld [vmem:[%s7772_s1 + $0xa80] ss:$16 sps:$4 sm:$0xff]  }
 0x117   :  { %3732 = vmatpush1.bf16.msra.mxu0 %v5472_v36  ;;  %4101 = vmatpush1.bf16.msra.mxu1 %v5475_v37  ;;  %v5567_v36 = vld [vmem:[%s7772_s1 + $0xa88] ss:$16 sps:$4 sm:$0xff]   ;;  %v5572_v37 = vld [vmem:[%s7772_s1 + $0xaa4] ss:$16 sps:$4 sm:$0xff]  }
 0x118   :  { %3733 = vmatprep.subr.bf16.mxu0 %v5480_v38  ;;  %4102 = vmatprep.subr.bf16.mxu1 %v5483_v39  ;;  %v5575_v38 = vld [vmem:[%s7772_s1 + $0xaac] ss:$16 sps:$4 sm:$0xff]   ;;  %v5570_v39 = vld [vmem:[%s7772_s1 + $0xaa0] ss:$16 sps:$4 sm:$0xff]  }
 0x11b   :  { %3734 = vmatpush1.bf16.msra.mxu0 %v5478_v40  ;;  %4103 = vmatpush1.bf16.msra.mxu1 %v5481_v41  ;;  %v5573_v40 = vld [vmem:[%s7772_s1 + $0xaa8] ss:$16 sps:$4 sm:$0xff]   ;;  %v5578_v41 = vld [vmem:[%s7772_s1 + $0xac4] ss:$16 sps:$4 sm:$0xff]  }
 0x11c   :  { %3735 = vmatprep.subr.bf16.mxu0 %v5486_v42  ;;  %4104 = vmatprep.subr.bf16.mxu1 %v5489_v43  ;;  %v5581_v42 = vld [vmem:[%s7772_s1 + $0xacc] ss:$16 sps:$4 sm:$0xff]   ;;  %v5576_v43 = vld [vmem:[%s7772_s1 + $0xac0] ss:$16 sps:$4 sm:$0xff]  }
 0x11f   :  { %3736 = vmatpush1.bf16.msra.mxu0 %v5484_v44  ;;  %4105 = vmatpush1.bf16.msra.mxu1 %v5487_v45  ;;  %v5579_v44 = vld [vmem:[%s7772_s1 + $0xac8] ss:$16 sps:$4 sm:$0xff]   ;;  %v5584_v45 = vld [vmem:[%s7772_s1 + $0xae4] ss:$16 sps:$4 sm:$0xff]  }
 0x120   :  { %3737 = vmatprep.subr.bf16.mxu0 %v5492_v46  ;;  %4106 = vmatprep.subr.bf16.mxu1 %v5495_v47  ;;  %v5587_v46 = vld [vmem:[%s7772_s1 + $0xaec] ss:$16 sps:$4 sm:$0xff]   ;;  %v5582_v47 = vld [vmem:[%s7772_s1 + $0xae0] ss:$16 sps:$4 sm:$0xff]  }
 0x123   :  { %3738 = vmatpush1.bf16.msra.mxu0 %v5490_v48  ;;  %4107 = vmatpush1.bf16.msra.mxu1 %v5493_v49  ;;  %v5585_v48 = vld [vmem:[%s7772_s1 + $0xae8] ss:$16 sps:$4 sm:$0xff]   ;;  %v5590_v49 = vld [vmem:[%s7772_s1 + $0xb04] ss:$16 sps:$4 sm:$0xff]  }
 0x124   :  { %3739 = vmatprep.subr.bf16.mxu0 %v5498_v50  ;;  %4108 = vmatprep.subr.bf16.mxu1 %v5501_v51  ;;  %v5593_v50 = vld [vmem:[%s7772_s1 + $0xb0c] ss:$16 sps:$4 sm:$0xff]   ;;  %v5588_v51 = vld [vmem:[%s7772_s1 + $0xb00] ss:$16 sps:$4 sm:$0xff]  }
 0x127   :  { %3740 = vmatpush1.bf16.msra.mxu0 %v5496_v52  ;;  %4109 = vmatpush1.bf16.msra.mxu1 %v5499_v53  ;;  %v5591_v52 = vld [vmem:[%s7772_s1 + $0xb08] ss:$16 sps:$4 sm:$0xff]   ;;  %v5596_v53 = vld [vmem:[%s7772_s1 + $0xb24] ss:$16 sps:$4 sm:$0xff]  }
 0x128   :  { %3741 = vmatprep.subr.bf16.mxu0 %v5504_v54  ;;  %4110 = vmatprep.subr.bf16.mxu1 %v5507_v55  ;;  %v5599_v54 = vld [vmem:[%s7772_s1 + $0xb2c] ss:$16 sps:$4 sm:$0xff]   ;;  %v5594_v55 = vld [vmem:[%s7772_s1 + $0xb20] ss:$16 sps:$4 sm:$0xff]  }
 0x12b   :  { %3742 = vmatpush1.bf16.msra.mxu0 %v5502_v56  ;;  %4111 = vmatpush1.bf16.msra.mxu1 %v5505_v57  ;;  %v5597_v56 = vld [vmem:[%s7772_s1 + $0xb28] ss:$16 sps:$4 sm:$0xff]   ;;  %v5602_v57 = vld [vmem:[%s7772_s1 + $0xb44] ss:$16 sps:$4 sm:$0xff]  }
 0x12c   :  { %3743 = vmatprep.subr.bf16.mxu0 %v5510_v58  ;;  %4112 = vmatprep.subr.bf16.mxu1 %v5513_v59  ;;  %v5605_v58 = vld [vmem:[%s7772_s1 + $0xb4c] ss:$16 sps:$4 sm:$0xff]   ;;  %v5600_v59 = vld [vmem:[%s7772_s1 + $0xb40] ss:$16 sps:$4 sm:$0xff]  }
 0x12f   :  { %3744 = vmatpush1.bf16.msra.mxu0 %v5508_v60  ;;  %4113 = vmatpush1.bf16.msra.mxu1 %v5511_v61  ;;  %v5603_v60 = vld [vmem:[%s7772_s1 + $0xb48] ss:$16 sps:$4 sm:$0xff]   ;;  %v5608_v61 = vld [vmem:[%s7772_s1 + $0xb64] ss:$16 sps:$4 sm:$0xff]  }
 0x130   :  { %3745 = vmatprep.subr.bf16.mxu0 %v5516_v62  ;;  %4114 = vmatprep.subr.bf16.mxu1 %v5519_v63  ;;  %v5611_v62 = vld [vmem:[%s7772_s1 + $0xb6c] ss:$16 sps:$4 sm:$0xff]   ;;  %v5606_v63 = vld [vmem:[%s7772_s1 + $0xb60] ss:$16 sps:$4 sm:$0xff]  }
 0x133   :  { %3746 = vmatpush1.bf16.msra.mxu0 %v5514_v0  ;;  %4115 = vmatpush1.bf16.msra.mxu1 %v5517_v1  ;;  %v5609_v0 = vld [vmem:[%s7772_s1 + $0xb68] ss:$16 sps:$4 sm:$0xff]   ;;  %v5614_v1 = vld [vmem:[%s7772_s1 + $0xb84] ss:$16 sps:$4 sm:$0xff]  }
 0x134   :  { %3747 = vmatprep.subr.bf16.mxu0 %v5522_v2  ;;  %4116 = vmatprep.subr.bf16.mxu1 %v5525_v3  ;;  %v5617_v2 = vld [vmem:[%s7772_s1 + $0xb8c] ss:$16 sps:$4 sm:$0xff]   ;;  %v5612_v3 = vld [vmem:[%s7772_s1 + $0xb80] ss:$16 sps:$4 sm:$0xff]  }
 0x137   :  { %3748 = vmatpush1.bf16.msra.mxu0 %v5520_v4  ;;  %4117 = vmatpush1.bf16.msra.mxu1 %v5523_v5  ;;  %v5615_v4 = vld [vmem:[%s7772_s1 + $0xb88] ss:$16 sps:$4 sm:$0xff]   ;;  %v5620_v5 = vld [vmem:[%s7772_s1 + $0xba4] ss:$16 sps:$4 sm:$0xff]  }
 0x138   :  { %3749 = vmatprep.subr.bf16.mxu0 %v5528_v6  ;;  %4118 = vmatprep.subr.bf16.mxu1 %v5531_v7  ;;  %v5623_v6 = vld [vmem:[%s7772_s1 + $0xbac] ss:$16 sps:$4 sm:$0xff]   ;;  %v5618_v7 = vld [vmem:[%s7772_s1 + $0xba0] ss:$16 sps:$4 sm:$0xff]  }
 0x13b   :  { %3750 = vmatpush1.bf16.msra.mxu0 %v5526_v8  ;;  %4119 = vmatpush1.bf16.msra.mxu1 %v5529_v9  ;;  %v5621_v8 = vld [vmem:[%s7772_s1 + $0xba8] ss:$16 sps:$4 sm:$0xff]   ;;  %v5626_v9 = vld [vmem:[%s7772_s1 + $0xbc4] ss:$16 sps:$4 sm:$0xff]  }
 0x13c   :  { %3751 = vmatprep.subr.bf16.mxu0 %v5534_v10  ;;  %4120 = vmatprep.subr.bf16.mxu1 %v5537_v12  ;;  %v5629_v10 = vld [vmem:[%s7772_s1 + $0xbcc] ss:$16 sps:$4 sm:$0xff]   ;;  %v5624_v12 = vld [vmem:[%s7772_s1 + $0xbc0] ss:$16 sps:$4 sm:$0xff]  }
 0x13f   :  { %3752 = vmatpush1.bf16.msra.mxu0 %v5532_v13  ;;  %4121 = vmatpush1.bf16.msra.mxu1 %v5535_v15  ;;  %v5627_v13 = vld [vmem:[%s7772_s1 + $0xbc8] ss:$16 sps:$4 sm:$0xff]   ;;  %v5632_v15 = vld [vmem:[%s7772_s1 + $0xbe4] ss:$16 sps:$4 sm:$0xff]  }
 0x140   :  { %3762 = vmatprep.subr.bf16.mxu0 %v5542_v11  ;;  %4131 = vmatprep.subr.bf16.mxu1 %v5545_v17  ;;  %v5635_v11 = vld [vmem:[%s7772_s1 + $0xbec] ss:$16 sps:$4 sm:$0xff]   ;;  %v5630_v17 = vld [vmem:[%s7772_s1 + $0xbe0] ss:$16 sps:$4 sm:$0xff]  }
 0x142   :  { %3754 = vmatmul.mubr.bf16.vlgmr.msra.gmra.mrb[0].mxu0 %v4396_v14  ;;  %4123 = vmatmul.mubr.bf16.vlgmr.msra.gmra.mrb[0].mxu1 %v4396_v14  ;;  %v5633_v14 = vld [vmem:[%s7772_s1 + $0xbe8] ss:$16 sps:$4 sm:$0xff]  }
 0x143   :  { %3763 = vmatpush1.bf16.msra.mxu0 %v5540_v19  ;;  %4132 = vmatpush1.bf16.msra.mxu1 %v5543_v20  ;;  %v5640_v19 = vld [vmem:[%s7772_s1 + $0xc04] ss:$16 sps:$4 sm:$0xff]   ;;  %v5643_v20 = vld [vmem:[%s7772_s1 + $0xc0c] ss:$16 sps:$4 sm:$0xff]  }
 0x144   :  { %3764 = vmatprep.subr.bf16.mxu0 %v5548_v21  ;;  %4133 = vmatprep.subr.bf16.mxu1 %v5551_v16  ;;  %v4398_v21 = vcombine.low %v6963_v18, %v6963_v18  ;;  %v7166_v16 = vld [vmem:[%s7773_s0 + $0x30] sm:$0xff] }
 0x145   :  { %3794 = vmatprep.mubr.bf16.mxu0 %v4399_v22  ;;  %4163 = vmatprep.mubr.bf16.mxu1 %v4399_v22  ;;  %v5638_v22 = vld [vmem:[%s7772_s1 + $0xc00] ss:$16 sps:$4 sm:$0xff]   ;;  %v5646_v18 = vld [vmem:[%s7772_s1 + $0xc24] ss:$16 sps:$4 sm:$0xff]  }
 0x147   :  { %3765 = vmatpush1.bf16.msra.mxu0 %v5546_v23  ;;  %4134 = vmatpush1.bf16.msra.mxu1 %v5549_v24  ;;  %v5641_v23 = vld [vmem:[%s7772_s1 + $0xc08] ss:$16 sps:$4 sm:$0xff]   ;;  %v5649_v24 = vld [vmem:[%s7772_s1 + $0xc2c] ss:$16 sps:$4 sm:$0xff]  }
 0x148   :  { %3766 = vmatprep.subr.bf16.mxu0 %v5554_v25  ;;  %4135 = vmatprep.subr.bf16.mxu1 %v5557_v26  ;;  %v4401_v25 = vcombine.high %v7166_v16, %v7166_v16  ;;  %v5644_v26 = vld [vmem:[%s7772_s1 + $0xc20] ss:$16 sps:$4 sm:$0xff]  }
 0x14b   :  { %3767 = vmatpush1.bf16.msra.mxu0 %v5552_v27  ;;  %4136 = vmatpush1.bf16.msra.mxu1 %v5555_v28  ;;  %v5647_v27 = vld [vmem:[%s7772_s1 + $0xc28] ss:$16 sps:$4 sm:$0xff]   ;;  %v5652_v28 = vld [vmem:[%s7772_s1 + $0xc44] ss:$16 sps:$4 sm:$0xff]  }
 0x14c   :  { %3768 = vmatprep.subr.bf16.mxu0 %v5560_v29  ;;  %4137 = vmatprep.subr.bf16.mxu1 %v5563_v30  ;;  %v5655_v29 = vld [vmem:[%s7772_s1 + $0xc4c] ss:$16 sps:$4 sm:$0xff]   ;;  %v5650_v30 = vld [vmem:[%s7772_s1 + $0xc40] ss:$16 sps:$4 sm:$0xff]  }
 0x14f   :  { %3769 = vmatpush1.bf16.msra.mxu0 %v5558_v31  ;;  %4138 = vmatpush1.bf16.msra.mxu1 %v5561_v32  ;;  %v5653_v31 = vld [vmem:[%s7772_s1 + $0xc48] ss:$16 sps:$4 sm:$0xff]   ;;  %v5658_v32 = vld [vmem:[%s7772_s1 + $0xc64] ss:$16 sps:$4 sm:$0xff]  }
 0x150   :  { %3770 = vmatprep.subr.bf16.mxu0 %v5566_v33  ;;  %4139 = vmatprep.subr.bf16.mxu1 %v5569_v34  ;;  %v5661_v33 = vld [vmem:[%s7772_s1 + $0xc6c] ss:$16 sps:$4 sm:$0xff]   ;;  %v5656_v34 = vld [vmem:[%s7772_s1 + $0xc60] ss:$16 sps:$4 sm:$0xff]  }
 0x153   :  { %3771 = vmatpush1.bf16.msra.mxu0 %v5564_v35  ;;  %4140 = vmatpush1.bf16.msra.mxu1 %v5567_v36  ;;  %v5659_v35 = vld [vmem:[%s7772_s1 + $0xc68] ss:$16 sps:$4 sm:$0xff]   ;;  %v5664_v36 = vld [vmem:[%s7772_s1 + $0xc84] ss:$16 sps:$4 sm:$0xff]  }
 0x154   :  { %3772 = vmatprep.subr.bf16.mxu0 %v5572_v37  ;;  %4141 = vmatprep.subr.bf16.mxu1 %v5575_v38  ;;  %v5667_v37 = vld [vmem:[%s7772_s1 + $0xc8c] ss:$16 sps:$4 sm:$0xff]   ;;  %v5662_v38 = vld [vmem:[%s7772_s1 + $0xc80] ss:$16 sps:$4 sm:$0xff]  }
 0x157   :  { %3773 = vmatpush1.bf16.msra.mxu0 %v5570_v39  ;;  %4142 = vmatpush1.bf16.msra.mxu1 %v5573_v40  ;;  %v5665_v39 = vld [vmem:[%s7772_s1 + $0xc88] ss:$16 sps:$4 sm:$0xff]   ;;  %v5670_v40 = vld [vmem:[%s7772_s1 + $0xca4] ss:$16 sps:$4 sm:$0xff]  }
 0x158   :  { %3774 = vmatprep.subr.bf16.mxu0 %v5578_v41  ;;  %4143 = vmatprep.subr.bf16.mxu1 %v5581_v42  ;;  %v5673_v41 = vld [vmem:[%s7772_s1 + $0xcac] ss:$16 sps:$4 sm:$0xff]   ;;  %v5668_v42 = vld [vmem:[%s7772_s1 + $0xca0] ss:$16 sps:$4 sm:$0xff]  }
 0x15b   :  { %3775 = vmatpush1.bf16.msra.mxu0 %v5576_v43  ;;  %4144 = vmatpush1.bf16.msra.mxu1 %v5579_v44  ;;  %v5671_v43 = vld [vmem:[%s7772_s1 + $0xca8] ss:$16 sps:$4 sm:$0xff]   ;;  %v5676_v44 = vld [vmem:[%s7772_s1 + $0xcc4] ss:$16 sps:$4 sm:$0xff]  }
 0x15c   :  { %3776 = vmatprep.subr.bf16.mxu0 %v5584_v45  ;;  %4145 = vmatprep.subr.bf16.mxu1 %v5587_v46  ;;  %v5679_v45 = vld [vmem:[%s7772_s1 + $0xccc] ss:$16 sps:$4 sm:$0xff]   ;;  %v5674_v46 = vld [vmem:[%s7772_s1 + $0xcc0] ss:$16 sps:$4 sm:$0xff]  }
 0x15f   :  { %3777 = vmatpush1.bf16.msra.mxu0 %v5582_v47  ;;  %4146 = vmatpush1.bf16.msra.mxu1 %v5585_v48  ;;  %v5677_v47 = vld [vmem:[%s7772_s1 + $0xcc8] ss:$16 sps:$4 sm:$0xff]   ;;  %v5682_v48 = vld [vmem:[%s7772_s1 + $0xce4] ss:$16 sps:$4 sm:$0xff]  }
 0x160   :  { %3778 = vmatprep.subr.bf16.mxu0 %v5590_v49  ;;  %4147 = vmatprep.subr.bf16.mxu1 %v5593_v50  ;;  %v5685_v49 = vld [vmem:[%s7772_s1 + $0xcec] ss:$16 sps:$4 sm:$0xff]   ;;  %v5680_v50 = vld [vmem:[%s7772_s1 + $0xce0] ss:$16 sps:$4 sm:$0xff]  }
 0x163   :  { %3779 = vmatpush1.bf16.msra.mxu0 %v5588_v51  ;;  %4148 = vmatpush1.bf16.msra.mxu1 %v5591_v52  ;;  %v5683_v51 = vld [vmem:[%s7772_s1 + $0xce8] ss:$16 sps:$4 sm:$0xff]   ;;  %v5688_v52 = vld [vmem:[%s7772_s1 + $0xd04] ss:$16 sps:$4 sm:$0xff]  }
 0x164   :  { %3780 = vmatprep.subr.bf16.mxu0 %v5596_v53  ;;  %4149 = vmatprep.subr.bf16.mxu1 %v5599_v54  ;;  %v5691_v53 = vld [vmem:[%s7772_s1 + $0xd0c] ss:$16 sps:$4 sm:$0xff]   ;;  %v5686_v54 = vld [vmem:[%s7772_s1 + $0xd00] ss:$16 sps:$4 sm:$0xff]  }
 0x167   :  { %3781 = vmatpush1.bf16.msra.mxu0 %v5594_v55  ;;  %4150 = vmatpush1.bf16.msra.mxu1 %v5597_v56  ;;  %v5689_v55 = vld [vmem:[%s7772_s1 + $0xd08] ss:$16 sps:$4 sm:$0xff]   ;;  %v5694_v56 = vld [vmem:[%s7772_s1 + $0xd24] ss:$16 sps:$4 sm:$0xff]  }
 0x168   :  { %3782 = vmatprep.subr.bf16.mxu0 %v5602_v57  ;;  %4151 = vmatprep.subr.bf16.mxu1 %v5605_v58  ;;  %v5697_v57 = vld [vmem:[%s7772_s1 + $0xd2c] ss:$16 sps:$4 sm:$0xff]   ;;  %v5692_v58 = vld [vmem:[%s7772_s1 + $0xd20] ss:$16 sps:$4 sm:$0xff]  }
 0x16b   :  { %3783 = vmatpush1.bf16.msra.mxu0 %v5600_v59  ;;  %4152 = vmatpush1.bf16.msra.mxu1 %v5603_v60  ;;  %v5695_v59 = vld [vmem:[%s7772_s1 + $0xd28] ss:$16 sps:$4 sm:$0xff]   ;;  %v5700_v60 = vld [vmem:[%s7772_s1 + $0xd44] ss:$16 sps:$4 sm:$0xff]  }
 0x16c   :  { %3784 = vmatprep.subr.bf16.mxu0 %v5608_v61  ;;  %4153 = vmatprep.subr.bf16.mxu1 %v5611_v62  ;;  %v5703_v61 = vld [vmem:[%s7772_s1 + $0xd4c] ss:$16 sps:$4 sm:$0xff]   ;;  %v5698_v62 = vld [vmem:[%s7772_s1 + $0xd40] ss:$16 sps:$4 sm:$0xff]  }
 0x16f   :  { %3785 = vmatpush1.bf16.msra.mxu0 %v5606_v63  ;;  %4154 = vmatpush1.bf16.msra.mxu1 %v5609_v0  ;;  %v5701_v63 = vld [vmem:[%s7772_s1 + $0xd48] ss:$16 sps:$4 sm:$0xff]   ;;  %v5706_v0 = vld [vmem:[%s7772_s1 + $0xd64] ss:$16 sps:$4 sm:$0xff]  }
 0x170   :  { %3786 = vmatprep.subr.bf16.mxu0 %v5614_v1  ;;  %4155 = vmatprep.subr.bf16.mxu1 %v5617_v2  ;;  %v5709_v1 = vld [vmem:[%s7772_s1 + $0xd6c] ss:$16 sps:$4 sm:$0xff]   ;;  %v5704_v2 = vld [vmem:[%s7772_s1 + $0xd60] ss:$16 sps:$4 sm:$0xff]  }
 0x173   :  { %3787 = vmatpush1.bf16.msra.mxu0 %v5612_v3  ;;  %4156 = vmatpush1.bf16.msra.mxu1 %v5615_v4  ;;  %v5707_v3 = vld [vmem:[%s7772_s1 + $0xd68] ss:$16 sps:$4 sm:$0xff]   ;;  %v5712_v4 = vld [vmem:[%s7772_s1 + $0xd84] ss:$16 sps:$4 sm:$0xff]  }
 0x174   :  { %3788 = vmatprep.subr.bf16.mxu0 %v5620_v5  ;;  %4157 = vmatprep.subr.bf16.mxu1 %v5623_v6  ;;  %v5715_v5 = vld [vmem:[%s7772_s1 + $0xd8c] ss:$16 sps:$4 sm:$0xff]   ;;  %v5710_v6 = vld [vmem:[%s7772_s1 + $0xd80] ss:$16 sps:$4 sm:$0xff]  }
 0x177   :  { %3789 = vmatpush1.bf16.msra.mxu0 %v5618_v7  ;;  %4158 = vmatpush1.bf16.msra.mxu1 %v5621_v8  ;;  %v5713_v7 = vld [vmem:[%s7772_s1 + $0xd88] ss:$16 sps:$4 sm:$0xff]   ;;  %v5718_v8 = vld [vmem:[%s7772_s1 + $0xda4] ss:$16 sps:$4 sm:$0xff]  }
 0x178   :  { %3790 = vmatprep.subr.bf16.mxu0 %v5626_v9  ;;  %4159 = vmatprep.subr.bf16.mxu1 %v5629_v10  ;;  %v5721_v9 = vld [vmem:[%s7772_s1 + $0xdac] ss:$16 sps:$4 sm:$0xff]   ;;  %v5716_v10 = vld [vmem:[%s7772_s1 + $0xda0] ss:$16 sps:$4 sm:$0xff]  }
 0x17b   :  { %3791 = vmatpush1.bf16.msra.mxu0 %v5624_v12  ;;  %4160 = vmatpush1.bf16.msra.mxu1 %v5627_v13  ;;  %v5719_v12 = vld [vmem:[%s7772_s1 + $0xda8] ss:$16 sps:$4 sm:$0xff]   ;;  %v5724_v13 = vld [vmem:[%s7772_s1 + $0xdc4] ss:$16 sps:$4 sm:$0xff]  }
 0x17c   :  { %3792 = vmatprep.subr.bf16.mxu0 %v5632_v15  ;;  %4161 = vmatprep.subr.bf16.mxu1 %v5635_v11  ;;  %v5727_v15 = vld [vmem:[%s7772_s1 + $0xdcc] ss:$16 sps:$4 sm:$0xff]   ;;  %v5722_v11 = vld [vmem:[%s7772_s1 + $0xdc0] ss:$16 sps:$4 sm:$0xff]  }
 0x17f   :  { %3793 = vmatpush1.bf16.msra.mxu0 %v5630_v17  ;;  %4162 = vmatpush1.bf16.msra.mxu1 %v5633_v14  ;;  %v5725_v17 = vld [vmem:[%s7772_s1 + $0xdc8] ss:$16 sps:$4 sm:$0xff]   ;;  %v5730_v14 = vld [vmem:[%s7772_s1 + $0xde4] ss:$16 sps:$4 sm:$0xff]  }
 0x180   :  { %3803 = vmatprep.subr.bf16.mxu0 %v5640_v19  ;;  %4172 = vmatprep.subr.bf16.mxu1 %v5643_v20  ;;  %v5733_v19 = vld [vmem:[%s7772_s1 + $0xdec] ss:$16 sps:$4 sm:$0xff]   ;;  %v5728_v20 = vld [vmem:[%s7772_s1 + $0xde0] ss:$16 sps:$4 sm:$0xff]  }
 0x182   :  { %3795 = vmatmul.mubr.bf16.vlgmr.msra.gmra.mrb[0].mxu0 %v4398_v21  ;;  %4164 = vmatmul.mubr.bf16.vlgmr.msra.gmra.mrb[0].mxu1 %v4398_v21  ;;  %v5731_v21 = vld [vmem:[%s7772_s1 + $0xde8] ss:$16 sps:$4 sm:$0xff]  }
 0x183   :  { %3804 = vmatpush1.bf16.msra.mxu0 %v5638_v22  ;;  %4173 = vmatpush1.bf16.msra.mxu1 %v5641_v23  ;;  %v5738_v22 = vld [vmem:[%s7772_s1 + $0xe04] ss:$16 sps:$4 sm:$0xff]   ;;  %v5741_v23 = vld [vmem:[%s7772_s1 + $0xe0c] ss:$16 sps:$4 sm:$0xff]  }
 0x184   :  { %3805 = vmatprep.subr.bf16.mxu0 %v5646_v18  ;;  %4174 = vmatprep.subr.bf16.mxu1 %v5649_v24  ;;  %v4400_v18 = vcombine.low %v7166_v16, %v7166_v16  ;;  %v7367_v24 = vld [vmem:[%s7773_s0 + $0x38] sm:$0xff]  ;;  %v5744_v16 = vld [vmem:[%s7772_s1 + $0xe24] ss:$16 sps:$4 sm:$0xff]  }
 0x185   :  { %3835 = vmatprep.mubr.bf16.mxu0 %v4401_v25  ;;  %4204 = vmatprep.mubr.bf16.mxu1 %v4401_v25  ;;  %v5736_v25 = vld [vmem:[%s7772_s1 + $0xe00] ss:$16 sps:$4 sm:$0xff]  }
 0x187   :  { %3806 = vmatpush1.bf16.msra.mxu0 %v5644_v26  ;;  %4175 = vmatpush1.bf16.msra.mxu1 %v5647_v27  ;;  %v5739_v26 = vld [vmem:[%s7772_s1 + $0xe08] ss:$16 sps:$4 sm:$0xff]   ;;  %v5747_v27 = vld [vmem:[%s7772_s1 + $0xe2c] ss:$16 sps:$4 sm:$0xff]  }
 0x188   :  { %3807 = vmatprep.subr.bf16.mxu0 %v5652_v28  ;;  %4176 = vmatprep.subr.bf16.mxu1 %v5655_v29  ;;  %v4403_v28 = vcombine.high %v7367_v24, %v7367_v24  ;;  %v5742_v29 = vld [vmem:[%s7772_s1 + $0xe20] ss:$16 sps:$4 sm:$0xff]  }
 0x18b   :  { %3808 = vmatpush1.bf16.msra.mxu0 %v5650_v30  ;;  %4177 = vmatpush1.bf16.msra.mxu1 %v5653_v31  ;;  %v5745_v30 = vld [vmem:[%s7772_s1 + $0xe28] ss:$16 sps:$4 sm:$0xff]   ;;  %v5750_v31 = vld [vmem:[%s7772_s1 + $0xe44] ss:$16 sps:$4 sm:$0xff]  }
 0x18c   :  { %3809 = vmatprep.subr.bf16.mxu0 %v5658_v32  ;;  %4178 = vmatprep.subr.bf16.mxu1 %v5661_v33  ;;  %v5753_v32 = vld [vmem:[%s7772_s1 + $0xe4c] ss:$16 sps:$4 sm:$0xff]   ;;  %v5748_v33 = vld [vmem:[%s7772_s1 + $0xe40] ss:$16 sps:$4 sm:$0xff]  }
 0x18f   :  { %3810 = vmatpush1.bf16.msra.mxu0 %v5656_v34  ;;  %4179 = vmatpush1.bf16.msra.mxu1 %v5659_v35  ;;  %v5751_v34 = vld [vmem:[%s7772_s1 + $0xe48] ss:$16 sps:$4 sm:$0xff]   ;;  %v5756_v35 = vld [vmem:[%s7772_s1 + $0xe64] ss:$16 sps:$4 sm:$0xff]  }
 0x190   :  { %3811 = vmatprep.subr.bf16.mxu0 %v5664_v36  ;;  %4180 = vmatprep.subr.bf16.mxu1 %v5667_v37  ;;  %v5759_v36 = vld [vmem:[%s7772_s1 + $0xe6c] ss:$16 sps:$4 sm:$0xff]   ;;  %v5754_v37 = vld [vmem:[%s7772_s1 + $0xe60] ss:$16 sps:$4 sm:$0xff]  }
 0x193   :  { %3812 = vmatpush1.bf16.msra.mxu0 %v5662_v38  ;;  %4181 = vmatpush1.bf16.msra.mxu1 %v5665_v39  ;;  %v5757_v38 = vld [vmem:[%s7772_s1 + $0xe68] ss:$16 sps:$4 sm:$0xff]   ;;  %v5762_v39 = vld [vmem:[%s7772_s1 + $0xe84] ss:$16 sps:$4 sm:$0xff]  }
 0x194   :  { %3813 = vmatprep.subr.bf16.mxu0 %v5670_v40  ;;  %4182 = vmatprep.subr.bf16.mxu1 %v5673_v41  ;;  %v5765_v40 = vld [vmem:[%s7772_s1 + $0xe8c] ss:$16 sps:$4 sm:$0xff]   ;;  %v5760_v41 = vld [vmem:[%s7772_s1 + $0xe80] ss:$16 sps:$4 sm:$0xff]  }
 0x197   :  { %3814 = vmatpush1.bf16.msra.mxu0 %v5668_v42  ;;  %4183 = vmatpush1.bf16.msra.mxu1 %v5671_v43  ;;  %v5763_v42 = vld [vmem:[%s7772_s1 + $0xe88] ss:$16 sps:$4 sm:$0xff]   ;;  %v5768_v43 = vld [vmem:[%s7772_s1 + $0xea4] ss:$16 sps:$4 sm:$0xff]  }
 0x198   :  { %3815 = vmatprep.subr.bf16.mxu0 %v5676_v44  ;;  %4184 = vmatprep.subr.bf16.mxu1 %v5679_v45  ;;  %v5771_v44 = vld [vmem:[%s7772_s1 + $0xeac] ss:$16 sps:$4 sm:$0xff]   ;;  %v5766_v45 = vld [vmem:[%s7772_s1 + $0xea0] ss:$16 sps:$4 sm:$0xff]  }
 0x19b   :  { %3816 = vmatpush1.bf16.msra.mxu0 %v5674_v46  ;;  %4185 = vmatpush1.bf16.msra.mxu1 %v5677_v47  ;;  %v5769_v46 = vld [vmem:[%s7772_s1 + $0xea8] ss:$16 sps:$4 sm:$0xff]   ;;  %v5774_v47 = vld [vmem:[%s7772_s1 + $0xec4] ss:$16 sps:$4 sm:$0xff]  }
 0x19c   :  { %3817 = vmatprep.subr.bf16.mxu0 %v5682_v48  ;;  %4186 = vmatprep.subr.bf16.mxu1 %v5685_v49  ;;  %v5777_v48 = vld [vmem:[%s7772_s1 + $0xecc] ss:$16 sps:$4 sm:$0xff]   ;;  %v5772_v49 = vld [vmem:[%s7772_s1 + $0xec0] ss:$16 sps:$4 sm:$0xff]  }
 0x19f   :  { %3818 = vmatpush1.bf16.msra.mxu0 %v5680_v50  ;;  %4187 = vmatpush1.bf16.msra.mxu1 %v5683_v51  ;;  %v5775_v50 = vld [vmem:[%s7772_s1 + $0xec8] ss:$16 sps:$4 sm:$0xff]   ;;  %v5780_v51 = vld [vmem:[%s7772_s1 + $0xee4] ss:$16 sps:$4 sm:$0xff]  }
 0x1a0   :  { %3819 = vmatprep.subr.bf16.mxu0 %v5688_v52  ;;  %4188 = vmatprep.subr.bf16.mxu1 %v5691_v53  ;;  %v5783_v52 = vld [vmem:[%s7772_s1 + $0xeec] ss:$16 sps:$4 sm:$0xff]   ;;  %v5778_v53 = vld [vmem:[%s7772_s1 + $0xee0] ss:$16 sps:$4 sm:$0xff]  }
 0x1a3   :  { %3820 = vmatpush1.bf16.msra.mxu0 %v5686_v54  ;;  %4189 = vmatpush1.bf16.msra.mxu1 %v5689_v55  ;;  %v5781_v54 = vld [vmem:[%s7772_s1 + $0xee8] ss:$16 sps:$4 sm:$0xff]   ;;  %v5786_v55 = vld [vmem:[%s7772_s1 + $0xf04] ss:$16 sps:$4 sm:$0xff]  }
 0x1a4   :  { %3821 = vmatprep.subr.bf16.mxu0 %v5694_v56  ;;  %4190 = vmatprep.subr.bf16.mxu1 %v5697_v57  ;;  %v5789_v56 = vld [vmem:[%s7772_s1 + $0xf0c] ss:$16 sps:$4 sm:$0xff]   ;;  %v5784_v57 = vld [vmem:[%s7772_s1 + $0xf00] ss:$16 sps:$4 sm:$0xff]  }
 0x1a7   :  { %3822 = vmatpush1.bf16.msra.mxu0 %v5692_v58  ;;  %4191 = vmatpush1.bf16.msra.mxu1 %v5695_v59  ;;  %v5787_v58 = vld [vmem:[%s7772_s1 + $0xf08] ss:$16 sps:$4 sm:$0xff]   ;;  %v5792_v59 = vld [vmem:[%s7772_s1 + $0xf24] ss:$16 sps:$4 sm:$0xff]  }
 0x1a8   :  { %3823 = vmatprep.subr.bf16.mxu0 %v5700_v60  ;;  %4192 = vmatprep.subr.bf16.mxu1 %v5703_v61  ;;  %v5795_v60 = vld [vmem:[%s7772_s1 + $0xf2c] ss:$16 sps:$4 sm:$0xff]   ;;  %v5790_v61 = vld [vmem:[%s7772_s1 + $0xf20] ss:$16 sps:$4 sm:$0xff]  }
 0x1ab   :  { %3824 = vmatpush1.bf16.msra.mxu0 %v5698_v62  ;;  %4193 = vmatpush1.bf16.msra.mxu1 %v5701_v63  ;;  %v5793_v62 = vld [vmem:[%s7772_s1 + $0xf28] ss:$16 sps:$4 sm:$0xff]   ;;  %v5798_v63 = vld [vmem:[%s7772_s1 + $0xf44] ss:$16 sps:$4 sm:$0xff]  }
 0x1ac   :  { %3825 = vmatprep.subr.bf16.mxu0 %v5706_v0  ;;  %4194 = vmatprep.subr.bf16.mxu1 %v5709_v1  ;;  %v5801_v0 = vld [vmem:[%s7772_s1 + $0xf4c] ss:$16 sps:$4 sm:$0xff]   ;;  %v5796_v1 = vld [vmem:[%s7772_s1 + $0xf40] ss:$16 sps:$4 sm:$0xff]  }
 0x1af   :  { %3826 = vmatpush1.bf16.msra.mxu0 %v5704_v2  ;;  %4195 = vmatpush1.bf16.msra.mxu1 %v5707_v3  ;;  %v5799_v2 = vld [vmem:[%s7772_s1 + $0xf48] ss:$16 sps:$4 sm:$0xff]   ;;  %v5804_v3 = vld [vmem:[%s7772_s1 + $0xf64] ss:$16 sps:$4 sm:$0xff]  }
 0x1b0   :  { %3827 = vmatprep.subr.bf16.mxu0 %v5712_v4  ;;  %4196 = vmatprep.subr.bf16.mxu1 %v5715_v5  ;;  %v5807_v4 = vld [vmem:[%s7772_s1 + $0xf6c] ss:$16 sps:$4 sm:$0xff]   ;;  %v5802_v5 = vld [vmem:[%s7772_s1 + $0xf60] ss:$16 sps:$4 sm:$0xff]  }
 0x1b3   :  { %3828 = vmatpush1.bf16.msra.mxu0 %v5710_v6  ;;  %4197 = vmatpush1.bf16.msra.mxu1 %v5713_v7  ;;  %v5805_v6 = vld [vmem:[%s7772_s1 + $0xf68] ss:$16 sps:$4 sm:$0xff]   ;;  %v5810_v7 = vld [vmem:[%s7772_s1 + $0xf84] ss:$16 sps:$4 sm:$0xff]  }
 0x1b4   :  { %3829 = vmatprep.subr.bf16.mxu0 %v5718_v8  ;;  %4198 = vmatprep.subr.bf16.mxu1 %v5721_v9  ;;  %v5813_v8 = vld [vmem:[%s7772_s1 + $0xf8c] ss:$16 sps:$4 sm:$0xff]   ;;  %v5808_v9 = vld [vmem:[%s7772_s1 + $0xf80] ss:$16 sps:$4 sm:$0xff]  }
 0x1b7   :  { %3830 = vmatpush1.bf16.msra.mxu0 %v5716_v10  ;;  %4199 = vmatpush1.bf16.msra.mxu1 %v5719_v12  ;;  %v5811_v10 = vld [vmem:[%s7772_s1 + $0xf88] ss:$16 sps:$4 sm:$0xff]   ;;  %v5816_v12 = vld [vmem:[%s7772_s1 + $0xfa4] ss:$16 sps:$4 sm:$0xff]  }
 0x1b8   :  { %3831 = vmatprep.subr.bf16.mxu0 %v5724_v13  ;;  %4200 = vmatprep.subr.bf16.mxu1 %v5727_v15  ;;  %v5819_v13 = vld [vmem:[%s7772_s1 + $0xfac] ss:$16 sps:$4 sm:$0xff]   ;;  %v5814_v15 = vld [vmem:[%s7772_s1 + $0xfa0] ss:$16 sps:$4 sm:$0xff]  }
 0x1bb   :  { %3832 = vmatpush1.bf16.msra.mxu0 %v5722_v11  ;;  %4201 = vmatpush1.bf16.msra.mxu1 %v5725_v17  ;;  %v5817_v11 = vld [vmem:[%s7772_s1 + $0xfa8] ss:$16 sps:$4 sm:$0xff]   ;;  %v5822_v17 = vld [vmem:[%s7772_s1 + $0xfc4] ss:$16 sps:$4 sm:$0xff]  }
 0x1bc   :  { %3833 = vmatprep.subr.bf16.mxu0 %v5730_v14  ;;  %4202 = vmatprep.subr.bf16.mxu1 %v5733_v19  ;;  %v5825_v14 = vld [vmem:[%s7772_s1 + $0xfcc] ss:$16 sps:$4 sm:$0xff]   ;;  %v5820_v19 = vld [vmem:[%s7772_s1 + $0xfc0] ss:$16 sps:$4 sm:$0xff]  }
 0x1bf   :  { %3834 = vmatpush1.bf16.msra.mxu0 %v5728_v20  ;;  %4203 = vmatpush1.bf16.msra.mxu1 %v5731_v21  ;;  %v5823_v20 = vld [vmem:[%s7772_s1 + $0xfc8] ss:$16 sps:$4 sm:$0xff]   ;;  %v5828_v21 = vld [vmem:[%s7772_s1 + $0xfe4] ss:$16 sps:$4 sm:$0xff]  }
 0x1c0   :  { %3844 = vmatprep.subr.bf16.mxu0 %v5738_v22  ;;  %4213 = vmatprep.subr.bf16.mxu1 %v5741_v23  ;;  %v5831_v22 = vld [vmem:[%s7772_s1 + $0xfec] ss:$16 sps:$4 sm:$0xff]   ;;  %v5826_v23 = vld [vmem:[%s7772_s1 + $0xfe0] ss:$16 sps:$4 sm:$0xff]  }
 0x1c2   :  { %3836 = vmatmul.mubr.bf16.vlgmr.msra.gmra.mrb[0].mxu0 %v4400_v18  ;;  %4205 = vmatmul.mubr.bf16.vlgmr.msra.gmra.mrb[0].mxu1 %v4400_v18  ;;  %v5829_v18 = vld [vmem:[%s7772_s1 + $0xfe8] ss:$16 sps:$4 sm:$0xff]  }
 0x1c3   :  { %3845 = vmatpush1.bf16.msra.mxu0 %v5736_v25  ;;  %4214 = vmatpush1.bf16.msra.mxu1 %v5739_v26  ;;  %v5836_v25 = vld [vmem:[%s7772_s1 + $0x1004] ss:$16 sps:$4 sm:$0xff]   ;;  %v5839_v26 = vld [vmem:[%s7772_s1 + $0x100c] ss:$16 sps:$4 sm:$0xff]  }
 0x1c4   :  { %3846 = vmatprep.subr.bf16.mxu0 %v5744_v16  ;;  %4215 = vmatprep.subr.bf16.mxu1 %v5747_v27  ;;  %v4402_v16 = vcombine.low %v7367_v24, %v7367_v24  ;;  %v7568_v27 = vld [vmem:[%s7773_s0 + $0x40] sm:$0xff] }
 0x1c5   :  { %3876 = vmatprep.mubr.bf16.mxu0 %v4403_v28  ;;  %4245 = vmatprep.mubr.bf16.mxu1 %v4403_v28  ;;  %v5834_v28 = vld [vmem:[%s7772_s1 + $0x1000] ss:$16 sps:$4 sm:$0xff]   ;;  %v5842_v24 = vld [vmem:[%s7772_s1 + $0x1024] ss:$16 sps:$4 sm:$0xff]  }
 0x1c7   :  { %3847 = vmatpush1.bf16.msra.mxu0 %v5742_v29  ;;  %4216 = vmatpush1.bf16.msra.mxu1 %v5745_v30  ;;  %v5837_v29 = vld [vmem:[%s7772_s1 + $0x1008] ss:$16 sps:$4 sm:$0xff]   ;;  %v5845_v30 = vld [vmem:[%s7772_s1 + $0x102c] ss:$16 sps:$4 sm:$0xff]  }
 0x1c8   :  { %3848 = vmatprep.subr.bf16.mxu0 %v5750_v31  ;;  %4217 = vmatprep.subr.bf16.mxu1 %v5753_v32  ;;  %v4405_v31 = vcombine.high %v7568_v27, %v7568_v27  ;;  %v5840_v32 = vld [vmem:[%s7772_s1 + $0x1020] ss:$16 sps:$4 sm:$0xff]  }
 0x1cb   :  { %3849 = vmatpush1.bf16.msra.mxu0 %v5748_v33  ;;  %4218 = vmatpush1.bf16.msra.mxu1 %v5751_v34  ;;  %v5843_v33 = vld [vmem:[%s7772_s1 + $0x1028] ss:$16 sps:$4 sm:$0xff]   ;;  %v5848_v34 = vld [vmem:[%s7772_s1 + $0x1044] ss:$16 sps:$4 sm:$0xff]  }
 0x1cc   :  { %3850 = vmatprep.subr.bf16.mxu0 %v5756_v35  ;;  %4219 = vmatprep.subr.bf16.mxu1 %v5759_v36  ;;  %v5851_v35 = vld [vmem:[%s7772_s1 + $0x104c] ss:$16 sps:$4 sm:$0xff]   ;;  %v5846_v36 = vld [vmem:[%s7772_s1 + $0x1040] ss:$16 sps:$4 sm:$0xff]  }
 0x1cf   :  { %3851 = vmatpush1.bf16.msra.mxu0 %v5754_v37  ;;  %4220 = vmatpush1.bf16.msra.mxu1 %v5757_v38  ;;  %v5849_v37 = vld [vmem:[%s7772_s1 + $0x1048] ss:$16 sps:$4 sm:$0xff]   ;;  %v5854_v38 = vld [vmem:[%s7772_s1 + $0x1064] ss:$16 sps:$4 sm:$0xff]  }
 0x1d0   :  { %3852 = vmatprep.subr.bf16.mxu0 %v5762_v39  ;;  %4221 = vmatprep.subr.bf16.mxu1 %v5765_v40  ;;  %v5857_v39 = vld [vmem:[%s7772_s1 + $0x106c] ss:$16 sps:$4 sm:$0xff]   ;;  %v5852_v40 = vld [vmem:[%s7772_s1 + $0x1060] ss:$16 sps:$4 sm:$0xff]  }
 0x1d3   :  { %3853 = vmatpush1.bf16.msra.mxu0 %v5760_v41  ;;  %4222 = vmatpush1.bf16.msra.mxu1 %v5763_v42  ;;  %v5855_v41 = vld [vmem:[%s7772_s1 + $0x1068] ss:$16 sps:$4 sm:$0xff]   ;;  %v5860_v42 = vld [vmem:[%s7772_s1 + $0x1084] ss:$16 sps:$4 sm:$0xff]  }
 0x1d4   :  { %3854 = vmatprep.subr.bf16.mxu0 %v5768_v43  ;;  %4223 = vmatprep.subr.bf16.mxu1 %v5771_v44  ;;  %v5863_v43 = vld [vmem:[%s7772_s1 + $0x108c] ss:$16 sps:$4 sm:$0xff]   ;;  %v5858_v44 = vld [vmem:[%s7772_s1 + $0x1080] ss:$16 sps:$4 sm:$0xff]  }
 0x1d7   :  { %3855 = vmatpush1.bf16.msra.mxu0 %v5766_v45  ;;  %4224 = vmatpush1.bf16.msra.mxu1 %v5769_v46  ;;  %v5861_v45 = vld [vmem:[%s7772_s1 + $0x1088] ss:$16 sps:$4 sm:$0xff]   ;;  %v5866_v46 = vld [vmem:[%s7772_s1 + $0x10a4] ss:$16 sps:$4 sm:$0xff]  }
 0x1d8   :  { %3856 = vmatprep.subr.bf16.mxu0 %v5774_v47  ;;  %4225 = vmatprep.subr.bf16.mxu1 %v5777_v48  ;;  %v5869_v47 = vld [vmem:[%s7772_s1 + $0x10ac] ss:$16 sps:$4 sm:$0xff]   ;;  %v5864_v48 = vld [vmem:[%s7772_s1 + $0x10a0] ss:$16 sps:$4 sm:$0xff]  }
 0x1db   :  { %3857 = vmatpush1.bf16.msra.mxu0 %v5772_v49  ;;  %4226 = vmatpush1.bf16.msra.mxu1 %v5775_v50  ;;  %v5867_v49 = vld [vmem:[%s7772_s1 + $0x10a8] ss:$16 sps:$4 sm:$0xff]   ;;  %v5872_v50 = vld [vmem:[%s7772_s1 + $0x10c4] ss:$16 sps:$4 sm:$0xff]  }
 0x1dc   :  { %3858 = vmatprep.subr.bf16.mxu0 %v5780_v51  ;;  %4227 = vmatprep.subr.bf16.mxu1 %v5783_v52  ;;  %v5875_v51 = vld [vmem:[%s7772_s1 + $0x10cc] ss:$16 sps:$4 sm:$0xff]   ;;  %v5870_v52 = vld [vmem:[%s7772_s1 + $0x10c0] ss:$16 sps:$4 sm:$0xff]  }
 0x1df   :  { %3859 = vmatpush1.bf16.msra.mxu0 %v5778_v53  ;;  %4228 = vmatpush1.bf16.msra.mxu1 %v5781_v54  ;;  %v5873_v53 = vld [vmem:[%s7772_s1 + $0x10c8] ss:$16 sps:$4 sm:$0xff]   ;;  %v5878_v54 = vld [vmem:[%s7772_s1 + $0x10e4] ss:$16 sps:$4 sm:$0xff]  }
 0x1e0   :  { %3860 = vmatprep.subr.bf16.mxu0 %v5786_v55  ;;  %4229 = vmatprep.subr.bf16.mxu1 %v5789_v56  ;;  %v5881_v55 = vld [vmem:[%s7772_s1 + $0x10ec] ss:$16 sps:$4 sm:$0xff]   ;;  %v5876_v56 = vld [vmem:[%s7772_s1 + $0x10e0] ss:$16 sps:$4 sm:$0xff]  }
 0x1e3   :  { %3861 = vmatpush1.bf16.msra.mxu0 %v5784_v57  ;;  %4230 = vmatpush1.bf16.msra.mxu1 %v5787_v58  ;;  %v5879_v57 = vld [vmem:[%s7772_s1 + $0x10e8] ss:$16 sps:$4 sm:$0xff]   ;;  %v5884_v58 = vld [vmem:[%s7772_s1 + $0x1104] ss:$16 sps:$4 sm:$0xff]  }
 0x1e4   :  { %3862 = vmatprep.subr.bf16.mxu0 %v5792_v59  ;;  %4231 = vmatprep.subr.bf16.mxu1 %v5795_v60  ;;  %v5887_v59 = vld [vmem:[%s7772_s1 + $0x110c] ss:$16 sps:$4 sm:$0xff]   ;;  %v5882_v60 = vld [vmem:[%s7772_s1 + $0x1100] ss:$16 sps:$4 sm:$0xff]  }
 0x1e7   :  { %3863 = vmatpush1.bf16.msra.mxu0 %v5790_v61  ;;  %4232 = vmatpush1.bf16.msra.mxu1 %v5793_v62  ;;  %v5885_v61 = vld [vmem:[%s7772_s1 + $0x1108] ss:$16 sps:$4 sm:$0xff]   ;;  %v5890_v62 = vld [vmem:[%s7772_s1 + $0x1124] ss:$16 sps:$4 sm:$0xff]  }
 0x1e8   :  { %3864 = vmatprep.subr.bf16.mxu0 %v5798_v63  ;;  %4233 = vmatprep.subr.bf16.mxu1 %v5801_v0  ;;  %v5893_v63 = vld [vmem:[%s7772_s1 + $0x112c] ss:$16 sps:$4 sm:$0xff]   ;;  %v5888_v0 = vld [vmem:[%s7772_s1 + $0x1120] ss:$16 sps:$4 sm:$0xff]  }
 0x1eb   :  { %3865 = vmatpush1.bf16.msra.mxu0 %v5796_v1  ;;  %4234 = vmatpush1.bf16.msra.mxu1 %v5799_v2  ;;  %v5891_v1 = vld [vmem:[%s7772_s1 + $0x1128] ss:$16 sps:$4 sm:$0xff]   ;;  %v5896_v2 = vld [vmem:[%s7772_s1 + $0x1144] ss:$16 sps:$4 sm:$0xff]  }
 0x1ec   :  { %3866 = vmatprep.subr.bf16.mxu0 %v5804_v3  ;;  %4235 = vmatprep.subr.bf16.mxu1 %v5807_v4  ;;  %v5899_v3 = vld [vmem:[%s7772_s1 + $0x114c] ss:$16 sps:$4 sm:$0xff]   ;;  %v5894_v4 = vld [vmem:[%s7772_s1 + $0x1140] ss:$16 sps:$4 sm:$0xff]  }
 0x1ef   :  { %3867 = vmatpush1.bf16.msra.mxu0 %v5802_v5  ;;  %4236 = vmatpush1.bf16.msra.mxu1 %v5805_v6  ;;  %v5897_v5 = vld [vmem:[%s7772_s1 + $0x1148] ss:$16 sps:$4 sm:$0xff]   ;;  %v5902_v6 = vld [vmem:[%s7772_s1 + $0x1164] ss:$16 sps:$4 sm:$0xff]  }
 0x1f0   :  { %3868 = vmatprep.subr.bf16.mxu0 %v5810_v7  ;;  %4237 = vmatprep.subr.bf16.mxu1 %v5813_v8  ;;  %v5905_v7 = vld [vmem:[%s7772_s1 + $0x116c] ss:$16 sps:$4 sm:$0xff]   ;;  %v5900_v8 = vld [vmem:[%s7772_s1 + $0x1160] ss:$16 sps:$4 sm:$0xff]  }
 0x1f3   :  { %3869 = vmatpush1.bf16.msra.mxu0 %v5808_v9  ;;  %4238 = vmatpush1.bf16.msra.mxu1 %v5811_v10  ;;  %v5903_v9 = vld [vmem:[%s7772_s1 + $0x1168] ss:$16 sps:$4 sm:$0xff]   ;;  %v5908_v10 = vld [vmem:[%s7772_s1 + $0x1184] ss:$16 sps:$4 sm:$0xff]  }
 0x1f4   :  { %3870 = vmatprep.subr.bf16.mxu0 %v5816_v12  ;;  %4239 = vmatprep.subr.bf16.mxu1 %v5819_v13  ;;  %v5911_v12 = vld [vmem:[%s7772_s1 + $0x118c] ss:$16 sps:$4 sm:$0xff]   ;;  %v5906_v13 = vld [vmem:[%s7772_s1 + $0x1180] ss:$16 sps:$4 sm:$0xff]  }
 0x1f7   :  { %3871 = vmatpush1.bf16.msra.mxu0 %v5814_v15  ;;  %4240 = vmatpush1.bf16.msra.mxu1 %v5817_v11  ;;  %v5909_v15 = vld [vmem:[%s7772_s1 + $0x1188] ss:$16 sps:$4 sm:$0xff]   ;;  %v5914_v11 = vld [vmem:[%s7772_s1 + $0x11a4] ss:$16 sps:$4 sm:$0xff]  }
 0x1f8   :  { %3872 = vmatprep.subr.bf16.mxu0 %v5822_v17  ;;  %4241 = vmatprep.subr.bf16.mxu1 %v5825_v14  ;;  %v5917_v17 = vld [vmem:[%s7772_s1 + $0x11ac] ss:$16 sps:$4 sm:$0xff]   ;;  %v5912_v14 = vld [vmem:[%s7772_s1 + $0x11a0] ss:$16 sps:$4 sm:$0xff]  }
 0x1fb   :  { %3873 = vmatpush1.bf16.msra.mxu0 %v5820_v19  ;;  %4242 = vmatpush1.bf16.msra.mxu1 %v5823_v20  ;;  %v5915_v19 = vld [vmem:[%s7772_s1 + $0x11a8] ss:$16 sps:$4 sm:$0xff]   ;;  %v5920_v20 = vld [vmem:[%s7772_s1 + $0x11c4] ss:$16 sps:$4 sm:$0xff]  }
 0x1fc   :  { %3874 = vmatprep.subr.bf16.mxu0 %v5828_v21  ;;  %4243 = vmatprep.subr.bf16.mxu1 %v5831_v22  ;;  %v5923_v21 = vld [vmem:[%s7772_s1 + $0x11cc] ss:$16 sps:$4 sm:$0xff]   ;;  %v5918_v22 = vld [vmem:[%s7772_s1 + $0x11c0] ss:$16 sps:$4 sm:$0xff]  }
 0x1ff   :  { %3875 = vmatpush1.bf16.msra.mxu0 %v5826_v23  ;;  %4244 = vmatpush1.bf16.msra.mxu1 %v5829_v18  ;;  %v5921_v23 = vld [vmem:[%s7772_s1 + $0x11c8] ss:$16 sps:$4 sm:$0xff]   ;;  %v5926_v18 = vld [vmem:[%s7772_s1 + $0x11e4] ss:$16 sps:$4 sm:$0xff]  }
 0x200   :  { %3885 = vmatprep.subr.bf16.mxu0 %v5836_v25  ;;  %4254 = vmatprep.subr.bf16.mxu1 %v5839_v26  ;;  %v5929_v25 = vld [vmem:[%s7772_s1 + $0x11ec] ss:$16 sps:$4 sm:$0xff]   ;;  %v5924_v26 = vld [vmem:[%s7772_s1 + $0x11e0] ss:$16 sps:$4 sm:$0xff]  }
 0x202   :  { %3877 = vmatmul.mubr.bf16.vlgmr.msra.gmra.mrb[0].mxu0 %v4402_v16  ;;  %4246 = vmatmul.mubr.bf16.vlgmr.msra.gmra.mrb[0].mxu1 %v4402_v16  ;;  %v5927_v16 = vld [vmem:[%s7772_s1 + $0x11e8] ss:$16 sps:$4 sm:$0xff]  }
 0x203   :  { %3886 = vmatpush1.bf16.msra.mxu0 %v5834_v28  ;;  %4255 = vmatpush1.bf16.msra.mxu1 %v5837_v29  ;;  %v4404_v28 = vcombine.low %v7568_v27, %v7568_v27  ;;  %v4312_v29 = vlaneseq }
 0x204   :  { %3887 = vmatprep.subr.bf16.mxu0 %v5842_v24  ;;  %4256 = vmatprep.subr.bf16.mxu1 %v5845_v30 }
 0x205   :  { %3917 = vmatprep.mubr.bf16.mxu0 %v4405_v31  ;;  %4286 = vmatprep.mubr.bf16.mxu1 %v4405_v31  ;;  %v4313_v24 = vshrl.u32 %v4312_v29, 7 }
 0x207   :  { %3888 = vmatpush1.bf16.msra.mxu0 %v5840_v32  ;;  %4257 = vmatpush1.bf16.msra.mxu1 %v5843_v33  ;;  %v4314_v30 = vsub.s32 0, %v4313_v24  ;;  %v4322_v31 = vsub.s32 2, %v4313_v24  ;;  %v4310_v32 = vld [vmem:[%s7774_s2] sm:$0xf]  ;;  %v4318_v33 = vsub.s32 1, %v4313_v24 }
 0x208   :  { %3889 = vmatprep.subr.bf16.mxu0 %v5848_v34  ;;  %4258 = vmatprep.subr.bf16.mxu1 %v5851_v35  ;;  %v4326_v34 = vsub.s32 3, %v4313_v24  ;;  %v4336_v35 = vld [vmem:[%s7775_s3] sm:$0xf] }
 0x209   :  { %v4323_v27 = vrot.slane %v4310_v32, %v4322_v31 }
 0x20b   :  { %3890 = vmatpush1.bf16.msra.mxu0 %v5846_v36  ;;  %4259 = vmatpush1.bf16.msra.mxu1 %v5849_v37  ;;  %v4315_v36 = vrot.slane %v4310_v32, %v4314_v30  ;;  %v4319_v37 = vrot.slane %v4310_v32, %v4318_v33 }
 0x20c   :  { %3891 = vmatprep.subr.bf16.mxu0 %v5854_v38  ;;  %4260 = vmatprep.subr.bf16.mxu1 %v5857_v39  ;;  %v4327_v38 = vrot.slane %v4310_v32, %v4326_v34  ;;  %v4341_v39 = vrot.slane %v4336_v35, %v4314_v30 }
 0x20f   :  { %3892 = vmatpush1.bf16.msra.mxu0 %v5852_v40  ;;  %4261 = vmatpush1.bf16.msra.mxu1 %v5855_v41  ;;  %v4349_v40 = vrot.slane %v4336_v35, %v4322_v31 }
 0x210   :  { %3893 = vmatprep.subr.bf16.mxu0 %v5860_v42  ;;  %4262 = vmatprep.subr.bf16.mxu1 %v5863_v43  ;;  %v4345_v43 = vrot.slane %v4336_v35, %v4318_v33 }
 0x213   :  { %3894 = vmatpush1.bf16.msra.mxu0 %v5858_v44  ;;  %4263 = vmatpush1.bf16.msra.mxu1 %v5861_v45  ;;  %v4353_v44 = vrot.slane %v4336_v35, %v4326_v34 }
 0x214   :  { %3895 = vmatprep.subr.bf16.mxu0 %v5866_v46  ;;  %4264 = vmatprep.subr.bf16.mxu1 %v5869_v47 }
 0x217   :  { %3896 = vmatpush1.bf16.msra.mxu0 %v5864_v48  ;;  %4265 = vmatpush1.bf16.msra.mxu1 %v5867_v49 }
 0x218   :  { %3897 = vmatprep.subr.bf16.mxu0 %v5872_v50  ;;  %4266 = vmatprep.subr.bf16.mxu1 %v5875_v51 }
 0x21b   :  { %3898 = vmatpush1.bf16.msra.mxu0 %v5870_v52  ;;  %4267 = vmatpush1.bf16.msra.mxu1 %v5873_v53 }
 0x21c   :  { %3899 = vmatprep.subr.bf16.mxu0 %v5878_v54  ;;  %4268 = vmatprep.subr.bf16.mxu1 %v5881_v55 }
 0x21f   :  { %3900 = vmatpush1.bf16.msra.mxu0 %v5876_v56  ;;  %4269 = vmatpush1.bf16.msra.mxu1 %v5879_v57 }
 0x220   :  { %3901 = vmatprep.subr.bf16.mxu0 %v5884_v58  ;;  %4270 = vmatprep.subr.bf16.mxu1 %v5887_v59 }
 0x223   :  { %3902 = vmatpush1.bf16.msra.mxu0 %v5882_v60  ;;  %4271 = vmatpush1.bf16.msra.mxu1 %v5885_v61 }
 0x224   :  { %3903 = vmatprep.subr.bf16.mxu0 %v5890_v62  ;;  %4272 = vmatprep.subr.bf16.mxu1 %v5893_v63 }
 0x227   :  { %3904 = vmatpush1.bf16.msra.mxu0 %v5888_v0  ;;  %4273 = vmatpush1.bf16.msra.mxu1 %v5891_v1 }
 0x228   :  { %3905 = vmatprep.subr.bf16.mxu0 %v5896_v2  ;;  %4274 = vmatprep.subr.bf16.mxu1 %v5899_v3 }
 0x22b   :  { %3906 = vmatpush1.bf16.msra.mxu0 %v5894_v4  ;;  %4275 = vmatpush1.bf16.msra.mxu1 %v5897_v5 }
 0x22c   :  { %3907 = vmatprep.subr.bf16.mxu0 %v5902_v6  ;;  %4276 = vmatprep.subr.bf16.mxu1 %v5905_v7 }
 0x22f   :  { %3908 = vmatpush1.bf16.msra.mxu0 %v5900_v8  ;;  %4277 = vmatpush1.bf16.msra.mxu1 %v5903_v9 }
 0x230   :  { %3909 = vmatprep.subr.bf16.mxu0 %v5908_v10  ;;  %4278 = vmatprep.subr.bf16.mxu1 %v5911_v12 }
 0x233   :  { %3910 = vmatpush1.bf16.msra.mxu0 %v5906_v13  ;;  %4279 = vmatpush1.bf16.msra.mxu1 %v5909_v15 }
 0x234   :  { %3911 = vmatprep.subr.bf16.mxu0 %v5914_v11  ;;  %4280 = vmatprep.subr.bf16.mxu1 %v5917_v17 }
 0x237   :  { %3912 = vmatpush1.bf16.msra.mxu0 %v5912_v14  ;;  %4281 = vmatpush1.bf16.msra.mxu1 %v5915_v19 }
 0x238   :  { %3913 = vmatprep.subr.bf16.mxu0 %v5920_v20  ;;  %4282 = vmatprep.subr.bf16.mxu1 %v5923_v21 }
 0x23b   :  { %3914 = vmatpush1.bf16.msra.mxu0 %v5918_v22  ;;  %4283 = vmatpush1.bf16.msra.mxu1 %v5921_v23 }
 0x23c   :  { %3915 = vmatprep.subr.bf16.mxu0 %v5926_v18  ;;  %4284 = vmatprep.subr.bf16.mxu1 %v5929_v25 }
 0x23f   :  { %3916 = vmatpush1.bf16.msra.mxu0 %v5924_v26  ;;  %4285 = vmatpush1.bf16.msra.mxu1 %v5927_v16 }
 0x242   :  { %3918 = vmatmul.mubr.bf16.vlgmr.msra.gmra.mrb[0].mxu0 %v4404_v28  ;;  %4287 = vmatmul.mubr.bf16.vlgmr.msra.gmra.mrb[0].mxu1 %v4404_v28 }
 0x315   :  { %v3919_v41 = vpop.f32.mrb[0].mxu0  ;;  %v4288_v42 = vpop.f32.mrb[0].mxu1 }
 0x316   :  { %v4332_v45 = vmul.f32 %v4315_v36, %v3919_v41  ;;  %v4334_v46 = vmul.f32 %v4323_v27, %v4288_v42  ;;  %v3921_v47 = vpop.f32.mrb[1].mxu0  ;;  %v4290_v48 = vpop.f32.mrb[1].mxu1 }
 0x317   :  { %v4333_v49 = vmul.f32 %v4319_v37, %v3921_v47  ;;  %v4335_v50 = vmul.f32 %v4327_v38, %v4290_v48  ;;  %v3923_v51 = vpop.f32.mrb[2].mxu0  ;;  %v4292_v52 = vpop.f32.mrb[2].mxu1 }
 0x318   :  { %v4358_v53 = vadd.f32 %v4341_v39, %v4332_v45  ;;  %v4360_v54 = vadd.f32 %v4349_v40, %v4334_v46  ;;  %v3924_v55 = vpop.f32.mrb[3].mxu0  ;;  %v4293_v56 = vpop.f32.mrb[3].mxu1 }
 0x319   :  { %v4359_v57 = vadd.f32 %v4345_v43, %v4333_v49  ;;  %v4361_v58 = vadd.f32 %v4353_v44, %v4335_v50 }
 0x31a   :  { %v4362_v59 = vmax.f32 %v4358_v53, 0.0  ;;  %v4364_v60 = vmax.f32 %v4360_v54, 0.0 }
 0x31b   :  { %v4363_v61 = vmax.f32 %v4359_v57, 0.0  ;;  %v4365_v62 = vmax.f32 %v4361_v58, 0.0 }
 0x31d   :  { %v4984_v63 = vpack.c.bf16 %v4363_v61, %v4362_v59  ;;  %v4985_v0 = vpack.c.bf16 %v4365_v62, %v4364_v60 }
 0x31f   :  { %4382 = vst [vmem:[%s7776_s4] sm:$0xff] %v4984_v63  ;;  %4383 = vst [vmem:[%s7776_s4 + $0x8] sm:$0xff] %v4985_v0 }

// kernel: simplenet_forward.13
= control target key start
LH: loop header
LB: loop body
LE: loop exit
PB: predicated region body
PF: predicated region fallthrough
CT: control target
= control target key end

     0   :  { %13 = vsyncpa [#allocation4], 0  ;;  %s8174_s27 = smov 0   ;;  %s9803_s0 = inlined_call_operand.vmem [shape: bf16[2,4608], index: 0, kind: input, shape index: {}]   ;;  %s9804_s1 = inlined_call_operand.vmem [shape: bf16[4608,1024], index: 1, kind: input, shape index: {}]   ;;  %s9805_s2 = inlined_call_operand.vmem [shape: f32[1,1024], index: 2, kind: input, shape index: {}]   ;;  %s9806_s3 = inlined_call_operand.vmem [shape: f32[1,1024], index: 3, kind: input, shape index: {}]   ;;  %s9807_s4 = inlined_call_operand.vmem [shape: bf16[1024,256], index: 4, kind: input, shape index: {}]   ;;  %s9808_s5 = inlined_call_operand.vmem [shape: f32[1,256], index: 5, kind: input, shape index: {}]   ;;  %s9809_s6 = inlined_call_operand.vmem [shape: bf16[256,1024], index: 6, kind: input, shape index: {}]   ;;  %s9810_s7 = inlined_call_operand.vmem [shape: f32[1,1024], index: 7, kind: input, shape index: {}]   ;;  %s9811_s8 = inlined_call_operand.hbm [shape: f32[2,1024], index: 8, kind: output, shape index: {}]  }
   0x1 LB: > { %s8180_s28 = sadd.s32 4294967295, %s8122_s27   ;;  %p6953_p0 = scmp.ge.s32.totalorder %s8122_s27, 1  ;;  %s8122_s27 = sphi %s8174_s27, %s19_s27  }
   0x2   : > { %p270_p1 = scmp.lt.s32.totalorder %s8122_s27, 5 }
   0x4   : > { %p271_p2 = pnand %p6953_p0, %p270_p1 }
   0x5   : > { %s304_s29 = smul.u32 (!%p271_p2), 9, %s8180_s28  ;;  %p6956_p5 = scmp.ne.s32.totalorder (!%p271_p2), %s8180_s28, 0 }
   0x6   : > { %274 = sbr.rel (%p271_p2) target bundleno = 1692 (0x69c), region = 52 }
   0x7   : > { %s309_s30 = smul.u32 (!%p271_p2), 144, %s8180_s28  ;;  %p305_p3 = scmp.lt.s32.totalorder (!%p271_p2), %s304_s29, 35 }
   0x9   : > { %p310_p4 = scmp.lt.s32.totalorder (!%p271_p2), %s309_s30, 575 }
   0xd   : > { %s9813_s29 = smov (!%p305_p3, %s304_s29), 35  ;;  %s9815_s30 = smov (!%p310_p4, %s309_s30), 575 }
   0xe   : > { %s8189_s11 = scalar_lea.vmem %s9803_s0, %s9813_s29  ;;  %s7795_s12 = sshll.u32 %s9815_s30, 5  ;;  %v8124_v0 = vmov (!%p6956_p5), 0.0  }
   0xf   : > { %s8194_s15 = scalar_lea.vmem %s9804_s1, %s7795_s12  ;;  %320 = sbr.rel (%p6956_p5) target bundleno = 22 (0x16), region = 56  ;;  %321 = vst [vmem:[#allocation2] sm:$0xff] (!%p6956_p5), %v8124_v0  ;;  %322 = vst [vmem:[#allocation2 + $0x8] sm:$0xff] (!%p6956_p5), %v8124_v0 }
  0x16 PF: > { %v327_v1 = vld [vmem:[%s8194_s15] sm:$0xff]  ;;  %v328_v3 = vld [vmem:[%s8194_s15 + $0x8] sm:$0xff]  ;;  %v8125_v33 = vmov 1966171168   ;;  %v909_v35 = vlaneseq  ;;  %p7534_p6 = scmp.ne.s32.totalorder %s8180_s28, 3 }
  0x17   : > { %v331_v2 = vld [vmem:[%s8194_s15 + $0x20] sm:$0xff]  ;;  %v332_v5 = vld [vmem:[%s8194_s15 + $0x28] sm:$0xff]  ;;  %v907_v34 = vunpack.c.l.s4 %v8125_v33 }
  0x18   : > { %v6959_v4 = vcombine.high %v327_v1, %v331_v2  ;;  %v6958_v6 = vcombine.low %v327_v1, %v331_v2  ;;  %v335_v7 = vld [vmem:[%s8194_s15 + $0x40] sm:$0xff]  ;;  %v6961_v9 = vcombine.high %v328_v3, %v332_v5  ;;  %v6960_v10 = vcombine.low %v328_v3, %v332_v5  ;;  %v336_v12 = vld [vmem:[%s8194_s15 + $0x48] sm:$0xff] }
  0x19   : > { %v339_v8 = vld [vmem:[%s8194_s15 + $0x60] sm:$0xff]  ;;  %v340_v13 = vld [vmem:[%s8194_s15 + $0x68] sm:$0xff]  ;;  %v908_v44 = vunpack.c.0.s8 %v907_v34  ;;  %v8219_v45 = vshrl.u32 %v909_v35, 7 }
  0x1a   : > { %v6967_v11 = vcombine.high %v335_v7, %v339_v8  ;;  %v343_v14 = vld [vmem:[%s8194_s15 + $0x80] sm:$0xff]  ;;  %3857 = vmatprep.subr.bf16.mxu0 %v6959_v4  ;;  %v6969_v15 = vcombine.high %v336_v12, %v340_v13  ;;  %v344_v17 = vld [vmem:[%s8194_s15 + $0x88] sm:$0xff]  ;;  %4062 = vmatprep.subr.bf16.mxu1 %v6961_v9  ;;  %v6966_v19 = vcombine.low %v335_v7, %v339_v8 }
  0x1b   : > { %v347_v16 = vld [vmem:[%s8194_s15 + $0xa0] sm:$0xff]  ;;  %v348_v18 = vld [vmem:[%s8194_s15 + $0xa8] sm:$0xff]  ;;  %3858 = vmatpush1.bf16.msra.mxu0 %v6958_v6  ;;  %4063 = vmatpush1.bf16.msra.mxu1 %v6960_v10  ;;  %v6968_v20 = vcombine.low %v336_v12, %v340_v13  ;;  %v8226_v54 = vsub.s32 %v908_v44, %v8219_v45 }
  0x1c   : > { %3859 = vmatprep.subr.bf16.mxu0 %v6967_v11  ;;  %v6975_v21 = vcombine.high %v343_v14, %v347_v16  ;;  %4064 = vmatprep.subr.bf16.mxu1 %v6969_v15  ;;  %v6977_v22 = vcombine.high %v344_v17, %v348_v18  ;;  %v351_v23 = vld [vmem:[%s8194_s15 + $0xc0] sm:$0xff]  ;;  %v352_v25 = vld [vmem:[%s8194_s15 + $0xc8] sm:$0xff]  ;;  %v6974_v27 = vcombine.low %v343_v14, %v347_v16 }
  0x1d   : > { %v355_v24 = vld [vmem:[%s8194_s15 + $0xe0] sm:$0xff]  ;;  %v356_v26 = vld [vmem:[%s8194_s15 + $0xe8] sm:$0xff]  ;;  %v6976_v28 = vcombine.low %v344_v17, %v348_v18 }
  0x1e   : > { %v6983_v29 = vcombine.high %v351_v23, %v355_v24  ;;  %v6985_v30 = vcombine.high %v352_v25, %v356_v26  ;;  %v359_v31 = vld [vmem:[%s8194_s15 + $0x100] sm:$0xff]  ;;  %v360_v36 = vld [vmem:[%s8194_s15 + $0x108] sm:$0xff]  ;;  %v6982_v38 = vcombine.low %v351_v23, %v355_v24  ;;  %v6984_v39 = vcombine.low %v352_v25, %v356_v26 }
  0x1f   : > { %3860 = vmatpush1.bf16.msra.mxu0 %v6966_v19  ;;  %4065 = vmatpush1.bf16.msra.mxu1 %v6968_v20  ;;  %v363_v32 = vld [vmem:[%s8194_s15 + $0x120] sm:$0xff]  ;;  %v364_v37 = vld [vmem:[%s8194_s15 + $0x128] sm:$0xff] }
  0x20   : > { %3861 = vmatprep.subr.bf16.mxu0 %v6975_v21  ;;  %4066 = vmatprep.subr.bf16.mxu1 %v6977_v22  ;;  %v6991_v40 = vcombine.high %v359_v31, %v363_v32  ;;  %v6993_v41 = vcombine.high %v360_v36, %v364_v37  ;;  %v367_v42 = vld [vmem:[%s8194_s15 + $0x140] sm:$0xff]  ;;  %v368_v46 = vld [vmem:[%s8194_s15 + $0x148] sm:$0xff]  ;;  %v6990_v48 = vcombine.low %v359_v31, %v363_v32 }
  0x21   : > { %v371_v43 = vld [vmem:[%s8194_s15 + $0x160] sm:$0xff]  ;;  %v372_v47 = vld [vmem:[%s8194_s15 + $0x168] sm:$0xff]  ;;  %v6992_v49 = vcombine.low %v360_v36, %v364_v37 }
  0x22   : > { %v6999_v50 = vcombine.high %v367_v42, %v371_v43  ;;  %v7001_v51 = vcombine.high %v368_v46, %v372_v47  ;;  %v375_v52 = vld [vmem:[%s8194_s15 + $0x180] sm:$0xff]  ;;  %v376_v55 = vld [vmem:[%s8194_s15 + $0x188] sm:$0xff]  ;;  %v6998_v57 = vcombine.low %v367_v42, %v371_v43  ;;  %v7000_v58 = vcombine.low %v368_v46, %v372_v47 }
  0x23   : > { %3862 = vmatpush1.bf16.msra.mxu0 %v6974_v27  ;;  %4067 = vmatpush1.bf16.msra.mxu1 %v6976_v28  ;;  %v379_v53 = vld [vmem:[%s8194_s15 + $0x1a0] sm:$0xff]  ;;  %v380_v56 = vld [vmem:[%s8194_s15 + $0x1a8] sm:$0xff] }
  0x24   : > { %3863 = vmatprep.subr.bf16.mxu0 %v6983_v29  ;;  %4068 = vmatprep.subr.bf16.mxu1 %v6985_v30  ;;  %v7007_v59 = vcombine.high %v375_v52, %v379_v53  ;;  %v8231_v60 = vld [vmem:[%s8189_s11] sm:$0xff]  ;;  %v7009_v61 = vcombine.high %v376_v55, %v380_v56  ;;  %v384_v1 = vld [vmem:[%s8194_s15 + $0x1c8] sm:$0xff]  ;;  %v7006_v3 = vcombine.low %v375_v52, %v379_v53 }
  0x25   : > { %v383_v62 = vld [vmem:[%s8194_s15 + $0x1c0] sm:$0xff]  ;;  %v8237_v0 = vrot.slane %v8231_v60, %v8226_v54  ;;  %v388_v2 = vld [vmem:[%s8194_s15 + $0x1e8] sm:$0xff]  ;;  %v7008_v5 = vcombine.low %v376_v55, %v380_v56 }
  0x26   : > { %v387_v63 = vld [vmem:[%s8194_s15 + $0x1e0] sm:$0xff]  ;;  %v7017_v7 = vcombine.high %v384_v1, %v388_v2  ;;  %v392_v11 = vld [vmem:[%s8194_s15 + $0x208] sm:$0xff]  ;;  %v7016_v14 = vcombine.low %v384_v1, %v388_v2 }
  0x27   : > { %3864 = vmatpush1.bf16.msra.mxu0 %v6982_v38  ;;  %4069 = vmatpush1.bf16.msra.mxu1 %v6984_v39  ;;  %v920_v4 = vcombine.high %v8237_v0, %v8237_v0  ;;  %v7015_v6 = vcombine.high %v383_v62, %v387_v63  ;;  %v391_v8 = vld [vmem:[%s8194_s15 + $0x200] sm:$0xff]  ;;  %v396_v12 = vld [vmem:[%s8194_s15 + $0x228] sm:$0xff]  ;;  %v7014_v13 = vcombine.low %v383_v62, %v387_v63 }
  0x28   : > { %3865 = vmatprep.subr.bf16.mxu0 %v6991_v40  ;;  %4070 = vmatprep.subr.bf16.mxu1 %v6993_v41  ;;  %v395_v9 = vld [vmem:[%s8194_s15 + $0x220] sm:$0xff]  ;;  %v7025_v16 = vcombine.high %v392_v11, %v396_v12  ;;  %v400_v19 = vld [vmem:[%s8194_s15 + $0x248] sm:$0xff]  ;;  %v7024_v22 = vcombine.low %v392_v11, %v396_v12 }
  0x29   : > { %v8246_v10 = vrot.slane %v920_v4, %v8226_v54  ;;  %v7023_v15 = vcombine.high %v391_v8, %v395_v9  ;;  %v399_v17 = vld [vmem:[%s8194_s15 + $0x240] sm:$0xff]  ;;  %v404_v20 = vld [vmem:[%s8194_s15 + $0x268] sm:$0xff]  ;;  %v7022_v21 = vcombine.low %v391_v8, %v395_v9 }
  0x2a   : > { %v403_v18 = vld [vmem:[%s8194_s15 + $0x260] sm:$0xff]  ;;  %v7033_v24 = vcombine.high %v400_v19, %v404_v20  ;;  %v408_v27 = vld [vmem:[%s8194_s15 + $0x288] sm:$0xff]  ;;  %v7032_v30 = vcombine.low %v400_v19, %v404_v20 }
  0x2b   : > { %3866 = vmatpush1.bf16.msra.mxu0 %v6990_v48  ;;  %4071 = vmatpush1.bf16.msra.mxu1 %v6992_v49  ;;  %v7031_v23 = vcombine.high %v399_v17, %v403_v18  ;;  %v407_v25 = vld [vmem:[%s8194_s15 + $0x280] sm:$0xff]  ;;  %v412_v28 = vld [vmem:[%s8194_s15 + $0x2a8] sm:$0xff]  ;;  %v7030_v29 = vcombine.low %v399_v17, %v403_v18 }
  0x2c   : > { %3867 = vmatprep.subr.bf16.mxu0 %v6999_v50  ;;  %4072 = vmatprep.subr.bf16.mxu1 %v7001_v51  ;;  %v411_v26 = vld [vmem:[%s8194_s15 + $0x2a0] sm:$0xff]  ;;  %v7041_v32 = vcombine.high %v408_v27, %v412_v28  ;;  %v416_v35 = vld [vmem:[%s8194_s15 + $0x2c8] sm:$0xff]  ;;  %v7040_v38 = vcombine.low %v408_v27, %v412_v28 }
  0x2d   : > { %3889 = vmatprep.mubr.bf16.mxu0 %v8246_v10  ;;  %4094 = vmatprep.mubr.bf16.mxu1 %v8246_v10  ;;  %v7039_v31 = vcombine.high %v407_v25, %v411_v26  ;;  %v415_v33 = vld [vmem:[%s8194_s15 + $0x2c0] sm:$0xff]  ;;  %v420_v36 = vld [vmem:[%s8194_s15 + $0x2e8] sm:$0xff]  ;;  %v7038_v37 = vcombine.low %v407_v25, %v411_v26 }
  0x2e   : > { %v419_v34 = vld [vmem:[%s8194_s15 + $0x2e0] sm:$0xff]  ;;  %v7049_v40 = vcombine.high %v416_v35, %v420_v36  ;;  %v424_v43 = vld [vmem:[%s8194_s15 + $0x308] sm:$0xff]  ;;  %v7048_v47 = vcombine.low %v416_v35, %v420_v36 }
  0x2f   : > { %3868 = vmatpush1.bf16.msra.mxu0 %v6998_v57  ;;  %4073 = vmatpush1.bf16.msra.mxu1 %v7000_v58  ;;  %v7047_v39 = vcombine.high %v415_v33, %v419_v34  ;;  %v423_v41 = vld [vmem:[%s8194_s15 + $0x300] sm:$0xff]  ;;  %v428_v44 = vld [vmem:[%s8194_s15 + $0x328] sm:$0xff]  ;;  %v7046_v46 = vcombine.low %v415_v33, %v419_v34  ;;  %v8296_v33 = vcombine.high %v8246_v10, %v8246_v10 }
  0x30   : > { %3869 = vmatprep.subr.bf16.mxu0 %v7007_v59  ;;  %4074 = vmatprep.subr.bf16.mxu1 %v7009_v61  ;;  %v427_v42 = vld [vmem:[%s8194_s15 + $0x320] sm:$0xff]  ;;  %v7057_v49 = vcombine.high %v424_v43, %v428_v44  ;;  %v432_v52 = vld [vmem:[%s8194_s15 + $0x348] sm:$0xff]  ;;  %v7056_v56 = vcombine.low %v424_v43, %v428_v44 }
  0x31   : > { %v7055_v48 = vcombine.high %v423_v41, %v427_v42  ;;  %v431_v50 = vld [vmem:[%s8194_s15 + $0x340] sm:$0xff]  ;;  %v436_v53 = vld [vmem:[%s8194_s15 + $0x368] sm:$0xff]  ;;  %v7054_v55 = vcombine.low %v423_v41, %v427_v42 }
  0x32   : > { %v435_v51 = vld [vmem:[%s8194_s15 + $0x360] sm:$0xff]  ;;  %v7065_v58 = vcombine.high %v432_v52, %v436_v53  ;;  %v440_v62 = vld [vmem:[%s8194_s15 + $0x388] sm:$0xff]  ;;  %v7064_v2 = vcombine.low %v432_v52, %v436_v53 }
  0x33   : > { %3870 = vmatpush1.bf16.msra.mxu0 %v7006_v3  ;;  %4075 = vmatpush1.bf16.msra.mxu1 %v7008_v5  ;;  %v7063_v57 = vcombine.high %v431_v50, %v435_v51  ;;  %v439_v59 = vld [vmem:[%s8194_s15 + $0x380] sm:$0xff]  ;;  %v444_v63 = vld [vmem:[%s8194_s15 + $0x3a8] sm:$0xff]  ;;  %v7062_v1 = vcombine.low %v431_v50, %v435_v51 }
  0x34   : > { %3871 = vmatprep.subr.bf16.mxu0 %v7015_v6  ;;  %4076 = vmatprep.subr.bf16.mxu1 %v7017_v7  ;;  %v443_v61 = vld [vmem:[%s8194_s15 + $0x3a0] sm:$0xff]  ;;  %v7073_v4 = vcombine.high %v440_v62, %v444_v63  ;;  %v448_v7 = vld [vmem:[%s8194_s15 + $0x3c8] sm:$0xff]  ;;  %v7072_v11 = vcombine.low %v440_v62, %v444_v63 }
  0x35   : > { %v7071_v3 = vcombine.high %v439_v59, %v443_v61  ;;  %v447_v5 = vld [vmem:[%s8194_s15 + $0x3c0] sm:$0xff]  ;;  %v452_v8 = vld [vmem:[%s8194_s15 + $0x3e8] sm:$0xff]  ;;  %v7070_v9 = vcombine.low %v439_v59, %v443_v61 }
  0x36   : > { %v451_v6 = vld [vmem:[%s8194_s15 + $0x3e0] sm:$0xff]  ;;  %v460_v17 = vld [vmem:[%s8194_s15 + $0x428] sm:$0xff]  ;;  %v7080_v19 = vcombine.low %v448_v7, %v452_v8 }
  0x37   : > { %3872 = vmatpush1.bf16.msra.mxu0 %v7014_v13  ;;  %4077 = vmatpush1.bf16.msra.mxu1 %v7016_v14  ;;  %v7079_v12 = vcombine.high %v447_v5, %v451_v6  ;;  %v7081_v13 = vcombine.high %v448_v7, %v452_v8  ;;  %v455_v14 = vld [vmem:[%s8194_s15 + $0x400] sm:$0xff]  ;;  %v7078_v18 = vcombine.low %v447_v5, %v451_v6  ;;  %v464_v25 = vld [vmem:[%s8194_s15 + $0x448] sm:$0xff] }
  0x38   : > { %3873 = vmatprep.subr.bf16.mxu0 %v7023_v15  ;;  %4078 = vmatprep.subr.bf16.mxu1 %v7025_v16  ;;  %v459_v15 = vld [vmem:[%s8194_s15 + $0x420] sm:$0xff]  ;;  %v456_v16 = vld [vmem:[%s8194_s15 + $0x408] sm:$0xff] }
  0x39   : > { %v7087_v20 = vcombine.high %v455_v14, %v459_v15  ;;  %v468_v26 = vld [vmem:[%s8194_s15 + $0x468] sm:$0xff]  ;;  %v7086_v27 = vcombine.low %v455_v14, %v459_v15  ;;  %v7088_v28 = vcombine.low %v456_v16, %v460_v17 }
  0x3a   : > { %v476_v34 = vld [vmem:[%s8194_s15 + $0x4a8] sm:$0xff]  ;;  %v7096_v36 = vcombine.low %v464_v25, %v468_v26 }
  0x3b   : > { %3874 = vmatpush1.bf16.msra.mxu0 %v7022_v21  ;;  %4079 = vmatpush1.bf16.msra.mxu1 %v7024_v22  ;;  %v7089_v21 = vcombine.high %v456_v16, %v460_v17  ;;  %v463_v22 = vld [vmem:[%s8194_s15 + $0x440] sm:$0xff]  ;;  %v480_v41 = vld [vmem:[%s8194_s15 + $0x4c8] sm:$0xff] }
  0x3c   : > { %3875 = vmatprep.subr.bf16.mxu0 %v7031_v23  ;;  %4080 = vmatprep.subr.bf16.mxu1 %v7033_v24  ;;  %v467_v23 = vld [vmem:[%s8194_s15 + $0x460] sm:$0xff]  ;;  %v8288_v24 = vrot.slane %v8237_v0, %v8226_v54  ;;  %v472_v0 = vld [vmem:[%s8194_s15 + $0x488] sm:$0xff] }
  0x3d   : > { %v7094_v35 = vcombine.low %v463_v22, %v467_v23  ;;  %v484_v42 = vld [vmem:[%s8194_s15 + $0x4e8] sm:$0xff]  ;;  %v7104_v44 = vcombine.low %v472_v0, %v476_v34 }
  0x3e   : > { %v488_v50 = vld [vmem:[%s8194_s15 + $0x508] sm:$0xff]  ;;  %v7112_v53 = vcombine.low %v480_v41, %v484_v42 }
  0x3f   : > { %3876 = vmatpush1.bf16.msra.mxu0 %v7030_v29  ;;  %4081 = vmatpush1.bf16.msra.mxu1 %v7032_v30  ;;  %v7095_v29 = vcombine.high %v463_v22, %v467_v23  ;;  %v7097_v30 = vcombine.high %v464_v25, %v468_v26  ;;  %v492_v51 = vld [vmem:[%s8194_s15 + $0x528] sm:$0xff] }
  0x40   : > { %3877 = vmatprep.subr.bf16.mxu0 %v7039_v31  ;;  %4082 = vmatprep.subr.bf16.mxu1 %v7041_v32  ;;  %v471_v31 = vld [vmem:[%s8194_s15 + $0x480] sm:$0xff]  ;;  %v496_v59 = vld [vmem:[%s8194_s15 + $0x548] sm:$0xff]  ;;  %v7120_v63 = vcombine.low %v488_v50, %v492_v51 }
  0x41   : > { %v475_v32 = vld [vmem:[%s8194_s15 + $0x4a0] sm:$0xff]  ;;  %v500_v61 = vld [vmem:[%s8194_s15 + $0x568] sm:$0xff] }
  0x42   : > { %v7102_v43 = vcombine.low %v471_v31, %v475_v32  ;;  %v504_v5 = vld [vmem:[%s8194_s15 + $0x588] sm:$0xff]  ;;  %v7128_v8 = vcombine.low %v496_v59, %v500_v61 }
  0x43   : > { %3878 = vmatpush1.bf16.msra.mxu0 %v7038_v37  ;;  %4083 = vmatpush1.bf16.msra.mxu1 %v7040_v38  ;;  %v7103_v37 = vcombine.high %v471_v31, %v475_v32  ;;  %v7105_v38 = vcombine.high %v472_v0, %v476_v34  ;;  %v508_v6 = vld [vmem:[%s8194_s15 + $0x5a8] sm:$0xff] }
  0x44   : > { %3879 = vmatprep.subr.bf16.mxu0 %v7047_v39  ;;  %4084 = vmatprep.subr.bf16.mxu1 %v7049_v40  ;;  %v479_v39 = vld [vmem:[%s8194_s15 + $0x4c0] sm:$0xff]  ;;  %v512_v14 = vld [vmem:[%s8194_s15 + $0x5c8] sm:$0xff]  ;;  %v7136_v17 = vcombine.low %v504_v5, %v508_v6 }
  0x45   : > { %v483_v40 = vld [vmem:[%s8194_s15 + $0x4e0] sm:$0xff]  ;;  %v516_v15 = vld [vmem:[%s8194_s15 + $0x5e8] sm:$0xff] }
  0x46   : > { %v7110_v52 = vcombine.low %v479_v39, %v483_v40  ;;  %v520_v22 = vld [vmem:[%s8194_s15 + $0x608] sm:$0xff]  ;;  %v7144_v26 = vcombine.low %v512_v14, %v516_v15 }
  0x47   : > { %3880 = vmatpush1.bf16.msra.mxu0 %v7046_v46  ;;  %4085 = vmatpush1.bf16.msra.mxu1 %v7048_v47  ;;  %v7111_v46 = vcombine.high %v479_v39, %v483_v40  ;;  %v7113_v47 = vcombine.high %v480_v41, %v484_v42  ;;  %v524_v23 = vld [vmem:[%s8194_s15 + $0x628] sm:$0xff] }
  0x48   : > { %3881 = vmatprep.subr.bf16.mxu0 %v7055_v48  ;;  %4086 = vmatprep.subr.bf16.mxu1 %v7057_v49  ;;  %v487_v48 = vld [vmem:[%s8194_s15 + $0x500] sm:$0xff]  ;;  %v528_v31 = vld [vmem:[%s8194_s15 + $0x648] sm:$0xff]  ;;  %v7152_v34 = vcombine.low %v520_v22, %v524_v23 }
  0x49   : > { %v491_v49 = vld [vmem:[%s8194_s15 + $0x520] sm:$0xff]  ;;  %v532_v32 = vld [vmem:[%s8194_s15 + $0x668] sm:$0xff] }
  0x4a   : > { %v7118_v62 = vcombine.low %v487_v48, %v491_v49  ;;  %v536_v39 = vld [vmem:[%s8194_s15 + $0x688] sm:$0xff]  ;;  %v7160_v42 = vcombine.low %v528_v31, %v532_v32 }
  0x4b   : > { %3882 = vmatpush1.bf16.msra.mxu0 %v7054_v55  ;;  %4087 = vmatpush1.bf16.msra.mxu1 %v7056_v56  ;;  %v7119_v55 = vcombine.high %v487_v48, %v491_v49  ;;  %v7121_v56 = vcombine.high %v488_v50, %v492_v51  ;;  %v540_v40 = vld [vmem:[%s8194_s15 + $0x6a8] sm:$0xff] }
  0x4c   : > { %3883 = vmatprep.subr.bf16.mxu0 %v7063_v57  ;;  %4088 = vmatprep.subr.bf16.mxu1 %v7065_v58  ;;  %v495_v57 = vld [vmem:[%s8194_s15 + $0x540] sm:$0xff]  ;;  %v544_v48 = vld [vmem:[%s8194_s15 + $0x6c8] sm:$0xff]  ;;  %v7168_v51 = vcombine.low %v536_v39, %v540_v40 }
  0x4d   : > { %v499_v58 = vld [vmem:[%s8194_s15 + $0x560] sm:$0xff]  ;;  %v548_v49 = vld [vmem:[%s8194_s15 + $0x6e8] sm:$0xff] }
  0x4e   : > { %v7126_v7 = vcombine.low %v495_v57, %v499_v58 }
  0x4f   : > { %3884 = vmatpush1.bf16.msra.mxu0 %v7062_v1  ;;  %4089 = vmatpush1.bf16.msra.mxu1 %v7064_v2  ;;  %v7127_v1 = vcombine.high %v495_v57, %v499_v58  ;;  %v7129_v2 = vcombine.high %v496_v59, %v500_v61  ;;  %v552_v57 = vld [vmem:[%s8194_s15 + $0x708] sm:$0xff]  ;;  %v7176_v61 = vcombine.low %v544_v48, %v548_v49 }
  0x50   : > { %3885 = vmatprep.subr.bf16.mxu0 %v7071_v3  ;;  %4090 = vmatprep.subr.bf16.mxu1 %v7073_v4  ;;  %v503_v3 = vld [vmem:[%s8194_s15 + $0x580] sm:$0xff]  ;;  %v556_v58 = vld [vmem:[%s8194_s15 + $0x728] sm:$0xff] }
  0x51   : > { %v507_v4 = vld [vmem:[%s8194_s15 + $0x5a0] sm:$0xff] }
  0x52   : > { %v7134_v16 = vcombine.low %v503_v3, %v507_v4 }
  0x53   : > { %3886 = vmatpush1.bf16.msra.mxu0 %v7070_v9  ;;  %4091 = vmatpush1.bf16.msra.mxu1 %v7072_v11  ;;  %v7135_v9 = vcombine.high %v503_v3, %v507_v4  ;;  %v7137_v11 = vcombine.high %v504_v5, %v508_v6  ;;  %v560_v3 = vld [vmem:[%s8194_s15 + $0x748] sm:$0xff]  ;;  %v7184_v6 = vcombine.low %v552_v57, %v556_v58 }
  0x54   : > { %3887 = vmatprep.subr.bf16.mxu0 %v7079_v12  ;;  %4092 = vmatprep.subr.bf16.mxu1 %v7081_v13  ;;  %v511_v12 = vld [vmem:[%s8194_s15 + $0x5c0] sm:$0xff]  ;;  %v564_v4 = vld [vmem:[%s8194_s15 + $0x768] sm:$0xff] }
  0x55   : > { %v515_v13 = vld [vmem:[%s8194_s15 + $0x5e0] sm:$0xff] }
  0x56   : > { %v7142_v25 = vcombine.low %v511_v12, %v515_v13 }
  0x57   : > { %3888 = vmatpush1.bf16.msra.mxu0 %v7078_v18  ;;  %4093 = vmatpush1.bf16.msra.mxu1 %v7080_v19  ;;  %v7143_v18 = vcombine.high %v511_v12, %v515_v13  ;;  %v7145_v19 = vcombine.high %v512_v14, %v516_v15  ;;  %v568_v12 = vld [vmem:[%s8194_s15 + $0x788] sm:$0xff]  ;;  %v7192_v15 = vcombine.low %v560_v3, %v564_v4 }
  0x58   : > { %3898 = vmatprep.subr.bf16.mxu0 %v7087_v20  ;;  %4103 = vmatprep.subr.bf16.mxu1 %v7089_v21  ;;  %v519_v20 = vld [vmem:[%s8194_s15 + $0x600] sm:$0xff]  ;;  %v572_v13 = vld [vmem:[%s8194_s15 + $0x7a8] sm:$0xff] }
  0x59   : > { %v523_v21 = vld [vmem:[%s8194_s15 + $0x620] sm:$0xff] }
  0x5a   : > { %3890 = vmatmul.mubr.bf16.vlgmr.msra.gmra.mrb[0].mxu0 %v8288_v24  ;;  %4095 = vmatmul.mubr.bf16.vlgmr.msra.gmra.mrb[0].mxu1 %v8288_v24  ;;  %v7150_v0 = vcombine.low %v519_v20, %v523_v21 }
  0x5b   : > { %3899 = vmatpush1.bf16.msra.mxu0 %v7086_v27  ;;  %4104 = vmatpush1.bf16.msra.mxu1 %v7088_v28  ;;  %v7151_v27 = vcombine.high %v519_v20, %v523_v21  ;;  %v7153_v28 = vcombine.high %v520_v22, %v524_v23  ;;  %v905_v20 = vcombine.high %v8231_v60, %v8231_v60  ;;  %v576_v21 = vld [vmem:[%s8194_s15 + $0x7c8] sm:$0xff] }
  0x5c   : > { %3900 = vmatprep.subr.bf16.mxu0 %v7095_v29  ;;  %4105 = vmatprep.subr.bf16.mxu1 %v7097_v30  ;;  %v527_v29 = vld [vmem:[%s8194_s15 + $0x640] sm:$0xff]  ;;  %v580_v22 = vld [vmem:[%s8194_s15 + $0x7e8] sm:$0xff] }
  0x5d   : > { %3930 = vmatprep.mubr.bf16.mxu0 %v8296_v33  ;;  %4135 = vmatprep.mubr.bf16.mxu1 %v8296_v33  ;;  %v531_v30 = vld [vmem:[%s8194_s15 + $0x660] sm:$0xff]  ;;  %v584_v60 = vld [vmem:[%s8194_s15 + $0x808] sm:$0xff] }
  0x5e   : > { %v7158_v41 = vcombine.low %v527_v29, %v531_v30 }
  0x5f   : > { %3901 = vmatpush1.bf16.msra.mxu0 %v7094_v35  ;;  %4106 = vmatpush1.bf16.msra.mxu1 %v7096_v36  ;;  %v7159_v35 = vcombine.high %v527_v29, %v531_v30  ;;  %v7161_v36 = vcombine.high %v528_v31, %v532_v32  ;;  %v587_v29 = vld [vmem:[%s8194_s15 + $0x820] sm:$0xff]  ;;  %v8361_v30 = vrot.slane %v905_v20, %v8226_v54  ;;  %v588_v31 = vld [vmem:[%s8194_s15 + $0x828] sm:$0xff] }
  0x60   : > { %3902 = vmatprep.subr.bf16.mxu0 %v7103_v37  ;;  %4107 = vmatprep.subr.bf16.mxu1 %v7105_v38  ;;  %v535_v37 = vld [vmem:[%s8194_s15 + $0x680] sm:$0xff] }
  0x61   : > { %v539_v38 = vld [vmem:[%s8194_s15 + $0x6a0] sm:$0xff] }
  0x62   : > { %v7166_v50 = vcombine.low %v535_v37, %v539_v38  ;;  %v631_v20 = vld [vmem:[%s8194_s15 + $0x980] sm:$0xff] }
  0x63   : > { %3903 = vmatpush1.bf16.msra.mxu0 %v7102_v43  ;;  %4108 = vmatpush1.bf16.msra.mxu1 %v7104_v44  ;;  %v7167_v43 = vcombine.high %v535_v37, %v539_v38  ;;  %v7169_v44 = vcombine.high %v536_v39, %v540_v40  ;;  %v595_v37 = vld [vmem:[%s8194_s15 + $0x860] sm:$0xff]  ;;  %v921_v38 = vcombine.high %v8361_v30, %v8361_v30  ;;  %v592_v40 = vld [vmem:[%s8194_s15 + $0x848] sm:$0xff] }
  0x64   : > { %3904 = vmatprep.subr.bf16.mxu0 %v7111_v46  ;;  %4109 = vmatprep.subr.bf16.mxu1 %v7113_v47  ;;  %v543_v46 = vld [vmem:[%s8194_s15 + $0x6c0] sm:$0xff]  ;;  %v8371_v39 = vcombine.high %v8288_v24, %v8288_v24 }
  0x65   : > { %v547_v47 = vld [vmem:[%s8194_s15 + $0x6e0] sm:$0xff] }
  0x66   : > { %v7174_v59 = vcombine.low %v543_v46, %v547_v47 }
  0x67   : > { %3905 = vmatpush1.bf16.msra.mxu0 %v7110_v52  ;;  %4110 = vmatpush1.bf16.msra.mxu1 %v7112_v53  ;;  %v7175_v52 = vcombine.high %v543_v46, %v547_v47  ;;  %v7177_v53 = vcombine.high %v544_v48, %v548_v49  ;;  %v599_v47 = vld [vmem:[%s8194_s15 + $0x880] sm:$0xff]  ;;  %v8378_v49 = vrot.slane %v921_v38, %v8226_v54 }
  0x68   : > { %3906 = vmatprep.subr.bf16.mxu0 %v7119_v55  ;;  %4111 = vmatprep.subr.bf16.mxu1 %v7121_v56  ;;  %v551_v55 = vld [vmem:[%s8194_s15 + $0x700] sm:$0xff] }
  0x69   : > { %v555_v56 = vld [vmem:[%s8194_s15 + $0x720] sm:$0xff] }
  0x6a   : > { %v7182_v5 = vcombine.low %v551_v55, %v555_v56  ;;  %v603_v48 = vld [vmem:[%s8194_s15 + $0x8a0] sm:$0xff] }
  0x6b   : > { %3907 = vmatpush1.bf16.msra.mxu0 %v7118_v62  ;;  %4112 = vmatpush1.bf16.msra.mxu1 %v7120_v63  ;;  %v7183_v62 = vcombine.high %v551_v55, %v555_v56  ;;  %v7185_v63 = vcombine.high %v552_v57, %v556_v58  ;;  %v7231_v55 = vcombine.high %v599_v47, %v603_v48  ;;  %v607_v57 = vld [vmem:[%s8194_s15 + $0x8c0] sm:$0xff] }
  0x6c   : > { %3908 = vmatprep.subr.bf16.mxu0 %v7127_v1  ;;  %4113 = vmatprep.subr.bf16.mxu1 %v7129_v2  ;;  %v559_v1 = vld [vmem:[%s8194_s15 + $0x740] sm:$0xff] }
  0x6d   : > { %v563_v2 = vld [vmem:[%s8194_s15 + $0x760] sm:$0xff] }
  0x6e   : > { %v7190_v14 = vcombine.low %v559_v1, %v563_v2  ;;  %v611_v58 = vld [vmem:[%s8194_s15 + $0x8e0] sm:$0xff] }
  0x6f   : > { %3909 = vmatpush1.bf16.msra.mxu0 %v7126_v7  ;;  %4114 = vmatpush1.bf16.msra.mxu1 %v7128_v8  ;;  %v7191_v7 = vcombine.high %v559_v1, %v563_v2  ;;  %v7193_v8 = vcombine.high %v560_v3, %v564_v4  ;;  %v7239_v1 = vcombine.high %v607_v57, %v611_v58  ;;  %v615_v3 = vld [vmem:[%s8194_s15 + $0x900] sm:$0xff] }
  0x70   : > { %3910 = vmatprep.subr.bf16.mxu0 %v7135_v9  ;;  %4115 = vmatprep.subr.bf16.mxu1 %v7137_v11  ;;  %v567_v9 = vld [vmem:[%s8194_s15 + $0x780] sm:$0xff] }
  0x71   : > { %v571_v11 = vld [vmem:[%s8194_s15 + $0x7a0] sm:$0xff] }
  0x72   : > { %v7198_v23 = vcombine.low %v567_v9, %v571_v11  ;;  %v619_v4 = vld [vmem:[%s8194_s15 + $0x920] sm:$0xff] }
  0x73   : > { %3911 = vmatpush1.bf16.msra.mxu0 %v7134_v16  ;;  %4116 = vmatpush1.bf16.msra.mxu1 %v7136_v17  ;;  %v7199_v16 = vcombine.high %v567_v9, %v571_v11  ;;  %v7201_v17 = vcombine.high %v568_v12, %v572_v13  ;;  %v7247_v9 = vcombine.high %v615_v3, %v619_v4  ;;  %v651_v38 = vld [vmem:[%s8194_s15 + $0xa20] sm:$0xff] }
  0x74   : > { %3912 = vmatprep.subr.bf16.mxu0 %v7143_v18  ;;  %4117 = vmatprep.subr.bf16.mxu1 %v7145_v19  ;;  %v575_v18 = vld [vmem:[%s8194_s15 + $0x7c0] sm:$0xff] }
  0x75   : > { %v579_v19 = vld [vmem:[%s8194_s15 + $0x7e0] sm:$0xff] }
  0x76   : > { %v7206_v32 = vcombine.low %v575_v18, %v579_v19 }
  0x77   : > { %3913 = vmatpush1.bf16.msra.mxu0 %v7142_v25  ;;  %4118 = vmatpush1.bf16.msra.mxu1 %v7144_v26  ;;  %v7200_v25 = vcombine.low %v568_v12, %v572_v13  ;;  %v7207_v26 = vcombine.high %v575_v18, %v579_v19  ;;  %v623_v12 = vld [vmem:[%s8194_s15 + $0x940] sm:$0xff] }
  0x78   : > { %3914 = vmatprep.subr.bf16.mxu0 %v7151_v27  ;;  %4119 = vmatprep.subr.bf16.mxu1 %v7153_v28  ;;  %v7209_v27 = vcombine.high %v576_v21, %v580_v22  ;;  %v583_v28 = vld [vmem:[%s8194_s15 + $0x800] sm:$0xff] }
  0x79   : > { %v627_v13 = vld [vmem:[%s8194_s15 + $0x960] sm:$0xff] }
  0x7a   : > { %v7255_v18 = vcombine.high %v623_v12, %v627_v13 }
  0x7b   : > { %3915 = vmatpush1.bf16.msra.mxu0 %v7150_v0  ;;  %4120 = vmatpush1.bf16.msra.mxu1 %v7152_v34  ;;  %v7208_v0 = vcombine.low %v576_v21, %v580_v22  ;;  %v7215_v34 = vcombine.high %v583_v28, %v587_v29  ;;  %v635_v21 = vld [vmem:[%s8194_s15 + $0x9a0] sm:$0xff]  ;;  %v632_v22 = vld [vmem:[%s8194_s15 + $0x988] sm:$0xff] }
  0x7c   : > { %3916 = vmatprep.subr.bf16.mxu0 %v7159_v35  ;;  %4121 = vmatprep.subr.bf16.mxu1 %v7161_v36  ;;  %v7217_v35 = vcombine.high %v584_v60, %v588_v31  ;;  %v591_v36 = vld [vmem:[%s8194_s15 + $0x840] sm:$0xff] }
  0x7f   : > { %3917 = vmatpush1.bf16.msra.mxu0 %v7158_v41  ;;  %4122 = vmatpush1.bf16.msra.mxu1 %v7160_v42  ;;  %v596_v41 = vld [vmem:[%s8194_s15 + $0x868] sm:$0xff]  ;;  %v7214_v42 = vcombine.low %v583_v28, %v587_v29  ;;  %v639_v29 = vld [vmem:[%s8194_s15 + $0x9c0] sm:$0xff] }
  0x80   : > { %3918 = vmatprep.subr.bf16.mxu0 %v7167_v43  ;;  %4123 = vmatprep.subr.bf16.mxu1 %v7169_v44  ;;  %v7216_v43 = vcombine.low %v584_v60, %v588_v31  ;;  %v7223_v44 = vcombine.high %v591_v36, %v595_v37  ;;  %v7225_v46 = vcombine.high %v592_v40, %v596_v41  ;;  %v643_v60 = vld [vmem:[%s8194_s15 + $0x9e0] sm:$0xff]  ;;  %v640_v31 = vld [vmem:[%s8194_s15 + $0x9c8] sm:$0xff] }
  0x83   : > { %3919 = vmatpush1.bf16.msra.mxu0 %v7166_v50  ;;  %4124 = vmatpush1.bf16.msra.mxu1 %v7168_v51  ;;  %v600_v50 = vld [vmem:[%s8194_s15 + $0x888] sm:$0xff] }
  0x84   : > { %3920 = vmatprep.subr.bf16.mxu0 %v7175_v52  ;;  %4125 = vmatprep.subr.bf16.mxu1 %v7177_v53  ;;  %v604_v51 = vld [vmem:[%s8194_s15 + $0x8a8] sm:$0xff]  ;;  %v7222_v52 = vcombine.low %v591_v36, %v595_v37  ;;  %v7224_v53 = vcombine.low %v592_v40, %v596_v41  ;;  %v647_v37 = vld [vmem:[%s8194_s15 + $0xa00] sm:$0xff] }
  0x85   : > { %v7233_v56 = vcombine.high %v600_v50, %v604_v51  ;;  %v648_v40 = vld [vmem:[%s8194_s15 + $0xa08] sm:$0xff] }
  0x86   : > { %v652_v41 = vld [vmem:[%s8194_s15 + $0xa28] sm:$0xff] }
  0x87   : > { %3921 = vmatpush1.bf16.msra.mxu0 %v7174_v59  ;;  %4126 = vmatpush1.bf16.msra.mxu1 %v7176_v61  ;;  %v608_v59 = vld [vmem:[%s8194_s15 + $0x8c8] sm:$0xff] }
  0x88   : > { %3922 = vmatprep.subr.bf16.mxu0 %v7183_v62  ;;  %4127 = vmatprep.subr.bf16.mxu1 %v7185_v63  ;;  %v612_v61 = vld [vmem:[%s8194_s15 + $0x8e8] sm:$0xff]  ;;  %v7230_v62 = vcombine.low %v599_v47, %v603_v48  ;;  %v7232_v63 = vcombine.low %v600_v50, %v604_v51  ;;  %v655_v47 = vld [vmem:[%s8194_s15 + $0xa40] sm:$0xff] }
  0x89   : > { %v7241_v2 = vcombine.high %v608_v59, %v612_v61  ;;  %v659_v48 = vld [vmem:[%s8194_s15 + $0xa60] sm:$0xff]  ;;  %v656_v50 = vld [vmem:[%s8194_s15 + $0xa48] sm:$0xff] }
  0x8a   : > { %v660_v51 = vld [vmem:[%s8194_s15 + $0xa68] sm:$0xff] }
  0x8b   : > { %3923 = vmatpush1.bf16.msra.mxu0 %v7182_v5  ;;  %4128 = vmatpush1.bf16.msra.mxu1 %v7184_v6  ;;  %v616_v5 = vld [vmem:[%s8194_s15 + $0x908] sm:$0xff] }
  0x8c   : > { %3924 = vmatprep.subr.bf16.mxu0 %v7191_v7  ;;  %4129 = vmatprep.subr.bf16.mxu1 %v7193_v8  ;;  %v620_v6 = vld [vmem:[%s8194_s15 + $0x928] sm:$0xff]  ;;  %v7238_v7 = vcombine.low %v607_v57, %v611_v58  ;;  %v7240_v8 = vcombine.low %v608_v59, %v612_v61  ;;  %v663_v57 = vld [vmem:[%s8194_s15 + $0xa80] sm:$0xff] }
  0x8d   : > { %v7249_v11 = vcombine.high %v616_v5, %v620_v6  ;;  %v667_v58 = vld [vmem:[%s8194_s15 + $0xaa0] sm:$0xff]  ;;  %v664_v59 = vld [vmem:[%s8194_s15 + $0xa88] sm:$0xff] }
  0x8e   : > { %v668_v61 = vld [vmem:[%s8194_s15 + $0xaa8] sm:$0xff] }
  0x8f   : > { %3925 = vmatpush1.bf16.msra.mxu0 %v7190_v14  ;;  %4130 = vmatpush1.bf16.msra.mxu1 %v7192_v15  ;;  %v624_v14 = vld [vmem:[%s8194_s15 + $0x948] sm:$0xff] }
  0x90   : > { %3926 = vmatprep.subr.bf16.mxu0 %v7199_v16  ;;  %4131 = vmatprep.subr.bf16.mxu1 %v7201_v17  ;;  %v628_v15 = vld [vmem:[%s8194_s15 + $0x968] sm:$0xff]  ;;  %v7246_v16 = vcombine.low %v615_v3, %v619_v4  ;;  %v7248_v17 = vcombine.low %v616_v5, %v620_v6  ;;  %v671_v3 = vld [vmem:[%s8194_s15 + $0xac0] sm:$0xff] }
  0x91   : > { %v7257_v19 = vcombine.high %v624_v14, %v628_v15  ;;  %v675_v4 = vld [vmem:[%s8194_s15 + $0xae0] sm:$0xff]  ;;  %v672_v5 = vld [vmem:[%s8194_s15 + $0xac8] sm:$0xff] }
  0x92   : > { %v676_v6 = vld [vmem:[%s8194_s15 + $0xae8] sm:$0xff] }
  0x93   : > { %3927 = vmatpush1.bf16.msra.mxu0 %v7198_v23  ;;  %4132 = vmatpush1.bf16.msra.mxu1 %v7200_v25  ;;  %v636_v23 = vld [vmem:[%s8194_s15 + $0x9a8] sm:$0xff]  ;;  %v7254_v25 = vcombine.low %v623_v12, %v627_v13  ;;  %v679_v12 = vld [vmem:[%s8194_s15 + $0xb00] sm:$0xff] }
  0x94   : > { %3928 = vmatprep.subr.bf16.mxu0 %v7207_v26  ;;  %4133 = vmatprep.subr.bf16.mxu1 %v7209_v27  ;;  %v7256_v26 = vcombine.low %v624_v14, %v628_v15  ;;  %v7263_v27 = vcombine.high %v631_v20, %v635_v21  ;;  %v7265_v28 = vcombine.high %v632_v22, %v636_v23  ;;  %v683_v13 = vld [vmem:[%s8194_s15 + $0xb20] sm:$0xff]  ;;  %v680_v14 = vld [vmem:[%s8194_s15 + $0xb08] sm:$0xff] }
  0x95   : > { %v684_v15 = vld [vmem:[%s8194_s15 + $0xb28] sm:$0xff] }
  0x97   : > { %3929 = vmatpush1.bf16.msra.mxu0 %v7206_v32  ;;  %4134 = vmatpush1.bf16.msra.mxu1 %v7208_v0  ;;  %v644_v32 = vld [vmem:[%s8194_s15 + $0x9e8] sm:$0xff]  ;;  %v7262_v0 = vcombine.low %v631_v20, %v635_v21  ;;  %v687_v20 = vld [vmem:[%s8194_s15 + $0xb40] sm:$0xff] }
  0x98   : > { %3939 = vmatprep.subr.bf16.mxu0 %v7215_v34  ;;  %4144 = vmatprep.subr.bf16.mxu1 %v7217_v35  ;;  %v7264_v34 = vcombine.low %v632_v22, %v636_v23  ;;  %v7271_v35 = vcombine.high %v639_v29, %v643_v60  ;;  %v7273_v36 = vcombine.high %v640_v31, %v644_v32  ;;  %v691_v21 = vld [vmem:[%s8194_s15 + $0xb60] sm:$0xff]  ;;  %v688_v22 = vld [vmem:[%s8194_s15 + $0xb48] sm:$0xff] }
  0x99   : > { %v692_v23 = vld [vmem:[%s8194_s15 + $0xb68] sm:$0xff] }
  0x9a   : > { %3931 = vmatmul.mubr.bf16.vlgmr.msra.gmra.mrb[0].mxu0 %v8371_v39  ;;  %4136 = vmatmul.mubr.bf16.vlgmr.msra.gmra.mrb[0].mxu1 %v8371_v39 }
  0x9b   : > { %3940 = vmatpush1.bf16.msra.mxu0 %v7214_v42  ;;  %4145 = vmatpush1.bf16.msra.mxu1 %v7216_v43  ;;  %v7270_v42 = vcombine.low %v639_v29, %v643_v60  ;;  %v7272_v43 = vcombine.low %v640_v31, %v644_v32  ;;  %v695_v29 = vld [vmem:[%s8194_s15 + $0xb80] sm:$0xff]  ;;  %v696_v31 = vld [vmem:[%s8194_s15 + $0xb88] sm:$0xff] }
  0x9c   : > { %3941 = vmatprep.subr.bf16.mxu0 %v7223_v44  ;;  %4146 = vmatprep.subr.bf16.mxu1 %v7225_v46  ;;  %v7279_v44 = vcombine.high %v647_v37, %v651_v38  ;;  %v7281_v46 = vcombine.high %v648_v40, %v652_v41  ;;  %v699_v60 = vld [vmem:[%s8194_s15 + $0xba0] sm:$0xff]  ;;  %v700_v32 = vld [vmem:[%s8194_s15 + $0xba8] sm:$0xff] }
  0x9d   : > { %3971 = vmatprep.mubr.bf16.mxu0 %v8378_v49  ;;  %4176 = vmatprep.mubr.bf16.mxu1 %v8378_v49 }
  0x9f   : > { %3942 = vmatpush1.bf16.msra.mxu0 %v7222_v52  ;;  %4147 = vmatpush1.bf16.msra.mxu1 %v7224_v53  ;;  %v7278_v52 = vcombine.low %v647_v37, %v651_v38  ;;  %v7280_v53 = vcombine.low %v648_v40, %v652_v41  ;;  %v703_v37 = vld [vmem:[%s8194_s15 + $0xbc0] sm:$0xff]  ;;  %v704_v40 = vld [vmem:[%s8194_s15 + $0xbc8] sm:$0xff] }
  0xa0   : > { %3943 = vmatprep.subr.bf16.mxu0 %v7231_v55  ;;  %4148 = vmatprep.subr.bf16.mxu1 %v7233_v56  ;;  %v7287_v55 = vcombine.high %v655_v47, %v659_v48  ;;  %v7289_v56 = vcombine.high %v656_v50, %v660_v51  ;;  %v707_v38 = vld [vmem:[%s8194_s15 + $0xbe0] sm:$0xff]  ;;  %v708_v41 = vld [vmem:[%s8194_s15 + $0xbe8] sm:$0xff] }
  0xa3   : > { %3944 = vmatpush1.bf16.msra.mxu0 %v7230_v62  ;;  %4149 = vmatpush1.bf16.msra.mxu1 %v7232_v63  ;;  %v7286_v62 = vcombine.low %v655_v47, %v659_v48  ;;  %v7288_v63 = vcombine.low %v656_v50, %v660_v51  ;;  %v711_v47 = vld [vmem:[%s8194_s15 + $0xc00] sm:$0xff]  ;;  %v712_v50 = vld [vmem:[%s8194_s15 + $0xc08] sm:$0xff] }
  0xa4   : > { %3945 = vmatprep.subr.bf16.mxu0 %v7239_v1  ;;  %4150 = vmatprep.subr.bf16.mxu1 %v7241_v2  ;;  %v7295_v1 = vcombine.high %v663_v57, %v667_v58  ;;  %v7297_v2 = vcombine.high %v664_v59, %v668_v61  ;;  %v715_v48 = vld [vmem:[%s8194_s15 + $0xc20] sm:$0xff]  ;;  %v716_v51 = vld [vmem:[%s8194_s15 + $0xc28] sm:$0xff] }
  0xa7   : > { %3946 = vmatpush1.bf16.msra.mxu0 %v7238_v7  ;;  %4151 = vmatpush1.bf16.msra.mxu1 %v7240_v8  ;;  %v7294_v7 = vcombine.low %v663_v57, %v667_v58  ;;  %v7296_v8 = vcombine.low %v664_v59, %v668_v61  ;;  %v719_v57 = vld [vmem:[%s8194_s15 + $0xc40] sm:$0xff]  ;;  %v8446_v59 = vrot.slane %v8361_v30, %v8226_v54  ;;  %v720_v61 = vld [vmem:[%s8194_s15 + $0xc48] sm:$0xff] }
  0xa8   : > { %3947 = vmatprep.subr.bf16.mxu0 %v7247_v9  ;;  %4152 = vmatprep.subr.bf16.mxu1 %v7249_v11  ;;  %v7303_v9 = vcombine.high %v671_v3, %v675_v4  ;;  %v7305_v11 = vcombine.high %v672_v5, %v676_v6  ;;  %v723_v58 = vld [vmem:[%s8194_s15 + $0xc60] sm:$0xff]  ;;  %v728_v30 = vld [vmem:[%s8194_s15 + $0xc88] sm:$0xff] }
  0xab   : > { %3948 = vmatpush1.bf16.msra.mxu0 %v7246_v16  ;;  %4153 = vmatpush1.bf16.msra.mxu1 %v7248_v17  ;;  %v7302_v16 = vcombine.low %v671_v3, %v675_v4  ;;  %v7304_v17 = vcombine.low %v672_v5, %v676_v6  ;;  %v727_v4 = vld [vmem:[%s8194_s15 + $0xc80] sm:$0xff]  ;;  %v8454_v6 = vcombine.high %v8378_v49, %v8378_v49 }
  0xac   : > { %3949 = vmatprep.subr.bf16.mxu0 %v7255_v18  ;;  %4154 = vmatprep.subr.bf16.mxu1 %v7257_v19  ;;  %v7311_v18 = vcombine.high %v679_v12, %v683_v13  ;;  %v7313_v19 = vcombine.high %v680_v14, %v684_v15  ;;  %v731_v5 = vld [vmem:[%s8194_s15 + $0xca0] sm:$0xff] }
  0xaf   : > { %3950 = vmatpush1.bf16.msra.mxu0 %v7254_v25  ;;  %4155 = vmatpush1.bf16.msra.mxu1 %v7256_v26  ;;  %v7310_v25 = vcombine.low %v679_v12, %v683_v13  ;;  %v7312_v26 = vcombine.low %v680_v14, %v684_v15  ;;  %v735_v13 = vld [vmem:[%s8194_s15 + $0xcc0] sm:$0xff]  ;;  %v736_v15 = vld [vmem:[%s8194_s15 + $0xcc8] sm:$0xff] }
  0xb0   : > { %3951 = vmatprep.subr.bf16.mxu0 %v7263_v27  ;;  %4156 = vmatprep.subr.bf16.mxu1 %v7265_v28  ;;  %v7319_v27 = vcombine.high %v687_v20, %v691_v21  ;;  %v7321_v28 = vcombine.high %v688_v22, %v692_v23  ;;  %v739_v14 = vld [vmem:[%s8194_s15 + $0xce0] sm:$0xff] }
  0xb3   : > { %3952 = vmatpush1.bf16.msra.mxu0 %v7262_v0  ;;  %4157 = vmatpush1.bf16.msra.mxu1 %v7264_v34  ;;  %v7318_v0 = vcombine.low %v687_v20, %v691_v21  ;;  %v7320_v34 = vcombine.low %v688_v22, %v692_v23  ;;  %v743_v21 = vld [vmem:[%s8194_s15 + $0xd00] sm:$0xff]  ;;  %v744_v23 = vld [vmem:[%s8194_s15 + $0xd08] sm:$0xff] }
  0xb4   : > { %3953 = vmatprep.subr.bf16.mxu0 %v7271_v35  ;;  %4158 = vmatprep.subr.bf16.mxu1 %v7273_v36  ;;  %v7327_v35 = vcombine.high %v695_v29, %v699_v60  ;;  %v7329_v36 = vcombine.high %v696_v31, %v700_v32  ;;  %v747_v22 = vld [vmem:[%s8194_s15 + $0xd20] sm:$0xff] }
  0xb7   : > { %3954 = vmatpush1.bf16.msra.mxu0 %v7270_v42  ;;  %4159 = vmatpush1.bf16.msra.mxu1 %v7272_v43  ;;  %v7326_v42 = vcombine.low %v695_v29, %v699_v60  ;;  %v7328_v43 = vcombine.low %v696_v31, %v700_v32  ;;  %v751_v60 = vld [vmem:[%s8194_s15 + $0xd40] sm:$0xff]  ;;  %v752_v32 = vld [vmem:[%s8194_s15 + $0xd48] sm:$0xff] }
  0xb8   : > { %3955 = vmatprep.subr.bf16.mxu0 %v7279_v44  ;;  %4160 = vmatprep.subr.bf16.mxu1 %v7281_v46  ;;  %v7335_v44 = vcombine.high %v703_v37, %v707_v38  ;;  %v7337_v46 = vcombine.high %v704_v40, %v708_v41  ;;  %v755_v31 = vld [vmem:[%s8194_s15 + $0xd60] sm:$0xff] }
  0xbb   : > { %3956 = vmatpush1.bf16.msra.mxu0 %v7278_v52  ;;  %4161 = vmatpush1.bf16.msra.mxu1 %v7280_v53  ;;  %v7334_v52 = vcombine.low %v703_v37, %v707_v38  ;;  %v7336_v53 = vcombine.low %v704_v40, %v708_v41  ;;  %v759_v38 = vld [vmem:[%s8194_s15 + $0xd80] sm:$0xff]  ;;  %v760_v41 = vld [vmem:[%s8194_s15 + $0xd88] sm:$0xff] }
  0xbc   : > { %3957 = vmatprep.subr.bf16.mxu0 %v7287_v55  ;;  %4162 = vmatprep.subr.bf16.mxu1 %v7289_v56  ;;  %v7343_v55 = vcombine.high %v711_v47, %v715_v48  ;;  %v7345_v56 = vcombine.high %v712_v50, %v716_v51  ;;  %v763_v40 = vld [vmem:[%s8194_s15 + $0xda0] sm:$0xff] }
  0xbf   : > { %3958 = vmatpush1.bf16.msra.mxu0 %v7286_v62  ;;  %4163 = vmatpush1.bf16.msra.mxu1 %v7288_v63  ;;  %v724_v62 = vld [vmem:[%s8194_s15 + $0xc68] sm:$0xff]  ;;  %v7342_v63 = vcombine.low %v711_v47, %v715_v48  ;;  %v767_v48 = vld [vmem:[%s8194_s15 + $0xdc0] sm:$0xff] }
  0xc0   : > { %3959 = vmatprep.subr.bf16.mxu0 %v7295_v1  ;;  %4164 = vmatprep.subr.bf16.mxu1 %v7297_v2  ;;  %v7344_v1 = vcombine.low %v712_v50, %v716_v51  ;;  %v7351_v2 = vcombine.high %v719_v57, %v723_v58  ;;  %v7353_v3 = vcombine.high %v720_v61, %v724_v62  ;;  %v771_v50 = vld [vmem:[%s8194_s15 + $0xde0] sm:$0xff]  ;;  %v768_v51 = vld [vmem:[%s8194_s15 + $0xdc8] sm:$0xff] }
  0xc3   : > { %3960 = vmatpush1.bf16.msra.mxu0 %v7294_v7  ;;  %4165 = vmatpush1.bf16.msra.mxu1 %v7296_v8  ;;  %v732_v7 = vld [vmem:[%s8194_s15 + $0xca8] sm:$0xff]  ;;  %v7350_v8 = vcombine.low %v719_v57, %v723_v58  ;;  %v775_v58 = vld [vmem:[%s8194_s15 + $0xe00] sm:$0xff] }
  0xc4   : > { %3961 = vmatprep.subr.bf16.mxu0 %v7303_v9  ;;  %4166 = vmatprep.subr.bf16.mxu1 %v7305_v11  ;;  %v7352_v9 = vcombine.low %v720_v61, %v724_v62  ;;  %v7359_v11 = vcombine.high %v727_v4, %v731_v5  ;;  %v7361_v12 = vcombine.high %v728_v30, %v732_v7  ;;  %v779_v61 = vld [vmem:[%s8194_s15 + $0xe20] sm:$0xff]  ;;  %v776_v62 = vld [vmem:[%s8194_s15 + $0xe08] sm:$0xff] }
  0xc7   : > { %3962 = vmatpush1.bf16.msra.mxu0 %v7302_v16  ;;  %4167 = vmatpush1.bf16.msra.mxu1 %v7304_v17  ;;  %v740_v16 = vld [vmem:[%s8194_s15 + $0xce8] sm:$0xff]  ;;  %v7358_v17 = vcombine.low %v727_v4, %v731_v5  ;;  %v783_v5 = vld [vmem:[%s8194_s15 + $0xe40] sm:$0xff] }
  0xc8   : > { %3963 = vmatprep.subr.bf16.mxu0 %v7311_v18  ;;  %4168 = vmatprep.subr.bf16.mxu1 %v7313_v19  ;;  %v7360_v18 = vcombine.low %v728_v30, %v732_v7  ;;  %v7367_v19 = vcombine.high %v735_v13, %v739_v14  ;;  %v7369_v20 = vcombine.high %v736_v15, %v740_v16  ;;  %v787_v30 = vld [vmem:[%s8194_s15 + $0xe60] sm:$0xff]  ;;  %v784_v7 = vld [vmem:[%s8194_s15 + $0xe48] sm:$0xff] }
  0xcb   : > { %3964 = vmatpush1.bf16.msra.mxu0 %v7310_v25  ;;  %4169 = vmatpush1.bf16.msra.mxu1 %v7312_v26  ;;  %v748_v25 = vld [vmem:[%s8194_s15 + $0xd28] sm:$0xff]  ;;  %v7366_v26 = vcombine.low %v735_v13, %v739_v14  ;;  %v791_v14 = vld [vmem:[%s8194_s15 + $0xe80] sm:$0xff] }
  0xcc   : > { %3965 = vmatprep.subr.bf16.mxu0 %v7319_v27  ;;  %4170 = vmatprep.subr.bf16.mxu1 %v7321_v28  ;;  %v7368_v27 = vcombine.low %v736_v15, %v740_v16  ;;  %v7375_v28 = vcombine.high %v743_v21, %v747_v22  ;;  %v7377_v29 = vcombine.high %v744_v23, %v748_v25  ;;  %v795_v15 = vld [vmem:[%s8194_s15 + $0xea0] sm:$0xff]  ;;  %v792_v16 = vld [vmem:[%s8194_s15 + $0xe88] sm:$0xff] }
  0xcf   : > { %3966 = vmatpush1.bf16.msra.mxu0 %v7318_v0  ;;  %4171 = vmatpush1.bf16.msra.mxu1 %v7320_v34  ;;  %v756_v0 = vld [vmem:[%s8194_s15 + $0xd68] sm:$0xff]  ;;  %v7374_v34 = vcombine.low %v743_v21, %v747_v22  ;;  %v799_v22 = vld [vmem:[%s8194_s15 + $0xec0] sm:$0xff] }
  0xd0   : > { %3967 = vmatprep.subr.bf16.mxu0 %v7327_v35  ;;  %4172 = vmatprep.subr.bf16.mxu1 %v7329_v36  ;;  %v7376_v35 = vcombine.low %v744_v23, %v748_v25  ;;  %v7383_v36 = vcombine.high %v751_v60, %v755_v31  ;;  %v7385_v37 = vcombine.high %v752_v32, %v756_v0  ;;  %v803_v23 = vld [vmem:[%s8194_s15 + $0xee0] sm:$0xff]  ;;  %v800_v25 = vld [vmem:[%s8194_s15 + $0xec8] sm:$0xff] }
  0xd3   : > { %3968 = vmatpush1.bf16.msra.mxu0 %v7326_v42  ;;  %4173 = vmatpush1.bf16.msra.mxu1 %v7328_v43  ;;  %v764_v42 = vld [vmem:[%s8194_s15 + $0xda8] sm:$0xff]  ;;  %v7382_v43 = vcombine.low %v751_v60, %v755_v31  ;;  %v807_v31 = vld [vmem:[%s8194_s15 + $0xf00] sm:$0xff] }
  0xd4   : > { %3969 = vmatprep.subr.bf16.mxu0 %v7335_v44  ;;  %4174 = vmatprep.subr.bf16.mxu1 %v7337_v46  ;;  %v7384_v44 = vcombine.low %v752_v32, %v756_v0  ;;  %v7391_v46 = vcombine.high %v759_v38, %v763_v40  ;;  %v7393_v47 = vcombine.high %v760_v41, %v764_v42  ;;  %v811_v32 = vld [vmem:[%s8194_s15 + $0xf20] sm:$0xff]  ;;  %v808_v0 = vld [vmem:[%s8194_s15 + $0xf08] sm:$0xff] }
  0xd7   : > { %3970 = vmatpush1.bf16.msra.mxu0 %v7334_v52  ;;  %4175 = vmatpush1.bf16.msra.mxu1 %v7336_v53  ;;  %v772_v52 = vld [vmem:[%s8194_s15 + $0xde8] sm:$0xff]  ;;  %v7390_v53 = vcombine.low %v759_v38, %v763_v40  ;;  %v815_v40 = vld [vmem:[%s8194_s15 + $0xf40] sm:$0xff] }
  0xd8   : > { %3980 = vmatprep.subr.bf16.mxu0 %v7343_v55  ;;  %4185 = vmatprep.subr.bf16.mxu1 %v7345_v56  ;;  %v7392_v55 = vcombine.low %v760_v41, %v764_v42  ;;  %v7399_v56 = vcombine.high %v767_v48, %v771_v50  ;;  %v7401_v57 = vcombine.high %v768_v51, %v772_v52  ;;  %v819_v41 = vld [vmem:[%s8194_s15 + $0xf60] sm:$0xff]  ;;  %v816_v42 = vld [vmem:[%s8194_s15 + $0xf48] sm:$0xff] }
  0xda   : > { %3972 = vmatmul.mubr.bf16.vlgmr.msra.gmra.mrb[0].mxu0 %v8446_v59  ;;  %4177 = vmatmul.mubr.bf16.vlgmr.msra.gmra.mrb[0].mxu1 %v8446_v59 }
  0xdb   : > { %3981 = vmatpush1.bf16.msra.mxu0 %v7342_v63  ;;  %4186 = vmatpush1.bf16.msra.mxu1 %v7344_v1  ;;  %v780_v63 = vld [vmem:[%s8194_s15 + $0xe28] sm:$0xff]  ;;  %v7398_v1 = vcombine.low %v767_v48, %v771_v50  ;;  %v823_v50 = vld [vmem:[%s8194_s15 + $0xf80] sm:$0xff] }
  0xdc   : > { %3982 = vmatprep.subr.bf16.mxu0 %v7351_v2  ;;  %4187 = vmatprep.subr.bf16.mxu1 %v7353_v3  ;;  %v7400_v2 = vcombine.low %v768_v51, %v772_v52  ;;  %v7407_v3 = vcombine.high %v775_v58, %v779_v61  ;;  %v7409_v4 = vcombine.high %v776_v62, %v780_v63  ;;  %v827_v51 = vld [vmem:[%s8194_s15 + $0xfa0] sm:$0xff]  ;;  %v824_v52 = vld [vmem:[%s8194_s15 + $0xf88] sm:$0xff] }
  0xdd   : > { %4012 = vmatprep.mubr.bf16.mxu0 %v8454_v6  ;;  %4217 = vmatprep.mubr.bf16.mxu1 %v8454_v6 }
  0xdf   : > { %3983 = vmatpush1.bf16.msra.mxu0 %v7350_v8  ;;  %4188 = vmatpush1.bf16.msra.mxu1 %v7352_v9  ;;  %v788_v8 = vld [vmem:[%s8194_s15 + $0xe68] sm:$0xff]  ;;  %v7406_v9 = vcombine.low %v775_v58, %v779_v61  ;;  %v831_v61 = vld [vmem:[%s8194_s15 + $0xfc0] sm:$0xff] }
  0xe0   : > { %3984 = vmatprep.subr.bf16.mxu0 %v7359_v11  ;;  %4189 = vmatprep.subr.bf16.mxu1 %v7361_v12  ;;  %v7408_v11 = vcombine.low %v776_v62, %v780_v63  ;;  %v7415_v12 = vcombine.high %v783_v5, %v787_v30  ;;  %v7417_v13 = vcombine.high %v784_v7, %v788_v8  ;;  %v835_v62 = vld [vmem:[%s8194_s15 + $0xfe0] sm:$0xff]  ;;  %v832_v63 = vld [vmem:[%s8194_s15 + $0xfc8] sm:$0xff] }
  0xe3   : > { %3985 = vmatpush1.bf16.msra.mxu0 %v7358_v17  ;;  %4190 = vmatpush1.bf16.msra.mxu1 %v7360_v18  ;;  %v796_v17 = vld [vmem:[%s8194_s15 + $0xea8] sm:$0xff]  ;;  %v7414_v18 = vcombine.low %v783_v5, %v787_v30  ;;  %v839_v30 = vld [vmem:[%s8194_s15 + $0x1000] sm:$0xff] }
  0xe4   : > { %3986 = vmatprep.subr.bf16.mxu0 %v7367_v19  ;;  %4191 = vmatprep.subr.bf16.mxu1 %v7369_v20  ;;  %v7416_v19 = vcombine.low %v784_v7, %v788_v8  ;;  %v7423_v20 = vcombine.high %v791_v14, %v795_v15  ;;  %v7425_v21 = vcombine.high %v792_v16, %v796_v17  ;;  %v843_v7 = vld [vmem:[%s8194_s15 + $0x1020] sm:$0xff]  ;;  %v840_v8 = vld [vmem:[%s8194_s15 + $0x1008] sm:$0xff] }
  0xe7   : > { %3987 = vmatpush1.bf16.msra.mxu0 %v7366_v26  ;;  %4192 = vmatpush1.bf16.msra.mxu1 %v7368_v27  ;;  %v804_v26 = vld [vmem:[%s8194_s15 + $0xee8] sm:$0xff]  ;;  %v7422_v27 = vcombine.low %v791_v14, %v795_v15  ;;  %v847_v15 = vld [vmem:[%s8194_s15 + $0x1040] sm:$0xff] }
  0xe8   : > { %3988 = vmatprep.subr.bf16.mxu0 %v7375_v28  ;;  %4193 = vmatprep.subr.bf16.mxu1 %v7377_v29  ;;  %v7424_v28 = vcombine.low %v792_v16, %v796_v17  ;;  %v7431_v29 = vcombine.high %v799_v22, %v803_v23  ;;  %v7433_v60 = vcombine.high %v800_v25, %v804_v26  ;;  %v851_v16 = vld [vmem:[%s8194_s15 + $0x1060] sm:$0xff] }
  0xe9   : > { %v8522_v17 = vcombine.high %v8446_v59, %v8446_v59 }
  0xeb   : > { %3989 = vmatpush1.bf16.msra.mxu0 %v7374_v34  ;;  %4194 = vmatpush1.bf16.msra.mxu1 %v7376_v35  ;;  %v812_v34 = vld [vmem:[%s8194_s15 + $0xf28] sm:$0xff]  ;;  %v7430_v35 = vcombine.low %v799_v22, %v803_v23  ;;  %v7479_v22 = vcombine.high %v847_v15, %v851_v16 }
  0xec   : > { %3990 = vmatprep.subr.bf16.mxu0 %v7383_v36  ;;  %4195 = vmatprep.subr.bf16.mxu1 %v7385_v37  ;;  %v7432_v36 = vcombine.low %v800_v25, %v804_v26  ;;  %v7439_v37 = vcombine.high %v807_v31, %v811_v32  ;;  %v7441_v38 = vcombine.high %v808_v0, %v812_v34  ;;  %v855_v25 = vld [vmem:[%s8194_s15 + $0x1080] sm:$0xff] }
  0xed   : > { %v859_v26 = vld [vmem:[%s8194_s15 + $0x10a0] sm:$0xff] }
  0xef   : > { %3991 = vmatpush1.bf16.msra.mxu0 %v7382_v43  ;;  %4196 = vmatpush1.bf16.msra.mxu1 %v7384_v44  ;;  %v820_v43 = vld [vmem:[%s8194_s15 + $0xf68] sm:$0xff]  ;;  %v7438_v44 = vcombine.low %v807_v31, %v811_v32  ;;  %v7487_v31 = vcombine.high %v855_v25, %v859_v26 }
  0xf0   : > { %3992 = vmatprep.subr.bf16.mxu0 %v7391_v46  ;;  %4197 = vmatprep.subr.bf16.mxu1 %v7393_v47  ;;  %v7440_v46 = vcombine.low %v808_v0, %v812_v34  ;;  %v7447_v47 = vcombine.high %v815_v40, %v819_v41  ;;  %v7449_v48 = vcombine.high %v816_v42, %v820_v43  ;;  %v863_v0 = vld [vmem:[%s8194_s15 + $0x10c0] sm:$0xff] }
  0xf1   : > { %v867_v34 = vld [vmem:[%s8194_s15 + $0x10e0] sm:$0xff] }
  0xf3   : > { %3993 = vmatpush1.bf16.msra.mxu0 %v7390_v53  ;;  %4198 = vmatpush1.bf16.msra.mxu1 %v7392_v55  ;;  %v828_v53 = vld [vmem:[%s8194_s15 + $0xfa8] sm:$0xff]  ;;  %v7446_v55 = vcombine.low %v815_v40, %v819_v41  ;;  %v7495_v41 = vcombine.high %v863_v0, %v867_v34 }
  0xf4   : > { %3994 = vmatprep.subr.bf16.mxu0 %v7399_v56  ;;  %4199 = vmatprep.subr.bf16.mxu1 %v7401_v57  ;;  %v7448_v56 = vcombine.low %v816_v42, %v820_v43  ;;  %v7455_v57 = vcombine.high %v823_v50, %v827_v51  ;;  %v7457_v58 = vcombine.high %v824_v52, %v828_v53  ;;  %v871_v43 = vld [vmem:[%s8194_s15 + $0x1100] sm:$0xff] }
  0xf7   : > { %3995 = vmatpush1.bf16.msra.mxu0 %v7398_v1  ;;  %4200 = vmatpush1.bf16.msra.mxu1 %v7400_v2  ;;  %v836_v1 = vld [vmem:[%s8194_s15 + $0xfe8] sm:$0xff]  ;;  %v7454_v2 = vcombine.low %v823_v50, %v827_v51 }
  0xf8   : > { %3996 = vmatprep.subr.bf16.mxu0 %v7407_v3  ;;  %4201 = vmatprep.subr.bf16.mxu1 %v7409_v4  ;;  %v7456_v3 = vcombine.low %v824_v52, %v828_v53  ;;  %v7463_v4 = vcombine.high %v831_v61, %v835_v62  ;;  %v7465_v5 = vcombine.high %v832_v63, %v836_v1  ;;  %v879_v53 = vld [vmem:[%s8194_s15 + $0x1140] sm:$0xff] }
  0xfb   : > { %3997 = vmatpush1.bf16.msra.mxu0 %v7406_v9  ;;  %4202 = vmatpush1.bf16.msra.mxu1 %v7408_v11  ;;  %v844_v9 = vld [vmem:[%s8194_s15 + $0x1028] sm:$0xff]  ;;  %v7462_v11 = vcombine.low %v831_v61, %v835_v62 }
  0xfc   : > { %3998 = vmatprep.subr.bf16.mxu0 %v7415_v12  ;;  %4203 = vmatprep.subr.bf16.mxu1 %v7417_v13  ;;  %v7464_v12 = vcombine.low %v832_v63, %v836_v1  ;;  %v7471_v13 = vcombine.high %v839_v30, %v843_v7  ;;  %v7473_v14 = vcombine.high %v840_v8, %v844_v9  ;;  %v887_v1 = vld [vmem:[%s8194_s15 + $0x1180] sm:$0xff] }
  0xff   : > { %3999 = vmatpush1.bf16.msra.mxu0 %v7414_v18  ;;  %4204 = vmatpush1.bf16.msra.mxu1 %v7416_v19  ;;  %v848_v18 = vld [vmem:[%s8194_s15 + $0x1048] sm:$0xff] }
 0x100   : > { %4000 = vmatprep.subr.bf16.mxu0 %v7423_v20  ;;  %4205 = vmatprep.subr.bf16.mxu1 %v7425_v21  ;;  %v852_v19 = vld [vmem:[%s8194_s15 + $0x1068] sm:$0xff]  ;;  %v7470_v20 = vcombine.low %v839_v30, %v843_v7  ;;  %v7472_v21 = vcombine.low %v840_v8, %v844_v9  ;;  %v895_v9 = vld [vmem:[%s8194_s15 + $0x11c0] sm:$0xff] }
 0x101   : > { %v7481_v23 = vcombine.high %v848_v18, %v852_v19 }
 0x103   : > { %4001 = vmatpush1.bf16.msra.mxu0 %v7422_v27  ;;  %4206 = vmatpush1.bf16.msra.mxu1 %v7424_v28  ;;  %v856_v27 = vld [vmem:[%s8194_s15 + $0x1088] sm:$0xff] }
 0x104   : > { %4002 = vmatprep.subr.bf16.mxu0 %v7431_v29  ;;  %4207 = vmatprep.subr.bf16.mxu1 %v7433_v60  ;;  %v860_v28 = vld [vmem:[%s8194_s15 + $0x10a8] sm:$0xff]  ;;  %v7478_v29 = vcombine.low %v847_v15, %v851_v16  ;;  %v7480_v60 = vcombine.low %v848_v18, %v852_v19  ;;  %v329_v19 = vld [vmem:[%s8194_s15 + $0x10] sm:$0xff] }
 0x105   : > { %v7489_v32 = vcombine.high %v856_v27, %v860_v28  ;;  %v7488_v40 = vcombine.low %v856_v27, %v860_v28 }
 0x107   : > { %4003 = vmatpush1.bf16.msra.mxu0 %v7430_v35  ;;  %4208 = vmatpush1.bf16.msra.mxu1 %v7432_v36  ;;  %v8126_v35 = vmov 0   ;;  %v864_v36 = vld [vmem:[%s8194_s15 + $0x10c8] sm:$0xff] }
 0x108   : > { %4004 = vmatprep.subr.bf16.mxu0 %v7439_v37  ;;  %4209 = vmatprep.subr.bf16.mxu1 %v7441_v38  ;;  %v868_v37 = vld [vmem:[%s8194_s15 + $0x10e8] sm:$0xff]  ;;  %v7486_v38 = vcombine.low %v855_v25, %v859_v26 }
 0x109   : > { %v7497_v42 = vcombine.high %v864_v36, %v868_v37  ;;  %v7496_v50 = vcombine.low %v864_v36, %v868_v37  ;;  %v6957_v25 = vld.sshfl [vmem:[%s8189_s11 + $0x8] sm:$0x1 pattern:$0x75316420] }
 0x10b   : > { %4005 = vmatpush1.bf16.msra.mxu0 %v7438_v44  ;;  %4210 = vmatpush1.bf16.msra.mxu1 %v7440_v46  ;;  %v875_v44 = vld [vmem:[%s8194_s15 + $0x1120] sm:$0xff]  ;;  %v872_v46 = vld [vmem:[%s8194_s15 + $0x1108] sm:$0xff] }
 0x10c   : > { %4006 = vmatprep.subr.bf16.mxu0 %v7447_v47  ;;  %4211 = vmatprep.subr.bf16.mxu1 %v7449_v48  ;;  %v876_v47 = vld [vmem:[%s8194_s15 + $0x1128] sm:$0xff]  ;;  %v7494_v48 = vcombine.low %v863_v0, %v867_v34  ;;  %v7503_v51 = vcombine.high %v871_v43, %v875_v44  ;;  %v342_v0 = vld [vmem:[%s8194_s15 + $0x78] sm:$0xff] }
 0x10d   : > { %v7505_v52 = vcombine.high %v872_v46, %v876_v47  ;;  %v7504_v61 = vcombine.low %v872_v46, %v876_v47 }
 0x10f   : > { %4007 = vmatpush1.bf16.msra.mxu0 %v7446_v55  ;;  %4212 = vmatpush1.bf16.msra.mxu1 %v7448_v56  ;;  %v883_v55 = vld [vmem:[%s8194_s15 + $0x1160] sm:$0xff]  ;;  %v880_v56 = vld [vmem:[%s8194_s15 + $0x1148] sm:$0xff] }
 0x110   : > { %4008 = vmatprep.subr.bf16.mxu0 %v7455_v57  ;;  %4213 = vmatprep.subr.bf16.mxu1 %v7457_v58  ;;  %v884_v57 = vld [vmem:[%s8194_s15 + $0x1168] sm:$0xff]  ;;  %v7502_v58 = vcombine.low %v871_v43, %v875_v44  ;;  %v7511_v62 = vcombine.high %v879_v53, %v883_v55 }
 0x111   : > { %v7513_v63 = vcombine.high %v880_v56, %v884_v57  ;;  %v7512_v30 = vcombine.low %v880_v56, %v884_v57 }
 0x113   : > { %4009 = vmatpush1.bf16.msra.mxu0 %v7454_v2  ;;  %4214 = vmatpush1.bf16.msra.mxu1 %v7456_v3  ;;  %v891_v2 = vld [vmem:[%s8194_s15 + $0x11a0] sm:$0xff]  ;;  %v888_v3 = vld [vmem:[%s8194_s15 + $0x1188] sm:$0xff] }
 0x114   : > { %4010 = vmatprep.subr.bf16.mxu0 %v7463_v4  ;;  %4215 = vmatprep.subr.bf16.mxu1 %v7465_v5  ;;  %v892_v4 = vld [vmem:[%s8194_s15 + $0x11a8] sm:$0xff]  ;;  %v7510_v5 = vcombine.low %v879_v53, %v883_v55  ;;  %v7519_v7 = vcombine.high %v887_v1, %v891_v2 }
 0x115   : > { %v7521_v8 = vcombine.high %v888_v3, %v892_v4  ;;  %v7520_v15 = vcombine.low %v888_v3, %v892_v4  ;;  %v369_v4 = vld [vmem:[%s8194_s15 + $0x150] sm:$0xff] }
 0x117   : > { %4011 = vmatpush1.bf16.msra.mxu0 %v7462_v11  ;;  %4216 = vmatpush1.bf16.msra.mxu1 %v7464_v12  ;;  %v899_v11 = vld [vmem:[%s8194_s15 + $0x11e0] sm:$0xff]  ;;  %v896_v12 = vld [vmem:[%s8194_s15 + $0x11c8] sm:$0xff] }
 0x118   : > { %4021 = vmatprep.subr.bf16.mxu0 %v7471_v13  ;;  %4226 = vmatprep.subr.bf16.mxu1 %v7473_v14  ;;  %v900_v13 = vld [vmem:[%s8194_s15 + $0x11e8] sm:$0xff]  ;;  %v7518_v14 = vcombine.low %v887_v1, %v891_v2  ;;  %v7527_v16 = vcombine.high %v895_v9, %v899_v11 }
 0x119   : > { %v7529_v18 = vcombine.high %v896_v12, %v900_v13  ;;  %v7528_v26 = vcombine.low %v896_v12, %v900_v13  ;;  %v377_v13 = vld [vmem:[%s8194_s15 + $0x190] sm:$0xff] }
 0x11a   : > { %4013 = vmatmul.mubr.bf16.vlgmr.msra.gmra.mrb[0].mxu0 %v8522_v17  ;;  %4218 = vmatmul.mubr.bf16.vlgmr.msra.gmra.mrb[0].mxu1 %v8522_v17 }
 0x11b   : > { %4022 = vmatpush1.bf16.msra.mxu0 %v7470_v20  ;;  %4227 = vmatpush1.bf16.msra.mxu1 %v7472_v21  ;;  %v333_v20 = vld [vmem:[%s8194_s15 + $0x30] sm:$0xff]  ;;  %v330_v21 = vld [vmem:[%s8194_s15 + $0x18] sm:$0xff] }
 0x11c   : > { %4023 = vmatprep.subr.bf16.mxu0 %v7479_v22  ;;  %4228 = vmatprep.subr.bf16.mxu1 %v7481_v23  ;;  %v334_v22 = vld [vmem:[%s8194_s15 + $0x38] sm:$0xff]  ;;  %v7526_v23 = vcombine.low %v895_v9, %v899_v11  ;;  %v6963_v27 = vcombine.high %v329_v19, %v333_v20  ;;  %v6962_v34 = vcombine.low %v329_v19, %v333_v20 }
 0x11d   : > { %4053 = vmatprep.mubr.bf16.mxu0 %v8126_v35  ;;  %4258 = vmatprep.mubr.bf16.mxu1 %v8126_v35  ;;  %v6965_v28 = vcombine.high %v330_v21, %v334_v22  ;;  %v6964_v36 = vcombine.low %v330_v21, %v334_v22  ;;  %v385_v22 = vld [vmem:[%s8194_s15 + $0x1d0] sm:$0xff] }
 0x11f   : > { %4024 = vmatpush1.bf16.msra.mxu0 %v7478_v29  ;;  %4229 = vmatpush1.bf16.msra.mxu1 %v7480_v60  ;;  %v337_v29 = vld [vmem:[%s8194_s15 + $0x50] sm:$0xff] }
 0x120   : > { %4025 = vmatprep.subr.bf16.mxu0 %v7487_v31  ;;  %4230 = vmatprep.subr.bf16.mxu1 %v7489_v32  ;;  %v341_v60 = vld [vmem:[%s8194_s15 + $0x70] sm:$0xff]  ;;  %v8562_v31 = vrot.slane %v6957_v25, %v8226_v54  ;;  %v338_v32 = vld [vmem:[%s8194_s15 + $0x58] sm:$0xff] }
 0x121   : > { %v6971_v37 = vcombine.high %v337_v29, %v341_v60  ;;  %v346_v54 = vld [vmem:[%s8194_s15 + $0x98] sm:$0xff]  ;;  %v6970_v43 = vcombine.low %v337_v29, %v341_v60  ;;  %v6972_v44 = vcombine.low %v338_v32, %v342_v0 }
 0x122   : > { %v386_v25 = vld [vmem:[%s8194_s15 + $0x1d8] sm:$0xff] }
 0x123   : > { %4026 = vmatpush1.bf16.msra.mxu0 %v7486_v38  ;;  %4231 = vmatpush1.bf16.msra.mxu1 %v7488_v40  ;;  %v6973_v38 = vcombine.high %v338_v32, %v342_v0  ;;  %v345_v40 = vld [vmem:[%s8194_s15 + $0x90] sm:$0xff] }
 0x124   : > { %4027 = vmatprep.subr.bf16.mxu0 %v7495_v41  ;;  %4232 = vmatprep.subr.bf16.mxu1 %v7497_v42  ;;  %v349_v41 = vld [vmem:[%s8194_s15 + $0xb0] sm:$0xff]  ;;  %v350_v42 = vld [vmem:[%s8194_s15 + $0xb8] sm:$0xff] }
 0x125   : > { %v6979_v46 = vcombine.high %v345_v40, %v349_v41  ;;  %v6981_v47 = vcombine.high %v346_v54, %v350_v42  ;;  %v6978_v53 = vcombine.low %v345_v40, %v349_v41  ;;  %v6980_v55 = vcombine.low %v346_v54, %v350_v42  ;;  %v393_v32 = vld [vmem:[%s8194_s15 + $0x210] sm:$0xff] }
 0x126   : > { %v397_v0 = vld [vmem:[%s8194_s15 + $0x230] sm:$0xff] }
 0x127   : > { %4028 = vmatpush1.bf16.msra.mxu0 %v7494_v48  ;;  %4233 = vmatpush1.bf16.msra.mxu1 %v7496_v50  ;;  %v353_v48 = vld [vmem:[%s8194_s15 + $0xd0] sm:$0xff]  ;;  %v7027_v40 = vcombine.high %v393_v32, %v397_v0 }
 0x128   : > { %4029 = vmatprep.subr.bf16.mxu0 %v7503_v51  ;;  %4234 = vmatprep.subr.bf16.mxu1 %v7505_v52  ;;  %v357_v50 = vld [vmem:[%s8194_s15 + $0xf0] sm:$0xff]  ;;  %v354_v51 = vld [vmem:[%s8194_s15 + $0xd8] sm:$0xff] }
 0x129   : > { %v358_v52 = vld [vmem:[%s8194_s15 + $0xf8] sm:$0xff]  ;;  %v6987_v56 = vcombine.high %v353_v48, %v357_v50  ;;  %v6986_v1 = vcombine.low %v353_v48, %v357_v50  ;;  %v401_v54 = vld [vmem:[%s8194_s15 + $0x250] sm:$0xff] }
 0x12a   : > { %v6989_v57 = vcombine.high %v354_v51, %v358_v52  ;;  %v405_v42 = vld [vmem:[%s8194_s15 + $0x270] sm:$0xff] }
 0x12b   : > { %4030 = vmatpush1.bf16.msra.mxu0 %v7502_v58  ;;  %4235 = vmatpush1.bf16.msra.mxu1 %v7504_v61  ;;  %v361_v58 = vld [vmem:[%s8194_s15 + $0x110] sm:$0xff]  ;;  %v7035_v48 = vcombine.high %v401_v54, %v405_v42 }
 0x12c   : > { %4031 = vmatprep.subr.bf16.mxu0 %v7511_v62  ;;  %4236 = vmatprep.subr.bf16.mxu1 %v7513_v63  ;;  %v365_v61 = vld [vmem:[%s8194_s15 + $0x130] sm:$0xff]  ;;  %v362_v62 = vld [vmem:[%s8194_s15 + $0x118] sm:$0xff] }
 0x12d   : > { %v366_v63 = vld [vmem:[%s8194_s15 + $0x138] sm:$0xff]  ;;  %v6995_v2 = vcombine.high %v361_v58, %v365_v61 }
 0x12e   : > { %v6997_v3 = vcombine.high %v362_v62, %v366_v63  ;;  %v6996_v9 = vcombine.low %v362_v62, %v366_v63  ;;  %v417_v62 = vld [vmem:[%s8194_s15 + $0x2d0] sm:$0xff] }
 0x12f   : > { %4032 = vmatpush1.bf16.msra.mxu0 %v7510_v5  ;;  %4237 = vmatpush1.bf16.msra.mxu1 %v7512_v30  ;;  %v373_v5 = vld [vmem:[%s8194_s15 + $0x170] sm:$0xff]  ;;  %v370_v30 = vld [vmem:[%s8194_s15 + $0x158] sm:$0xff] }
 0x130   : > { %4033 = vmatprep.subr.bf16.mxu0 %v7519_v7  ;;  %4238 = vmatprep.subr.bf16.mxu1 %v7521_v8  ;;  %v374_v7 = vld [vmem:[%s8194_s15 + $0x178] sm:$0xff]  ;;  %v6994_v8 = vcombine.low %v361_v58, %v365_v61  ;;  %v7003_v11 = vcombine.high %v369_v4, %v373_v5  ;;  %v421_v63 = vld [vmem:[%s8194_s15 + $0x2f0] sm:$0xff] }
 0x131   : > { %v7005_v12 = vcombine.high %v370_v30, %v374_v7  ;;  %v7004_v19 = vcombine.low %v370_v30, %v374_v7  ;;  %v425_v30 = vld [vmem:[%s8194_s15 + $0x310] sm:$0xff] }
 0x132   : > { %v429_v7 = vld [vmem:[%s8194_s15 + $0x330] sm:$0xff] }
 0x133   : > { %4034 = vmatpush1.bf16.msra.mxu0 %v7518_v14  ;;  %4239 = vmatpush1.bf16.msra.mxu1 %v7520_v15  ;;  %v381_v14 = vld [vmem:[%s8194_s15 + $0x1b0] sm:$0xff]  ;;  %v378_v15 = vld [vmem:[%s8194_s15 + $0x198] sm:$0xff] }
 0x134   : > { %4035 = vmatprep.subr.bf16.mxu0 %v7527_v16  ;;  %4240 = vmatprep.subr.bf16.mxu1 %v7529_v18  ;;  %v382_v16 = vld [vmem:[%s8194_s15 + $0x1b8] sm:$0xff]  ;;  %v7002_v18 = vcombine.low %v369_v4, %v373_v5  ;;  %v7011_v20 = vcombine.high %v377_v13, %v381_v14  ;;  %v7051_v4 = vcombine.high %v417_v62, %v421_v63 }
 0x135   : > { %v7013_v21 = vcombine.high %v378_v15, %v382_v16 }
 0x137   : > { %4036 = vmatpush1.bf16.msra.mxu0 %v7526_v23  ;;  %4241 = vmatpush1.bf16.msra.mxu1 %v7528_v26  ;;  %v389_v23 = vld [vmem:[%s8194_s15 + $0x1f0] sm:$0xff]  ;;  %v390_v26 = vld [vmem:[%s8194_s15 + $0x1f8] sm:$0xff] }
 0x138   : > { %4267 = vmatprep.subr.bf16.mxu0 %v6963_v27  ;;  %4472 = vmatprep.subr.bf16.mxu1 %v6965_v28  ;;  %v7010_v27 = vcombine.low %v377_v13, %v381_v14  ;;  %v7012_v28 = vcombine.low %v378_v15, %v382_v16  ;;  %v7019_v29 = vcombine.high %v385_v22, %v389_v23  ;;  %v433_v15 = vld [vmem:[%s8194_s15 + $0x350] sm:$0xff] }
 0x139   : > { %v7021_v60 = vcombine.high %v386_v25, %v390_v26  ;;  %v7059_v13 = vcombine.high %v425_v30, %v429_v7  ;;  %v437_v16 = vld [vmem:[%s8194_s15 + $0x370] sm:$0xff] }
 0x13a   : > { %4054 = vmatmul.mubr.bf16.vlgmr.msra.gmra.mrb[0].mxu0 %v8562_v31  ;;  %4259 = vmatmul.mubr.bf16.vlgmr.msra.gmra.mrb[0].mxu1 %v8562_v31 }
 0x13b   : > { %4268 = vmatpush1.bf16.msra.mxu0 %v6962_v34  ;;  %4473 = vmatpush1.bf16.msra.mxu1 %v6964_v36  ;;  %v394_v34 = vld [vmem:[%s8194_s15 + $0x218] sm:$0xff] }
 0x13c   : > { %4269 = vmatprep.subr.bf16.mxu0 %v6971_v37  ;;  %4474 = vmatprep.subr.bf16.mxu1 %v6973_v38  ;;  %v398_v36 = vld [vmem:[%s8194_s15 + $0x238] sm:$0xff]  ;;  %v7018_v37 = vcombine.low %v385_v22, %v389_v23  ;;  %v7020_v38 = vcombine.low %v386_v25, %v390_v26  ;;  %v7067_v22 = vcombine.high %v433_v15, %v437_v16  ;;  %v441_v25 = vld [vmem:[%s8194_s15 + $0x390] sm:$0xff] }
 0x13d   : > { %4299 = vmatprep.mubr.bf16.mxu0 %v8246_v10  ;;  %4504 = vmatprep.mubr.bf16.mxu1 %v8246_v10  ;;  %v6988_v10 = vcombine.low %v354_v51, %v358_v52  ;;  %v7029_v41 = vcombine.high %v394_v34, %v398_v36  ;;  %v409_v51 = vld [vmem:[%s8194_s15 + $0x290] sm:$0xff] }
 0x13e   : > { %v413_v52 = vld [vmem:[%s8194_s15 + $0x2b0] sm:$0xff] }
 0x13f   : > { %4270 = vmatpush1.bf16.msra.mxu0 %v6970_v43  ;;  %4475 = vmatpush1.bf16.msra.mxu1 %v6972_v44  ;;  %v402_v43 = vld [vmem:[%s8194_s15 + $0x258] sm:$0xff]  ;;  %v7043_v58 = vcombine.high %v409_v51, %v413_v52  ;;  %v445_v26 = vld [vmem:[%s8194_s15 + $0x3b0] sm:$0xff] }
 0x140   : > { %4271 = vmatprep.subr.bf16.mxu0 %v6979_v46  ;;  %4476 = vmatprep.subr.bf16.mxu1 %v6981_v47  ;;  %v406_v44 = vld [vmem:[%s8194_s15 + $0x278] sm:$0xff]  ;;  %v7026_v46 = vcombine.low %v393_v32, %v397_v0  ;;  %v7028_v47 = vcombine.low %v394_v34, %v398_v36  ;;  %v7075_v32 = vcombine.high %v441_v25, %v445_v26  ;;  %v449_v34 = vld [vmem:[%s8194_s15 + $0x3d0] sm:$0xff] }
 0x141   : > { %v7037_v50 = vcombine.high %v402_v43, %v406_v44  ;;  %v453_v36 = vld [vmem:[%s8194_s15 + $0x3f0] sm:$0xff] }
 0x143   : > { %4272 = vmatpush1.bf16.msra.mxu0 %v6978_v53  ;;  %4477 = vmatpush1.bf16.msra.mxu1 %v6980_v55  ;;  %v410_v53 = vld [vmem:[%s8194_s15 + $0x298] sm:$0xff] }
 0x144   : > { %4273 = vmatprep.subr.bf16.mxu0 %v6987_v56  ;;  %4478 = vmatprep.subr.bf16.mxu1 %v6989_v57  ;;  %v414_v55 = vld [vmem:[%s8194_s15 + $0x2b8] sm:$0xff]  ;;  %v7034_v56 = vcombine.low %v401_v54, %v405_v42  ;;  %v7036_v57 = vcombine.low %v402_v43, %v406_v44  ;;  %v7083_v54 = vcombine.high %v449_v34, %v453_v36  ;;  %v457_v43 = vld [vmem:[%s8194_s15 + $0x410] sm:$0xff] }
 0x145   : > { %v7045_v61 = vcombine.high %v410_v53, %v414_v55  ;;  %v461_v44 = vld [vmem:[%s8194_s15 + $0x430] sm:$0xff] }
 0x147   : > { %4274 = vmatpush1.bf16.msra.mxu0 %v6986_v1  ;;  %4479 = vmatpush1.bf16.msra.mxu1 %v6988_v10  ;;  %v418_v1 = vld [vmem:[%s8194_s15 + $0x2d8] sm:$0xff] }
 0x148   : > { %4275 = vmatprep.subr.bf16.mxu0 %v6995_v2  ;;  %4480 = vmatprep.subr.bf16.mxu1 %v6997_v3  ;;  %v422_v10 = vld [vmem:[%s8194_s15 + $0x2f8] sm:$0xff]  ;;  %v7042_v2 = vcombine.low %v409_v51, %v413_v52  ;;  %v7044_v3 = vcombine.low %v410_v53, %v414_v55  ;;  %v7091_v51 = vcombine.high %v457_v43, %v461_v44  ;;  %v465_v53 = vld [vmem:[%s8194_s15 + $0x450] sm:$0xff] }
 0x149   : > { %v7053_v5 = vcombine.high %v418_v1, %v422_v10  ;;  %v469_v55 = vld [vmem:[%s8194_s15 + $0x470] sm:$0xff] }
 0x14b   : > { %4276 = vmatpush1.bf16.msra.mxu0 %v6994_v8  ;;  %4481 = vmatpush1.bf16.msra.mxu1 %v6996_v9  ;;  %v426_v8 = vld [vmem:[%s8194_s15 + $0x318] sm:$0xff] }
 0x14c   : > { %4277 = vmatprep.subr.bf16.mxu0 %v7003_v11  ;;  %4482 = vmatprep.subr.bf16.mxu1 %v7005_v12  ;;  %v430_v9 = vld [vmem:[%s8194_s15 + $0x338] sm:$0xff]  ;;  %v7050_v11 = vcombine.low %v417_v62, %v421_v63  ;;  %v7052_v12 = vcombine.low %v418_v1, %v422_v10  ;;  %v7099_v62 = vcombine.high %v465_v53, %v469_v55  ;;  %v473_v1 = vld [vmem:[%s8194_s15 + $0x490] sm:$0xff] }
 0x14d   : > { %v7061_v14 = vcombine.high %v426_v8, %v430_v9  ;;  %v477_v10 = vld [vmem:[%s8194_s15 + $0x4b0] sm:$0xff] }
 0x14f   : > { %4278 = vmatpush1.bf16.msra.mxu0 %v7002_v18  ;;  %4483 = vmatpush1.bf16.msra.mxu1 %v7004_v19  ;;  %v434_v18 = vld [vmem:[%s8194_s15 + $0x358] sm:$0xff] }
 0x150   : > { %4279 = vmatprep.subr.bf16.mxu0 %v7011_v20  ;;  %4484 = vmatprep.subr.bf16.mxu1 %v7013_v21  ;;  %v438_v19 = vld [vmem:[%s8194_s15 + $0x378] sm:$0xff]  ;;  %v7058_v20 = vcombine.low %v425_v30, %v429_v7  ;;  %v7060_v21 = vcombine.low %v426_v8, %v430_v9  ;;  %v7107_v30 = vcombine.high %v473_v1, %v477_v10  ;;  %v481_v8 = vld [vmem:[%s8194_s15 + $0x4d0] sm:$0xff] }
 0x151   : > { %v7069_v23 = vcombine.high %v434_v18, %v438_v19  ;;  %v485_v9 = vld [vmem:[%s8194_s15 + $0x4f0] sm:$0xff] }
 0x153   : > { %4280 = vmatpush1.bf16.msra.mxu0 %v7010_v27  ;;  %4485 = vmatpush1.bf16.msra.mxu1 %v7012_v28  ;;  %v442_v27 = vld [vmem:[%s8194_s15 + $0x398] sm:$0xff] }
 0x154   : > { %4281 = vmatprep.subr.bf16.mxu0 %v7019_v29  ;;  %4486 = vmatprep.subr.bf16.mxu1 %v7021_v60  ;;  %v446_v28 = vld [vmem:[%s8194_s15 + $0x3b8] sm:$0xff]  ;;  %v7066_v29 = vcombine.low %v433_v15, %v437_v16  ;;  %v7068_v60 = vcombine.low %v434_v18, %v438_v19  ;;  %v489_v16 = vld [vmem:[%s8194_s15 + $0x510] sm:$0xff] }
 0x155   : > { %v7077_v0 = vcombine.high %v442_v27, %v446_v28  ;;  %v493_v18 = vld [vmem:[%s8194_s15 + $0x530] sm:$0xff]  ;;  %v490_v19 = vld [vmem:[%s8194_s15 + $0x518] sm:$0xff] }
 0x157   : > { %4282 = vmatpush1.bf16.msra.mxu0 %v7018_v37  ;;  %4487 = vmatpush1.bf16.msra.mxu1 %v7020_v38  ;;  %v450_v37 = vld [vmem:[%s8194_s15 + $0x3d8] sm:$0xff] }
 0x158   : > { %4283 = vmatprep.subr.bf16.mxu0 %v7027_v40  ;;  %4488 = vmatprep.subr.bf16.mxu1 %v7029_v41  ;;  %v454_v38 = vld [vmem:[%s8194_s15 + $0x3f8] sm:$0xff]  ;;  %v7074_v40 = vcombine.low %v441_v25, %v445_v26  ;;  %v7076_v41 = vcombine.low %v442_v27, %v446_v28  ;;  %v497_v25 = vld [vmem:[%s8194_s15 + $0x550] sm:$0xff] }
 0x159   : > { %v7085_v42 = vcombine.high %v450_v37, %v454_v38  ;;  %v501_v26 = vld [vmem:[%s8194_s15 + $0x570] sm:$0xff]  ;;  %v498_v27 = vld [vmem:[%s8194_s15 + $0x558] sm:$0xff] }
 0x15a   : > { %v502_v28 = vld [vmem:[%s8194_s15 + $0x578] sm:$0xff] }
 0x15b   : > { %4284 = vmatpush1.bf16.msra.mxu0 %v7026_v46  ;;  %4489 = vmatpush1.bf16.msra.mxu1 %v7028_v47  ;;  %v458_v46 = vld [vmem:[%s8194_s15 + $0x418] sm:$0xff] }
 0x15c   : > { %4285 = vmatprep.subr.bf16.mxu0 %v7035_v48  ;;  %4490 = vmatprep.subr.bf16.mxu1 %v7037_v50  ;;  %v462_v47 = vld [vmem:[%s8194_s15 + $0x438] sm:$0xff]  ;;  %v7082_v48 = vcombine.low %v449_v34, %v453_v36  ;;  %v7084_v50 = vcombine.low %v450_v37, %v454_v38  ;;  %v505_v34 = vld [vmem:[%s8194_s15 + $0x590] sm:$0xff] }
 0x15d   : > { %v7093_v52 = vcombine.high %v458_v46, %v462_v47  ;;  %v509_v36 = vld [vmem:[%s8194_s15 + $0x5b0] sm:$0xff]  ;;  %v506_v37 = vld [vmem:[%s8194_s15 + $0x598] sm:$0xff] }
 0x15e   : > { %v510_v38 = vld [vmem:[%s8194_s15 + $0x5b8] sm:$0xff] }
 0x15f   : > { %4286 = vmatpush1.bf16.msra.mxu0 %v7034_v56  ;;  %4491 = vmatpush1.bf16.msra.mxu1 %v7036_v57  ;;  %v466_v56 = vld [vmem:[%s8194_s15 + $0x458] sm:$0xff] }
 0x160   : > { %4287 = vmatprep.subr.bf16.mxu0 %v7043_v58  ;;  %4492 = vmatprep.subr.bf16.mxu1 %v7045_v61  ;;  %v470_v57 = vld [vmem:[%s8194_s15 + $0x478] sm:$0xff]  ;;  %v7090_v58 = vcombine.low %v457_v43, %v461_v44  ;;  %v7092_v61 = vcombine.low %v458_v46, %v462_v47  ;;  %v513_v43 = vld [vmem:[%s8194_s15 + $0x5d0] sm:$0xff] }
 0x161   : > { %v7101_v63 = vcombine.high %v466_v56, %v470_v57  ;;  %v517_v44 = vld [vmem:[%s8194_s15 + $0x5f0] sm:$0xff]  ;;  %v514_v46 = vld [vmem:[%s8194_s15 + $0x5d8] sm:$0xff] }
 0x162   : > { %v518_v47 = vld [vmem:[%s8194_s15 + $0x5f8] sm:$0xff] }
 0x163   : > { %4288 = vmatpush1.bf16.msra.mxu0 %v7042_v2  ;;  %4493 = vmatpush1.bf16.msra.mxu1 %v7044_v3  ;;  %v474_v2 = vld [vmem:[%s8194_s15 + $0x498] sm:$0xff] }
 0x164   : > { %4289 = vmatprep.subr.bf16.mxu0 %v7051_v4  ;;  %4494 = vmatprep.subr.bf16.mxu1 %v7053_v5  ;;  %v478_v3 = vld [vmem:[%s8194_s15 + $0x4b8] sm:$0xff]  ;;  %v7098_v4 = vcombine.low %v465_v53, %v469_v55  ;;  %v7100_v5 = vcombine.low %v466_v56, %v470_v57  ;;  %v521_v53 = vld [vmem:[%s8194_s15 + $0x610] sm:$0xff] }
 0x165   : > { %v7109_v7 = vcombine.high %v474_v2, %v478_v3  ;;  %v525_v55 = vld [vmem:[%s8194_s15 + $0x630] sm:$0xff]  ;;  %v522_v56 = vld [vmem:[%s8194_s15 + $0x618] sm:$0xff] }
 0x166   : > { %v526_v57 = vld [vmem:[%s8194_s15 + $0x638] sm:$0xff] }
 0x167   : > { %4290 = vmatpush1.bf16.msra.mxu0 %v7050_v11  ;;  %4495 = vmatpush1.bf16.msra.mxu1 %v7052_v12  ;;  %v482_v11 = vld [vmem:[%s8194_s15 + $0x4d8] sm:$0xff] }
 0x168   : > { %4291 = vmatprep.subr.bf16.mxu0 %v7059_v13  ;;  %4496 = vmatprep.subr.bf16.mxu1 %v7061_v14  ;;  %v486_v12 = vld [vmem:[%s8194_s15 + $0x4f8] sm:$0xff]  ;;  %v7108_v13 = vcombine.low %v474_v2, %v478_v3  ;;  %v7115_v14 = vcombine.high %v481_v8, %v485_v9 }
 0x169   : > { %v7117_v15 = vcombine.high %v482_v11, %v486_v12  ;;  %v530_v2 = vld [vmem:[%s8194_s15 + $0x658] sm:$0xff] }
 0x16a   : > { %v534_v3 = vld [vmem:[%s8194_s15 + $0x678] sm:$0xff] }
 0x16b   : > { %4292 = vmatpush1.bf16.msra.mxu0 %v7058_v20  ;;  %4497 = vmatpush1.bf16.msra.mxu1 %v7060_v21  ;;  %v494_v20 = vld [vmem:[%s8194_s15 + $0x538] sm:$0xff]  ;;  %v7114_v21 = vcombine.low %v481_v8, %v485_v9  ;;  %v537_v8 = vld [vmem:[%s8194_s15 + $0x690] sm:$0xff] }
 0x16c   : > { %4293 = vmatprep.subr.bf16.mxu0 %v7067_v22  ;;  %4498 = vmatprep.subr.bf16.mxu1 %v7069_v23  ;;  %v7123_v22 = vcombine.high %v489_v16, %v493_v18  ;;  %v7125_v23 = vcombine.high %v490_v19, %v494_v20  ;;  %v541_v9 = vld [vmem:[%s8194_s15 + $0x6b0] sm:$0xff] }
 0x16f   : > { %4294 = vmatpush1.bf16.msra.mxu0 %v7066_v29  ;;  %4499 = vmatpush1.bf16.msra.mxu1 %v7068_v60  ;;  %v7122_v29 = vcombine.low %v489_v16, %v493_v18  ;;  %v7124_v60 = vcombine.low %v490_v19, %v494_v20  ;;  %v545_v16 = vld [vmem:[%s8194_s15 + $0x6d0] sm:$0xff]  ;;  %v546_v19 = vld [vmem:[%s8194_s15 + $0x6d8] sm:$0xff] }
 0x170   : > { %4295 = vmatprep.subr.bf16.mxu0 %v7075_v32  ;;  %4500 = vmatprep.subr.bf16.mxu1 %v7077_v0  ;;  %v7131_v32 = vcombine.high %v497_v25, %v501_v26  ;;  %v7133_v0 = vcombine.high %v498_v27, %v502_v28  ;;  %v549_v18 = vld [vmem:[%s8194_s15 + $0x6f0] sm:$0xff]  ;;  %v550_v20 = vld [vmem:[%s8194_s15 + $0x6f8] sm:$0xff] }
 0x173   : > { %4296 = vmatpush1.bf16.msra.mxu0 %v7074_v40  ;;  %4501 = vmatpush1.bf16.msra.mxu1 %v7076_v41  ;;  %v7130_v40 = vcombine.low %v497_v25, %v501_v26  ;;  %v7132_v41 = vcombine.low %v498_v27, %v502_v28  ;;  %v553_v25 = vld [vmem:[%s8194_s15 + $0x710] sm:$0xff]  ;;  %v554_v27 = vld [vmem:[%s8194_s15 + $0x718] sm:$0xff] }
 0x174   : > { %4297 = vmatprep.subr.bf16.mxu0 %v7083_v54  ;;  %4502 = vmatprep.subr.bf16.mxu1 %v7085_v42  ;;  %v7139_v54 = vcombine.high %v505_v34, %v509_v36  ;;  %v7141_v42 = vcombine.high %v506_v37, %v510_v38  ;;  %v557_v26 = vld [vmem:[%s8194_s15 + $0x730] sm:$0xff]  ;;  %v558_v28 = vld [vmem:[%s8194_s15 + $0x738] sm:$0xff] }
 0x177   : > { %4298 = vmatpush1.bf16.msra.mxu0 %v7082_v48  ;;  %4503 = vmatpush1.bf16.msra.mxu1 %v7084_v50  ;;  %v7138_v48 = vcombine.low %v505_v34, %v509_v36  ;;  %v7140_v50 = vcombine.low %v506_v37, %v510_v38  ;;  %v561_v34 = vld [vmem:[%s8194_s15 + $0x750] sm:$0xff]  ;;  %v562_v37 = vld [vmem:[%s8194_s15 + $0x758] sm:$0xff] }
 0x178   : > { %4308 = vmatprep.subr.bf16.mxu0 %v7091_v51  ;;  %4513 = vmatprep.subr.bf16.mxu1 %v7093_v52  ;;  %v7147_v51 = vcombine.high %v513_v43, %v517_v44  ;;  %v7149_v52 = vcombine.high %v514_v46, %v518_v47  ;;  %v565_v36 = vld [vmem:[%s8194_s15 + $0x770] sm:$0xff]  ;;  %v566_v38 = vld [vmem:[%s8194_s15 + $0x778] sm:$0xff] }
 0x17a   : > { %4300 = vmatmul.mubr.bf16.vlgmr.msra.gmra.mrb[4].mxu0 %v8288_v24  ;;  %4505 = vmatmul.mubr.bf16.vlgmr.msra.gmra.mrb[4].mxu1 %v8288_v24  ;;  %v7106_v24 = vcombine.low %v473_v1, %v477_v10  ;;  %v529_v1 = vld [vmem:[%s8194_s15 + $0x650] sm:$0xff] }
 0x17b   : > { %4309 = vmatpush1.bf16.msra.mxu0 %v7090_v58  ;;  %4514 = vmatpush1.bf16.msra.mxu1 %v7092_v61  ;;  %v7146_v58 = vcombine.low %v513_v43, %v517_v44  ;;  %v7148_v61 = vcombine.low %v514_v46, %v518_v47  ;;  %v533_v10 = vld [vmem:[%s8194_s15 + $0x670] sm:$0xff]  ;;  %v570_v46 = vld [vmem:[%s8194_s15 + $0x798] sm:$0xff] }
 0x17c   : > { %4310 = vmatprep.subr.bf16.mxu0 %v7099_v62  ;;  %4515 = vmatprep.subr.bf16.mxu1 %v7101_v63  ;;  %v7155_v62 = vcombine.high %v521_v53, %v525_v55  ;;  %v7157_v63 = vcombine.high %v522_v56, %v526_v57  ;;  %v569_v43 = vld [vmem:[%s8194_s15 + $0x790] sm:$0xff]  ;;  %v574_v47 = vld [vmem:[%s8194_s15 + $0x7b8] sm:$0xff] }
 0x17d   : > { %4340 = vmatprep.mubr.bf16.mxu0 %v8296_v33  ;;  %4545 = vmatprep.mubr.bf16.mxu1 %v8296_v33  ;;  %v7116_v33 = vcombine.low %v482_v11, %v486_v12  ;;  %v538_v11 = vld [vmem:[%s8194_s15 + $0x698] sm:$0xff]  ;;  %v573_v44 = vld [vmem:[%s8194_s15 + $0x7b0] sm:$0xff] }
 0x17e   : > { %v542_v12 = vld [vmem:[%s8194_s15 + $0x6b8] sm:$0xff] }
 0x17f   : > { %4311 = vmatpush1.bf16.msra.mxu0 %v7098_v4  ;;  %4516 = vmatpush1.bf16.msra.mxu1 %v7100_v5  ;;  %v7154_v4 = vcombine.low %v521_v53, %v525_v55  ;;  %v7156_v5 = vcombine.low %v522_v56, %v526_v57  ;;  %v577_v53 = vld [vmem:[%s8194_s15 + $0x7d0] sm:$0xff]  ;;  %v578_v56 = vld [vmem:[%s8194_s15 + $0x7d8] sm:$0xff] }
 0x180   : > { %4312 = vmatprep.subr.bf16.mxu0 %v7107_v30  ;;  %4517 = vmatprep.subr.bf16.mxu1 %v7109_v7  ;;  %v7163_v30 = vcombine.high %v529_v1, %v533_v10  ;;  %v7165_v7 = vcombine.high %v530_v2, %v534_v3  ;;  %v581_v55 = vld [vmem:[%s8194_s15 + $0x7f0] sm:$0xff]  ;;  %v582_v57 = vld [vmem:[%s8194_s15 + $0x7f8] sm:$0xff] }
 0x183   : > { %4313 = vmatpush1.bf16.msra.mxu0 %v7106_v24  ;;  %4518 = vmatpush1.bf16.msra.mxu1 %v7108_v13  ;;  %v7162_v24 = vcombine.low %v529_v1, %v533_v10  ;;  %v7164_v13 = vcombine.low %v530_v2, %v534_v3  ;;  %v585_v1 = vld [vmem:[%s8194_s15 + $0x810] sm:$0xff]  ;;  %v586_v2 = vld [vmem:[%s8194_s15 + $0x818] sm:$0xff] }
 0x184   : > { %4314 = vmatprep.subr.bf16.mxu0 %v7115_v14  ;;  %4519 = vmatprep.subr.bf16.mxu1 %v7117_v15  ;;  %v7171_v14 = vcombine.high %v537_v8, %v541_v9  ;;  %v7173_v15 = vcombine.high %v538_v11, %v542_v12  ;;  %v589_v10 = vld [vmem:[%s8194_s15 + $0x830] sm:$0xff]  ;;  %v590_v3 = vld [vmem:[%s8194_s15 + $0x838] sm:$0xff] }
 0x187   : > { %4315 = vmatpush1.bf16.msra.mxu0 %v7114_v21  ;;  %4520 = vmatpush1.bf16.msra.mxu1 %v7116_v33  ;;  %v7170_v21 = vcombine.low %v537_v8, %v541_v9  ;;  %v7172_v33 = vcombine.low %v538_v11, %v542_v12  ;;  %v593_v8 = vld [vmem:[%s8194_s15 + $0x850] sm:$0xff]  ;;  %v594_v11 = vld [vmem:[%s8194_s15 + $0x858] sm:$0xff] }
 0x188   : > { %4316 = vmatprep.subr.bf16.mxu0 %v7123_v22  ;;  %4521 = vmatprep.subr.bf16.mxu1 %v7125_v23  ;;  %v7179_v22 = vcombine.high %v545_v16, %v549_v18  ;;  %v7181_v23 = vcombine.high %v546_v19, %v550_v20  ;;  %v597_v9 = vld [vmem:[%s8194_s15 + $0x870] sm:$0xff]  ;;  %v598_v12 = vld [vmem:[%s8194_s15 + $0x878] sm:$0xff] }
 0x18b   : > { %4317 = vmatpush1.bf16.msra.mxu0 %v7122_v29  ;;  %4522 = vmatpush1.bf16.msra.mxu1 %v7124_v60  ;;  %v7178_v29 = vcombine.low %v545_v16, %v549_v18  ;;  %v7180_v60 = vcombine.low %v546_v19, %v550_v20  ;;  %v601_v16 = vld [vmem:[%s8194_s15 + $0x890] sm:$0xff]  ;;  %v602_v19 = vld [vmem:[%s8194_s15 + $0x898] sm:$0xff] }
 0x18c   : > { %4318 = vmatprep.subr.bf16.mxu0 %v7131_v32  ;;  %4523 = vmatprep.subr.bf16.mxu1 %v7133_v0  ;;  %v7187_v32 = vcombine.high %v553_v25, %v557_v26  ;;  %v7189_v0 = vcombine.high %v554_v27, %v558_v28  ;;  %v605_v18 = vld [vmem:[%s8194_s15 + $0x8b0] sm:$0xff]  ;;  %v606_v20 = vld [vmem:[%s8194_s15 + $0x8b8] sm:$0xff] }
 0x18f   : > { %4319 = vmatpush1.bf16.msra.mxu0 %v7130_v40  ;;  %4524 = vmatpush1.bf16.msra.mxu1 %v7132_v41  ;;  %v7186_v40 = vcombine.low %v553_v25, %v557_v26  ;;  %v7188_v41 = vcombine.low %v554_v27, %v558_v28  ;;  %v609_v25 = vld [vmem:[%s8194_s15 + $0x8d0] sm:$0xff]  ;;  %v610_v27 = vld [vmem:[%s8194_s15 + $0x8d8] sm:$0xff] }
 0x190   : > { %4320 = vmatprep.subr.bf16.mxu0 %v7139_v54  ;;  %4525 = vmatprep.subr.bf16.mxu1 %v7141_v42  ;;  %v7195_v54 = vcombine.high %v561_v34, %v565_v36  ;;  %v7197_v42 = vcombine.high %v562_v37, %v566_v38  ;;  %v613_v26 = vld [vmem:[%s8194_s15 + $0x8f0] sm:$0xff]  ;;  %v614_v28 = vld [vmem:[%s8194_s15 + $0x8f8] sm:$0xff] }
 0x193   : > { %4321 = vmatpush1.bf16.msra.mxu0 %v7138_v48  ;;  %4526 = vmatpush1.bf16.msra.mxu1 %v7140_v50  ;;  %v7194_v48 = vcombine.low %v561_v34, %v565_v36  ;;  %v7196_v50 = vcombine.low %v562_v37, %v566_v38  ;;  %v621_v34 = vld [vmem:[%s8194_s15 + $0x930] sm:$0xff]  ;;  %v618_v36 = vld [vmem:[%s8194_s15 + $0x918] sm:$0xff]  ;;  %v7242_v38 = vcombine.low %v609_v25, %v613_v26 }
 0x194   : > { %4322 = vmatprep.subr.bf16.mxu0 %v7147_v51  ;;  %4527 = vmatprep.subr.bf16.mxu1 %v7149_v52  ;;  %v7203_v51 = vcombine.high %v569_v43, %v573_v44  ;;  %v7205_v52 = vcombine.high %v570_v46, %v574_v47  ;;  %v622_v37 = vld [vmem:[%s8194_s15 + $0x938] sm:$0xff] }
 0x197   : > { %4323 = vmatpush1.bf16.msra.mxu0 %v7146_v58  ;;  %4528 = vmatpush1.bf16.msra.mxu1 %v7148_v61  ;;  %v7202_v58 = vcombine.low %v569_v43, %v573_v44  ;;  %v7204_v61 = vcombine.low %v570_v46, %v574_v47  ;;  %v626_v43 = vld [vmem:[%s8194_s15 + $0x958] sm:$0xff]  ;;  %v7252_v47 = vcombine.low %v618_v36, %v622_v37 }
 0x198   : > { %4324 = vmatprep.subr.bf16.mxu0 %v7155_v62  ;;  %4529 = vmatprep.subr.bf16.mxu1 %v7157_v63  ;;  %v7211_v62 = vcombine.high %v577_v53, %v581_v55  ;;  %v7213_v63 = vcombine.high %v578_v56, %v582_v57  ;;  %v630_v44 = vld [vmem:[%s8194_s15 + $0x978] sm:$0xff] }
 0x19b   : > { %4325 = vmatpush1.bf16.msra.mxu0 %v7154_v4  ;;  %4530 = vmatpush1.bf16.msra.mxu1 %v7156_v5  ;;  %v7210_v4 = vcombine.low %v577_v53, %v581_v55  ;;  %v7212_v5 = vcombine.low %v578_v56, %v582_v57  ;;  %v634_v53 = vld [vmem:[%s8194_s15 + $0x998] sm:$0xff]  ;;  %v7260_v57 = vcombine.low %v626_v43, %v630_v44 }
 0x19c   : > { %4326 = vmatprep.subr.bf16.mxu0 %v7163_v30  ;;  %4531 = vmatprep.subr.bf16.mxu1 %v7165_v7  ;;  %v7219_v30 = vcombine.high %v585_v1, %v589_v10  ;;  %v7221_v7 = vcombine.high %v586_v2, %v590_v3  ;;  %v638_v55 = vld [vmem:[%s8194_s15 + $0x9b8] sm:$0xff] }
 0x19f   : > { %4327 = vmatpush1.bf16.msra.mxu0 %v7162_v24  ;;  %4532 = vmatpush1.bf16.msra.mxu1 %v7164_v13  ;;  %v7218_v24 = vcombine.low %v585_v1, %v589_v10  ;;  %v7220_v13 = vcombine.low %v586_v2, %v590_v3  ;;  %v642_v1 = vld [vmem:[%s8194_s15 + $0x9d8] sm:$0xff]  ;;  %v7268_v3 = vcombine.low %v634_v53, %v638_v55 }
 0x1a0   : > { %4328 = vmatprep.subr.bf16.mxu0 %v7171_v14  ;;  %4533 = vmatprep.subr.bf16.mxu1 %v7173_v15  ;;  %v7227_v14 = vcombine.high %v593_v8, %v597_v9  ;;  %v7229_v15 = vcombine.high %v594_v11, %v598_v12  ;;  %v646_v10 = vld [vmem:[%s8194_s15 + $0x9f8] sm:$0xff] }
 0x1a3   : > { %4329 = vmatpush1.bf16.msra.mxu0 %v7170_v21  ;;  %4534 = vmatpush1.bf16.msra.mxu1 %v7172_v33  ;;  %v7226_v21 = vcombine.low %v593_v8, %v597_v9  ;;  %v7228_v33 = vcombine.low %v594_v11, %v598_v12  ;;  %v650_v8 = vld [vmem:[%s8194_s15 + $0xa18] sm:$0xff]  ;;  %v7276_v12 = vcombine.low %v642_v1, %v646_v10 }
 0x1a4   : > { %4330 = vmatprep.subr.bf16.mxu0 %v7179_v22  ;;  %4535 = vmatprep.subr.bf16.mxu1 %v7181_v23  ;;  %v7235_v22 = vcombine.high %v601_v16, %v605_v18  ;;  %v7237_v23 = vcombine.high %v602_v19, %v606_v20  ;;  %v654_v9 = vld [vmem:[%s8194_s15 + $0xa38] sm:$0xff] }
 0x1a7   : > { %4331 = vmatpush1.bf16.msra.mxu0 %v7178_v29  ;;  %4536 = vmatpush1.bf16.msra.mxu1 %v7180_v60  ;;  %v7236_v29 = vcombine.low %v602_v19, %v606_v20  ;;  %v7243_v60 = vcombine.high %v609_v25, %v613_v26  ;;  %v7284_v20 = vcombine.low %v650_v8, %v654_v9  ;;  %v666_v25 = vld [vmem:[%s8194_s15 + $0xa98] sm:$0xff] }
 0x1a8   : > { %4332 = vmatprep.subr.bf16.mxu0 %v7187_v32  ;;  %4537 = vmatprep.subr.bf16.mxu1 %v7189_v0  ;;  %v7245_v32 = vcombine.high %v610_v27, %v614_v28  ;;  %v617_v0 = vld [vmem:[%s8194_s15 + $0x910] sm:$0xff]  ;;  %v670_v26 = vld [vmem:[%s8194_s15 + $0xab8] sm:$0xff] }
 0x1a9   : > { %v7250_v46 = vcombine.low %v617_v0, %v621_v34 }
 0x1ab   : > { %4333 = vmatpush1.bf16.msra.mxu0 %v7186_v40  ;;  %4538 = vmatpush1.bf16.msra.mxu1 %v7188_v41  ;;  %v7251_v40 = vcombine.high %v617_v0, %v621_v34  ;;  %v7253_v41 = vcombine.high %v618_v36, %v622_v37  ;;  %v674_v0 = vld [vmem:[%s8194_s15 + $0xad8] sm:$0xff]  ;;  %v7300_v37 = vcombine.low %v666_v25, %v670_v26 }
 0x1ac   : > { %4334 = vmatprep.subr.bf16.mxu0 %v7195_v54  ;;  %4539 = vmatprep.subr.bf16.mxu1 %v7197_v42  ;;  %v625_v54 = vld [vmem:[%s8194_s15 + $0x950] sm:$0xff]  ;;  %v678_v34 = vld [vmem:[%s8194_s15 + $0xaf8] sm:$0xff] }
 0x1ad   : > { %v629_v42 = vld [vmem:[%s8194_s15 + $0x970] sm:$0xff] }
 0x1ae   : > { %v7258_v56 = vcombine.low %v625_v54, %v629_v42 }
 0x1af   : > { %4335 = vmatpush1.bf16.msra.mxu0 %v7194_v48  ;;  %4540 = vmatpush1.bf16.msra.mxu1 %v7196_v50  ;;  %v7259_v48 = vcombine.high %v625_v54, %v629_v42  ;;  %v7261_v50 = vcombine.high %v626_v43, %v630_v44  ;;  %v682_v54 = vld [vmem:[%s8194_s15 + $0xb18] sm:$0xff]  ;;  %v7308_v44 = vcombine.low %v674_v0, %v678_v34 }
 0x1b0   : > { %4336 = vmatprep.subr.bf16.mxu0 %v7203_v51  ;;  %4541 = vmatprep.subr.bf16.mxu1 %v7205_v52  ;;  %v633_v51 = vld [vmem:[%s8194_s15 + $0x990] sm:$0xff]  ;;  %v686_v42 = vld [vmem:[%s8194_s15 + $0xb38] sm:$0xff] }
 0x1b1   : > { %v637_v52 = vld [vmem:[%s8194_s15 + $0x9b0] sm:$0xff] }
 0x1b2   : > { %v7266_v2 = vcombine.low %v633_v51, %v637_v52 }
 0x1b3   : > { %4337 = vmatpush1.bf16.msra.mxu0 %v7202_v58  ;;  %4542 = vmatpush1.bf16.msra.mxu1 %v7204_v61  ;;  %v7267_v58 = vcombine.high %v633_v51, %v637_v52  ;;  %v7269_v61 = vcombine.high %v634_v53, %v638_v55  ;;  %v690_v51 = vld [vmem:[%s8194_s15 + $0xb58] sm:$0xff]  ;;  %v7316_v55 = vcombine.low %v682_v54, %v686_v42 }
 0x1b4   : > { %4338 = vmatprep.subr.bf16.mxu0 %v7211_v62  ;;  %4543 = vmatprep.subr.bf16.mxu1 %v7213_v63  ;;  %v641_v62 = vld [vmem:[%s8194_s15 + $0x9d0] sm:$0xff]  ;;  %v694_v52 = vld [vmem:[%s8194_s15 + $0xb78] sm:$0xff] }
 0x1b5   : > { %v645_v63 = vld [vmem:[%s8194_s15 + $0x9f0] sm:$0xff] }
 0x1b6   : > { %v7274_v11 = vcombine.low %v641_v62, %v645_v63 }
 0x1b7   : > { %4339 = vmatpush1.bf16.msra.mxu0 %v7210_v4  ;;  %4544 = vmatpush1.bf16.msra.mxu1 %v7212_v5  ;;  %v7275_v4 = vcombine.high %v641_v62, %v645_v63  ;;  %v7277_v5 = vcombine.high %v642_v1, %v646_v10  ;;  %v698_v62 = vld [vmem:[%s8194_s15 + $0xb98] sm:$0xff]  ;;  %v7324_v10 = vcombine.low %v690_v51, %v694_v52 }
 0x1b8   : > { %4349 = vmatprep.subr.bf16.mxu0 %v7219_v30  ;;  %4554 = vmatprep.subr.bf16.mxu1 %v7221_v7  ;;  %v649_v30 = vld [vmem:[%s8194_s15 + $0xa10] sm:$0xff]  ;;  %v702_v63 = vld [vmem:[%s8194_s15 + $0xbb8] sm:$0xff] }
 0x1b9   : > { %v653_v7 = vld [vmem:[%s8194_s15 + $0xa30] sm:$0xff] }
 0x1ba   : > { %4341 = vmatmul.mubr.bf16.vlgmr.msra.gmra.mrb[4].mxu0 %v8371_v39  ;;  %4546 = vmatmul.mubr.bf16.vlgmr.msra.gmra.mrb[4].mxu1 %v8371_v39  ;;  %v7234_v39 = vcombine.low %v601_v16, %v605_v18  ;;  %v658_v16 = vld [vmem:[%s8194_s15 + $0xa58] sm:$0xff]  ;;  %v7282_v19 = vcombine.low %v649_v30, %v653_v7 }
 0x1bb   : > { %4350 = vmatpush1.bf16.msra.mxu0 %v7218_v24  ;;  %4555 = vmatpush1.bf16.msra.mxu1 %v7220_v13  ;;  %v7283_v24 = vcombine.high %v649_v30, %v653_v7  ;;  %v7285_v13 = vcombine.high %v650_v8, %v654_v9  ;;  %v662_v18 = vld [vmem:[%s8194_s15 + $0xa78] sm:$0xff]  ;;  %v7332_v9 = vcombine.low %v698_v62, %v702_v63 }
 0x1bc   : > { %4351 = vmatprep.subr.bf16.mxu0 %v7227_v14  ;;  %4556 = vmatprep.subr.bf16.mxu1 %v7229_v15  ;;  %v657_v14 = vld [vmem:[%s8194_s15 + $0xa50] sm:$0xff]  ;;  %v706_v30 = vld [vmem:[%s8194_s15 + $0xbd8] sm:$0xff] }
 0x1bd   : > { %4381 = vmatprep.mubr.bf16.mxu0 %v8378_v49  ;;  %4586 = vmatprep.mubr.bf16.mxu1 %v8378_v49  ;;  %v7244_v49 = vcombine.low %v610_v27, %v614_v28  ;;  %v661_v15 = vld [vmem:[%s8194_s15 + $0xa70] sm:$0xff]  ;;  %v7292_v28 = vcombine.low %v658_v16, %v662_v18  ;;  %v710_v7 = vld [vmem:[%s8194_s15 + $0xbf8] sm:$0xff] }
 0x1be   : > { %v7290_v27 = vcombine.low %v657_v14, %v661_v15 }
 0x1bf   : > { %4352 = vmatpush1.bf16.msra.mxu0 %v7226_v21  ;;  %4557 = vmatpush1.bf16.msra.mxu1 %v7228_v33  ;;  %v7291_v21 = vcombine.high %v657_v14, %v661_v15  ;;  %v7293_v33 = vcombine.high %v658_v16, %v662_v18  ;;  %v714_v14 = vld [vmem:[%s8194_s15 + $0xc18] sm:$0xff]  ;;  %v7340_v18 = vcombine.low %v706_v30, %v710_v7 }
 0x1c0   : > { %4353 = vmatprep.subr.bf16.mxu0 %v7235_v22  ;;  %4558 = vmatprep.subr.bf16.mxu1 %v7237_v23  ;;  %v665_v22 = vld [vmem:[%s8194_s15 + $0xa90] sm:$0xff]  ;;  %v718_v15 = vld [vmem:[%s8194_s15 + $0xc38] sm:$0xff] }
 0x1c1   : > { %v669_v23 = vld [vmem:[%s8194_s15 + $0xab0] sm:$0xff] }
 0x1c2   : > { %v7298_v36 = vcombine.low %v665_v22, %v669_v23 }
 0x1c3   : > { %4354 = vmatpush1.bf16.msra.mxu0 %v7234_v39  ;;  %4559 = vmatpush1.bf16.msra.mxu1 %v7236_v29  ;;  %v7299_v39 = vcombine.high %v665_v22, %v669_v23  ;;  %v7301_v29 = vcombine.high %v666_v25, %v670_v26  ;;  %v722_v22 = vld [vmem:[%s8194_s15 + $0xc58] sm:$0xff]  ;;  %v7348_v26 = vcombine.low %v714_v14, %v718_v15 }
 0x1c4   : > { %4355 = vmatprep.subr.bf16.mxu0 %v7243_v60  ;;  %4560 = vmatprep.subr.bf16.mxu1 %v7245_v32  ;;  %v673_v60 = vld [vmem:[%s8194_s15 + $0xad0] sm:$0xff]  ;;  %v726_v23 = vld [vmem:[%s8194_s15 + $0xc78] sm:$0xff] }
 0x1c5   : > { %v677_v32 = vld [vmem:[%s8194_s15 + $0xaf0] sm:$0xff] }
 0x1c6   : > { %v7306_v43 = vcombine.low %v673_v60, %v677_v32 }
 0x1c7   : > { %4356 = vmatpush1.bf16.msra.mxu0 %v7242_v38  ;;  %4561 = vmatpush1.bf16.msra.mxu1 %v7244_v49  ;;  %v7307_v38 = vcombine.high %v673_v60, %v677_v32  ;;  %v7309_v49 = vcombine.high %v674_v0, %v678_v34  ;;  %v730_v60 = vld [vmem:[%s8194_s15 + $0xc98] sm:$0xff]  ;;  %v7356_v34 = vcombine.low %v722_v22, %v726_v23 }
 0x1c8   : > { %4357 = vmatprep.subr.bf16.mxu0 %v7251_v40  ;;  %4562 = vmatprep.subr.bf16.mxu1 %v7253_v41  ;;  %v681_v40 = vld [vmem:[%s8194_s15 + $0xb10] sm:$0xff]  ;;  %v734_v32 = vld [vmem:[%s8194_s15 + $0xcb8] sm:$0xff] }
 0x1c9   : > { %v685_v41 = vld [vmem:[%s8194_s15 + $0xb30] sm:$0xff] }
 0x1ca   : > { %v7314_v53 = vcombine.low %v681_v40, %v685_v41 }
 0x1cb   : > { %4358 = vmatpush1.bf16.msra.mxu0 %v7250_v46  ;;  %4563 = vmatpush1.bf16.msra.mxu1 %v7252_v47  ;;  %v7315_v46 = vcombine.high %v681_v40, %v685_v41  ;;  %v7317_v47 = vcombine.high %v682_v54, %v686_v42  ;;  %v738_v40 = vld [vmem:[%s8194_s15 + $0xcd8] sm:$0xff]  ;;  %v7364_v54 = vcombine.low %v730_v60, %v734_v32 }
 0x1cc   : > { %4359 = vmatprep.subr.bf16.mxu0 %v7259_v48  ;;  %4564 = vmatprep.subr.bf16.mxu1 %v7261_v50  ;;  %v689_v48 = vld [vmem:[%s8194_s15 + $0xb50] sm:$0xff]  ;;  %v742_v41 = vld [vmem:[%s8194_s15 + $0xcf8] sm:$0xff] }
 0x1cd   : > { %v693_v50 = vld [vmem:[%s8194_s15 + $0xb70] sm:$0xff] }
 0x1ce   : > { %v7322_v1 = vcombine.low %v689_v48, %v693_v50 }
 0x1cf   : > { %4360 = vmatpush1.bf16.msra.mxu0 %v7258_v56  ;;  %4565 = vmatpush1.bf16.msra.mxu1 %v7260_v57  ;;  %v7323_v56 = vcombine.high %v689_v48, %v693_v50  ;;  %v7325_v57 = vcombine.high %v690_v51, %v694_v52  ;;  %v750_v48 = vld [vmem:[%s8194_s15 + $0xd38] sm:$0xff] }
 0x1d0   : > { %4361 = vmatprep.subr.bf16.mxu0 %v7267_v58  ;;  %4566 = vmatprep.subr.bf16.mxu1 %v7269_v61  ;;  %v697_v58 = vld [vmem:[%s8194_s15 + $0xb90] sm:$0xff] }
 0x1d1   : > { %v701_v61 = vld [vmem:[%s8194_s15 + $0xbb0] sm:$0xff] }
 0x1d2   : > { %v7330_v8 = vcombine.low %v697_v58, %v701_v61 }
 0x1d3   : > { %4362 = vmatpush1.bf16.msra.mxu0 %v7266_v2  ;;  %4567 = vmatpush1.bf16.msra.mxu1 %v7268_v3  ;;  %v7331_v2 = vcombine.high %v697_v58, %v701_v61  ;;  %v7333_v3 = vcombine.high %v698_v62, %v702_v63  ;;  %v754_v58 = vld [vmem:[%s8194_s15 + $0xd58] sm:$0xff] }
 0x1d4   : > { %4363 = vmatprep.subr.bf16.mxu0 %v7275_v4  ;;  %4568 = vmatprep.subr.bf16.mxu1 %v7277_v5  ;;  %v705_v4 = vld [vmem:[%s8194_s15 + $0xbd0] sm:$0xff]  ;;  %v758_v61 = vld [vmem:[%s8194_s15 + $0xd78] sm:$0xff] }
 0x1d5   : > { %v709_v5 = vld [vmem:[%s8194_s15 + $0xbf0] sm:$0xff] }
 0x1d6   : > { %v7338_v16 = vcombine.low %v705_v4, %v709_v5 }
 0x1d7   : > { %4364 = vmatpush1.bf16.msra.mxu0 %v7274_v11  ;;  %4569 = vmatpush1.bf16.msra.mxu1 %v7276_v12  ;;  %v7339_v11 = vcombine.high %v705_v4, %v709_v5  ;;  %v7341_v12 = vcombine.high %v706_v30, %v710_v7  ;;  %v765_v4 = vld [vmem:[%s8194_s15 + $0xdb0] sm:$0xff]  ;;  %v762_v5 = vld [vmem:[%s8194_s15 + $0xd98] sm:$0xff] }
 0x1d8   : > { %4365 = vmatprep.subr.bf16.mxu0 %v7283_v24  ;;  %4570 = vmatprep.subr.bf16.mxu1 %v7285_v13  ;;  %v713_v24 = vld [vmem:[%s8194_s15 + $0xc10] sm:$0xff]  ;;  %v766_v30 = vld [vmem:[%s8194_s15 + $0xdb8] sm:$0xff] }
 0x1d9   : > { %v717_v13 = vld [vmem:[%s8194_s15 + $0xc30] sm:$0xff] }
 0x1da   : > { %v7346_v25 = vcombine.low %v713_v24, %v717_v13 }
 0x1db   : > { %4366 = vmatpush1.bf16.msra.mxu0 %v7282_v19  ;;  %4571 = vmatpush1.bf16.msra.mxu1 %v7284_v20  ;;  %v7347_v19 = vcombine.high %v713_v24, %v717_v13  ;;  %v7349_v20 = vcombine.high %v714_v14, %v718_v15  ;;  %v7397_v24 = vcombine.high %v762_v5, %v766_v30  ;;  %v769_v13 = vld [vmem:[%s8194_s15 + $0xdd0] sm:$0xff] }
 0x1dc   : > { %4367 = vmatprep.subr.bf16.mxu0 %v7291_v21  ;;  %4572 = vmatprep.subr.bf16.mxu1 %v7293_v33  ;;  %v721_v21 = vld [vmem:[%s8194_s15 + $0xc50] sm:$0xff] }
 0x1dd   : > { %v725_v33 = vld [vmem:[%s8194_s15 + $0xc70] sm:$0xff] }
 0x1de   : > { %v7354_v0 = vcombine.low %v721_v21, %v725_v33  ;;  %v773_v14 = vld [vmem:[%s8194_s15 + $0xdf0] sm:$0xff] }
 0x1df   : > { %4368 = vmatpush1.bf16.msra.mxu0 %v7290_v27  ;;  %4573 = vmatpush1.bf16.msra.mxu1 %v7292_v28  ;;  %v7355_v27 = vcombine.high %v721_v21, %v725_v33  ;;  %v7357_v28 = vcombine.high %v722_v22, %v726_v23 }
 0x1e0   : > { %4369 = vmatprep.subr.bf16.mxu0 %v7299_v39  ;;  %4574 = vmatprep.subr.bf16.mxu1 %v7301_v29  ;;  %v729_v39 = vld [vmem:[%s8194_s15 + $0xc90] sm:$0xff] }
 0x1e1   : > { %v733_v29 = vld [vmem:[%s8194_s15 + $0xcb0] sm:$0xff] }
 0x1e3   : > { %4370 = vmatpush1.bf16.msra.mxu0 %v7298_v36  ;;  %4575 = vmatpush1.bf16.msra.mxu1 %v7300_v37  ;;  %v7363_v36 = vcombine.high %v729_v39, %v733_v29  ;;  %v7365_v37 = vcombine.high %v730_v60, %v734_v32  ;;  %v777_v32 = vld [vmem:[%s8194_s15 + $0xe10] sm:$0xff] }
 0x1e4   : > { %4371 = vmatprep.subr.bf16.mxu0 %v7307_v38  ;;  %4576 = vmatprep.subr.bf16.mxu1 %v7309_v49  ;;  %v737_v38 = vld [vmem:[%s8194_s15 + $0xcd0] sm:$0xff] }
 0x1e5   : > { %v741_v49 = vld [vmem:[%s8194_s15 + $0xcf0] sm:$0xff] }
 0x1e6   : > { %v7371_v42 = vcombine.high %v737_v38, %v741_v49  ;;  %v7370_v50 = vcombine.low %v737_v38, %v741_v49  ;;  %v323_v38 = vld [vmem:[#allocation2] sm:$0xff]  ;;  %v7402_v49 = vcombine.low %v769_v13, %v773_v14 }
 0x1e7   : > { %4372 = vmatpush1.bf16.msra.mxu0 %v7306_v43  ;;  %4577 = vmatpush1.bf16.msra.mxu1 %v7308_v44  ;;  %v7373_v43 = vcombine.high %v738_v40, %v742_v41  ;;  %v745_v44 = vld [vmem:[%s8194_s15 + $0xd10] sm:$0xff] }
 0x1e8   : > { %4373 = vmatprep.subr.bf16.mxu0 %v7315_v46  ;;  %4578 = vmatprep.subr.bf16.mxu1 %v7317_v47  ;;  %v749_v46 = vld [vmem:[%s8194_s15 + $0xd30] sm:$0xff]  ;;  %v746_v47 = vld [vmem:[%s8194_s15 + $0xd18] sm:$0xff] }
 0x1e9   : > { %v7379_v51 = vcombine.high %v745_v44, %v749_v46  ;;  %v7381_v52 = vcombine.high %v746_v47, %v750_v48  ;;  %v7378_v62 = vcombine.low %v745_v44, %v749_v46  ;;  %v7380_v63 = vcombine.low %v746_v47, %v750_v48  ;;  %v786_v46 = vld [vmem:[%s8194_s15 + $0xe58] sm:$0xff] }
 0x1ea   : > { %v790_v47 = vld [vmem:[%s8194_s15 + $0xe78] sm:$0xff] }
 0x1eb   : > { %4374 = vmatpush1.bf16.msra.mxu0 %v7314_v53  ;;  %4579 = vmatpush1.bf16.msra.mxu1 %v7316_v55  ;;  %v8127_v53 = vmov 1983009808  }
 0x1ec   : > { %4375 = vmatprep.subr.bf16.mxu0 %v7323_v56  ;;  %4580 = vmatprep.subr.bf16.mxu1 %v7325_v57  ;;  %v4688_v55 = vunpack.c.l.s4 %v8127_v53  ;;  %v753_v56 = vld [vmem:[%s8194_s15 + $0xd50] sm:$0xff] }
 0x1ed   : > { %v757_v57 = vld [vmem:[%s8194_s15 + $0xd70] sm:$0xff] }
 0x1ee   : > { %v7386_v7 = vcombine.low %v753_v56, %v757_v57  ;;  %v797_v53 = vld [vmem:[%s8194_s15 + $0xeb0] sm:$0xff] }
 0x1ef   : > { %4376 = vmatpush1.bf16.msra.mxu0 %v7322_v1  ;;  %4581 = vmatpush1.bf16.msra.mxu1 %v7324_v10  ;;  %v7387_v1 = vcombine.high %v753_v56, %v757_v57  ;;  %v4689_v10 = vunpack.c.0.s8 %v4688_v55  ;;  %v794_v55 = vld [vmem:[%s8194_s15 + $0xe98] sm:$0xff] }
 0x1f0   : > { %4377 = vmatprep.subr.bf16.mxu0 %v7331_v2  ;;  %4582 = vmatprep.subr.bf16.mxu1 %v7333_v3  ;;  %v7389_v2 = vcombine.high %v754_v58, %v758_v61  ;;  %v761_v3 = vld [vmem:[%s8194_s15 + $0xd90] sm:$0xff]  ;;  %v798_v56 = vld [vmem:[%s8194_s15 + $0xeb8] sm:$0xff] }
 0x1f1   : > { %v7394_v22 = vcombine.low %v761_v3, %v765_v4 }
 0x1f3   : > { %4378 = vmatpush1.bf16.msra.mxu0 %v7330_v8  ;;  %4583 = vmatpush1.bf16.msra.mxu1 %v7332_v9  ;;  %v7388_v8 = vcombine.low %v754_v58, %v758_v61  ;;  %v7395_v9 = vcombine.high %v761_v3, %v765_v4  ;;  %v7420_v58 = vcombine.low %v786_v46, %v790_v47 }
 0x1f4   : > { %4379 = vmatprep.subr.bf16.mxu0 %v7339_v11  ;;  %4584 = vmatprep.subr.bf16.mxu1 %v7341_v12  ;;  %v8795_v12 = vsub.s32 %v4689_v10, %v8219_v45  ;;  %v802_v10 = vld [vmem:[%s8194_s15 + $0xed8] sm:$0xff]  ;;  %v7428_v4 = vcombine.low %v794_v55, %v798_v56 }
 0x1f7   : > { %4380 = vmatpush1.bf16.msra.mxu0 %v7338_v16  ;;  %4585 = vmatpush1.bf16.msra.mxu1 %v7340_v18  ;;  %v770_v18 = vld [vmem:[%s8194_s15 + $0xdd8] sm:$0xff] }
 0x1f8   : > { %4390 = vmatprep.subr.bf16.mxu0 %v7347_v19  ;;  %4595 = vmatprep.subr.bf16.mxu1 %v7349_v20  ;;  %v774_v19 = vld [vmem:[%s8194_s15 + $0xdf8] sm:$0xff] }
 0x1f9   : > { %v7405_v60 = vcombine.high %v770_v18, %v774_v19 }
 0x1fa   : > { %4382 = vmatmul.mubr.bf16.vlgmr.msra.gmra.mrb[4].mxu0 %v8446_v59  ;;  %4587 = vmatmul.mubr.bf16.vlgmr.msra.gmra.mrb[4].mxu1 %v8446_v59  ;;  %v7362_v59 = vcombine.low %v729_v39, %v733_v29 }
 0x1fb   : > { %4391 = vmatpush1.bf16.msra.mxu0 %v7346_v25  ;;  %4596 = vmatpush1.bf16.msra.mxu1 %v7348_v26 }
 0x1fc   : > { %4392 = vmatprep.subr.bf16.mxu0 %v7355_v27  ;;  %4597 = vmatprep.subr.bf16.mxu1 %v7357_v28  ;;  %v7396_v27 = vcombine.low %v762_v5, %v766_v30  ;;  %v7403_v28 = vcombine.high %v769_v13, %v773_v14 }
 0x1fd   : > { %4422 = vmatprep.mubr.bf16.mxu0 %v8454_v6  ;;  %4627 = vmatprep.mubr.bf16.mxu1 %v8454_v6  ;;  %v7372_v6 = vcombine.low %v738_v40, %v742_v41  ;;  %v7404_v41 = vcombine.low %v770_v18, %v774_v19  ;;  %v821_v18 = vld [vmem:[%s8194_s15 + $0xf70] sm:$0xff]  ;;  %v818_v19 = vld [vmem:[%s8194_s15 + $0xf58] sm:$0xff] }
 0x1ff   : > { %4393 = vmatpush1.bf16.msra.mxu0 %v7354_v0  ;;  %4598 = vmatpush1.bf16.msra.mxu1 %v7356_v34  ;;  %v781_v0 = vld [vmem:[%s8194_s15 + $0xe30] sm:$0xff] }
 0x200   : > { %4394 = vmatprep.subr.bf16.mxu0 %v7363_v36  ;;  %4599 = vmatprep.subr.bf16.mxu1 %v7365_v37  ;;  %v778_v36 = vld [vmem:[%s8194_s15 + $0xe18] sm:$0xff]  ;;  %v7410_v48 = vcombine.low %v777_v32, %v781_v0 }
 0x201   : > { %v782_v37 = vld [vmem:[%s8194_s15 + $0xe38] sm:$0xff] }
 0x203   : > { %4395 = vmatpush1.bf16.msra.mxu0 %v7362_v59  ;;  %4600 = vmatpush1.bf16.msra.mxu1 %v7364_v54  ;;  %v7411_v59 = vcombine.high %v777_v32, %v781_v0  ;;  %v7413_v54 = vcombine.high %v778_v36, %v782_v37  ;;  %v833_v0 = vld [vmem:[%s8194_s15 + $0xfd0] sm:$0xff] }
 0x204   : > { %4396 = vmatprep.subr.bf16.mxu0 %v7371_v42  ;;  %4601 = vmatprep.subr.bf16.mxu1 %v7373_v43  ;;  %v785_v42 = vld [vmem:[%s8194_s15 + $0xe50] sm:$0xff] }
 0x205   : > { %v789_v43 = vld [vmem:[%s8194_s15 + $0xe70] sm:$0xff] }
 0x206   : > { %v7418_v57 = vcombine.low %v785_v42, %v789_v43 }
 0x207   : > { %4397 = vmatpush1.bf16.msra.mxu0 %v7370_v50  ;;  %4602 = vmatpush1.bf16.msra.mxu1 %v7372_v6  ;;  %v7412_v50 = vcombine.low %v778_v36, %v782_v37  ;;  %v7419_v6 = vcombine.high %v785_v42, %v789_v43  ;;  %v834_v36 = vld [vmem:[%s8194_s15 + $0xfd8] sm:$0xff] }
 0x208   : > { %4398 = vmatprep.subr.bf16.mxu0 %v7379_v51  ;;  %4603 = vmatprep.subr.bf16.mxu1 %v7381_v52  ;;  %v7421_v51 = vcombine.high %v786_v46, %v790_v47  ;;  %v793_v52 = vld [vmem:[%s8194_s15 + $0xe90] sm:$0xff]  ;;  %v838_v37 = vld [vmem:[%s8194_s15 + $0xff8] sm:$0xff] }
 0x209   : > { %v7427_v61 = vcombine.high %v793_v52, %v797_v53  ;;  %v7426_v3 = vcombine.low %v793_v52, %v797_v53  ;;  %v842_v42 = vld [vmem:[%s8194_s15 + $0x1018] sm:$0xff]  ;;  %v7468_v46 = vcombine.low %v834_v36, %v838_v37 }
 0x20a   : > { %v846_v43 = vld [vmem:[%s8194_s15 + $0x1038] sm:$0xff] }
 0x20b   : > { %4399 = vmatpush1.bf16.msra.mxu0 %v7378_v62  ;;  %4604 = vmatpush1.bf16.msra.mxu1 %v7380_v63  ;;  %v7429_v62 = vcombine.high %v794_v55, %v798_v56  ;;  %v801_v63 = vld [vmem:[%s8194_s15 + $0xed0] sm:$0xff]  ;;  %v854_v52 = vld [vmem:[%s8194_s15 + $0x1078] sm:$0xff]  ;;  %v7476_v55 = vcombine.low %v842_v42, %v846_v43 }
 0x20c   : > { %4400 = vmatprep.subr.bf16.mxu0 %v7387_v1  ;;  %4605 = vmatprep.subr.bf16.mxu1 %v7389_v2  ;;  %v805_v1 = vld [vmem:[%s8194_s15 + $0xef0] sm:$0xff]  ;;  %v806_v2 = vld [vmem:[%s8194_s15 + $0xef8] sm:$0xff] }
 0x20d   : > { %v4055_v11 = vpop.f32.mrb[0].mxu0  ;;  %v4260_v15 = vpop.f32.mrb[0].mxu1  ;;  %v7435_v5 = vcombine.high %v801_v63, %v805_v1  ;;  %v7437_v30 = vcombine.high %v802_v10, %v806_v2  ;;  %v7436_v13 = vcombine.low %v802_v10, %v806_v2 }
 0x20e   : > { %v4057_v16 = vpop.f32.mrb[1].mxu0  ;;  %v4262_v21 = vpop.f32.mrb[1].mxu1 }
 0x20f   : > { %v4685_v20 = vcombine.low %v4055_v11, %v4057_v16  ;;  %v4059_v33 = vpop.f32.mrb[2].mxu0  ;;  %4401 = vmatpush1.bf16.msra.mxu0 %v7386_v7  ;;  %v4686_v23 = vcombine.low %v4260_v15, %v4262_v21  ;;  %v4264_v25 = vpop.f32.mrb[2].mxu1  ;;  %4606 = vmatpush1.bf16.msra.mxu1 %v7388_v8  ;;  %v809_v7 = vld [vmem:[%s8194_s15 + $0xf10] sm:$0xff]  ;;  %v814_v11 = vld [vmem:[%s8194_s15 + $0xf38] sm:$0xff] }
 0x210   : > { %v4060_v26 = vpop.f32.mrb[3].mxu0  ;;  %4402 = vmatprep.subr.bf16.mxu0 %v7395_v9  ;;  %v4265_v29 = vpop.f32.mrb[3].mxu1  ;;  %4607 = vmatprep.subr.bf16.mxu1 %v7397_v24  ;;  %v813_v8 = vld [vmem:[%s8194_s15 + $0xf30] sm:$0xff]  ;;  %v810_v9 = vld [vmem:[%s8194_s15 + $0xf18] sm:$0xff]  ;;  %v7434_v24 = vcombine.low %v801_v63, %v805_v1 }
 0x211   : > { %v4693_v39 = vrot.slane %v4685_v20, %v8795_v12  ;;  %v4700_v34 = vrot.slane %v4686_v23, %v8795_v12  ;;  %v7443_v14 = vcombine.high %v809_v7, %v813_v8  ;;  %v7445_v15 = vcombine.high %v810_v9, %v814_v11  ;;  %v817_v16 = vld [vmem:[%s8194_s15 + $0xf50] sm:$0xff]  ;;  %v822_v20 = vld [vmem:[%s8194_s15 + $0xf78] sm:$0xff] }
 0x212   : > { %v7442_v21 = vcombine.low %v809_v7, %v813_v8  ;;  %v7444_v33 = vcombine.low %v810_v9, %v814_v11  ;;  %v7453_v23 = vcombine.high %v818_v19, %v822_v20  ;;  %v825_v25 = vld [vmem:[%s8194_s15 + $0xf90] sm:$0xff]  ;;  %v7452_v29 = vcombine.low %v818_v19, %v822_v20  ;;  %v862_v63 = vld [vmem:[%s8194_s15 + $0x10b8] sm:$0xff] }
 0x213   : > { %4403 = vmatpush1.bf16.msra.mxu0 %v7394_v22  ;;  %v4701_v40 = vcombine.low %v4693_v39, %v4700_v34  ;;  %4608 = vmatpush1.bf16.msra.mxu1 %v7396_v27  ;;  %v7451_v22 = vcombine.high %v817_v16, %v821_v18  ;;  %v829_v26 = vld [vmem:[%s8194_s15 + $0xfb0] sm:$0xff]  ;;  %v826_v27 = vld [vmem:[%s8194_s15 + $0xf98] sm:$0xff]  ;;  %v7450_v39 = vcombine.low %v817_v16, %v821_v18 }
 0x214   : > { %4404 = vmatprep.subr.bf16.mxu0 %v7403_v28  ;;  %4609 = vmatprep.subr.bf16.mxu1 %v7405_v60  ;;  %v830_v28 = vld [vmem:[%s8194_s15 + $0xfb8] sm:$0xff]  ;;  %v7459_v60 = vcombine.high %v825_v25, %v829_v26  ;;  %v837_v34 = vld [vmem:[%s8194_s15 + $0xff0] sm:$0xff] }
 0x215   : > { %v4721_v44 = vadd.f32 %v4701_v40, %v323_v38  ;;  %v7461_v32 = vcombine.high %v826_v27, %v830_v28  ;;  %v7458_v38 = vcombine.low %v825_v25, %v829_v26  ;;  %v7467_v40 = vcombine.high %v833_v0, %v837_v34  ;;  %v870_v7 = vld [vmem:[%s8194_s15 + $0x10f8] sm:$0xff]  ;;  %v881_v20 = vld [vmem:[%s8194_s15 + $0x1150] sm:$0xff] }
 0x217   : > { %4405 = vmatpush1.bf16.msra.mxu0 %v7402_v49  ;;  %4723 = vst [vmem:[#allocation2] sm:$0xff] %v4721_v44  ;;  %4610 = vmatpush1.bf16.msra.mxu1 %v7404_v41  ;;  %v7460_v49 = vcombine.low %v826_v27, %v830_v28  ;;  %v7469_v41 = vcombine.high %v834_v36, %v838_v37  ;;  %v889_v28 = vld [vmem:[%s8194_s15 + $0x1190] sm:$0xff] }
 0x218   : > { %4406 = vmatprep.subr.bf16.mxu0 %v7411_v59  ;;  %4611 = vmatprep.subr.bf16.mxu1 %v7413_v54  ;;  %v841_v59 = vld [vmem:[%s8194_s15 + $0x1010] sm:$0xff]  ;;  %v7466_v44 = vcombine.low %v833_v0, %v837_v34 }
 0x219   : > { %v845_v54 = vld [vmem:[%s8194_s15 + $0x1030] sm:$0xff] }
 0x21a   : > { %v7475_v47 = vcombine.high %v841_v59, %v845_v54  ;;  %v7474_v53 = vcombine.low %v841_v59, %v845_v54  ;;  %v897_v37 = vld [vmem:[%s8194_s15 + $0x11d0] sm:$0xff] }
 0x21b   : > { %4407 = vmatpush1.bf16.msra.mxu0 %v7410_v48  ;;  %4612 = vmatpush1.bf16.msra.mxu1 %v7412_v50  ;;  %v7477_v48 = vcombine.high %v842_v42, %v846_v43  ;;  %v849_v50 = vld [vmem:[%s8194_s15 + $0x1050] sm:$0xff] }
 0x21c   : > { %4408 = vmatprep.subr.bf16.mxu0 %v7419_v6  ;;  %4613 = vmatprep.subr.bf16.mxu1 %v7421_v51  ;;  %v853_v6 = vld [vmem:[%s8194_s15 + $0x1070] sm:$0xff]  ;;  %v850_v51 = vld [vmem:[%s8194_s15 + $0x1058] sm:$0xff] }
 0x21d   : > { %v7483_v56 = vcombine.high %v849_v50, %v853_v6  ;;  %v7482_v1 = vcombine.low %v849_v50, %v853_v6  ;;  %v7484_v10 = vcombine.low %v850_v51, %v854_v52 }
 0x21f   : > { %4409 = vmatpush1.bf16.msra.mxu0 %v7418_v57  ;;  %4614 = vmatpush1.bf16.msra.mxu1 %v7420_v58  ;;  %v7485_v57 = vcombine.high %v850_v51, %v854_v52  ;;  %v857_v58 = vld [vmem:[%s8194_s15 + $0x1090] sm:$0xff] }
 0x220   : > { %4410 = vmatprep.subr.bf16.mxu0 %v7427_v61  ;;  %4615 = vmatprep.subr.bf16.mxu1 %v7429_v62  ;;  %v861_v61 = vld [vmem:[%s8194_s15 + $0x10b0] sm:$0xff]  ;;  %v858_v62 = vld [vmem:[%s8194_s15 + $0x1098] sm:$0xff] }
 0x221   : > { %v7491_v2 = vcombine.high %v857_v58, %v861_v61  ;;  %v7492_v8 = vcombine.low %v858_v62, %v862_v63 }
 0x223   : > { %4411 = vmatpush1.bf16.msra.mxu0 %v7426_v3  ;;  %4616 = vmatpush1.bf16.msra.mxu1 %v7428_v4  ;;  %v7493_v3 = vcombine.high %v858_v62, %v862_v63  ;;  %v865_v4 = vld [vmem:[%s8194_s15 + $0x10d0] sm:$0xff] }
 0x224   : > { %4412 = vmatprep.subr.bf16.mxu0 %v7435_v5  ;;  %4617 = vmatprep.subr.bf16.mxu1 %v7437_v30  ;;  %v869_v5 = vld [vmem:[%s8194_s15 + $0x10f0] sm:$0xff]  ;;  %v866_v30 = vld [vmem:[%s8194_s15 + $0x10d8] sm:$0xff] }
 0x225   : > { %v7499_v9 = vcombine.high %v865_v4, %v869_v5  ;;  %v7501_v11 = vcombine.high %v866_v30, %v870_v7  ;;  %v7498_v16 = vcombine.low %v865_v4, %v869_v5  ;;  %v7902_v4 = vld [vmem:[%s9807_s4 + $0x20] ss:$8 sps:$4 sm:$0xff] (!%p7534_p6)   ;;  %v7903_v5 = vld [vmem:[%s9807_s4 + $0x34] ss:$8 sps:$4 sm:$0xff] (!%p7534_p6)  }
 0x227   : > { %4413 = vmatpush1.bf16.msra.mxu0 %v7434_v24  ;;  %4618 = vmatpush1.bf16.msra.mxu1 %v7436_v13  ;;  %v873_v24 = vld [vmem:[%s8194_s15 + $0x1110] sm:$0xff] }
 0x228   : > { %4414 = vmatprep.subr.bf16.mxu0 %v7443_v14  ;;  %4619 = vmatprep.subr.bf16.mxu1 %v7445_v15  ;;  %v877_v13 = vld [vmem:[%s8194_s15 + $0x1130] sm:$0xff]  ;;  %v874_v14 = vld [vmem:[%s8194_s15 + $0x1118] sm:$0xff] }
 0x229   : > { %v878_v15 = vld [vmem:[%s8194_s15 + $0x1138] sm:$0xff]  ;;  %v7507_v18 = vcombine.high %v873_v24, %v877_v13 }
 0x22a   : > { %v7509_v19 = vcombine.high %v874_v14, %v878_v15  ;;  %v7508_v25 = vcombine.low %v874_v14, %v878_v15  ;;  %v7911_v14 = vld [vmem:[%s9807_s4 + $0x50] ss:$8 sps:$4 sm:$0xff] (!%p7534_p6)   ;;  %v7912_v15 = vld [vmem:[%s9807_s4 + $0x64] ss:$8 sps:$4 sm:$0xff] (!%p7534_p6)  }
 0x22b   : > { %4415 = vmatpush1.bf16.msra.mxu0 %v7442_v21  ;;  %4620 = vmatpush1.bf16.msra.mxu1 %v7444_v33  ;;  %v885_v21 = vld [vmem:[%s8194_s15 + $0x1170] sm:$0xff]  ;;  %v882_v33 = vld [vmem:[%s8194_s15 + $0x1158] sm:$0xff] }
 0x22c   : > { %4416 = vmatprep.subr.bf16.mxu0 %v7451_v22  ;;  %4621 = vmatprep.subr.bf16.mxu1 %v7453_v23  ;;  %v886_v22 = vld [vmem:[%s8194_s15 + $0x1178] sm:$0xff]  ;;  %v7506_v23 = vcombine.low %v873_v24, %v877_v13  ;;  %v7515_v26 = vcombine.high %v881_v20, %v885_v21  ;;  %v8916_v24 = vsub.s32 (!%p7534_p6), 2, %v8219_v45  ;;  %v8919_v13 = vsub.s32 (!%p7534_p6), 3, %v8219_v45 }
 0x22d   : > { %v7517_v27 = vcombine.high %v882_v33, %v886_v22  ;;  %v7516_v0 = vcombine.low %v882_v33, %v886_v22  ;;  %v7914_v33 = vld [vmem:[%s9807_s4 + $0x60] ss:$8 sps:$4 sm:$0xff] (!%p7534_p6)  }
 0x22f   : > { %4417 = vmatpush1.bf16.msra.mxu0 %v7450_v39  ;;  %4622 = vmatpush1.bf16.msra.mxu1 %v7452_v29  ;;  %v893_v39 = vld [vmem:[%s8194_s15 + $0x11b0] sm:$0xff]  ;;  %v890_v29 = vld [vmem:[%s8194_s15 + $0x1198] sm:$0xff] }
 0x230   : > { %4418 = vmatprep.subr.bf16.mxu0 %v7459_v60  ;;  %4623 = vmatprep.subr.bf16.mxu1 %v7461_v32  ;;  %v894_v60 = vld [vmem:[%s8194_s15 + $0x11b8] sm:$0xff]  ;;  %v7514_v32 = vcombine.low %v881_v20, %v885_v21  ;;  %v7523_v34 = vcombine.high %v889_v28, %v893_v39  ;;  %v8943_v21 = vld [vmem:[%s9806_s3] sm:$0xff] (!%p7534_p6) }
 0x231   : > { %v7525_v36 = vcombine.high %v890_v29, %v894_v60  ;;  %v7524_v59 = vcombine.low %v890_v29, %v894_v60 }
 0x233   : > { %4419 = vmatpush1.bf16.msra.mxu0 %v7458_v38  ;;  %4624 = vmatpush1.bf16.msra.mxu1 %v7460_v49  ;;  %v901_v38 = vld [vmem:[%s8194_s15 + $0x11f0] sm:$0xff]  ;;  %v898_v49 = vld [vmem:[%s8194_s15 + $0x11d8] sm:$0xff] }
 0x234   : > { %4420 = vmatprep.subr.bf16.mxu0 %v7467_v40  ;;  %4625 = vmatprep.subr.bf16.mxu1 %v7469_v41  ;;  %v902_v40 = vld [vmem:[%s8194_s15 + $0x11f8] sm:$0xff]  ;;  %v7522_v41 = vcombine.low %v889_v28, %v893_v39  ;;  %v7531_v54 = vcombine.high %v897_v37, %v901_v38  ;;  %v7530_v43 = vcombine.low %v897_v37, %v901_v38 }
 0x235   : > { %v7533_v42 = vcombine.high %v898_v49, %v902_v40 }
 0x237   : > { %4421 = vmatpush1.bf16.msra.mxu0 %v7466_v44  ;;  %4626 = vmatpush1.bf16.msra.mxu1 %v7468_v46  ;;  %v7532_v44 = vcombine.low %v898_v49, %v902_v40  ;;  %v7918_v49 = vld [vmem:[%s9807_s4 + $0x84] ss:$8 sps:$4 sm:$0xff] (!%p7534_p6)  }
 0x238   : > { %4431 = vmatprep.subr.bf16.mxu0 %v7475_v47  ;;  %4636 = vmatprep.subr.bf16.mxu1 %v7477_v48 }
 0x23a   : > { %4423 = vmatmul.mubr.bf16.vlgmr.msra.gmra.mrb[4].mxu0 %v8522_v17  ;;  %4628 = vmatmul.mubr.bf16.vlgmr.msra.gmra.mrb[4].mxu1 %v8522_v17  ;;  %v7490_v17 = vcombine.low %v857_v58, %v861_v61  ;;  %v324_v61 = vld [vmem:[#allocation2 + $0x8] sm:$0xff] }
 0x23b   : > { %4432 = vmatpush1.bf16.msra.mxu0 %v7474_v53  ;;  %4637 = vmatpush1.bf16.msra.mxu1 %v7476_v55 }
 0x23c   : > { %4433 = vmatprep.subr.bf16.mxu0 %v7483_v56  ;;  %4638 = vmatprep.subr.bf16.mxu1 %v7485_v57 }
 0x23d   : > { %4463 = vmatprep.mubr.bf16.mxu0 %v8126_v35  ;;  %4668 = vmatprep.mubr.bf16.mxu1 %v8126_v35  ;;  %v7500_v35 = vcombine.low %v866_v30, %v870_v7  ;;  %v7905_v30 = vld [vmem:[%s9807_s4 + $0x30] ss:$8 sps:$4 sm:$0xff] (!%p7534_p6)   ;;  %v7906_v7 = vld [vmem:[%s9807_s4 + $0x44] ss:$8 sps:$4 sm:$0xff] (!%p7534_p6)  }
 0x23f   : > { %4434 = vmatpush1.bf16.msra.mxu0 %v7482_v1  ;;  %4639 = vmatpush1.bf16.msra.mxu1 %v7484_v10  ;;  %v7896_v1 = vld [vmem:[%s9807_s4] ss:$8 sps:$4 sm:$0xff] (!%p7534_p6)   ;;  %v7897_v10 = vld [vmem:[%s9807_s4 + $0x14] ss:$8 sps:$4 sm:$0xff] (!%p7534_p6)  }
 0x240   : > { %4435 = vmatprep.subr.bf16.mxu0 %v7491_v2  ;;  %4640 = vmatprep.subr.bf16.mxu1 %v7493_v3  ;;  %v7899_v2 = vld [vmem:[%s9807_s4 + $0x10] ss:$8 sps:$4 sm:$0xff] (!%p7534_p6)   ;;  %v7900_v3 = vld [vmem:[%s9807_s4 + $0x24] ss:$8 sps:$4 sm:$0xff] (!%p7534_p6)  }
 0x243   : > { %4436 = vmatpush1.bf16.msra.mxu0 %v7490_v17  ;;  %4641 = vmatpush1.bf16.msra.mxu1 %v7492_v8  ;;  %v7908_v17 = vld [vmem:[%s9807_s4 + $0x40] ss:$8 sps:$4 sm:$0xff] (!%p7534_p6)   ;;  %v7909_v8 = vld [vmem:[%s9807_s4 + $0x54] ss:$8 sps:$4 sm:$0xff] (!%p7534_p6)  }
 0x244   : > { %4437 = vmatprep.subr.bf16.mxu0 %v7499_v9  ;;  %4642 = vmatprep.subr.bf16.mxu1 %v7501_v11  ;;  %v8910_v9 = vsub.s32 (!%p7534_p6), 0, %v8219_v45  ;;  %v8913_v11 = vsub.s32 (!%p7534_p6), 1, %v8219_v45 }
 0x246   : > { %v4808_v22 = vrot.slane (!%p7534_p6), %v8943_v21, %v8910_v9 }
 0x247   : > { %4438 = vmatpush1.bf16.msra.mxu0 %v7498_v16  ;;  %4643 = vmatpush1.bf16.msra.mxu1 %v7500_v35  ;;  %v8930_v16 = vld [vmem:[%s9805_s2] sm:$0xff] (!%p7534_p6) }
 0x248   : > { %4439 = vmatprep.subr.bf16.mxu0 %v7507_v18  ;;  %4644 = vmatprep.subr.bf16.mxu1 %v7509_v19  ;;  %v4736_v35 = vrot.slane (!%p7534_p6), %v8930_v16, %v8910_v9  ;;  %v4740_v18 = vrot.slane (!%p7534_p6), %v8930_v16, %v8913_v11  ;;  %v4744_v19 = vrot.slane (!%p7534_p6), %v8930_v16, %v8916_v24 }
 0x249   : > { %v4748_v20 = vrot.slane (!%p7534_p6), %v8930_v16, %v8919_v13 }
 0x24a   : > { %v4765_v28 = vcombine.low (!%p7534_p6), %v4736_v35, %v4740_v18  ;;  %v7939_v35 = vld [vmem:[%s9807_s4 + $0xf4] ss:$8 sps:$4 sm:$0xff] (!%p7534_p6)  }
 0x24b   : > { %4440 = vmatpush1.bf16.msra.mxu0 %v7506_v23  ;;  %4645 = vmatpush1.bf16.msra.mxu1 %v7508_v25  ;;  %v4812_v23 = vrot.slane (!%p7534_p6), %v8943_v21, %v8913_v11  ;;  %v4816_v25 = vrot.slane (!%p7534_p6), %v8943_v21, %v8916_v24  ;;  %v4766_v39 = vcombine.low (!%p7534_p6), %v4744_v19, %v4748_v20 }
 0x24c   : > { %4441 = vmatprep.subr.bf16.mxu0 %v7515_v26  ;;  %4646 = vmatprep.subr.bf16.mxu1 %v7517_v27  ;;  %v4820_v26 = vrot.slane (!%p7534_p6), %v8943_v21, %v8919_v13  ;;  %v7915_v27 = vld [vmem:[%s9807_s4 + $0x74] ss:$8 sps:$4 sm:$0xff] (!%p7534_p6)  }
 0x24d   : > { %v4837_v29 = vcombine.low (!%p7534_p6), %v4808_v22, %v4812_v23  ;;  %v7944_v23 = vld [vmem:[%s9807_s4 + $0x104] ss:$8 sps:$4 sm:$0xff] (!%p7534_p6)  }
 0x24e   : > { %v4838_v60 = vcombine.low (!%p7534_p6), %v4816_v25, %v4820_v26 }
 0x24f   : > { %4442 = vmatpush1.bf16.msra.mxu0 %v7514_v32  ;;  %4647 = vmatpush1.bf16.msra.mxu1 %v7516_v0  ;;  %v4773_v32 = vrot.slane (!%p7534_p6), %v4765_v28, %v8795_v12  ;;  %v4780_v0 = vrot.slane (!%p7534_p6), %v4766_v39, %v8795_v12  ;;  %v4845_v37 = vrot.slane (!%p7534_p6), %v4837_v29, %v8795_v12  ;;  %v7942_v39 = vld [vmem:[%s9807_s4 + $0x100] ss:$8 sps:$4 sm:$0xff] (!%p7534_p6)  }
 0x250   : > { %4443 = vmatprep.subr.bf16.mxu0 %v7523_v34  ;;  %4648 = vmatprep.subr.bf16.mxu1 %v7525_v36  ;;  %v7917_v34 = vld [vmem:[%s9807_s4 + $0x70] ss:$8 sps:$4 sm:$0xff] (!%p7534_p6)   ;;  %v4729_v36 = vld [vmem:[#allocation2] sm:$0xff] (!%p7534_p6)  ;;  %v4852_v38 = vrot.slane (!%p7534_p6), %v4838_v60, %v8795_v12  ;;  %v7947_v60 = vld [vmem:[%s9807_s4 + $0x114] ss:$8 sps:$4 sm:$0xff] (!%p7534_p6)  }
 0x251   : > { %v4781_v40 = vcombine.low (!%p7534_p6), %v4773_v32, %v4780_v0 }
 0x253   : > { %4444 = vmatpush1.bf16.msra.mxu0 %v7522_v41  ;;  %4649 = vmatpush1.bf16.msra.mxu1 %v7524_v59  ;;  %v4853_v41 = vcombine.low (!%p7534_p6), %v4845_v37, %v4852_v38  ;;  %v4801_v59 = vmul.f32 (!%p7534_p6), %v4781_v40, %v4729_v36  ;;  %v7945_v36 = vld [vmem:[%s9807_s4 + $0x110] ss:$8 sps:$4 sm:$0xff] (!%p7534_p6)   ;;  %v7950_v37 = vld [vmem:[%s9807_s4 + $0x124] ss:$8 sps:$4 sm:$0xff] (!%p7534_p6)   ;;  %v7953_v40 = vld [vmem:[%s9807_s4 + $0x134] ss:$8 sps:$4 sm:$0xff] (!%p7534_p6)  }
 0x254   : > { %4445 = vmatprep.subr.bf16.mxu0 %v7531_v54  ;;  %4650 = vmatprep.subr.bf16.mxu1 %v7533_v42  ;;  %v7920_v54 = vld [vmem:[%s9807_s4 + $0x80] ss:$8 sps:$4 sm:$0xff] (!%p7534_p6)   ;;  %v7921_v42 = vld [vmem:[%s9807_s4 + $0x94] ss:$8 sps:$4 sm:$0xff] (!%p7534_p6)  }
 0x257   : > { %4446 = vmatpush1.bf16.msra.mxu0 %v7530_v43  ;;  %4651 = vmatpush1.bf16.msra.mxu1 %v7532_v44  ;;  %v4873_v43 = vadd.f32 (!%p7534_p6), %v4853_v41, %v4801_v59  ;;  %v7951_v41 = vld [vmem:[%s9807_s4 + $0x130] ss:$8 sps:$4 sm:$0xff] (!%p7534_p6)   ;;  %v7956_v59 = vld [vmem:[%s9807_s4 + $0x144] ss:$8 sps:$4 sm:$0xff] (!%p7534_p6)  }
 0x259   : > { %v4875_v44 = vmax.f32 (!%p7534_p6), %v4873_v43, 0.0  ;;  %v7957_v43 = vld [vmem:[%s9807_s4 + $0x150] ss:$8 sps:$4 sm:$0xff] (!%p7534_p6)  }
 0x25a   : > { %4464 = vmatmul.mubr.bf16.vlgmr.msra.gmra.mrb[4].mxu0 %v8562_v31  ;;  %4669 = vmatmul.mubr.bf16.vlgmr.msra.gmra.mrb[4].mxu1 %v8562_v31  ;;  %v7894_v31 = vld [vmem:[%s9807_s4 + $0x4] ss:$8 sps:$4 sm:$0xff] (!%p7534_p6)  }
 0x25b   : > { %5709 = vmatprep.subr.bf16.mxu0 (!%p7534_p6), %v7894_v31 }
 0x25c   : > { %5710 = vmatpush1.bf16.msra.mxu0 (!%p7534_p6), %v7896_v1 }
 0x25d   : > { %5711 = vmatprep.subr.bf16.mxu0 (!%p7534_p6), %v7897_v10 }
 0x260   : > { %5712 = vmatpush1.bf16.msra.mxu0 (!%p7534_p6), %v7899_v2  ;;  %v7935_v2 = vld [vmem:[%s9807_s4 + $0xd0] ss:$8 sps:$4 sm:$0xff] (!%p7534_p6)  }
 0x261   : > { %5713 = vmatprep.subr.bf16.mxu0 (!%p7534_p6), %v7900_v3  ;;  %v4879_v3 = vcombine.high (!%p7534_p6), %v4875_v44, %v4875_v44 }
 0x264   : > { %5714 = vmatpush1.bf16.msra.mxu0 (!%p7534_p6), %v7902_v4  ;;  %v7936_v4 = vld [vmem:[%s9807_s4 + $0xe4] ss:$8 sps:$4 sm:$0xff] (!%p7534_p6)  }
 0x265   : > { %5715 = vmatprep.subr.bf16.mxu0 (!%p7534_p6), %v7903_v5 }
 0x268   : > { %5716 = vmatpush1.bf16.msra.mxu0 (!%p7534_p6), %v7905_v30 }
 0x269   : > { %5717 = vmatprep.subr.bf16.mxu0 (!%p7534_p6), %v7906_v7 }
 0x26c   : > { %5718 = vmatpush1.bf16.msra.mxu0 (!%p7534_p6), %v7908_v17 }
 0x26d   : > { %5719 = vmatprep.subr.bf16.mxu0 (!%p7534_p6), %v7909_v8 }
 0x270   : > { %5720 = vmatpush1.bf16.msra.mxu0 (!%p7534_p6), %v7911_v14 }
 0x271   : > { %5721 = vmatprep.subr.bf16.mxu0 (!%p7534_p6), %v7912_v15  ;;  %v7938_v15 = vld [vmem:[%s9807_s4 + $0xe0] ss:$8 sps:$4 sm:$0xff] (!%p7534_p6)  }
 0x274   : > { %5722 = vmatpush1.bf16.msra.mxu0 (!%p7534_p6), %v7914_v33  ;;  %v7941_v33 = vld [vmem:[%s9807_s4 + $0xf0] ss:$8 sps:$4 sm:$0xff] (!%p7534_p6)  }
 0x275   : > { %5723 = vmatprep.subr.bf16.mxu0 (!%p7534_p6), %v7915_v27 }
 0x278   : > { %5724 = vmatpush1.bf16.msra.mxu0 (!%p7534_p6), %v7917_v34 }
 0x279   : > { %5725 = vmatprep.subr.bf16.mxu0 (!%p7534_p6), %v7918_v49  ;;  %v7948_v49 = vld [vmem:[%s9807_s4 + $0x120] ss:$8 sps:$4 sm:$0xff] (!%p7534_p6)  }
 0x27c   : > { %5726 = vmatpush1.bf16.msra.mxu0 (!%p7534_p6), %v7920_v54  ;;  %v7954_v54 = vld [vmem:[%s9807_s4 + $0x140] ss:$8 sps:$4 sm:$0xff] (!%p7534_p6)  }
 0x27d   : > { %5727 = vmatprep.subr.bf16.mxu0 (!%p7534_p6), %v7921_v42  ;;  %v7959_v42 = vld [vmem:[%s9807_s4 + $0x154] ss:$8 sps:$4 sm:$0xff] (!%p7534_p6)  }
 0x32d   : > { %v4465_v46 = vpop.f32.mrb[4].mxu0  ;;  %v4670_v47 = vpop.f32.mrb[4].mxu1 }
 0x32e   : > { %v4467_v48 = vpop.f32.mrb[5].mxu0  ;;  %v4672_v6 = vpop.f32.mrb[5].mxu1 }
 0x32f   : > { %v4702_v50 = vcombine.low %v4465_v46, %v4467_v48  ;;  %v4469_v51 = vpop.f32.mrb[6].mxu0  ;;  %v4703_v52 = vcombine.low %v4670_v47, %v4672_v6  ;;  %v4674_v53 = vpop.f32.mrb[6].mxu1  ;;  %v7923_v46 = vld [vmem:[%s9807_s4 + $0x90] ss:$8 sps:$4 sm:$0xff] (!%p7534_p6)   ;;  %v7924_v47 = vld [vmem:[%s9807_s4 + $0xa4] ss:$8 sps:$4 sm:$0xff] (!%p7534_p6)   ;;  %v4886_v48 = vrot.slane (!%p7534_p6), %v4875_v44, %v8795_v12 }
 0x330   : > { %v4470_v55 = vpop.f32.mrb[7].mxu0  ;;  %v4675_v57 = vpop.f32.mrb[7].mxu1  ;;  %5728 = vmatpush1.bf16.msra.mxu0 (!%p7534_p6), %v7923_v46  ;;  %v7926_v6 = vld [vmem:[%s9807_s4 + $0xa0] ss:$8 sps:$4 sm:$0xff] (!%p7534_p6)   ;;  %v7927_v51 = vld [vmem:[%s9807_s4 + $0xb4] ss:$8 sps:$4 sm:$0xff] (!%p7534_p6)  }
 0x331   : > { %v4710_v56 = vrot.slane %v4702_v50, %v8795_v12  ;;  %v4717_v58 = vrot.slane %v4703_v52, %v8795_v12  ;;  %4728 = sbr.rel (%p7534_p6) target bundleno = 1667 (0x683), region = 60  ;;  %v4894_v50 = vcombine.high (!%p7534_p6), %v4886_v48, %v4886_v48  ;;  %5729 = vmatprep.subr.bf16.mxu0 (!%p7534_p6), %v7924_v47  ;;  %v7929_v53 = vld [vmem:[%s9807_s4 + $0xb0] ss:$8 sps:$4 sm:$0xff] (!%p7534_p6)   ;;  %v7930_v55 = vld [vmem:[%s9807_s4 + $0xc4] ss:$8 sps:$4 sm:$0xff] (!%p7534_p6)   ;;  %v8998_v57 = vsub.s32 (!%p7534_p6), 5, %v8219_v45 }
 0x332   : > { %v4921_v27 = vpack.c.bf16 (!%p7534_p6), %v4886_v48, %v4886_v48  ;;  %v7962_v44 = vld [vmem:[%s9807_s4 + $0x164] ss:$8 sps:$4 sm:$0xff] (!%p7534_p6)   ;;  %v7960_v46 = vld [vmem:[%s9807_s4 + $0x160] ss:$8 sps:$4 sm:$0xff] (!%p7534_p6)   ;;  %v7965_v47 = vld [vmem:[%s9807_s4 + $0x174] ss:$8 sps:$4 sm:$0xff] (!%p7534_p6)  }
 0x333   : > { %v4718_v62 = vcombine.low %v4710_v56, %v4717_v58  ;;  %v4922_v52 = vpack.c.bf16 (!%p7534_p6), %v4894_v50, %v4894_v50  ;;  %v8995_v56 = vsub.s32 (!%p7534_p6), 4, %v8219_v45  ;;  %v9001_v58 = vsub.s32 (!%p7534_p6), 6, %v8219_v45  ;;  %v7963_v48 = vld [vmem:[%s9807_s4 + $0x170] ss:$8 sps:$4 sm:$0xff] (!%p7534_p6)   ;;  %v7968_v50 = vld [vmem:[%s9807_s4 + $0x184] ss:$8 sps:$4 sm:$0xff] (!%p7534_p6)  }
 0x334   : > { %5730 = vmatpush1.bf16.msra.mxu0 (!%p7534_p6), %v7926_v6  ;;  %v4756_v1 = vrot.slane (!%p7534_p6), %v8930_v16, %v8998_v57  ;;  %v4828_v30 = vrot.slane (!%p7534_p6), %v8943_v21, %v8998_v57  ;;  %v7966_v6 = vld [vmem:[%s9807_s4 + $0x180] ss:$8 sps:$4 sm:$0xff] (!%p7534_p6)  }
 0x335   : > { %v4722_v63 = vadd.f32 %v4718_v62, %v324_v61  ;;  %5741 = vmatprep.mubr.bf16.mxu0 (!%p7534_p6), %v4922_v52  ;;  %5731 = vmatprep.subr.bf16.mxu0 (!%p7534_p6), %v7927_v51  ;;  %v9004_v61 = vsub.s32 (!%p7534_p6), 7, %v8219_v45  ;;  %v7932_v62 = vld [vmem:[%s9807_s4 + $0xc0] ss:$8 sps:$4 sm:$0xff] (!%p7534_p6)   ;;  %v4752_v31 = vrot.slane (!%p7534_p6), %v8930_v16, %v8995_v56  ;;  %v4760_v45 = vrot.slane (!%p7534_p6), %v8930_v16, %v9001_v58  ;;  %v7971_v51 = vld [vmem:[%s9807_s4 + $0x194] ss:$8 sps:$4 sm:$0xff] (!%p7534_p6)  }
 0x336   : > { %v4824_v5 = vrot.slane (!%p7534_p6), %v8943_v21, %v8995_v56  ;;  %v4832_v7 = vrot.slane (!%p7534_p6), %v8943_v21, %v9001_v58  ;;  %v7969_v52 = vld [vmem:[%s9807_s4 + $0x190] ss:$8 sps:$4 sm:$0xff] (!%p7534_p6)  }
 0x337   : > { %4724 = vst [vmem:[#allocation2 + $0x8] sm:$0xff] %v4722_v63  ;;  %v7933_v63 = vld [vmem:[%s9807_s4 + $0xd4] ss:$8 sps:$4 sm:$0xff] (!%p7534_p6)   ;;  %v4764_v10 = vrot.slane (!%p7534_p6), %v8930_v16, %v9004_v61  ;;  %v4836_v17 = vrot.slane (!%p7534_p6), %v8943_v21, %v9004_v61  ;;  %v4782_v8 = vcombine.low (!%p7534_p6), %v4752_v31, %v4756_v1  ;;  %v9038_v16 = vrot.slane (!%p7534_p6), %v4879_v3, %v8795_v12  ;;  %v7980_v31 = vld [vmem:[%s9807_s4 + $0x1c4] ss:$8 sps:$4 sm:$0xff] (!%p7534_p6)  }
 0x338   : > { %5732 = vmatpush1.bf16.msra.mxu0 %v7929_v53  ;;  %v4854_v18 = vcombine.low %v4824_v5, %v4828_v30  ;;  %v7974_v53 = vld [vmem:[%s9807_s4 + $0x1a4] ss:$8 sps:$4 sm:$0xff]   ;;  %v7978_v1 = vld [vmem:[%s9807_s4 + $0x1c0] ss:$8 sps:$4 sm:$0xff]   ;;  %v7989_v30 = vld [vmem:[%s9807_s4 + $0x1f4] ss:$8 sps:$4 sm:$0xff]  }
 0x339   : > { %5733 = vmatprep.subr.bf16.mxu0 %v7930_v55  ;;  %v4783_v14 = vcombine.low %v4760_v45, %v4764_v10  ;;  %v4855_v19 = vcombine.low %v4832_v7, %v4836_v17  ;;  %v4790_v20 = vrot.slane %v4782_v8, %v8795_v12  ;;  %v4895_v22 = vcombine.high %v9038_v16, %v9038_v16  ;;  %v7972_v55 = vld [vmem:[%s9807_s4 + $0x1a0] ss:$8 sps:$4 sm:$0xff]   ;;  %v7983_v45 = vld [vmem:[%s9807_s4 + $0x1d4] ss:$8 sps:$4 sm:$0xff]   ;;  %v7981_v10 = vld [vmem:[%s9807_s4 + $0x1d0] ss:$8 sps:$4 sm:$0xff]  }
 0x33a   : > { %v4862_v25 = vrot.slane %v4854_v18, %v8795_v12  ;;  %v7986_v3 = vld [vmem:[%s9807_s4 + $0x1e4] ss:$8 sps:$4 sm:$0xff]   ;;  %v7987_v7 = vld [vmem:[%s9807_s4 + $0x1f0] ss:$8 sps:$4 sm:$0xff]   ;;  %v7995_v18 = vld [vmem:[%s9807_s4 + $0x214] ss:$8 sps:$4 sm:$0xff]  }
 0x33b   : > { %v4797_v21 = vrot.slane %v4783_v14, %v8795_v12  ;;  %v4869_v26 = vrot.slane %v4855_v19, %v8795_v12  ;;  %v4924_v29 = vpack.c.bf16 %v4895_v22, %v4895_v22  ;;  %v7992_v8 = vld [vmem:[%s9807_s4 + $0x204] ss:$8 sps:$4 sm:$0xff]   ;;  %v4923_v14 = vpack.c.bf16 %v9038_v16, %v9038_v16 }
 0x33c   : > { %5734 = vmatpush1.bf16.msra.mxu0 %v7932_v62  ;;  %v7977_v62 = vld [vmem:[%s9807_s4 + $0x1b4] ss:$8 sps:$4 sm:$0xff]   ;;  %v5875_v19 = vld [vmem:[%s9809_s6] sm:$0xff] }
 0x33d   : > { %5735 = vmatprep.subr.bf16.mxu0 %v7933_v63  ;;  %v4798_v28 = vcombine.low %v4790_v20, %v4797_v21  ;;  %v4870_v32 = vcombine.low %v4862_v25, %v4869_v26  ;;  %v7975_v63 = vld [vmem:[%s9807_s4 + $0x1b0] ss:$8 sps:$4 sm:$0xff]   ;;  %v5879_v16 = vld [vmem:[%s9809_s6 + $0x20] sm:$0xff] }
 0x33e   : > { %v4730_v0 = vld [vmem:[#allocation2 + $0x8] sm:$0xff]  ;;  %v5883_v20 = vld [vmem:[%s9809_s6 + $0x40] sm:$0xff]  ;;  %v7993_v21 = vld [vmem:[%s9807_s4 + $0x210] ss:$8 sps:$4 sm:$0xff]   ;;  %v7663_v22 = vcombine.low %v5875_v19, %v5879_v16 }
 0x33f   : > { %v4802_v34 = vmul.f32 %v4798_v28, %v4730_v0  ;;  %v7998_v25 = vld [vmem:[%s9807_s4 + $0x224] ss:$8 sps:$4 sm:$0xff]  }
 0x340   : > { %5736 = vmatpush1.bf16.msra.mxu0 %v7935_v2  ;;  %v5895_v28 = vld [vmem:[%s9809_s6 + $0xa0] sm:$0xff] }
 0x341   : > { %5737 = vmatprep.subr.bf16.mxu0 %v7936_v4  ;;  %v4874_v38 = vadd.f32 %v4870_v32, %v4802_v34  ;;  %v7984_v4 = vld [vmem:[%s9807_s4 + $0x1e0] ss:$8 sps:$4 sm:$0xff]   ;;  %v8001_v32 = vld [vmem:[%s9807_s4 + $0x234] ss:$8 sps:$4 sm:$0xff]  }
 0x342   : > { %v5899_v0 = vld [vmem:[%s9809_s6 + $0xc0] sm:$0xff] }
 0x343   : > { %v9136_v2 = vmax.f32 %v4874_v38, 0.0  ;;  %v5903_v34 = vld [vmem:[%s9809_s6 + $0xe0] sm:$0xff] }
 0x344   : > { %5738 = vmatpush1.bf16.msra.mxu0 %v7938_v15  ;;  %v7990_v15 = vld [vmem:[%s9807_s4 + $0x200] ss:$8 sps:$4 sm:$0xff]   ;;  %v7688_v38 = vcombine.high %v5899_v0, %v5903_v34 }
 0x345   : > { %5739 = vmatprep.subr.bf16.mxu0 %v7939_v35  ;;  %v9146_v5 = vrot.slane %v9136_v2, %v8795_v12 }
 0x347   : > { %v4911_v17 = vcombine.high %v9146_v5, %v9146_v5 }
 0x348   : > { %5740 = vmatpush1.bf16.msra.mxu0 %v7941_v33  ;;  %v7664_v33 = vcombine.high %v5875_v19, %v5879_v16  ;;  %v8017_v16 = vld [vmem:[%s9807_s4 + $0x290] ss:$8 sps:$4 sm:$0xff]  }
 0x349   : > { %5750 = vmatprep.subr.bf16.mxu0 %v7944_v23  ;;  %v4926_v35 = vpack.c.bf16 %v4911_v17, %v4911_v17  ;;  %v5887_v23 = vld [vmem:[%s9809_s6 + $0x60] sm:$0xff] }
 0x34a   : > { %v7672_v26 = vcombine.high %v5883_v20, %v5887_v23  ;;  %6685 = vmatprep.subr.bf16.mxu1 %v7664_v33  ;;  %v5955_v33 = vld [vmem:[%s9809_s6 + $0x280] sm:$0xff] }
 0x34b   : > { %5742 = vmatmul.mubr.bf16.vlgmr.msra.gmra.mrb[0].mxu0 %v4921_v27  ;;  %v5891_v27 = vld [vmem:[%s9809_s6 + $0x80] sm:$0xff]  ;;  %6686 = vmatpush1.bf16.msra.mxu1 %v7663_v22 }
 0x34c   : > { %5751 = vmatpush1.bf16.msra.mxu0 %v7942_v39  ;;  %5782 = vmatprep.mubr.bf16.mxu0 %v4924_v29  ;;  %v7671_v39 = vcombine.low %v5883_v20, %v5887_v23  ;;  %v7996_v29 = vld [vmem:[%s9807_s4 + $0x220] ss:$8 sps:$4 sm:$0xff]  }
 0x34d   : > { %5752 = vmatprep.subr.bf16.mxu0 %v7947_v60  ;;  %6687 = vmatprep.subr.bf16.mxu1 %v7672_v26  ;;  %v7680_v60 = vcombine.high %v5891_v27, %v5895_v28  ;;  %v5959_v22 = vld [vmem:[%s9809_s6 + $0x2a0] sm:$0xff] }
 0x34e   : > { %v7744_v26 = vcombine.high %v5955_v33, %v5959_v22 }
 0x34f   : > { %6688 = vmatpush1.bf16.msra.mxu1 %v7671_v39  ;;  %v5967_v39 = vld [vmem:[%s9809_s6 + $0x2e0] sm:$0xff] }
 0x350   : > { %5753 = vmatpush1.bf16.msra.mxu0 %v7945_v36  ;;  %v7679_v36 = vcombine.low %v5891_v27, %v5895_v28  ;;  %6689 = vmatprep.subr.bf16.mxu1 %v7680_v60  ;;  %v8025_v27 = vld [vmem:[%s9807_s4 + $0x2b4] ss:$8 sps:$4 sm:$0xff]   ;;  %v5963_v28 = vld [vmem:[%s9809_s6 + $0x2c0] sm:$0xff]  ;;  %v8023_v60 = vld [vmem:[%s9807_s4 + $0x2b0] ss:$8 sps:$4 sm:$0xff]  }
 0x351   : > { %5754 = vmatprep.subr.bf16.mxu0 %v7950_v37  ;;  %v7999_v37 = vld [vmem:[%s9807_s4 + $0x230] ss:$8 sps:$4 sm:$0xff]  }
 0x353   : > { %6690 = vmatpush1.bf16.msra.mxu1 %v7679_v36  ;;  %v5975_v36 = vld [vmem:[%s9809_s6 + $0x320] sm:$0xff] }
 0x354   : > { %5755 = vmatpush1.bf16.msra.mxu0 %v7948_v49  ;;  %v8004_v49 = vld [vmem:[%s9807_s4 + $0x244] ss:$8 sps:$4 sm:$0xff]   ;;  %6691 = vmatprep.subr.bf16.mxu1 %v7688_v38  ;;  %v8026_v38 = vld [vmem:[%s9807_s4 + $0x2c0] ss:$8 sps:$4 sm:$0xff]  }
 0x355   : > { %5756 = vmatprep.subr.bf16.mxu0 %v7953_v40  ;;  %v5907_v40 = vld [vmem:[%s9809_s6 + $0x100] sm:$0xff] }
 0x358   : > { %5757 = vmatpush1.bf16.msra.mxu0 %v7951_v41  ;;  %v5911_v41 = vld [vmem:[%s9809_s6 + $0x120] sm:$0xff] }
 0x359   : > { %5758 = vmatprep.subr.bf16.mxu0 %v7956_v59  ;;  %v7687_v59 = vcombine.low %v5899_v0, %v5903_v34  ;;  %v8028_v0 = vld [vmem:[%s9807_s4 + $0x2c4] ss:$8 sps:$4 sm:$0xff]  }
 0x35a   : > { %v5971_v34 = vld [vmem:[%s9809_s6 + $0x300] sm:$0xff] }
 0x35b   : > { %6692 = vmatpush1.bf16.msra.mxu1 %v7687_v59  ;;  %v5983_v59 = vld [vmem:[%s9809_s6 + $0x360] sm:$0xff] }
 0x35c   : > { %5759 = vmatpush1.bf16.msra.mxu0 %v7954_v54  ;;  %v8002_v54 = vld [vmem:[%s9807_s4 + $0x240] ss:$8 sps:$4 sm:$0xff]  }
 0x35d   : > { %5760 = vmatprep.subr.bf16.mxu0 %v7959_v42  ;;  %v7696_v42 = vcombine.high %v5907_v40, %v5911_v41 }
 0x35f   : > { %6693 = vmatprep.subr.bf16.mxu1 %v7696_v42  ;;  %v8029_v42 = vld [vmem:[%s9807_s4 + $0x2d0] ss:$8 sps:$4 sm:$0xff]  }
 0x360   : > { %5761 = vmatpush1.bf16.msra.mxu0 %v7957_v43  ;;  %v8007_v43 = vld [vmem:[%s9807_s4 + $0x254] ss:$8 sps:$4 sm:$0xff]  }
 0x361   : > { %5762 = vmatprep.subr.bf16.mxu0 %v7962_v44  ;;  %v5915_v44 = vld [vmem:[%s9809_s6 + $0x140] sm:$0xff] }
 0x364   : > { %5763 = vmatpush1.bf16.msra.mxu0 %v7960_v46  ;;  %v5919_v46 = vld [vmem:[%s9809_s6 + $0x160] sm:$0xff] }
 0x365   : > { %5764 = vmatprep.subr.bf16.mxu0 %v7965_v47  ;;  %v7695_v47 = vcombine.low %v5907_v40, %v5911_v41  ;;  %v8031_v40 = vld [vmem:[%s9807_s4 + $0x2d4] ss:$8 sps:$4 sm:$0xff]   ;;  %v5979_v41 = vld [vmem:[%s9809_s6 + $0x340] sm:$0xff] }
 0x367   : > { %6694 = vmatpush1.bf16.msra.mxu1 %v7695_v47  ;;  %v5987_v47 = vld [vmem:[%s9809_s6 + $0x380] sm:$0xff] }
 0x368   : > { %5765 = vmatpush1.bf16.msra.mxu0 %v7963_v48  ;;  %v8005_v48 = vld [vmem:[%s9807_s4 + $0x250] ss:$8 sps:$4 sm:$0xff]  }
 0x369   : > { %5766 = vmatprep.subr.bf16.mxu0 %v7968_v50  ;;  %v7704_v50 = vcombine.high %v5915_v44, %v5919_v46 }
 0x36b   : > { %6695 = vmatprep.subr.bf16.mxu1 %v7704_v50  ;;  %v7767_v50 = vcombine.low %v5979_v41, %v5983_v59 }
 0x36c   : > { %5767 = vmatpush1.bf16.msra.mxu0 %v7966_v6  ;;  %v8010_v6 = vld [vmem:[%s9807_s4 + $0x264] ss:$8 sps:$4 sm:$0xff]  }
 0x36d   : > { %5768 = vmatprep.subr.bf16.mxu0 %v7971_v51  ;;  %v5923_v51 = vld [vmem:[%s9809_s6 + $0x180] sm:$0xff] }
 0x370   : > { %5769 = vmatpush1.bf16.msra.mxu0 %v7969_v52  ;;  %v5927_v52 = vld [vmem:[%s9809_s6 + $0x1a0] sm:$0xff] }
 0x371   : > { %5770 = vmatprep.subr.bf16.mxu0 %v7974_v53  ;;  %v7703_v53 = vcombine.low %v5915_v44, %v5919_v46  ;;  %v7768_v44 = vcombine.high %v5979_v41, %v5983_v59  ;;  %v8034_v46 = vld [vmem:[%s9807_s4 + $0x2e4] ss:$8 sps:$4 sm:$0xff]  }
 0x372   : > { %v5876_v59 = vld [vmem:[%s9809_s6 + $0x8] sm:$0xff] }
 0x373   : > { %6696 = vmatpush1.bf16.msra.mxu1 %v7703_v53 }
 0x374   : > { %5771 = vmatpush1.bf16.msra.mxu0 %v7972_v55  ;;  %v8008_v55 = vld [vmem:[%s9807_s4 + $0x260] ss:$8 sps:$4 sm:$0xff]  }
 0x375   : > { %5772 = vmatprep.subr.bf16.mxu0 %v7977_v62  ;;  %v7712_v62 = vcombine.high %v5923_v51, %v5927_v52 }
 0x377   : > { %6697 = vmatprep.subr.bf16.mxu1 %v7712_v62 }
 0x378   : > { %5773 = vmatpush1.bf16.msra.mxu0 %v7975_v63  ;;  %v8013_v63 = vld [vmem:[%s9807_s4 + $0x274] ss:$8 sps:$4 sm:$0xff]  }
 0x379   : > { %5774 = vmatprep.subr.bf16.mxu0 %v7980_v31  ;;  %v5931_v31 = vld [vmem:[%s9809_s6 + $0x1c0] sm:$0xff] }
 0x37c   : > { %5775 = vmatpush1.bf16.msra.mxu0 %v7978_v1  ;;  %v5935_v1 = vld [vmem:[%s9809_s6 + $0x1e0] sm:$0xff] }
 0x37d   : > { %5776 = vmatprep.subr.bf16.mxu0 %v7983_v45  ;;  %v7711_v45 = vcombine.low %v5923_v51, %v5927_v52  ;;  %v7719_v17 = vcombine.low %v5931_v31, %v5935_v1  ;;  %v8037_v52 = vld [vmem:[%s9807_s4 + $0x2f4] ss:$8 sps:$4 sm:$0xff]  }
 0x37f   : > { %6698 = vmatpush1.bf16.msra.mxu1 %v7711_v45 }
 0x380   : > { %5777 = vmatpush1.bf16.msra.mxu0 %v7981_v10  ;;  %v8011_v10 = vld [vmem:[%s9807_s4 + $0x270] ss:$8 sps:$4 sm:$0xff]  }
 0x381   : > { %5778 = vmatprep.subr.bf16.mxu0 %v7986_v3  ;;  %v7720_v3 = vcombine.high %v5931_v31, %v5935_v1  ;;  %v4925_v31 = vpack.c.bf16 %v9146_v5, %v9146_v5  ;;  %v8038_v1 = vld [vmem:[%s9807_s4 + $0x300] ss:$8 sps:$4 sm:$0xff]   ;;  %v8046_v5 = vld [vmem:[%s9807_s4 + $0x324] ss:$8 sps:$4 sm:$0xff]  }
 0x383   : > { %6699 = vmatprep.subr.bf16.mxu1 %v7720_v3  ;;  %v8041_v3 = vld [vmem:[%s9807_s4 + $0x310] ss:$8 sps:$4 sm:$0xff]  }
 0x384   : > { %5779 = vmatpush1.bf16.msra.mxu0 %v7984_v4  ;;  %v8016_v4 = vld [vmem:[%s9807_s4 + $0x284] ss:$8 sps:$4 sm:$0xff]   ;;  %6700 = vmatpush1.bf16.msra.mxu1 %v7719_v17 }
 0x385   : > { %5780 = vmatprep.subr.bf16.mxu0 %v7989_v30  ;;  %v5939_v30 = vld [vmem:[%s9809_s6 + $0x200] sm:$0xff] }
 0x386   : > { %v8052_v17 = vld [vmem:[%s9807_s4 + $0x344] ss:$8 sps:$4 sm:$0xff]  }
 0x388   : > { %5781 = vmatpush1.bf16.msra.mxu0 %v7987_v7  ;;  %v5943_v7 = vld [vmem:[%s9809_s6 + $0x220] sm:$0xff] }
 0x389   : > { %5791 = vmatprep.subr.bf16.mxu0 %v7992_v8  ;;  %v8014_v8 = vld [vmem:[%s9807_s4 + $0x280] ss:$8 sps:$4 sm:$0xff]   ;;  %v7727_v19 = vcombine.low %v5939_v30, %v5943_v7 }
 0x38b   : > { %5783 = vmatmul.mubr.bf16.vlgmr.msra.gmra.mrb[0].mxu0 %v4923_v14  ;;  %v7728_v14 = vcombine.high %v5939_v30, %v5943_v7  ;;  %v8049_v30 = vld [vmem:[%s9807_s4 + $0x334] ss:$8 sps:$4 sm:$0xff]   ;;  %v8047_v7 = vld [vmem:[%s9807_s4 + $0x330] ss:$8 sps:$4 sm:$0xff]  }
 0x38c   : > { %5792 = vmatpush1.bf16.msra.mxu0 %v7990_v15  ;;  %5823 = vmatprep.mubr.bf16.mxu0 %v4926_v35  ;;  %v8019_v15 = vld [vmem:[%s9807_s4 + $0x294] ss:$8 sps:$4 sm:$0xff]   ;;  %v5947_v35 = vld [vmem:[%s9809_s6 + $0x240] sm:$0xff] }
 0x38d   : > { %5793 = vmatprep.subr.bf16.mxu0 %v7995_v18  ;;  %v5951_v18 = vld [vmem:[%s9809_s6 + $0x260] sm:$0xff]  ;;  %6701 = vmatprep.subr.bf16.mxu1 %v7728_v14  ;;  %v8055_v14 = vld [vmem:[%s9807_s4 + $0x354] ss:$8 sps:$4 sm:$0xff]  }
 0x38e   : > { %v7736_v20 = vcombine.high %v5947_v35, %v5951_v18  ;;  %6702 = vmatpush1.bf16.msra.mxu1 %v7727_v19  ;;  %v7735_v23 = vcombine.low %v5947_v35, %v5951_v18  ;;  %v8058_v35 = vld [vmem:[%s9807_s4 + $0x364] ss:$8 sps:$4 sm:$0xff]   ;;  %v8056_v18 = vld [vmem:[%s9807_s4 + $0x360] ss:$8 sps:$4 sm:$0xff]   ;;  %v8061_v19 = vld [vmem:[%s9807_s4 + $0x374] ss:$8 sps:$4 sm:$0xff]  }
 0x390   : > { %5794 = vmatpush1.bf16.msra.mxu0 %v7993_v21  ;;  %v8022_v21 = vld [vmem:[%s9807_s4 + $0x2a4] ss:$8 sps:$4 sm:$0xff]   ;;  %6703 = vmatprep.subr.bf16.mxu1 %v7736_v20 }
 0x391   : > { %5795 = vmatprep.subr.bf16.mxu0 %v7998_v25  ;;  %v8020_v25 = vld [vmem:[%s9807_s4 + $0x2a0] ss:$8 sps:$4 sm:$0xff]   ;;  %v8064_v20 = vld [vmem:[%s9807_s4 + $0x384] ss:$8 sps:$4 sm:$0xff]  }
 0x392   : > { %6704 = vmatpush1.bf16.msra.mxu1 %v7735_v23  ;;  %v8070_v23 = vld [vmem:[%s9807_s4 + $0x3a4] ss:$8 sps:$4 sm:$0xff]  }
 0x393   : > { %6705 = vmatprep.subr.bf16.mxu1 %v7744_v26  ;;  %v8073_v26 = vld [vmem:[%s9807_s4 + $0x3b4] ss:$8 sps:$4 sm:$0xff]  }
 0x394   : > { %5796 = vmatpush1.bf16.msra.mxu0 %v7996_v29  ;;  %v7743_v29 = vcombine.low %v5955_v33, %v5959_v22  ;;  %v8067_v33 = vld [vmem:[%s9807_s4 + $0x394] ss:$8 sps:$4 sm:$0xff]   ;;  %v8065_v22 = vld [vmem:[%s9807_s4 + $0x390] ss:$8 sps:$4 sm:$0xff]  }
 0x395   : > { %5797 = vmatprep.subr.bf16.mxu0 %v8001_v32  ;;  %v7752_v32 = vcombine.high %v5963_v28, %v5967_v39 }
 0x396   : > { %6706 = vmatpush1.bf16.msra.mxu1 %v7743_v29  ;;  %v8079_v29 = vld [vmem:[%s9807_s4 + $0x3d4] ss:$8 sps:$4 sm:$0xff]  }
 0x397   : > { %6707 = vmatprep.subr.bf16.mxu1 %v7752_v32  ;;  %v8082_v32 = vld [vmem:[%s9807_s4 + $0x3e4] ss:$8 sps:$4 sm:$0xff]  }
 0x398   : > { %5798 = vmatpush1.bf16.msra.mxu0 %v7999_v37  ;;  %v7751_v37 = vcombine.low %v5963_v28, %v5967_v39  ;;  %v8076_v28 = vld [vmem:[%s9807_s4 + $0x3c4] ss:$8 sps:$4 sm:$0xff]   ;;  %v8074_v39 = vld [vmem:[%s9807_s4 + $0x3c0] ss:$8 sps:$4 sm:$0xff]  }
 0x399   : > { %5799 = vmatprep.subr.bf16.mxu0 %v8004_v49  ;;  %v7760_v49 = vcombine.high %v5971_v34, %v5975_v36 }
 0x39a   : > { %6708 = vmatpush1.bf16.msra.mxu1 %v7751_v37 }
 0x39b   : > { %6709 = vmatprep.subr.bf16.mxu1 %v7760_v49  ;;  %v5999_v49 = vld [vmem:[%s9809_s6 + $0x3e0] sm:$0xff] }
 0x39c   : > { %5800 = vmatpush1.bf16.msra.mxu0 %v8002_v54  ;;  %v7759_v54 = vcombine.low %v5971_v34, %v5975_v36  ;;  %v8085_v34 = vld [vmem:[%s9807_s4 + $0x3f4] ss:$8 sps:$4 sm:$0xff]   ;;  %v8083_v36 = vld [vmem:[%s9807_s4 + $0x3f0] ss:$8 sps:$4 sm:$0xff]  }
 0x39d   : > { %5801 = vmatprep.subr.bf16.mxu0 %v8007_v43  ;;  %v4896_v43 = vcombine.high %v9136_v2, %v9136_v2  ;;  %v8032_v2 = vld [vmem:[%s9807_s4 + $0x2e0] ss:$8 sps:$4 sm:$0xff]  }
 0x39e   : > { %6710 = vmatpush1.bf16.msra.mxu1 %v7759_v54  ;;  %v5880_v54 = vld [vmem:[%s9809_s6 + $0x28] sm:$0xff] }
 0x39f   : > { %6711 = vmatprep.subr.bf16.mxu1 %v7768_v44  ;;  %v5057_v44 = vld [vmem:[%s9808_s5] sm:$0x3] }
 0x3a0   : > { %5802 = vmatpush1.bf16.msra.mxu0 %v8005_v48  ;;  %v5991_v48 = vld [vmem:[%s9809_s6 + $0x3a0] sm:$0xff] }
 0x3a1   : > { %5803 = vmatprep.subr.bf16.mxu0 %v8010_v6  ;;  %v9341_v6 = vrot.slane %v4896_v43, %v8795_v12  ;;  %v7776_v51 = vcombine.high %v5987_v47, %v5991_v48  ;;  %v7775_v53 = vcombine.low %v5987_v47, %v5991_v48  ;;  %v7665_v43 = vcombine.low %v5876_v59, %v5880_v54 }
 0x3a2   : > { %6712 = vmatpush1.bf16.msra.mxu1 %v7767_v50  ;;  %v5066_v47 = vrot.slane %v5057_v44, %v8913_v11 }
 0x3a3   : > { %v4912_v62 = vcombine.high %v9341_v6, %v9341_v6  ;;  %6713 = vmatprep.subr.bf16.mxu1 %v7776_v51  ;;  %v4927_v37 = vpack.c.bf16 %v9341_v6, %v9341_v6 }
 0x3a4   : > { %5804 = vmatpush1.bf16.msra.mxu0 %v8008_v55  ;;  %v8035_v55 = vld [vmem:[%s9807_s4 + $0x2f0] ss:$8 sps:$4 sm:$0xff]  }
 0x3a5   : > { %5805 = vmatprep.subr.bf16.mxu0 %v8013_v63  ;;  %v8040_v63 = vld [vmem:[%s9807_s4 + $0x304] ss:$8 sps:$4 sm:$0xff]   ;;  %v4928_v45 = vpack.c.bf16 %v4912_v62, %v4912_v62 }
 0x3a6   : > { %6714 = vmatpush1.bf16.msra.mxu1 %v7775_v53  ;;  %v5888_v53 = vld [vmem:[%s9809_s6 + $0x68] sm:$0xff] }
 0x3a8   : > { %5806 = vmatpush1.bf16.msra.mxu0 %v8011_v10  ;;  %v8043_v10 = vld [vmem:[%s9807_s4 + $0x314] ss:$8 sps:$4 sm:$0xff]  }
 0x3a9   : > { %5807 = vmatprep.subr.bf16.mxu0 %v8016_v4  ;;  %v8044_v4 = vld [vmem:[%s9807_s4 + $0x320] ss:$8 sps:$4 sm:$0xff]  }
 0x3ac   : > { %5808 = vmatpush1.bf16.msra.mxu0 %v8014_v8  ;;  %v8050_v8 = vld [vmem:[%s9807_s4 + $0x340] ss:$8 sps:$4 sm:$0xff]  }
 0x3ad   : > { %5809 = vmatprep.subr.bf16.mxu0 %v8019_v15  ;;  %v8053_v15 = vld [vmem:[%s9807_s4 + $0x350] ss:$8 sps:$4 sm:$0xff]  }
 0x3b0   : > { %5810 = vmatpush1.bf16.msra.mxu0 %v8017_v16  ;;  %v8059_v16 = vld [vmem:[%s9807_s4 + $0x370] ss:$8 sps:$4 sm:$0xff]  }
 0x3b1   : > { %5811 = vmatprep.subr.bf16.mxu0 %v8022_v21  ;;  %v8062_v21 = vld [vmem:[%s9807_s4 + $0x380] ss:$8 sps:$4 sm:$0xff]  }
 0x3b4   : > { %5812 = vmatpush1.bf16.msra.mxu0 %v8020_v25  ;;  %v8068_v25 = vld [vmem:[%s9807_s4 + $0x3a0] ss:$8 sps:$4 sm:$0xff]  }
 0x3b5   : > { %5813 = vmatprep.subr.bf16.mxu0 %v8025_v27  ;;  %v8071_v27 = vld [vmem:[%s9807_s4 + $0x3b0] ss:$8 sps:$4 sm:$0xff]  }
 0x3b8   : > { %5814 = vmatpush1.bf16.msra.mxu0 %v8023_v60  ;;  %v8077_v60 = vld [vmem:[%s9807_s4 + $0x3d0] ss:$8 sps:$4 sm:$0xff]  }
 0x3b9   : > { %5815 = vmatprep.subr.bf16.mxu0 %v8028_v0  ;;  %v8080_v0 = vld [vmem:[%s9807_s4 + $0x3e0] ss:$8 sps:$4 sm:$0xff]  }
 0x3bc   : > { %5816 = vmatpush1.bf16.msra.mxu0 %v8026_v38  ;;  %v5995_v38 = vld [vmem:[%s9809_s6 + $0x3c0] sm:$0xff] }
 0x3bd   : > { %5817 = vmatprep.subr.bf16.mxu0 %v8031_v40  ;;  %v7784_v40 = vcombine.high %v5995_v38, %v5999_v49  ;;  %v7783_v41 = vcombine.low %v5995_v38, %v5999_v49  ;;  %v5960_v38 = vld [vmem:[%s9809_s6 + $0x2a8] sm:$0xff] }
 0x3bf   : > { %6715 = vmatprep.subr.bf16.mxu1 %v7784_v40 }
 0x3c0   : > { %5818 = vmatpush1.bf16.msra.mxu0 %v8029_v42  ;;  %6716 = vmatpush1.bf16.msra.mxu1 %v7783_v41  ;;  %v7666_v42 = vcombine.high %v5876_v59, %v5880_v54  ;;  %v5964_v41 = vld [vmem:[%s9809_s6 + $0x2c8] sm:$0xff] }
 0x3c1   : > { %5819 = vmatprep.subr.bf16.mxu0 %v8034_v46  ;;  %v5062_v46 = vrot.slane %v5057_v44, %v8910_v9  ;;  %v5968_v59 = vld [vmem:[%s9809_s6 + $0x2e8] sm:$0xff] }
 0x3c2   : > { %6726 = vmatprep.subr.bf16.mxu1 %v7666_v42  ;;  %v7754_v42 = vcombine.high %v5964_v41, %v5968_v59  ;;  %v5976_v44 = vld [vmem:[%s9809_s6 + $0x328] sm:$0xff] }
 0x3c4   : > { %5820 = vmatpush1.bf16.msra.mxu0 %v8032_v2 }
 0x3c5   : > { %5821 = vmatprep.subr.bf16.mxu0 %v8037_v52  ;;  %v5884_v52 = vld [vmem:[%s9809_s6 + $0x48] sm:$0xff] }
 0x3c8   : > { %5822 = vmatpush1.bf16.msra.mxu0 %v8035_v55 }
 0x3c9   : > { %5832 = vmatprep.subr.bf16.mxu0 %v8040_v63 }
 0x3cb   : > { %5824 = vmatmul.mubr.bf16.vlgmr.msra.gmra.mrb[0].mxu0 %v4925_v31  ;;  %v7674_v31 = vcombine.high %v5884_v52, %v5888_v53 }
 0x3cc   : > { %5833 = vmatpush1.bf16.msra.mxu0 %v8038_v1  ;;  %5864 = vmatprep.mubr.bf16.mxu0 %v4928_v45  ;;  %v5892_v1 = vld [vmem:[%s9809_s6 + $0x88] sm:$0xff] }
 0x3cd   : > { %5834 = vmatprep.subr.bf16.mxu0 %v8043_v10  ;;  %v5896_v45 = vld [vmem:[%s9809_s6 + $0xa8] sm:$0xff]  ;;  %v7673_v10 = vcombine.low %v5884_v52, %v5888_v53 }
 0x3ce   : > { %v5992_v52 = vld [vmem:[%s9809_s6 + $0x3a8] sm:$0xff] }
 0x3d0   : > { %5835 = vmatpush1.bf16.msra.mxu0 %v8041_v3  ;;  %v7682_v3 = vcombine.high %v5892_v1, %v5896_v45 }
 0x3d1   : > { %5836 = vmatprep.subr.bf16.mxu0 %v8046_v5  ;;  %v5900_v5 = vld [vmem:[%s9809_s6 + $0xc8] sm:$0xff] }
 0x3d4   : > { %5837 = vmatpush1.bf16.msra.mxu0 %v8044_v4  ;;  %v5904_v4 = vld [vmem:[%s9809_s6 + $0xe8] sm:$0xff] }
 0x3d5   : > { %5838 = vmatprep.subr.bf16.mxu0 %v8049_v30  ;;  %v7681_v30 = vcombine.low %v5892_v1, %v5896_v45  ;;  %v6000_v1 = vld [vmem:[%s9809_s6 + $0x3e8] sm:$0xff] }
 0x3d8   : > { %5839 = vmatpush1.bf16.msra.mxu0 %v8047_v7  ;;  %v7690_v7 = vcombine.high %v5900_v5, %v5904_v4 }
 0x3d9   : > { %5840 = vmatprep.subr.bf16.mxu0 %v8052_v17  ;;  %v5908_v17 = vld [vmem:[%s9809_s6 + $0x108] sm:$0xff] }
 0x3dc   : > { %5841 = vmatpush1.bf16.msra.mxu0 %v8050_v8  ;;  %v5912_v8 = vld [vmem:[%s9809_s6 + $0x128] sm:$0xff] }
 0x3dd   : > { %5842 = vmatprep.subr.bf16.mxu0 %v8055_v14  ;;  %v7689_v14 = vcombine.low %v5900_v5, %v5904_v4  ;;  %v5881_v5 = vld [vmem:[%s9809_s6 + $0x30] sm:$0xff] }
 0x3e0   : > { %5843 = vmatpush1.bf16.msra.mxu0 %v8053_v15  ;;  %v7698_v15 = vcombine.high %v5908_v17, %v5912_v8 }
 0x3e1   : > { %5844 = vmatprep.subr.bf16.mxu0 %v8058_v35  ;;  %v5916_v35 = vld [vmem:[%s9809_s6 + $0x148] sm:$0xff] }
 0x3e4   : > { %5845 = vmatpush1.bf16.msra.mxu0 %v8056_v18  ;;  %v5920_v18 = vld [vmem:[%s9809_s6 + $0x168] sm:$0xff] }
 0x3e5   : > { %5846 = vmatprep.subr.bf16.mxu0 %v8061_v19  ;;  %v7697_v19 = vcombine.low %v5908_v17, %v5912_v8  ;;  %v5889_v17 = vld [vmem:[%s9809_s6 + $0x70] sm:$0xff] }
 0x3e8   : > { %5847 = vmatpush1.bf16.msra.mxu0 %v8059_v16  ;;  %v7706_v16 = vcombine.high %v5916_v35, %v5920_v18 }
 0x3e9   : > { %5848 = vmatprep.subr.bf16.mxu0 %v8064_v20  ;;  %v5924_v20 = vld [vmem:[%s9809_s6 + $0x188] sm:$0xff] }
 0x3ec   : > { %5849 = vmatpush1.bf16.msra.mxu0 %v8062_v21  ;;  %v5928_v21 = vld [vmem:[%s9809_s6 + $0x1a8] sm:$0xff] }
 0x3ed   : > { %5850 = vmatprep.subr.bf16.mxu0 %v8067_v33  ;;  %v7705_v33 = vcombine.low %v5916_v35, %v5920_v18  ;;  %v5897_v35 = vld [vmem:[%s9809_s6 + $0xb0] sm:$0xff] }
 0x3f0   : > { %5851 = vmatpush1.bf16.msra.mxu0 %v8065_v22  ;;  %v7714_v22 = vcombine.high %v5924_v20, %v5928_v21 }
 0x3f1   : > { %5852 = vmatprep.subr.bf16.mxu0 %v8070_v23  ;;  %v5932_v23 = vld [vmem:[%s9809_s6 + $0x1c8] sm:$0xff] }
 0x3f4   : > { %5853 = vmatpush1.bf16.msra.mxu0 %v8068_v25  ;;  %v5936_v25 = vld [vmem:[%s9809_s6 + $0x1e8] sm:$0xff] }
 0x3f5   : > { %5854 = vmatprep.subr.bf16.mxu0 %v8073_v26  ;;  %v7713_v26 = vcombine.low %v5924_v20, %v5928_v21  ;;  %v5905_v20 = vld [vmem:[%s9809_s6 + $0xf0] sm:$0xff] }
 0x3f8   : > { %5855 = vmatpush1.bf16.msra.mxu0 %v8071_v27  ;;  %v7722_v27 = vcombine.high %v5932_v23, %v5936_v25 }
 0x3f9   : > { %5856 = vmatprep.subr.bf16.mxu0 %v8076_v28  ;;  %v5940_v28 = vld [vmem:[%s9809_s6 + $0x208] sm:$0xff] }
 0x3fc   : > { %5857 = vmatpush1.bf16.msra.mxu0 %v8074_v39  ;;  %v5944_v39 = vld [vmem:[%s9809_s6 + $0x228] sm:$0xff] }
 0x3fd   : > { %5858 = vmatprep.subr.bf16.mxu0 %v8079_v29  ;;  %v7721_v29 = vcombine.low %v5932_v23, %v5936_v25  ;;  %v5913_v23 = vld [vmem:[%s9809_s6 + $0x130] sm:$0xff] }
 0x400   : > { %5859 = vmatpush1.bf16.msra.mxu0 %v8077_v60  ;;  %v7730_v60 = vcombine.high %v5940_v28, %v5944_v39 }
 0x401   : > { %5860 = vmatprep.subr.bf16.mxu0 %v8082_v32  ;;  %v5948_v32 = vld [vmem:[%s9809_s6 + $0x248] sm:$0xff] }
 0x404   : > { %5861 = vmatpush1.bf16.msra.mxu0 %v8080_v0  ;;  %v5952_v0 = vld [vmem:[%s9809_s6 + $0x268] sm:$0xff] }
 0x405   : > { %5862 = vmatprep.subr.bf16.mxu0 %v8085_v34  ;;  %v7729_v34 = vcombine.low %v5940_v28, %v5944_v39  ;;  %v7737_v49 = vcombine.low %v5948_v32, %v5952_v0  ;;  %v5921_v28 = vld [vmem:[%s9809_s6 + $0x170] sm:$0xff] }
 0x408   : > { %5863 = vmatpush1.bf16.msra.mxu0 %v8083_v36  ;;  %v7738_v36 = vcombine.high %v5948_v32, %v5952_v0  ;;  %v5929_v32 = vld [vmem:[%s9809_s6 + $0x1b0] sm:$0xff] }
 0x40b   : > { %5865 = vmatmul.mubr.bf16.vlgmr.msra.gmra.mrb[0].mxu0 %v4927_v37  ;;  %v5956_v37 = vld [vmem:[%s9809_s6 + $0x288] sm:$0xff] }
 0x40c   : > { %v7746_v40 = vcombine.high %v5956_v37, %v5960_v38  ;;  %v7745_v54 = vcombine.low %v5956_v37, %v5960_v38  ;;  %v5937_v37 = vld [vmem:[%s9809_s6 + $0x1f0] sm:$0xff] }
 0x4de   : > { %v5866_v48 = vpop.f32.mrb[0].mxu0 }
 0x4df   : > { %v7860_v50 = vadd.f32 %v5866_v48, %v5062_v46  ;;  %v5868_v2 = vpop.f32.mrb[1].mxu0  ;;  %v7753_v46 = vcombine.low %v5964_v41, %v5968_v59  ;;  %v5980_v48 = vld [vmem:[%s9809_s6 + $0x348] sm:$0xff]  ;;  %v5945_v41 = vld [vmem:[%s9809_s6 + $0x230] sm:$0xff] }
 0x4e0   : > { %v7861_v6 = vadd.f32 %v5868_v2, %v5066_v47  ;;  %v5870_v51 = vpop.f32.mrb[2].mxu0 }
 0x4e1   : > { %v5871_v55 = vpop.f32.mrb[3].mxu0  ;;  %v9476_v63 = vpack.c.bf16 %v7860_v50, %v7860_v50  ;;  %v5984_v50 = vld [vmem:[%s9809_s6 + $0x368] sm:$0xff] }
 0x4e2   : > { %v9474_v62 = vpack.c.bf16 %v7861_v6, %v7861_v6  ;;  %v7770_v6 = vcombine.high %v5980_v48, %v5984_v50  ;;  %v5988_v51 = vld [vmem:[%s9809_s6 + $0x388] sm:$0xff]  ;;  %v7769_v53 = vcombine.low %v5980_v48, %v5984_v50  ;;  %v5961_v48 = vld [vmem:[%s9809_s6 + $0x2b0] sm:$0xff] }
 0x4e3   : > { %v7778_v55 = vcombine.high %v5988_v51, %v5992_v52  ;;  %v7777_v45 = vcombine.low %v5988_v51, %v5992_v52  ;;  %v5969_v51 = vld [vmem:[%s9809_s6 + $0x2f0] sm:$0xff] }
 0x4e4   : > { %6717 = vmatprep.mubr.bf16.mxu1 %v9474_v62 }
 0x4e5   : > { %6718 = vmatmul.mubr.bf16.vlgmr.msra.gmra.mrb[0].mxu1 %v9476_v63 }
 0x4e6   : > { %6727 = vmatpush1.bf16.msra.mxu1 %v7665_v43  ;;  %6758 = vmatprep.mubr.bf16.mxu1 %v9474_v62  ;;  %v5972_v43 = vld [vmem:[%s9809_s6 + $0x308] sm:$0xff] }
 0x4e7   : > { %6728 = vmatprep.subr.bf16.mxu1 %v7674_v31  ;;  %v7762_v47 = vcombine.high %v5972_v43, %v5976_v44  ;;  %v7761_v2 = vcombine.low %v5972_v43, %v5976_v44  ;;  %v5996_v31 = vld [vmem:[%s9809_s6 + $0x3c8] sm:$0xff]  ;;  %v5953_v43 = vld [vmem:[%s9809_s6 + $0x270] sm:$0xff] }
 0x4e8   : > { %v7785_v4 = vcombine.low %v5996_v31, %v6000_v1 }
 0x4ea   : > { %6729 = vmatpush1.bf16.msra.mxu1 %v7673_v10  ;;  %v7786_v10 = vcombine.high %v5996_v31, %v6000_v1  ;;  %v5977_v31 = vld [vmem:[%s9809_s6 + $0x330] sm:$0xff] }
 0x4eb   : > { %6730 = vmatprep.subr.bf16.mxu1 %v7682_v3  ;;  %v5877_v3 = vld [vmem:[%s9809_s6 + $0x10] sm:$0xff] }
 0x4ec   : > { %v7667_v8 = vcombine.low %v5877_v3, %v5881_v5 }
 0x4ee   : > { %6731 = vmatpush1.bf16.msra.mxu1 %v7681_v30  ;;  %v7668_v30 = vcombine.high %v5877_v3, %v5881_v5  ;;  %v5985_v3 = vld [vmem:[%s9809_s6 + $0x370] sm:$0xff] }
 0x4ef   : > { %6732 = vmatprep.subr.bf16.mxu1 %v7690_v7  ;;  %v5885_v7 = vld [vmem:[%s9809_s6 + $0x50] sm:$0xff] }
 0x4f0   : > { %v7675_v18 = vcombine.low %v5885_v7, %v5889_v17 }
 0x4f2   : > { %6733 = vmatpush1.bf16.msra.mxu1 %v7689_v14  ;;  %v7676_v14 = vcombine.high %v5885_v7, %v5889_v17  ;;  %v5993_v7 = vld [vmem:[%s9809_s6 + $0x3b0] sm:$0xff] }
 0x4f3   : > { %6734 = vmatprep.subr.bf16.mxu1 %v7698_v15  ;;  %v5893_v15 = vld [vmem:[%s9809_s6 + $0x90] sm:$0xff] }
 0x4f4   : > { %v7683_v21 = vcombine.low %v5893_v15, %v5897_v35 }
 0x4f6   : > { %6735 = vmatpush1.bf16.msra.mxu1 %v7697_v19  ;;  %v7684_v19 = vcombine.high %v5893_v15, %v5897_v35  ;;  %v6001_v15 = vld [vmem:[%s9809_s6 + $0x3f0] sm:$0xff] }
 0x4f7   : > { %6736 = vmatprep.subr.bf16.mxu1 %v7706_v16  ;;  %v5901_v16 = vld [vmem:[%s9809_s6 + $0xd0] sm:$0xff] }
 0x4f8   : > { %v7691_v25 = vcombine.low %v5901_v16, %v5905_v20 }
 0x4fa   : > { %6737 = vmatpush1.bf16.msra.mxu1 %v7705_v33  ;;  %v7692_v33 = vcombine.high %v5901_v16, %v5905_v20  ;;  %v5882_v16 = vld [vmem:[%s9809_s6 + $0x38] sm:$0xff] }
 0x4fb   : > { %6738 = vmatprep.subr.bf16.mxu1 %v7714_v22  ;;  %v5909_v22 = vld [vmem:[%s9809_s6 + $0x110] sm:$0xff] }
 0x4fc   : > { %v7699_v39 = vcombine.low %v5909_v22, %v5913_v23 }
 0x4fe   : > { %6739 = vmatpush1.bf16.msra.mxu1 %v7713_v26  ;;  %v7700_v26 = vcombine.high %v5909_v22, %v5913_v23  ;;  %v5890_v22 = vld [vmem:[%s9809_s6 + $0x78] sm:$0xff] }
 0x4ff   : > { %6740 = vmatprep.subr.bf16.mxu1 %v7722_v27  ;;  %v5917_v27 = vld [vmem:[%s9809_s6 + $0x150] sm:$0xff] }
 0x500   : > { %v7707_v0 = vcombine.low %v5917_v27, %v5921_v28 }
 0x502   : > { %6741 = vmatpush1.bf16.msra.mxu1 %v7721_v29  ;;  %v7708_v29 = vcombine.high %v5917_v27, %v5921_v28  ;;  %v5898_v27 = vld [vmem:[%s9809_s6 + $0xb8] sm:$0xff] }
 0x503   : > { %6742 = vmatprep.subr.bf16.mxu1 %v7730_v60  ;;  %v5925_v60 = vld [vmem:[%s9809_s6 + $0x190] sm:$0xff] }
 0x504   : > { %v7715_v38 = vcombine.low %v5925_v60, %v5929_v32 }
 0x506   : > { %6743 = vmatpush1.bf16.msra.mxu1 %v7729_v34  ;;  %v7716_v34 = vcombine.high %v5925_v60, %v5929_v32  ;;  %v5906_v60 = vld [vmem:[%s9809_s6 + $0xf8] sm:$0xff] }
 0x507   : > { %6744 = vmatprep.subr.bf16.mxu1 %v7738_v36  ;;  %v5933_v36 = vld [vmem:[%s9809_s6 + $0x1d0] sm:$0xff] }
 0x508   : > { %v7723_v59 = vcombine.low %v5933_v36, %v5937_v37 }
 0x50a   : > { %6745 = vmatpush1.bf16.msra.mxu1 %v7737_v49  ;;  %v7724_v49 = vcombine.high %v5933_v36, %v5937_v37 }
 0x50b   : > { %6746 = vmatprep.subr.bf16.mxu1 %v7746_v40  ;;  %v5941_v40 = vld [vmem:[%s9809_s6 + $0x210] sm:$0xff] }
 0x50c   : > { %v7731_v44 = vcombine.low %v5941_v40, %v5945_v41 }
 0x50e   : > { %6747 = vmatpush1.bf16.msra.mxu1 %v7745_v54  ;;  %v7732_v54 = vcombine.high %v5941_v40, %v5945_v41 }
 0x50f   : > { %6748 = vmatprep.subr.bf16.mxu1 %v7754_v42  ;;  %v5949_v42 = vld [vmem:[%s9809_s6 + $0x250] sm:$0xff] }
 0x510   : > { %v7739_v50 = vcombine.low %v5949_v42, %v5953_v43 }
 0x512   : > { %6749 = vmatpush1.bf16.msra.mxu1 %v7753_v46  ;;  %v7740_v46 = vcombine.high %v5949_v42, %v5953_v43 }
 0x513   : > { %6750 = vmatprep.subr.bf16.mxu1 %v7762_v47  ;;  %v5957_v47 = vld [vmem:[%s9809_s6 + $0x290] sm:$0xff] }
 0x514   : > { %v7747_v52 = vcombine.low %v5957_v47, %v5961_v48 }
 0x516   : > { %6751 = vmatpush1.bf16.msra.mxu1 %v7761_v2  ;;  %v7748_v2 = vcombine.high %v5957_v47, %v5961_v48 }
 0x517   : > { %6752 = vmatprep.subr.bf16.mxu1 %v7770_v6  ;;  %v5965_v6 = vld [vmem:[%s9809_s6 + $0x2d0] sm:$0xff] }
 0x518   : > { %v7755_v1 = vcombine.low %v5965_v6, %v5969_v51 }
 0x51a   : > { %6753 = vmatpush1.bf16.msra.mxu1 %v7769_v53  ;;  %v7756_v53 = vcombine.high %v5965_v6, %v5969_v51 }
 0x51b   : > { %6754 = vmatprep.subr.bf16.mxu1 %v7778_v55  ;;  %v5973_v55 = vld [vmem:[%s9809_s6 + $0x310] sm:$0xff] }
 0x51c   : > { %v7763_v5 = vcombine.low %v5973_v55, %v5977_v31 }
 0x51e   : > { %6755 = vmatpush1.bf16.msra.mxu1 %v7777_v45  ;;  %v7764_v45 = vcombine.high %v5973_v55, %v5977_v31 }
 0x51f   : > { %6756 = vmatprep.subr.bf16.mxu1 %v7786_v10  ;;  %v5981_v10 = vld [vmem:[%s9809_s6 + $0x350] sm:$0xff] }
 0x520   : > { %v7771_v17 = vcombine.low %v5981_v10, %v5985_v3 }
 0x522   : > { %6757 = vmatpush1.bf16.msra.mxu1 %v7785_v4  ;;  %v7772_v4 = vcombine.high %v5981_v10, %v5985_v3 }
 0x523   : > { %6767 = vmatprep.subr.bf16.mxu1 %v7668_v30  ;;  %v5989_v30 = vld [vmem:[%s9809_s6 + $0x390] sm:$0xff] }
 0x524   : > { %v7779_v35 = vcombine.low %v5989_v30, %v5993_v7 }
 0x525   : > { %6759 = vmatmul.mubr.bf16.vlgmr.msra.gmra.mrb[4].mxu1 %v9476_v63 }
 0x526   : > { %6768 = vmatpush1.bf16.msra.mxu1 %v7667_v8  ;;  %6799 = vmatprep.mubr.bf16.mxu1 %v9474_v62  ;;  %v7780_v8 = vcombine.high %v5989_v30, %v5993_v7 }
 0x527   : > { %6769 = vmatprep.subr.bf16.mxu1 %v7676_v14  ;;  %v5997_v14 = vld [vmem:[%s9809_s6 + $0x3d0] sm:$0xff] }
 0x528   : > { %v7787_v20 = vcombine.low %v5997_v14, %v6001_v15 }
 0x52a   : > { %6770 = vmatpush1.bf16.msra.mxu1 %v7675_v18  ;;  %v7788_v18 = vcombine.high %v5997_v14, %v6001_v15 }
 0x52b   : > { %6771 = vmatprep.subr.bf16.mxu1 %v7684_v19  ;;  %v5878_v19 = vld [vmem:[%s9809_s6 + $0x18] sm:$0xff] }
 0x52c   : > { %v7669_v23 = vcombine.low %v5878_v19, %v5882_v16 }
 0x52e   : > { %6772 = vmatpush1.bf16.msra.mxu1 %v7683_v21  ;;  %v7670_v21 = vcombine.high %v5878_v19, %v5882_v16 }
 0x52f   : > { %6773 = vmatprep.subr.bf16.mxu1 %v7692_v33  ;;  %v5886_v33 = vld [vmem:[%s9809_s6 + $0x58] sm:$0xff] }
 0x530   : > { %v7677_v28 = vcombine.low %v5886_v33, %v5890_v22 }
 0x532   : > { %6774 = vmatpush1.bf16.msra.mxu1 %v7691_v25  ;;  %v7678_v25 = vcombine.high %v5886_v33, %v5890_v22 }
 0x533   : > { %6775 = vmatprep.subr.bf16.mxu1 %v7700_v26  ;;  %v5894_v26 = vld [vmem:[%s9809_s6 + $0x98] sm:$0xff] }
 0x534   : > { %v7685_v32 = vcombine.low %v5894_v26, %v5898_v27 }
 0x536   : > { %6776 = vmatpush1.bf16.msra.mxu1 %v7699_v39  ;;  %v7686_v39 = vcombine.high %v5894_v26, %v5898_v27 }
 0x537   : > { %6777 = vmatprep.subr.bf16.mxu1 %v7708_v29  ;;  %v5902_v29 = vld [vmem:[%s9809_s6 + $0xd8] sm:$0xff] }
 0x538   : > { %v7693_v36 = vcombine.low %v5902_v29, %v5906_v60 }
 0x53a   : > { %6778 = vmatpush1.bf16.msra.mxu1 %v7707_v0  ;;  %v7694_v0 = vcombine.high %v5902_v29, %v5906_v60 }
 0x53b   : > { %6779 = vmatprep.subr.bf16.mxu1 %v7716_v34  ;;  %v5910_v34 = vld [vmem:[%s9809_s6 + $0x118] sm:$0xff] }
 0x53e   : > { %6780 = vmatpush1.bf16.msra.mxu1 %v7715_v38  ;;  %v5918_v38 = vld [vmem:[%s9809_s6 + $0x158] sm:$0xff] }
 0x53f   : > { %6781 = vmatprep.subr.bf16.mxu1 %v7724_v49  ;;  %v5922_v49 = vld [vmem:[%s9809_s6 + $0x178] sm:$0xff] }
 0x540   : > { %v7710_v41 = vcombine.high %v5918_v38, %v5922_v49  ;;  %v7709_v42 = vcombine.low %v5918_v38, %v5922_v49 }
 0x542   : > { %6782 = vmatpush1.bf16.msra.mxu1 %v7723_v59  ;;  %v5926_v59 = vld [vmem:[%s9809_s6 + $0x198] sm:$0xff] }
 0x543   : > { %6783 = vmatprep.subr.bf16.mxu1 %v7732_v54  ;;  %v5930_v54 = vld [vmem:[%s9809_s6 + $0x1b8] sm:$0xff] }
 0x544   : > { %v7718_v43 = vcombine.high %v5926_v59, %v5930_v54  ;;  %v7717_v47 = vcombine.low %v5926_v59, %v5930_v54 }
 0x546   : > { %6784 = vmatpush1.bf16.msra.mxu1 %v7731_v44  ;;  %v5934_v44 = vld [vmem:[%s9809_s6 + $0x1d8] sm:$0xff] }
 0x547   : > { %6785 = vmatprep.subr.bf16.mxu1 %v7740_v46  ;;  %v5938_v46 = vld [vmem:[%s9809_s6 + $0x1f8] sm:$0xff] }
 0x548   : > { %v7726_v48 = vcombine.high %v5934_v44, %v5938_v46  ;;  %v7725_v6 = vcombine.low %v5934_v44, %v5938_v46 }
 0x54a   : > { %6786 = vmatpush1.bf16.msra.mxu1 %v7739_v50  ;;  %v5942_v50 = vld [vmem:[%s9809_s6 + $0x218] sm:$0xff] }
 0x54b   : > { %6787 = vmatprep.subr.bf16.mxu1 %v7748_v2  ;;  %v5946_v2 = vld [vmem:[%s9809_s6 + $0x238] sm:$0xff] }
 0x54c   : > { %v7734_v51 = vcombine.high %v5942_v50, %v5946_v2  ;;  %v7733_v55 = vcombine.low %v5942_v50, %v5946_v2 }
 0x54e   : > { %6788 = vmatpush1.bf16.msra.mxu1 %v7747_v52  ;;  %v5950_v52 = vld [vmem:[%s9809_s6 + $0x258] sm:$0xff] }
 0x54f   : > { %6789 = vmatprep.subr.bf16.mxu1 %v7756_v53  ;;  %v5954_v53 = vld [vmem:[%s9809_s6 + $0x278] sm:$0xff] }
 0x550   : > { %v7742_v31 = vcombine.high %v5950_v52, %v5954_v53  ;;  %v7741_v10 = vcombine.low %v5950_v52, %v5954_v53 }
 0x552   : > { %6790 = vmatpush1.bf16.msra.mxu1 %v7755_v1  ;;  %v5958_v1 = vld [vmem:[%s9809_s6 + $0x298] sm:$0xff] }
 0x553   : > { %6791 = vmatprep.subr.bf16.mxu1 %v7764_v45  ;;  %v5962_v45 = vld [vmem:[%s9809_s6 + $0x2b8] sm:$0xff] }
 0x554   : > { %v7750_v3 = vcombine.high %v5958_v1, %v5962_v45  ;;  %v7749_v30 = vcombine.low %v5958_v1, %v5962_v45 }
 0x556   : > { %6792 = vmatpush1.bf16.msra.mxu1 %v7763_v5  ;;  %v5966_v5 = vld [vmem:[%s9809_s6 + $0x2d8] sm:$0xff] }
 0x557   : > { %6793 = vmatprep.subr.bf16.mxu1 %v7772_v4  ;;  %v5970_v4 = vld [vmem:[%s9809_s6 + $0x2f8] sm:$0xff] }
 0x558   : > { %v7758_v7 = vcombine.high %v5966_v5, %v5970_v4  ;;  %v7757_v14 = vcombine.low %v5966_v5, %v5970_v4 }
 0x55a   : > { %6794 = vmatpush1.bf16.msra.mxu1 %v7771_v17  ;;  %v5974_v17 = vld [vmem:[%s9809_s6 + $0x318] sm:$0xff] }
 0x55b   : > { %6795 = vmatprep.subr.bf16.mxu1 %v7780_v8  ;;  %v5978_v8 = vld [vmem:[%s9809_s6 + $0x338] sm:$0xff] }
 0x55c   : > { %v7766_v15 = vcombine.high %v5974_v17, %v5978_v8  ;;  %v7765_v19 = vcombine.low %v5974_v17, %v5978_v8 }
 0x55e   : > { %6796 = vmatpush1.bf16.msra.mxu1 %v7779_v35  ;;  %v5982_v35 = vld [vmem:[%s9809_s6 + $0x358] sm:$0xff] }
 0x55f   : > { %6797 = vmatprep.subr.bf16.mxu1 %v7788_v18  ;;  %v5986_v18 = vld [vmem:[%s9809_s6 + $0x378] sm:$0xff] }
 0x560   : > { %v7774_v16 = vcombine.high %v5982_v35, %v5986_v18  ;;  %v7773_v33 = vcombine.low %v5982_v35, %v5986_v18 }
 0x562   : > { %6798 = vmatpush1.bf16.msra.mxu1 %v7787_v20  ;;  %v5990_v20 = vld [vmem:[%s9809_s6 + $0x398] sm:$0xff] }
 0x563   : > { %6808 = vmatprep.subr.bf16.mxu1 %v7670_v21  ;;  %v5994_v21 = vld [vmem:[%s9809_s6 + $0x3b8] sm:$0xff] }
 0x564   : > { %v7782_v22 = vcombine.high %v5990_v20, %v5994_v21  ;;  %v7781_v26 = vcombine.low %v5990_v20, %v5994_v21 }
 0x565   : > { %6800 = vmatmul.mubr.bf16.vlgmr.msra.gmra.mrb[8].mxu1 %v9476_v63 }
 0x566   : > { %6809 = vmatpush1.bf16.msra.mxu1 %v7669_v23  ;;  %6840 = vmatprep.mubr.bf16.mxu1 %v9474_v62  ;;  %v5914_v62 = vld [vmem:[%s9809_s6 + $0x138] sm:$0xff] }
 0x567   : > { %6810 = vmatprep.subr.bf16.mxu1 %v7678_v25  ;;  %v7702_v37 = vcombine.high %v5910_v34, %v5914_v62  ;;  %v7701_v40 = vcombine.low %v5910_v34, %v5914_v62  ;;  %v5998_v23 = vld [vmem:[%s9809_s6 + $0x3d8] sm:$0xff] }
 0x568   : > { %v6002_v25 = vld [vmem:[%s9809_s6 + $0x3f8] sm:$0xff] }
 0x569   : > { %v7790_v27 = vcombine.high %v5998_v23, %v6002_v25 }
 0x56a   : > { %6811 = vmatpush1.bf16.msra.mxu1 %v7677_v28  ;;  %v7789_v28 = vcombine.low %v5998_v23, %v6002_v25 }
 0x56b   : > { %6812 = vmatprep.subr.bf16.mxu1 %v7686_v39  ;;  %v6003_v39 = vld [vmem:[%s9810_s7] sm:$0xff] }
 0x56c   : > { %v6008_v29 = vrot.slane %v6003_v39, %v8910_v9  ;;  %v6012_v60 = vrot.slane %v6003_v39, %v8913_v11  ;;  %v6016_v49 = vrot.slane %v6003_v39, %v8916_v24  ;;  %v6032_v53 = vrot.slane %v6003_v39, %v9001_v58 }
 0x56e   : > { %6813 = vmatpush1.bf16.msra.mxu1 %v7685_v32 }
 0x56f   : > { %6814 = vmatprep.subr.bf16.mxu1 %v7694_v0 }
 0x572   : > { %6815 = vmatpush1.bf16.msra.mxu1 %v7693_v36 }
 0x573   : > { %6816 = vmatprep.subr.bf16.mxu1 %v7702_v37 }
 0x576   : > { %6817 = vmatpush1.bf16.msra.mxu1 %v7701_v40  ;;  %v6020_v40 = vrot.slane %v6003_v39, %v8919_v13 }
 0x577   : > { %6818 = vmatprep.subr.bf16.mxu1 %v7710_v41 }
 0x57a   : > { %6819 = vmatpush1.bf16.msra.mxu1 %v7709_v42 }
 0x57b   : > { %6820 = vmatprep.subr.bf16.mxu1 %v7718_v43 }
 0x57e   : > { %6821 = vmatpush1.bf16.msra.mxu1 %v7717_v47  ;;  %v6024_v47 = vrot.slane %v6003_v39, %v8995_v56 }
 0x57f   : > { %6822 = vmatprep.subr.bf16.mxu1 %v7726_v48  ;;  %v6028_v48 = vrot.slane %v6003_v39, %v8998_v57 }
 0x582   : > { %6823 = vmatpush1.bf16.msra.mxu1 %v7725_v6 }
 0x583   : > { %6824 = vmatprep.subr.bf16.mxu1 %v7734_v51 }
 0x586   : > { %6825 = vmatpush1.bf16.msra.mxu1 %v7733_v55  ;;  %v6036_v55 = vrot.slane %v6003_v39, %v9004_v61 }
 0x587   : > { %6826 = vmatprep.subr.bf16.mxu1 %v7742_v31 }
 0x58a   : > { %6827 = vmatpush1.bf16.msra.mxu1 %v7741_v10 }
 0x58b   : > { %6828 = vmatprep.subr.bf16.mxu1 %v7750_v3 }
 0x58e   : > { %6829 = vmatpush1.bf16.msra.mxu1 %v7749_v30 }
 0x58f   : > { %6830 = vmatprep.subr.bf16.mxu1 %v7758_v7 }
 0x592   : > { %6831 = vmatpush1.bf16.msra.mxu1 %v7757_v14 }
 0x593   : > { %6832 = vmatprep.subr.bf16.mxu1 %v7766_v15 }
 0x596   : > { %6833 = vmatpush1.bf16.msra.mxu1 %v7765_v19 }
 0x597   : > { %6834 = vmatprep.subr.bf16.mxu1 %v7774_v16 }
 0x59a   : > { %6835 = vmatpush1.bf16.msra.mxu1 %v7773_v33 }
 0x59b   : > { %6836 = vmatprep.subr.bf16.mxu1 %v7782_v22 }
 0x59e   : > { %6837 = vmatpush1.bf16.msra.mxu1 %v7781_v26 }
 0x59f   : > { %6838 = vmatprep.subr.bf16.mxu1 %v7790_v27 }
 0x5a2   : > { %6839 = vmatpush1.bf16.msra.mxu1 %v7789_v28 }
 0x5a5   : > { %6841 = vmatmul.mubr.bf16.vlgmr.msra.gmra.mrb[12].mxu1 %v9476_v63 }
 0x5b8   : > { %v6719_v32 = vpop.f32.mrb[0].mxu1 }
 0x5b9   : > { %v6720_v0 = vadd.f32 %v6719_v32, %v6008_v29  ;;  %v6721_v34 = vpop.f32.mrb[1].mxu1 }
 0x5ba   : > { %v6722_v62 = vadd.f32 %v6721_v34, %v6012_v60  ;;  %v6723_v36 = vpop.f32.mrb[2].mxu1 }
 0x5bb   : > { %v6724_v37 = vpop.f32.mrb[3].mxu1 }
 0x5bc   : > { %v6857_v38 = vcombine.low %v6720_v0, %v6722_v62 }
 0x5be   : > { %v6865_v11 = vrot.slane %v6857_v38, %v8795_v12 }
 0x5f8   : > { %v6760_v63 = vpop.f32.mrb[4].mxu1 }
 0x5f9   : > { %v6761_v41 = vadd.f32 %v6760_v63, %v6016_v49  ;;  %v6762_v59 = vpop.f32.mrb[5].mxu1 }
 0x5fa   : > { %v6763_v54 = vadd.f32 %v6762_v59, %v6020_v40  ;;  %v6764_v42 = vpop.f32.mrb[6].mxu1 }
 0x5fb   : > { %v6765_v43 = vpop.f32.mrb[7].mxu1 }
 0x5fc   : > { %v6858_v9 = vcombine.low %v6761_v41, %v6763_v54 }
 0x5fe   : > { %v6872_v44 = vrot.slane %v6858_v9, %v8795_v12 }
 0x600   : > { %v6873_v46 = vcombine.low %v6865_v11, %v6872_v44 }
 0x602   : > { %6893 = vst [vmem:[#allocation3] sm:$0xff] %v6873_v46 }
 0x638   : > { %v6801_v24 = vpop.f32.mrb[8].mxu1 }
 0x639   : > { %v6802_v50 = vadd.f32 %v6801_v24, %v6024_v47  ;;  %v6803_v13 = vpop.f32.mrb[9].mxu1 }
 0x63a   : > { %v6804_v2 = vadd.f32 %v6803_v13, %v6028_v48  ;;  %v6805_v6 = vpop.f32.mrb[10].mxu1 }
 0x63b   : > { %v6806_v51 = vpop.f32.mrb[11].mxu1 }
 0x63c   : > { %v6874_v52 = vcombine.low %v6802_v50, %v6804_v2 }
 0x63e   : > { %v6882_v57 = vrot.slane %v6874_v52, %v8795_v12 }
 0x678   : > { %v6842_v31 = vpop.f32.mrb[12].mxu1 }
 0x679   : > { %v6843_v1 = vadd.f32 %v6842_v31, %v6032_v53  ;;  %v6844_v45 = vpop.f32.mrb[13].mxu1 }
 0x67a   : > { %v6845_v10 = vadd.f32 %v6844_v45, %v6036_v55  ;;  %v6846_v3 = vpop.f32.mrb[14].mxu1 }
 0x67b   : > { %v6847_v5 = vpop.f32.mrb[15].mxu1 }
 0x67c   : > { %v6875_v56 = vcombine.low %v6843_v1, %v6845_v10 }
 0x67e   : > { %v6889_v4 = vrot.slane %v6875_v56, %v8795_v12 }
 0x680   : > { %v6890_v30 = vcombine.low %v6882_v57, %v6889_v4 }
 0x682   : > { %6894 = vst [vmem:[#allocation3 + $0x8] sm:$0xff] %v6890_v30 }
 0x683 PF: > { %p7878_p7 = scmp.eq.s32.totalorder %s8180_s28, 3  ;;  %s8128_s16 = smov [#allocation3]  }
 0x684   : > { %s6902_s17 = sshll.u32 %s8128_s16, 4  ;;  %s6903_s17 = int_to_ptr.vmem [resolvable:$true] %s6902_s17 }
 0x685   : > { %s8086_s18 = scalar_lea.vmem %s6903_s17, 256  ;;  %p8093_p11 = scmp.lt.s32.totalorder %s6903_s17, %s6903_s17 }
 0x686   : > { %p8087_p8 = scmp.ne.s32.totalorder %s6903_s17, %s8086_s18  ;;  %p8094_p12 = scmp.lt.s32.totalorder %s8086_s18, %s8086_s18 }
 0x688   : > { %p8088_p9 = pnand %p8087_p8, %p7878_p7  ;;  %p8095_p13 = por %p8094_p12, %p8093_p11 }
 0x68a   : > { %p8089_p10 = pneg %p8088_p9 }
 0x68c   : > { %p8096_p0 = pnand %p8095_p13, %p8089_p10 }
 0x68e   : > { %8099 = shalt.err (!%p8096_p0)
}
 0x68f   : > { %s8100_s21 = scalar_lea.hbm %s9811_s8, 256 }
 0x690   : > { %p8101_p1 = scmp.ne.s32.totalorder %s9811_s8, %s8100_s21  ;;  %p8106_p4 = scmp.lt.u32.totalorder %s8100_s21, %s9811_s8 }
 0x692   : > { %p8102_p2 = pnand %p8101_p1, %p7878_p7 }
 0x694   : > { %p8103_p3 = pneg %p8102_p2 }
 0x696   : > { %p8108_p5 = pnand %p8106_p4, %p8103_p3 }
 0x698   : > { %8111 = shalt.err (!%p8108_p5)
}
 0x699   : > { %7875 = dma.vmem_to_hbm [thread:$0]  (%p7878_p7), %s6903_s17, 256, %s9811_s8, [#allocation4]  }
 0x69a   : > { %8117 = dma.done.wait (%p7878_p7), [#allocation4], 256  }
 0x69b   : > { %8119 = vsyncadd (%p7878_p7), [#allocation4], 4294967040 }
 0x69c PF: > { %s19_s27 = sadd.s32 1, %s8122_s27  }
 0x69d   : > { %p16_p6 = scmp.ge.s32.totalorder %s19_s27, 6  }
 0x69f   :  { %18 = sbr.rel (!%p16_p6) target bundleno = 1 (0x1), region = 90 }
 0x6a6   :  { %6915 = vsyncpa [#allocation4], 1 }
 0x6a7   :  { %6917 = vsyncpa [#allocation4 + $0x1], 1 }

</bundles_post_ra>
